<compile_context>
chip_gen: v5e
topology: v5e:2x2
jax: 0.10.0
libtpu: 0.0.40
codegen_flags: <defaults>
</compile_context>

<pallas_src>
import functools

import jax
import jax.numpy as jnp
from jax.experimental import pallas as pl
from jax.experimental.pallas import tpu as pltpu

_BN_EPS = 1e-5
_BN_SCALE = 1.0 / (1.0 + _BN_EPS) ** 0.5
CPAD = 128                       # lane-padded channel width (inputs + outputs)
_P = 2                           # spatial halo (enough for the 5x5 conv)
_NEG = -1e30                     # MaxPool2d pads with -inf; -1e30 is equivalent
_VMEM_LIMIT = 32 * 1024 * 1024   # within v7x's 64 MiB physical VMEM


def _round_up(x, m):
    return ((x + m - 1) // m) * m


# ----------------------------------------------------------------------------
# the single fused kernel (one image / grid step)
# ----------------------------------------------------------------------------
def _inception_kernel(x_ref, m_ref, wred_ref, sred_ref, bred_ref, w1_ref,
                      wp_ref, wtaps_ref, sout_ref, bout_ref, o_ref,
                      *, H, W, HP, WP):
    x = x_ref[0]                              # (HP*WP, 128) bf16, halo-padded
    mask = m_ref[...]                         # (HP*WP, 128) f32, 1 = interior

    # ---- stage 1: fused 1x1 reduces (r3 | r5 on lanes) + BN + ReLU ----------
    r35 = jnp.dot(x, wred_ref[...], preferred_element_type=jnp.float32)
    r35 = jnp.maximum(r35 * sred_ref[...] + bred_ref[...], 0.0)
    r35 = (r35 * mask).astype(jnp.bfloat16)   # zero halo == conv zero padding
    r35_img = r35.reshape(HP, WP, CPAD)

    x_img = x.reshape(HP, WP, CPAD)
    x_int = x_img[_P:_P + H, _P:_P + W, :].reshape(H * W, CPAD)

    # ---- branch1: 1x1 conv on the interior rows -----------------------------
    acc = jnp.dot(x_int, w1_ref[...], preferred_element_type=jnp.float32)

    # ---- branch4: 3x3 max-pool (pad = -inf) fused with its 1x1 conv ---------
    neg = jnp.asarray(_NEG, dtype=x.dtype)
    xp = jnp.where(mask > 0.0, x, neg).reshape(HP, WP, CPAD)
    taps = [xp[di:di + H, dj:dj + W, :] for di in (1, 2, 3) for dj in (1, 2, 3)]
    while len(taps) > 1:                      # pairwise tree max (short dep chain)
        nxt = [jnp.maximum(taps[i], taps[i + 1])
               for i in range(0, len(taps) - 1, 2)]
        if len(taps) % 2:
            nxt.append(taps[-1])
        taps = nxt
    pooled = taps[0].reshape(H * W, CPAD)
    acc = acc + jnp.dot(pooled, wp_ref[...], preferred_element_type=jnp.float32)

    # ---- branch2 (3x3) + branch3 (5x5): one 25-tap direct conv --------------
    # block-packed weights: r3 rows -> branch2 cols, r5 rows -> branch3 cols
    t = 0
    for dy in range(5):
        for dx in range(5):
            tap = r35_img[dy:dy + H, dx:dx + W, :].reshape(H * W, CPAD)
            acc = acc + jnp.dot(tap, wtaps_ref[t],
                                preferred_element_type=jnp.float32)
            t += 1

    # ---- fused BN + ReLU epilogue for all four branches (disjoint columns) --
    o_ref[0] = jnp.maximum(acc * sout_ref[...] + bout_ref[...], 0.0)


# ----------------------------------------------------------------------------
# parameters (synthetic, deterministic); Conv+BN folded, block-packed to 128
# ----------------------------------------------------------------------------
class _KeyGen:
    def __init__(self, seed):
        self.key = jax.random.PRNGKey(seed)

    def __call__(self):
        self.key, sub = jax.random.split(self.key)
        return sub


def init_params(seed, in_ch, out1, red3, out3, red5, out5, outp):
    assert in_ch <= CPAD and out1 + out3 + out5 + outp <= CPAD
    kg = _KeyGen(seed)
    f32 = jnp.float32

    def he(shape, fan_in):
        return jax.random.normal(kg(), shape, f32) * (2.0 / fan_in) ** 0.5

    def bias(n):
        return jax.random.normal(kg(), (n,), f32) * 0.01

    o1, o2, o3, o4 = 0, out1, out1 + out3, out1 + out3 + out5

    # stage-1 packed reduces: r3 -> cols 0:red3, r5 -> cols red3:red3+red5
    w_r3, b_r3 = he((in_ch, red3), in_ch), bias(red3)
    w_r5, b_r5 = he((in_ch, red5), in_ch), bias(red5)
    w_red = jnp.zeros((CPAD, CPAD), f32)
    w_red = w_red.at[:in_ch, 0:red3].set(w_r3)
    w_red = w_red.at[:in_ch, red3:red3 + red5].set(w_r5)
    s_red = jnp.zeros((1, CPAD), f32).at[0, 0:red3 + red5].set(_BN_SCALE)
    b_red = jnp.zeros((1, CPAD), f32)
    b_red = b_red.at[0, 0:red3].set(b_r3 * _BN_SCALE)
    b_red = b_red.at[0, red3:red3 + red5].set(b_r5 * _BN_SCALE)

    # branch1 1x1 -> output cols o1:o1+out1
    w1, b1 = he((in_ch, out1), in_ch), bias(out1)
    w_b1 = jnp.zeros((CPAD, CPAD), f32).at[:in_ch, o1:o1 + out1].set(w1)

    # branch4 1x1 (after pool) -> output cols o4:o4+outp
    w4, b4 = he((in_ch, outp), in_ch), bias(outp)
    w_pool = jnp.zeros((CPAD, CPAD), f32).at[:in_ch, o4:o4 + outp].set(w4)

    # branch2 3x3 + branch3 5x5 packed into 25 tap matrices
    w3, b3 = he((3, 3, red3, out3), 9 * red3), bias(out3)
    w5, b5 = he((5, 5, red5, out5), 25 * red5), bias(out5)
    w_taps = jnp.zeros((25, CPAD, CPAD), f32)
    for dy in range(5):
        for dx in range(5):
            t = dy * 5 + dx
            w_taps = w_taps.at[t, red3:red3 + red5, o3:o3 + out5].set(w5[dy, dx])
            if 1 <= dy <= 3 and 1 <= dx <= 3:
                w_taps = w_taps.at[t, 0:red3, o2:o2 + out3].set(w3[dy - 1, dx - 1])

    # per-column BN scale / (conv-bias folded) bias for the final epilogue
    s_out = jnp.zeros((1, CPAD), f32)
    b_out = jnp.zeros((1, CPAD), f32)
    for off, n, bb in ((o1, out1, b1), (o2, out3, b3), (o3, out5, b5),
                       (o4, outp, b4)):
        s_out = s_out.at[0, off:off + n].set(_BN_SCALE)
        b_out = b_out.at[0, off:off + n].set(bb * _BN_SCALE)

    return {
        "w_red": w_red.astype(jnp.bfloat16), "s_red": s_red, "b_red": b_red,
        "w_b1": w_b1.astype(jnp.bfloat16), "w_pool": w_pool.astype(jnp.bfloat16),
        "w_taps": w_taps.astype(jnp.bfloat16),
        "s_out": s_out, "b_out": b_out,
    }


# ----------------------------------------------------------------------------
# forward pass
# ----------------------------------------------------------------------------
def inception_forward(params, x_nchw, *, cfg):
    out1, red3, out3, red5, out5, outp = cfg
    n, cin, h, w = x_nchw.shape
    assert cin <= CPAD
    hp = h + 2 * _P
    wp = _round_up(w + 2 * _P, 8)           # sublane-aligned padded width
    hw = h * w

    # bf16 first, then one transpose + pad (halo + lane padding)
    xb = x_nchw.astype(jnp.bfloat16)
    x_nhwc = jnp.transpose(xb, (0, 2, 3, 1))
    x_pad = jnp.pad(x_nhwc,
                    ((0, 0), (_P, _P), (_P, wp - w - _P), (0, CPAD - cin)))
    x_rows = x_pad.reshape(n, hp * wp, CPAD)

    # interior mask (1 inside the original HxW window, 0 in the halo)
    hh = jnp.arange(hp)[:, None]
    ww = jnp.arange(wp)[None, :]
    m2d = ((hh >= _P) & (hh < _P + h) & (ww >= _P) & (ww < _P + w))
    mask = jnp.broadcast_to(m2d.reshape(hp * wp, 1).astype(jnp.float32),
                            (hp * wp, CPAD))

    kernel = functools.partial(_inception_kernel, H=h, W=w, HP=hp, WP=wp)
    out = pl.pallas_call(
        kernel,
        grid=(n,),
        in_specs=[
            pl.BlockSpec((1, hp * wp, CPAD), lambda i: (i, 0, 0)),
            pl.BlockSpec((hp * wp, CPAD), lambda i: (0, 0)),
            pl.BlockSpec((CPAD, CPAD), lambda i: (0, 0)),
            pl.BlockSpec((1, CPAD), lambda i: (0, 0)),
            pl.BlockSpec((1, CPAD), lambda i: (0, 0)),
            pl.BlockSpec((CPAD, CPAD), lambda i: (0, 0)),
            pl.BlockSpec((CPAD, CPAD), lambda i: (0, 0)),
            pl.BlockSpec((25, CPAD, CPAD), lambda i: (0, 0, 0)),
            pl.BlockSpec((1, CPAD), lambda i: (0, 0)),
            pl.BlockSpec((1, CPAD), lambda i: (0, 0)),
        ],
        out_specs=pl.BlockSpec((1, hw, CPAD), lambda i: (i, 0, 0)),
        out_shape=jax.ShapeDtypeStruct((n, hw, CPAD), jnp.float32),
        compiler_params=pltpu.CompilerParams(
            dimension_semantics=("parallel",),
            vmem_limit_bytes=_VMEM_LIMIT),
    )(x_rows, mask, params["w_red"], params["s_red"], params["b_red"],
      params["w_b1"], params["w_pool"], params["w_taps"],
      params["s_out"], params["b_out"])

    c_total = out1 + out3 + out5 + outp
    y = out[:, :, :c_total].reshape(n, h, w, c_total)      # single lane-dense slice
    return jnp.transpose(y, (0, 3, 1, 2)).astype(jnp.float32)   # NCHW


# ----------------------------------------------------------------------------
if __name__ == "__main__":
    BATCH, IN_CH, SPATIAL = 2, 4, 16
    # (out_1x1, red_3x3, out_3x3, red_5x5, out_5x5, out_1x1pool)
    CFG = (16, 8, 16, 4, 8, 8)

    params = init_params(0, IN_CH, *CFG)
    x = jax.random.normal(jax.random.PRNGKey(0),
                          (BATCH, IN_CH, SPATIAL, SPATIAL), jnp.float32)

    fwd = jax.jit(functools.partial(inception_forward, cfg=CFG))
    y = jax.block_until_ready(fwd(params, x))

    out_ch = CFG[0] + CFG[2] + CFG[4] + CFG[5]
    assert y.shape == (BATCH, out_ch, SPATIAL, SPATIAL), y.shape
    assert bool(jnp.all(jnp.isfinite(y)))
    print("KERNEL_OK")
</pallas_src>

<mosaic_0001>
module attributes {stable_mosaic.version = 11 : i64} {
  func.func @_inception_kernel(%arg0: i32, %arg1: memref<1x480x128xbf16, #tpu.memory_space<vmem>>, %arg2: memref<480x128xf32, #tpu.memory_space<vmem>>, %arg3: memref<128x128xbf16, #tpu.memory_space<vmem>>, %arg4: memref<1x128xf32, #tpu.memory_space<vmem>>, %arg5: memref<1x128xf32, #tpu.memory_space<vmem>>, %arg6: memref<128x128xbf16, #tpu.memory_space<vmem>>, %arg7: memref<128x128xbf16, #tpu.memory_space<vmem>>, %arg8: memref<25x128x128xbf16, #tpu.memory_space<vmem>>, %arg9: memref<1x128xf32, #tpu.memory_space<vmem>>, %arg10: memref<1x128xf32, #tpu.memory_space<vmem>>, %arg11: memref<1x256x128xf32, #tpu.memory_space<vmem>>) attributes {dimension_semantics = [#tpu.dimension_semantics<parallel>], iteration_bounds = array<i64: 2>, scalar_prefetch = 0 : i64, scratch_operands = 0 : i64, tpu.core_type = #tpu.core_type<tc>, window_params = [{transform_indices = @transform_0, window_bounds = array<i64: 1, 480, 128>}, {pipeline_mode = #tpu.pipeline_mode<synchronous>, transform_indices = @transform_1, window_bounds = array<i64: 480, 128>}, {pipeline_mode = #tpu.pipeline_mode<synchronous>, transform_indices = @transform_2, window_bounds = array<i64: 128, 128>}, {pipeline_mode = #tpu.pipeline_mode<synchronous>, transform_indices = @transform_3, window_bounds = array<i64: 1, 128>}, {pipeline_mode = #tpu.pipeline_mode<synchronous>, transform_indices = @transform_4, window_bounds = array<i64: 1, 128>}, {pipeline_mode = #tpu.pipeline_mode<synchronous>, transform_indices = @transform_5, window_bounds = array<i64: 128, 128>}, {pipeline_mode = #tpu.pipeline_mode<synchronous>, transform_indices = @transform_6, window_bounds = array<i64: 128, 128>}, {pipeline_mode = #tpu.pipeline_mode<synchronous>, transform_indices = @transform_7, window_bounds = array<i64: 25, 128, 128>}, {pipeline_mode = #tpu.pipeline_mode<synchronous>, transform_indices = @transform_8, window_bounds = array<i64: 1, 128>}, {pipeline_mode = #tpu.pipeline_mode<synchronous>, transform_indices = @transform_9, window_bounds = array<i64: 1, 128>}, {transform_indices = @transform_10, window_bounds = array<i64: 1, 256, 128>}]} {
    %c0 = arith.constant 0 : index
    %c0_0 = arith.constant 0 : index
    %c0_1 = arith.constant 0 : index
    %0 = vector.load %arg1[%c0, %c0_0, %c0_1] : memref<1x480x128xbf16, #tpu.memory_space<vmem>>, vector<1x480x128xbf16>
    %1 = vector.shape_cast %0 : vector<1x480x128xbf16> to vector<480x128xbf16>
    %c0_2 = arith.constant 0 : index
    %c0_3 = arith.constant 0 : index
    %2 = vector.load %arg2[%c0_2, %c0_3] : memref<480x128xf32, #tpu.memory_space<vmem>>, vector<480x128xf32>
    %c0_4 = arith.constant 0 : index
    %c0_5 = arith.constant 0 : index
    %3 = vector.load %arg3[%c0_4, %c0_5] : memref<128x128xbf16, #tpu.memory_space<vmem>>, vector<128x128xbf16>
    %cst = arith.constant dense<0.000000e+00> : vector<480x128xf32>
    %4 = tpu.matmul %1, %3, %cst {dimension_numbers = #tpu.dot_dimension_numbers<[1], [0], [0], [1], [0, 0, 1, 1], [], []>} : vector<480x128xbf16>, vector<128x128xbf16>, vector<480x128xf32> -> vector<480x128xf32>
    %c0_6 = arith.constant 0 : index
    %c0_7 = arith.constant 0 : index
    %5 = vector.load %arg4[%c0_6, %c0_7] : memref<1x128xf32, #tpu.memory_space<vmem>>, vector<1x128xf32>
    %6 = vector.broadcast %5 : vector<1x128xf32> to vector<480x128xf32>
    %7 = arith.mulf %4, %6 : vector<480x128xf32>
    %c0_8 = arith.constant 0 : index
    %c0_9 = arith.constant 0 : index
    %8 = vector.load %arg5[%c0_8, %c0_9] : memref<1x128xf32, #tpu.memory_space<vmem>>, vector<1x128xf32>
    %9 = vector.broadcast %8 : vector<1x128xf32> to vector<480x128xf32>
    %10 = arith.addf %7, %9 : vector<480x128xf32>
    %cst_10 = arith.constant 0.000000e+00 : f32
    %11 = vector.broadcast %cst_10 : f32 to vector<480x128xf32>
    %12 = arith.maximumf %10, %11 : vector<480x128xf32>
    %13 = arith.mulf %12, %2 : vector<480x128xf32>
    %14 = arith.truncf %13 : vector<480x128xf32> to vector<480x128xbf16>
    %15 = vector.shape_cast %14 : vector<480x128xbf16> to vector<20x24x128xbf16>
    %16 = vector.shape_cast %1 : vector<480x128xbf16> to vector<20x24x128xbf16>
    %17 = vector.extract_strided_slice %16 {offsets = [2, 2, 0], sizes = [16, 16, 128], strides = [1, 1, 1]} : vector<20x24x128xbf16> to vector<16x16x128xbf16>
    %18 = vector.shape_cast %17 : vector<16x16x128xbf16> to vector<256x128xbf16>
    %c0_11 = arith.constant 0 : index
    %c0_12 = arith.constant 0 : index
    %19 = vector.load %arg6[%c0_11, %c0_12] : memref<128x128xbf16, #tpu.memory_space<vmem>>, vector<128x128xbf16>
    %cst_13 = arith.constant dense<0.000000e+00> : vector<256x128xf32>
    %20 = tpu.matmul %18, %19, %cst_13 {dimension_numbers = #tpu.dot_dimension_numbers<[1], [0], [0], [1], [0, 0, 1, 1], [], []>} : vector<256x128xbf16>, vector<128x128xbf16>, vector<256x128xf32> -> vector<256x128xf32>
    %cst_14 = arith.constant 0.000000e+00 : f32
    %21 = vector.broadcast %cst_14 : f32 to vector<480x128xf32>
    %22 = arith.cmpf ogt, %2, %21 : vector<480x128xf32>
    %cst_15 = arith.constant -1.000260e+30 : bf16
    %23 = vector.broadcast %cst_15 : bf16 to vector<480x128xbf16>
    %24 = arith.select %22, %1, %23 : vector<480x128xi1>, vector<480x128xbf16>
    %25 = vector.shape_cast %24 : vector<480x128xbf16> to vector<20x24x128xbf16>
    %26 = vector.extract_strided_slice %25 {offsets = [1, 1, 0], sizes = [16, 16, 128], strides = [1, 1, 1]} : vector<20x24x128xbf16> to vector<16x16x128xbf16>
    %27 = vector.extract_strided_slice %25 {offsets = [1, 2, 0], sizes = [16, 16, 128], strides = [1, 1, 1]} : vector<20x24x128xbf16> to vector<16x16x128xbf16>
    %28 = vector.extract_strided_slice %25 {offsets = [1, 3, 0], sizes = [16, 16, 128], strides = [1, 1, 1]} : vector<20x24x128xbf16> to vector<16x16x128xbf16>
    %29 = vector.extract_strided_slice %25 {offsets = [2, 1, 0], sizes = [16, 16, 128], strides = [1, 1, 1]} : vector<20x24x128xbf16> to vector<16x16x128xbf16>
    %30 = vector.extract_strided_slice %25 {offsets = [2, 2, 0], sizes = [16, 16, 128], strides = [1, 1, 1]} : vector<20x24x128xbf16> to vector<16x16x128xbf16>
    %31 = vector.extract_strided_slice %25 {offsets = [2, 3, 0], sizes = [16, 16, 128], strides = [1, 1, 1]} : vector<20x24x128xbf16> to vector<16x16x128xbf16>
    %32 = vector.extract_strided_slice %25 {offsets = [3, 1, 0], sizes = [16, 16, 128], strides = [1, 1, 1]} : vector<20x24x128xbf16> to vector<16x16x128xbf16>
    %33 = vector.extract_strided_slice %25 {offsets = [3, 2, 0], sizes = [16, 16, 128], strides = [1, 1, 1]} : vector<20x24x128xbf16> to vector<16x16x128xbf16>
    %34 = vector.extract_strided_slice %25 {offsets = [3, 3, 0], sizes = [16, 16, 128], strides = [1, 1, 1]} : vector<20x24x128xbf16> to vector<16x16x128xbf16>
    %35 = arith.maximumf %26, %27 : vector<16x16x128xbf16>
    %36 = arith.maximumf %28, %29 : vector<16x16x128xbf16>
    %37 = arith.maximumf %30, %31 : vector<16x16x128xbf16>
    %38 = arith.maximumf %32, %33 : vector<16x16x128xbf16>
    %39 = arith.maximumf %35, %36 : vector<16x16x128xbf16>
    %40 = arith.maximumf %37, %38 : vector<16x16x128xbf16>
    %41 = arith.maximumf %39, %40 : vector<16x16x128xbf16>
    %42 = arith.maximumf %41, %34 : vector<16x16x128xbf16>
    %43 = vector.shape_cast %42 : vector<16x16x128xbf16> to vector<256x128xbf16>
    %c0_16 = arith.constant 0 : index
    %c0_17 = arith.constant 0 : index
    %44 = vector.load %arg7[%c0_16, %c0_17] : memref<128x128xbf16, #tpu.memory_space<vmem>>, vector<128x128xbf16>
    %cst_18 = arith.constant dense<0.000000e+00> : vector<256x128xf32>
    %45 = tpu.matmul %43, %44, %cst_18 {dimension_numbers = #tpu.dot_dimension_numbers<[1], [0], [0], [1], [0, 0, 1, 1], [], []>} : vector<256x128xbf16>, vector<128x128xbf16>, vector<256x128xf32> -> vector<256x128xf32>
    %46 = arith.addf %20, %45 : vector<256x128xf32>
    %47 = vector.extract_strided_slice %15 {offsets = [0, 0, 0], sizes = [16, 16, 128], strides = [1, 1, 1]} : vector<20x24x128xbf16> to vector<16x16x128xbf16>
    %48 = vector.shape_cast %47 : vector<16x16x128xbf16> to vector<256x128xbf16>
    %c0_19 = arith.constant 0 : index
    %c0_20 = arith.constant 0 : index
    %c0_21 = arith.constant 0 : index
    %49 = vector.load %arg8[%c0_19, %c0_20, %c0_21] : memref<25x128x128xbf16, #tpu.memory_space<vmem>>, vector<1x128x128xbf16>
    %50 = vector.shape_cast %49 : vector<1x128x128xbf16> to vector<128x128xbf16>
    %cst_22 = arith.constant dense<0.000000e+00> : vector<256x128xf32>
    %51 = tpu.matmul %48, %50, %cst_22 {dimension_numbers = #tpu.dot_dimension_numbers<[1], [0], [0], [1], [0, 0, 1, 1], [], []>} : vector<256x128xbf16>, vector<128x128xbf16>, vector<256x128xf32> -> vector<256x128xf32>
    %52 = arith.addf %46, %51 : vector<256x128xf32>
    %53 = vector.extract_strided_slice %15 {offsets = [0, 1, 0], sizes = [16, 16, 128], strides = [1, 1, 1]} : vector<20x24x128xbf16> to vector<16x16x128xbf16>
    %54 = vector.shape_cast %53 : vector<16x16x128xbf16> to vector<256x128xbf16>
    %c1 = arith.constant 1 : index
    %c0_23 = arith.constant 0 : index
    %c0_24 = arith.constant 0 : index
    %55 = vector.load %arg8[%c1, %c0_23, %c0_24] : memref<25x128x128xbf16, #tpu.memory_space<vmem>>, vector<1x128x128xbf16>
    %56 = vector.shape_cast %55 : vector<1x128x128xbf16> to vector<128x128xbf16>
    %cst_25 = arith.constant dense<0.000000e+00> : vector<256x128xf32>
    %57 = tpu.matmul %54, %56, %cst_25 {dimension_numbers = #tpu.dot_dimension_numbers<[1], [0], [0], [1], [0, 0, 1, 1], [], []>} : vector<256x128xbf16>, vector<128x128xbf16>, vector<256x128xf32> -> vector<256x128xf32>
    %58 = arith.addf %52, %57 : vector<256x128xf32>
    %59 = vector.extract_strided_slice %15 {offsets = [0, 2, 0], sizes = [16, 16, 128], strides = [1, 1, 1]} : vector<20x24x128xbf16> to vector<16x16x128xbf16>
    %60 = vector.shape_cast %59 : vector<16x16x128xbf16> to vector<256x128xbf16>
    %c2 = arith.constant 2 : index
    %c0_26 = arith.constant 0 : index
    %c0_27 = arith.constant 0 : index
    %61 = vector.load %arg8[%c2, %c0_26, %c0_27] : memref<25x128x128xbf16, #tpu.memory_space<vmem>>, vector<1x128x128xbf16>
    %62 = vector.shape_cast %61 : vector<1x128x128xbf16> to vector<128x128xbf16>
    %cst_28 = arith.constant dense<0.000000e+00> : vector<256x128xf32>
    %63 = tpu.matmul %60, %62, %cst_28 {dimension_numbers = #tpu.dot_dimension_numbers<[1], [0], [0], [1], [0, 0, 1, 1], [], []>} : vector<256x128xbf16>, vector<128x128xbf16>, vector<256x128xf32> -> vector<256x128xf32>
    %64 = arith.addf %58, %63 : vector<256x128xf32>
    %65 = vector.extract_strided_slice %15 {offsets = [0, 3, 0], sizes = [16, 16, 128], strides = [1, 1, 1]} : vector<20x24x128xbf16> to vector<16x16x128xbf16>
    %66 = vector.shape_cast %65 : vector<16x16x128xbf16> to vector<256x128xbf16>
    %c3 = arith.constant 3 : index
    %c0_29 = arith.constant 0 : index
    %c0_30 = arith.constant 0 : index
    %67 = vector.load %arg8[%c3, %c0_29, %c0_30] : memref<25x128x128xbf16, #tpu.memory_space<vmem>>, vector<1x128x128xbf16>
    %68 = vector.shape_cast %67 : vector<1x128x128xbf16> to vector<128x128xbf16>
    %cst_31 = arith.constant dense<0.000000e+00> : vector<256x128xf32>
    %69 = tpu.matmul %66, %68, %cst_31 {dimension_numbers = #tpu.dot_dimension_numbers<[1], [0], [0], [1], [0, 0, 1, 1], [], []>} : vector<256x128xbf16>, vector<128x128xbf16>, vector<256x128xf32> -> vector<256x128xf32>
    %70 = arith.addf %64, %69 : vector<256x128xf32>
    %71 = vector.extract_strided_slice %15 {offsets = [0, 4, 0], sizes = [16, 16, 128], strides = [1, 1, 1]} : vector<20x24x128xbf16> to vector<16x16x128xbf16>
    %72 = vector.shape_cast %71 : vector<16x16x128xbf16> to vector<256x128xbf16>
    %c4 = arith.constant 4 : index
    %c0_32 = arith.constant 0 : index
    %c0_33 = arith.constant 0 : index
    %73 = vector.load %arg8[%c4, %c0_32, %c0_33] : memref<25x128x128xbf16, #tpu.memory_space<vmem>>, vector<1x128x128xbf16>
    %74 = vector.shape_cast %73 : vector<1x128x128xbf16> to vector<128x128xbf16>
    %cst_34 = arith.constant dense<0.000000e+00> : vector<256x128xf32>
    %75 = tpu.matmul %72, %74, %cst_34 {dimension_numbers = #tpu.dot_dimension_numbers<[1], [0], [0], [1], [0, 0, 1, 1], [], []>} : vector<256x128xbf16>, vector<128x128xbf16>, vector<256x128xf32> -> vector<256x128xf32>
    %76 = arith.addf %70, %75 : vector<256x128xf32>
    %77 = vector.extract_strided_slice %15 {offsets = [1, 0, 0], sizes = [16, 16, 128], strides = [1, 1, 1]} : vector<20x24x128xbf16> to vector<16x16x128xbf16>
    %78 = vector.shape_cast %77 : vector<16x16x128xbf16> to vector<256x128xbf16>
    %c5 = arith.constant 5 : index
    %c0_35 = arith.constant 0 : index
    %c0_36 = arith.constant 0 : index
    %79 = vector.load %arg8[%c5, %c0_35, %c0_36] : memref<25x128x128xbf16, #tpu.memory_space<vmem>>, vector<1x128x128xbf16>
    %80 = vector.shape_cast %79 : vector<1x128x128xbf16> to vector<128x128xbf16>
    %cst_37 = arith.constant dense<0.000000e+00> : vector<256x128xf32>
    %81 = tpu.matmul %78, %80, %cst_37 {dimension_numbers = #tpu.dot_dimension_numbers<[1], [0], [0], [1], [0, 0, 1, 1], [], []>} : vector<256x128xbf16>, vector<128x128xbf16>, vector<256x128xf32> -> vector<256x128xf32>
    %82 = arith.addf %76, %81 : vector<256x128xf32>
    %83 = vector.extract_strided_slice %15 {offsets = [1, 1, 0], sizes = [16, 16, 128], strides = [1, 1, 1]} : vector<20x24x128xbf16> to vector<16x16x128xbf16>
    %84 = vector.shape_cast %83 : vector<16x16x128xbf16> to vector<256x128xbf16>
    %c6 = arith.constant 6 : index
    %c0_38 = arith.constant 0 : index
    %c0_39 = arith.constant 0 : index
    %85 = vector.load %arg8[%c6, %c0_38, %c0_39] : memref<25x128x128xbf16, #tpu.memory_space<vmem>>, vector<1x128x128xbf16>
    %86 = vector.shape_cast %85 : vector<1x128x128xbf16> to vector<128x128xbf16>
    %cst_40 = arith.constant dense<0.000000e+00> : vector<256x128xf32>
    %87 = tpu.matmul %84, %86, %cst_40 {dimension_numbers = #tpu.dot_dimension_numbers<[1], [0], [0], [1], [0, 0, 1, 1], [], []>} : vector<256x128xbf16>, vector<128x128xbf16>, vector<256x128xf32> -> vector<256x128xf32>
    %88 = arith.addf %82, %87 : vector<256x128xf32>
    %89 = vector.extract_strided_slice %15 {offsets = [1, 2, 0], sizes = [16, 16, 128], strides = [1, 1, 1]} : vector<20x24x128xbf16> to vector<16x16x128xbf16>
    %90 = vector.shape_cast %89 : vector<16x16x128xbf16> to vector<256x128xbf16>
    %c7 = arith.constant 7 : index
    %c0_41 = arith.constant 0 : index
    %c0_42 = arith.constant 0 : index
    %91 = vector.load %arg8[%c7, %c0_41, %c0_42] : memref<25x128x128xbf16, #tpu.memory_space<vmem>>, vector<1x128x128xbf16>
    %92 = vector.shape_cast %91 : vector<1x128x128xbf16> to vector<128x128xbf16>
    %cst_43 = arith.constant dense<0.000000e+00> : vector<256x128xf32>
    %93 = tpu.matmul %90, %92, %cst_43 {dimension_numbers = #tpu.dot_dimension_numbers<[1], [0], [0], [1], [0, 0, 1, 1], [], []>} : vector<256x128xbf16>, vector<128x128xbf16>, vector<256x128xf32> -> vector<256x128xf32>
    %94 = arith.addf %88, %93 : vector<256x128xf32>
    %95 = vector.extract_strided_slice %15 {offsets = [1, 3, 0], sizes = [16, 16, 128], strides = [1, 1, 1]} : vector<20x24x128xbf16> to vector<16x16x128xbf16>
    %96 = vector.shape_cast %95 : vector<16x16x128xbf16> to vector<256x128xbf16>
    %c8 = arith.constant 8 : index
    %c0_44 = arith.constant 0 : index
    %c0_45 = arith.constant 0 : index
    %97 = vector.load %arg8[%c8, %c0_44, %c0_45] : memref<25x128x128xbf16, #tpu.memory_space<vmem>>, vector<1x128x128xbf16>
    %98 = vector.shape_cast %97 : vector<1x128x128xbf16> to vector<128x128xbf16>
    %cst_46 = arith.constant dense<0.000000e+00> : vector<256x128xf32>
    %99 = tpu.matmul %96, %98, %cst_46 {dimension_numbers = #tpu.dot_dimension_numbers<[1], [0], [0], [1], [0, 0, 1, 1], [], []>} : vector<256x128xbf16>, vector<128x128xbf16>, vector<256x128xf32> -> vector<256x128xf32>
    %100 = arith.addf %94, %99 : vector<256x128xf32>
    %101 = vector.extract_strided_slice %15 {offsets = [1, 4, 0], sizes = [16, 16, 128], strides = [1, 1, 1]} : vector<20x24x128xbf16> to vector<16x16x128xbf16>
    %102 = vector.shape_cast %101 : vector<16x16x128xbf16> to vector<256x128xbf16>
    %c9 = arith.constant 9 : index
    %c0_47 = arith.constant 0 : index
    %c0_48 = arith.constant 0 : index
    %103 = vector.load %arg8[%c9, %c0_47, %c0_48] : memref<25x128x128xbf16, #tpu.memory_space<vmem>>, vector<1x128x128xbf16>
    %104 = vector.shape_cast %103 : vector<1x128x128xbf16> to vector<128x128xbf16>
    %cst_49 = arith.constant dense<0.000000e+00> : vector<256x128xf32>
    %105 = tpu.matmul %102, %104, %cst_49 {dimension_numbers = #tpu.dot_dimension_numbers<[1], [0], [0], [1], [0, 0, 1, 1], [], []>} : vector<256x128xbf16>, vector<128x128xbf16>, vector<256x128xf32> -> vector<256x128xf32>
    %106 = arith.addf %100, %105 : vector<256x128xf32>
    %107 = vector.extract_strided_slice %15 {offsets = [2, 0, 0], sizes = [16, 16, 128], strides = [1, 1, 1]} : vector<20x24x128xbf16> to vector<16x16x128xbf16>
    %108 = vector.shape_cast %107 : vector<16x16x128xbf16> to vector<256x128xbf16>
    %c10 = arith.constant 10 : index
    %c0_50 = arith.constant 0 : index
    %c0_51 = arith.constant 0 : index
    %109 = vector.load %arg8[%c10, %c0_50, %c0_51] : memref<25x128x128xbf16, #tpu.memory_space<vmem>>, vector<1x128x128xbf16>
    %110 = vector.shape_cast %109 : vector<1x128x128xbf16> to vector<128x128xbf16>
    %cst_52 = arith.constant dense<0.000000e+00> : vector<256x128xf32>
    %111 = tpu.matmul %108, %110, %cst_52 {dimension_numbers = #tpu.dot_dimension_numbers<[1], [0], [0], [1], [0, 0, 1, 1], [], []>} : vector<256x128xbf16>, vector<128x128xbf16>, vector<256x128xf32> -> vector<256x128xf32>
    %112 = arith.addf %106, %111 : vector<256x128xf32>
    %113 = vector.extract_strided_slice %15 {offsets = [2, 1, 0], sizes = [16, 16, 128], strides = [1, 1, 1]} : vector<20x24x128xbf16> to vector<16x16x128xbf16>
    %114 = vector.shape_cast %113 : vector<16x16x128xbf16> to vector<256x128xbf16>
    %c11 = arith.constant 11 : index
    %c0_53 = arith.constant 0 : index
    %c0_54 = arith.constant 0 : index
    %115 = vector.load %arg8[%c11, %c0_53, %c0_54] : memref<25x128x128xbf16, #tpu.memory_space<vmem>>, vector<1x128x128xbf16>
    %116 = vector.shape_cast %115 : vector<1x128x128xbf16> to vector<128x128xbf16>
    %cst_55 = arith.constant dense<0.000000e+00> : vector<256x128xf32>
    %117 = tpu.matmul %114, %116, %cst_55 {dimension_numbers = #tpu.dot_dimension_numbers<[1], [0], [0], [1], [0, 0, 1, 1], [], []>} : vector<256x128xbf16>, vector<128x128xbf16>, vector<256x128xf32> -> vector<256x128xf32>
    %118 = arith.addf %112, %117 : vector<256x128xf32>
    %119 = vector.extract_strided_slice %15 {offsets = [2, 2, 0], sizes = [16, 16, 128], strides = [1, 1, 1]} : vector<20x24x128xbf16> to vector<16x16x128xbf16>
    %120 = vector.shape_cast %119 : vector<16x16x128xbf16> to vector<256x128xbf16>
    %c12 = arith.constant 12 : index
    %c0_56 = arith.constant 0 : index
    %c0_57 = arith.constant 0 : index
    %121 = vector.load %arg8[%c12, %c0_56, %c0_57] : memref<25x128x128xbf16, #tpu.memory_space<vmem>>, vector<1x128x128xbf16>
    %122 = vector.shape_cast %121 : vector<1x128x128xbf16> to vector<128x128xbf16>
    %cst_58 = arith.constant dense<0.000000e+00> : vector<256x128xf32>
    %123 = tpu.matmul %120, %122, %cst_58 {dimension_numbers = #tpu.dot_dimension_numbers<[1], [0], [0], [1], [0, 0, 1, 1], [], []>} : vector<256x128xbf16>, vector<128x128xbf16>, vector<256x128xf32> -> vector<256x128xf32>
    %124 = arith.addf %118, %123 : vector<256x128xf32>
    %125 = vector.extract_strided_slice %15 {offsets = [2, 3, 0], sizes = [16, 16, 128], strides = [1, 1, 1]} : vector<20x24x128xbf16> to vector<16x16x128xbf16>
    %126 = vector.shape_cast %125 : vector<16x16x128xbf16> to vector<256x128xbf16>
    %c13 = arith.constant 13 : index
    %c0_59 = arith.constant 0 : index
    %c0_60 = arith.constant 0 : index
    %127 = vector.load %arg8[%c13, %c0_59, %c0_60] : memref<25x128x128xbf16, #tpu.memory_space<vmem>>, vector<1x128x128xbf16>
    %128 = vector.shape_cast %127 : vector<1x128x128xbf16> to vector<128x128xbf16>
    %cst_61 = arith.constant dense<0.000000e+00> : vector<256x128xf32>
    %129 = tpu.matmul %126, %128, %cst_61 {dimension_numbers = #tpu.dot_dimension_numbers<[1], [0], [0], [1], [0, 0, 1, 1], [], []>} : vector<256x128xbf16>, vector<128x128xbf16>, vector<256x128xf32> -> vector<256x128xf32>
    %130 = arith.addf %124, %129 : vector<256x128xf32>
    %131 = vector.extract_strided_slice %15 {offsets = [2, 4, 0], sizes = [16, 16, 128], strides = [1, 1, 1]} : vector<20x24x128xbf16> to vector<16x16x128xbf16>
    %132 = vector.shape_cast %131 : vector<16x16x128xbf16> to vector<256x128xbf16>
    %c14 = arith.constant 14 : index
    %c0_62 = arith.constant 0 : index
    %c0_63 = arith.constant 0 : index
    %133 = vector.load %arg8[%c14, %c0_62, %c0_63] : memref<25x128x128xbf16, #tpu.memory_space<vmem>>, vector<1x128x128xbf16>
    %134 = vector.shape_cast %133 : vector<1x128x128xbf16> to vector<128x128xbf16>
    %cst_64 = arith.constant dense<0.000000e+00> : vector<256x128xf32>
    %135 = tpu.matmul %132, %134, %cst_64 {dimension_numbers = #tpu.dot_dimension_numbers<[1], [0], [0], [1], [0, 0, 1, 1], [], []>} : vector<256x128xbf16>, vector<128x128xbf16>, vector<256x128xf32> -> vector<256x128xf32>
    %136 = arith.addf %130, %135 : vector<256x128xf32>
    %137 = vector.extract_strided_slice %15 {offsets = [3, 0, 0], sizes = [16, 16, 128], strides = [1, 1, 1]} : vector<20x24x128xbf16> to vector<16x16x128xbf16>
    %138 = vector.shape_cast %137 : vector<16x16x128xbf16> to vector<256x128xbf16>
    %c15 = arith.constant 15 : index
    %c0_65 = arith.constant 0 : index
    %c0_66 = arith.constant 0 : index
    %139 = vector.load %arg8[%c15, %c0_65, %c0_66] : memref<25x128x128xbf16, #tpu.memory_space<vmem>>, vector<1x128x128xbf16>
    %140 = vector.shape_cast %139 : vector<1x128x128xbf16> to vector<128x128xbf16>
    %cst_67 = arith.constant dense<0.000000e+00> : vector<256x128xf32>
    %141 = tpu.matmul %138, %140, %cst_67 {dimension_numbers = #tpu.dot_dimension_numbers<[1], [0], [0], [1], [0, 0, 1, 1], [], []>} : vector<256x128xbf16>, vector<128x128xbf16>, vector<256x128xf32> -> vector<256x128xf32>
    %142 = arith.addf %136, %141 : vector<256x128xf32>
    %143 = vector.extract_strided_slice %15 {offsets = [3, 1, 0], sizes = [16, 16, 128], strides = [1, 1, 1]} : vector<20x24x128xbf16> to vector<16x16x128xbf16>
    %144 = vector.shape_cast %143 : vector<16x16x128xbf16> to vector<256x128xbf16>
    %c16 = arith.constant 16 : index
    %c0_68 = arith.constant 0 : index
    %c0_69 = arith.constant 0 : index
    %145 = vector.load %arg8[%c16, %c0_68, %c0_69] : memref<25x128x128xbf16, #tpu.memory_space<vmem>>, vector<1x128x128xbf16>
    %146 = vector.shape_cast %145 : vector<1x128x128xbf16> to vector<128x128xbf16>
    %cst_70 = arith.constant dense<0.000000e+00> : vector<256x128xf32>
    %147 = tpu.matmul %144, %146, %cst_70 {dimension_numbers = #tpu.dot_dimension_numbers<[1], [0], [0], [1], [0, 0, 1, 1], [], []>} : vector<256x128xbf16>, vector<128x128xbf16>, vector<256x128xf32> -> vector<256x128xf32>
    %148 = arith.addf %142, %147 : vector<256x128xf32>
    %149 = vector.extract_strided_slice %15 {offsets = [3, 2, 0], sizes = [16, 16, 128], strides = [1, 1, 1]} : vector<20x24x128xbf16> to vector<16x16x128xbf16>
    %150 = vector.shape_cast %149 : vector<16x16x128xbf16> to vector<256x128xbf16>
    %c17 = arith.constant 17 : index
    %c0_71 = arith.constant 0 : index
    %c0_72 = arith.constant 0 : index
    %151 = vector.load %arg8[%c17, %c0_71, %c0_72] : memref<25x128x128xbf16, #tpu.memory_space<vmem>>, vector<1x128x128xbf16>
    %152 = vector.shape_cast %151 : vector<1x128x128xbf16> to vector<128x128xbf16>
    %cst_73 = arith.constant dense<0.000000e+00> : vector<256x128xf32>
    %153 = tpu.matmul %150, %152, %cst_73 {dimension_numbers = #tpu.dot_dimension_numbers<[1], [0], [0], [1], [0, 0, 1, 1], [], []>} : vector<256x128xbf16>, vector<128x128xbf16>, vector<256x128xf32> -> vector<256x128xf32>
    %154 = arith.addf %148, %153 : vector<256x128xf32>
    %155 = vector.extract_strided_slice %15 {offsets = [3, 3, 0], sizes = [16, 16, 128], strides = [1, 1, 1]} : vector<20x24x128xbf16> to vector<16x16x128xbf16>
    %156 = vector.shape_cast %155 : vector<16x16x128xbf16> to vector<256x128xbf16>
    %c18 = arith.constant 18 : index
    %c0_74 = arith.constant 0 : index
    %c0_75 = arith.constant 0 : index
    %157 = vector.load %arg8[%c18, %c0_74, %c0_75] : memref<25x128x128xbf16, #tpu.memory_space<vmem>>, vector<1x128x128xbf16>
    %158 = vector.shape_cast %157 : vector<1x128x128xbf16> to vector<128x128xbf16>
    %cst_76 = arith.constant dense<0.000000e+00> : vector<256x128xf32>
    %159 = tpu.matmul %156, %158, %cst_76 {dimension_numbers = #tpu.dot_dimension_numbers<[1], [0], [0], [1], [0, 0, 1, 1], [], []>} : vector<256x128xbf16>, vector<128x128xbf16>, vector<256x128xf32> -> vector<256x128xf32>
    %160 = arith.addf %154, %159 : vector<256x128xf32>
    %161 = vector.extract_strided_slice %15 {offsets = [3, 4, 0], sizes = [16, 16, 128], strides = [1, 1, 1]} : vector<20x24x128xbf16> to vector<16x16x128xbf16>
    %162 = vector.shape_cast %161 : vector<16x16x128xbf16> to vector<256x128xbf16>
    %c19 = arith.constant 19 : index
    %c0_77 = arith.constant 0 : index
    %c0_78 = arith.constant 0 : index
    %163 = vector.load %arg8[%c19, %c0_77, %c0_78] : memref<25x128x128xbf16, #tpu.memory_space<vmem>>, vector<1x128x128xbf16>
    %164 = vector.shape_cast %163 : vector<1x128x128xbf16> to vector<128x128xbf16>
    %cst_79 = arith.constant dense<0.000000e+00> : vector<256x128xf32>
    %165 = tpu.matmul %162, %164, %cst_79 {dimension_numbers = #tpu.dot_dimension_numbers<[1], [0], [0], [1], [0, 0, 1, 1], [], []>} : vector<256x128xbf16>, vector<128x128xbf16>, vector<256x128xf32> -> vector<256x128xf32>
    %166 = arith.addf %160, %165 : vector<256x128xf32>
    %167 = vector.extract_strided_slice %15 {offsets = [4, 0, 0], sizes = [16, 16, 128], strides = [1, 1, 1]} : vector<20x24x128xbf16> to vector<16x16x128xbf16>
    %168 = vector.shape_cast %167 : vector<16x16x128xbf16> to vector<256x128xbf16>
    %c20 = arith.constant 20 : index
    %c0_80 = arith.constant 0 : index
    %c0_81 = arith.constant 0 : index
    %169 = vector.load %arg8[%c20, %c0_80, %c0_81] : memref<25x128x128xbf16, #tpu.memory_space<vmem>>, vector<1x128x128xbf16>
    %170 = vector.shape_cast %169 : vector<1x128x128xbf16> to vector<128x128xbf16>
    %cst_82 = arith.constant dense<0.000000e+00> : vector<256x128xf32>
    %171 = tpu.matmul %168, %170, %cst_82 {dimension_numbers = #tpu.dot_dimension_numbers<[1], [0], [0], [1], [0, 0, 1, 1], [], []>} : vector<256x128xbf16>, vector<128x128xbf16>, vector<256x128xf32> -> vector<256x128xf32>
    %172 = arith.addf %166, %171 : vector<256x128xf32>
    %173 = vector.extract_strided_slice %15 {offsets = [4, 1, 0], sizes = [16, 16, 128], strides = [1, 1, 1]} : vector<20x24x128xbf16> to vector<16x16x128xbf16>
    %174 = vector.shape_cast %173 : vector<16x16x128xbf16> to vector<256x128xbf16>
    %c21 = arith.constant 21 : index
    %c0_83 = arith.constant 0 : index
    %c0_84 = arith.constant 0 : index
    %175 = vector.load %arg8[%c21, %c0_83, %c0_84] : memref<25x128x128xbf16, #tpu.memory_space<vmem>>, vector<1x128x128xbf16>
    %176 = vector.shape_cast %175 : vector<1x128x128xbf16> to vector<128x128xbf16>
    %cst_85 = arith.constant dense<0.000000e+00> : vector<256x128xf32>
    %177 = tpu.matmul %174, %176, %cst_85 {dimension_numbers = #tpu.dot_dimension_numbers<[1], [0], [0], [1], [0, 0, 1, 1], [], []>} : vector<256x128xbf16>, vector<128x128xbf16>, vector<256x128xf32> -> vector<256x128xf32>
    %178 = arith.addf %172, %177 : vector<256x128xf32>
    %179 = vector.extract_strided_slice %15 {offsets = [4, 2, 0], sizes = [16, 16, 128], strides = [1, 1, 1]} : vector<20x24x128xbf16> to vector<16x16x128xbf16>
    %180 = vector.shape_cast %179 : vector<16x16x128xbf16> to vector<256x128xbf16>
    %c22 = arith.constant 22 : index
    %c0_86 = arith.constant 0 : index
    %c0_87 = arith.constant 0 : index
    %181 = vector.load %arg8[%c22, %c0_86, %c0_87] : memref<25x128x128xbf16, #tpu.memory_space<vmem>>, vector<1x128x128xbf16>
    %182 = vector.shape_cast %181 : vector<1x128x128xbf16> to vector<128x128xbf16>
    %cst_88 = arith.constant dense<0.000000e+00> : vector<256x128xf32>
    %183 = tpu.matmul %180, %182, %cst_88 {dimension_numbers = #tpu.dot_dimension_numbers<[1], [0], [0], [1], [0, 0, 1, 1], [], []>} : vector<256x128xbf16>, vector<128x128xbf16>, vector<256x128xf32> -> vector<256x128xf32>
    %184 = arith.addf %178, %183 : vector<256x128xf32>
    %185 = vector.extract_strided_slice %15 {offsets = [4, 3, 0], sizes = [16, 16, 128], strides = [1, 1, 1]} : vector<20x24x128xbf16> to vector<16x16x128xbf16>
    %186 = vector.shape_cast %185 : vector<16x16x128xbf16> to vector<256x128xbf16>
    %c23 = arith.constant 23 : index
    %c0_89 = arith.constant 0 : index
    %c0_90 = arith.constant 0 : index
    %187 = vector.load %arg8[%c23, %c0_89, %c0_90] : memref<25x128x128xbf16, #tpu.memory_space<vmem>>, vector<1x128x128xbf16>
    %188 = vector.shape_cast %187 : vector<1x128x128xbf16> to vector<128x128xbf16>
    %cst_91 = arith.constant dense<0.000000e+00> : vector<256x128xf32>
    %189 = tpu.matmul %186, %188, %cst_91 {dimension_numbers = #tpu.dot_dimension_numbers<[1], [0], [0], [1], [0, 0, 1, 1], [], []>} : vector<256x128xbf16>, vector<128x128xbf16>, vector<256x128xf32> -> vector<256x128xf32>
    %190 = arith.addf %184, %189 : vector<256x128xf32>
    %191 = vector.extract_strided_slice %15 {offsets = [4, 4, 0], sizes = [16, 16, 128], strides = [1, 1, 1]} : vector<20x24x128xbf16> to vector<16x16x128xbf16>
    %192 = vector.shape_cast %191 : vector<16x16x128xbf16> to vector<256x128xbf16>
    %c24 = arith.constant 24 : index
    %c0_92 = arith.constant 0 : index
    %c0_93 = arith.constant 0 : index
    %193 = vector.load %arg8[%c24, %c0_92, %c0_93] : memref<25x128x128xbf16, #tpu.memory_space<vmem>>, vector<1x128x128xbf16>
    %194 = vector.shape_cast %193 : vector<1x128x128xbf16> to vector<128x128xbf16>
    %cst_94 = arith.constant dense<0.000000e+00> : vector<256x128xf32>
    %195 = tpu.matmul %192, %194, %cst_94 {dimension_numbers = #tpu.dot_dimension_numbers<[1], [0], [0], [1], [0, 0, 1, 1], [], []>} : vector<256x128xbf16>, vector<128x128xbf16>, vector<256x128xf32> -> vector<256x128xf32>
    %196 = arith.addf %190, %195 : vector<256x128xf32>
    %c0_95 = arith.constant 0 : index
    %c0_96 = arith.constant 0 : index
    %197 = vector.load %arg9[%c0_95, %c0_96] : memref<1x128xf32, #tpu.memory_space<vmem>>, vector<1x128xf32>
    %198 = vector.broadcast %197 : vector<1x128xf32> to vector<256x128xf32>
    %199 = arith.mulf %196, %198 : vector<256x128xf32>
    %c0_97 = arith.constant 0 : index
    %c0_98 = arith.constant 0 : index
    %200 = vector.load %arg10[%c0_97, %c0_98] : memref<1x128xf32, #tpu.memory_space<vmem>>, vector<1x128xf32>
    %201 = vector.broadcast %200 : vector<1x128xf32> to vector<256x128xf32>
    %202 = arith.addf %199, %201 : vector<256x128xf32>
    %cst_99 = arith.constant 0.000000e+00 : f32
    %203 = vector.broadcast %cst_99 : f32 to vector<256x128xf32>
    %204 = arith.maximumf %202, %203 : vector<256x128xf32>
    %c0_100 = arith.constant 0 : index
    %c0_101 = arith.constant 0 : index
    %c0_102 = arith.constant 0 : index
    %205 = vector.load %arg11[%c0_100, %c0_101, %c0_102] : memref<1x256x128xf32, #tpu.memory_space<vmem>>, vector<1x256x128xf32>
    %206 = vector.shape_cast %205 : vector<1x256x128xf32> to vector<256x128xf32>
    %207 = vector.shape_cast %204 : vector<256x128xf32> to vector<1x256x128xf32>
    tpu.vector_store %arg11[%c0_100, %c0_101, %c0_102], %207 {strides = array<i32>} : memref<1x256x128xf32, #tpu.memory_space<vmem>>, vector<1x256x128xf32>,
    return
  }
  func.func @transform_0(%arg0: i32) -> (i32, i32, i32) {
    %c0_i32 = arith.constant 0 : i32
    %c0_i32_0 = arith.constant 0 : i32
    %c0_i32_1 = arith.constant 0 : i32
    return %arg0, %c0_i32, %c0_i32_0 : i32, i32, i32
  }
  func.func @transform_1(%arg0: i32) -> (i32, i32) {
    %c0_i32 = arith.constant 0 : i32
    %c0_i32_0 = arith.constant 0 : i32
    %c0_i32_1 = arith.constant 0 : i32
    return %c0_i32, %c0_i32_0 : i32, i32
  }
  func.func @transform_2(%arg0: i32) -> (i32, i32) {
    %c0_i32 = arith.constant 0 : i32
    %c0_i32_0 = arith.constant 0 : i32
    %c0_i32_1 = arith.constant 0 : i32
    return %c0_i32, %c0_i32_0 : i32, i32
  }
  func.func @transform_3(%arg0: i32) -> (i32, i32) {
    %c0_i32 = arith.constant 0 : i32
    %c0_i32_0 = arith.constant 0 : i32
    %c0_i32_1 = arith.constant 0 : i32
    return %c0_i32, %c0_i32_0 : i32, i32
  }
  func.func @transform_4(%arg0: i32) -> (i32, i32) {
    %c0_i32 = arith.constant 0 : i32
    %c0_i32_0 = arith.constant 0 : i32
    %c0_i32_1 = arith.constant 0 : i32
    return %c0_i32, %c0_i32_0 : i32, i32
  }
  func.func @transform_5(%arg0: i32) -> (i32, i32) {
    %c0_i32 = arith.constant 0 : i32
    %c0_i32_0 = arith.constant 0 : i32
    %c0_i32_1 = arith.constant 0 : i32
    return %c0_i32, %c0_i32_0 : i32, i32
  }
  func.func @transform_6(%arg0: i32) -> (i32, i32) {
    %c0_i32 = arith.constant 0 : i32
    %c0_i32_0 = arith.constant 0 : i32
    %c0_i32_1 = arith.constant 0 : i32
    return %c0_i32, %c0_i32_0 : i32, i32
  }
  func.func @transform_7(%arg0: i32) -> (i32, i32, i32) {
    %c0_i32 = arith.constant 0 : i32
    %c0_i32_0 = arith.constant 0 : i32
    %c0_i32_1 = arith.constant 0 : i32
    %c0_i32_2 = arith.constant 0 : i32
    return %c0_i32, %c0_i32_0, %c0_i32_1 : i32, i32, i32
  }
  func.func @transform_8(%arg0: i32) -> (i32, i32) {
    %c0_i32 = arith.constant 0 : i32
    %c0_i32_0 = arith.constant 0 : i32
    %c0_i32_1 = arith.constant 0 : i32
    return %c0_i32, %c0_i32_0 : i32, i32
  }
  func.func @transform_9(%arg0: i32) -> (i32, i32) {
    %c0_i32 = arith.constant 0 : i32
    %c0_i32_0 = arith.constant 0 : i32
    %c0_i32_1 = arith.constant 0 : i32
    return %c0_i32, %c0_i32_0 : i32, i32
  }
  func.func @transform_10(%arg0: i32) -> (i32, i32, i32) {
    %c0_i32 = arith.constant 0 : i32
    %c0_i32_0 = arith.constant 0 : i32
    %c0_i32_1 = arith.constant 0 : i32
    return %arg0, %c0_i32, %c0_i32_0 : i32, i32, i32
  }
}

</mosaic_0001>

<bundles_post_ra>
// kernel: inception_forward.1
= control target key start
LH: loop header
LB: loop body
LE: loop exit
PB: predicated region body
PF: predicated region fallthrough
CT: control target
= control target key end

     0   :  { %15 = vsyncpa [#allocation3], 0  ;;  %s19975_s0 = inlined_call_operand.vmem [shape: bf16[2,480,128], index: 0, kind: input, shape index: {}]   ;;  %s19976_s1 = inlined_call_operand.vmem [shape: f32[480,128], index: 1, kind: input, shape index: {}]   ;;  %s19977_s2 = inlined_call_operand.vmem [shape: bf16[128,128], index: 2, kind: input, shape index: {}]   ;;  %s19978_s3 = inlined_call_operand.vmem [shape: f32[1,128], index: 3, kind: input, shape index: {}]   ;;  %s19979_s4 = inlined_call_operand.vmem [shape: f32[1,128], index: 4, kind: input, shape index: {}]   ;;  %s19980_s5 = inlined_call_operand.vmem [shape: bf16[128,128], index: 5, kind: input, shape index: {}]   ;;  %s19981_s6 = inlined_call_operand.vmem [shape: bf16[128,128], index: 6, kind: input, shape index: {}]   ;;  %s19982_s7 = inlined_call_operand.vmem [shape: bf16[25,128,128], index: 7, kind: input, shape index: {}]   ;;  %s19983_s8 = inlined_call_operand.vmem [shape: f32[1,128], index: 8, kind: input, shape index: {}]   ;;  %s19984_s9 = inlined_call_operand.vmem [shape: f32[1,128], index: 9, kind: input, shape index: {}]   ;;  %s19985_s10 = inlined_call_operand.hbm [shape: f32[2,256,128], index: 10, kind: output, shape index: {}]  }
   0x1   :  { %17 = vsyncpa [#allocation3 + $0x1], 0  ;;  %s12518_s13 = smov 0   ;;  %s12520_s14 = smov 0  }
   0x2   :  { %s12522_s15 = smov 0   ;;  %s12524_s16 = smov 0  }
   0x3 LB: > { %s12539_s17 = sadd.s32 4294967295, %s12459_s16   ;;  %s10551_s18 = sadd.s32 4294967294, %s12459_s16   ;;  %s12459_s16 = sphi %s12524_s16, %s21859_s16   ;;  %s12455_s15 = sphi %s12522_s15, %s21858_s15   ;;  %s12451_s14 = sphi %s12520_s14, %s21857_s14   ;;  %s12447_s13 = sphi %s12518_s13, %s21856_s13  }
   0x4   : > { %s12543_s19 = sadd.s32 1, %s12459_s16   ;;  %s245_s20 = sadd.s32 1, %s12455_s15 }
   0x5   : > { %s242_s21 = ssub.s32 %s12459_s16, %s12543_s19  ;;  %p255_p0 = scmp.ne.s32.totalorder %s12455_s15, %s12451_s14 }
   0x6   : > { %p243_p1 = scmp.eq.s32.totalorder %s242_s21, 0  ;;  %p256_p2 = scmp.eq.s32.totalorder %s12539_s17, 1 }
   0x7   : > { %p261_p3 = scmp.ne.s32.totalorder %s12451_s14, %s12447_s13  ;;  %p262_p4 = scmp.eq.s32.totalorder %s10551_s18, 1 }
   0x8   : > { %s12554_s22 = scalar_select %p243_p1, %s12455_s15, %s245_s20  }
   0x9   : > { %p12556_p5 = por %p256_p2, %p255_p0  ;;  %p12560_p6 = por %p262_p4, %p261_p3 }
   0xa   : > { %p10554_p7 = scmp.ge.s32.totalorder %s12459_s16, 1  ;;  %p315_p8 = scmp.lt.s32.totalorder %s12459_s16, 3 }
   0xc   : > { %p316_p9 = pnand %p10554_p7, %p315_p8 }
   0xe   : > { %319 = sbr.rel (%p316_p9) target bundleno = 2357 (0x935), region = 60 }
  0x13   : > { %v12055_v0 = vld [vmem:[%s19977_s2 + $0x38] sm:$0xff]  ;;  %v12054_v1 = vld [vmem:[%s19977_s2 + $0x30] sm:$0xff]  ;;  %v12053_v2 = vld [vmem:[%s19977_s2 + $0x28] sm:$0xff]  ;;  %p353_p10 = scmp.lt.s32.totalorder %s12539_s17, 1  ;;  %vm1190_vm0 = vcmask 1042432   ;;  %vm1191_vm1 = vcmask 1046532  }
  0x14   : > { %723 = vmatpush.bf16.msra.mxu0 %v12055_v0  ;;  %12273 = vmatpush.bf16.msra.mxu1 %v12055_v0  ;;  %v12052_v3 = vld [vmem:[%s19977_s2 + $0x20] sm:$0xff]  ;;  %v12051_v4 = vld [vmem:[%s19977_s2 + $0x18] sm:$0xff]  ;;  %v12050_v5 = vld [vmem:[%s19977_s2 + $0x10] sm:$0xff]  ;;  %vm1579_vm15 = vcmask 1046528   ;;  %s12272_s26 = sshll.u32 %s12539_s17, 8 }
  0x15   : > { %12274 = vmatpush.bf16.msra.mxu2 %v12055_v0  ;;  %12275 = vmatpush.bf16.msra.mxu3 %v12055_v0  ;;  %s354_s21 = scalar_select %p353_p10, %s12539_s17, 1  ;;  %v12049_v6 = vld [vmem:[%s19977_s2 + $0x8] sm:$0xff]  ;;  %v12048_v9 = vld [vmem:[%s19977_s2] sm:$0xff]  ;;  %v12063_v14 = vld [vmem:[%s19980_s5 + $0x38] sm:$0xff] }
  0x16   : > { %vm12608_vm2 = vmor %vm1190_vm0, %vm1191_vm1  ;;  %v428_v17 = vld [vmem:[%s19976_s1 + $0x48] sm:$0xff]  ;;  %v429_v23 = vld [vmem:[%s19976_s1 + $0x50] sm:$0xff]  ;;  %s10485_s29 = scalar_lea.hbm %s19985_s10, %s12272_s26 }
  0x17   : > { %s12297_s27 = smul.u32 240, %s354_s21  ;;  %vm1327_vm3 = vcmp.gt.f32.partialorder %v428_v17, 0.0  ;;  %v425_v24 = vld [vmem:[%s19976_s1 + $0x30] sm:$0xff]  ;;  %v426_v25 = vld [vmem:[%s19976_s1 + $0x38] sm:$0xff]  ;;  %v427_v26 = vld [vmem:[%s19976_s1 + $0x40] sm:$0xff]  ;;  %vm1328_vm11 = vcmp.gt.f32.partialorder %v429_v23, 0.0 }
  0x18   : > { %724 = vmatpush.bf16.msra.mxu0 %v12054_v1  ;;  %12276 = vmatpush.bf16.msra.mxu1 %v12054_v1  ;;  %v12062_v28 = vld [vmem:[%s19980_s5 + $0x30] sm:$0xff]  ;;  %vm1324_vm4 = vcmp.gt.f32.partialorder %v425_v24, 0.0  ;;  %vm1325_vm5 = vcmp.gt.f32.partialorder %v426_v25, 0.0  ;;  %v430_v29 = vld [vmem:[%s19976_s1 + $0x58] sm:$0xff]  ;;  %vm12646_vm6 = vmpackc.low %vm1327_vm3, %vm1327_vm3  ;;  %vm1326_vm7 = vcmp.gt.f32.partialorder %v427_v26, 0.0  ;;  %s10488_s11 = sshll.u32 %s10485_s29, 4  ;;  %s10489_s11 = int_to_ptr.hbm [resolvable:$true] %s10488_s11 }
  0x19   : > { %12277 = vmatpush.bf16.msra.mxu2 %v12054_v1  ;;  %12278 = vmatpush.bf16.msra.mxu3 %v12054_v1  ;;  %s12592_s12 = scalar_lea.vmem %s19975_s0, %s12297_s27  ;;  %v422_v32 = vld [vmem:[%s19976_s1 + $0x18] sm:$0xff]  ;;  %vm1378_vm8 = vmpackc.low %vm1324_vm4, %vm1324_vm4  ;;  %v12061_v38 = vld [vmem:[%s19980_s5 + $0x28] sm:$0xff]  ;;  %vm1329_vm13 = vcmp.gt.f32.partialorder %v430_v29, 0.0  ;;  %s12411_s18 = sshra.s32 %s10489_s11, 4  ;;  %s12412_s18 = int_to_ptr.hbm [resolvable:$true] %s12411_s18 }
  0x1a   : > { %v12595_v7 = vld [vmem:[%s12592_s12 + $0x1c] sm:$0xf]  ;;  %v365_v10 = vld [vmem:[%s12592_s12 + $0x18] sm:$0xf]  ;;  %v12603_v11 = vld [vmem:[%s12592_s12 + $0x20] sm:$0xf]  ;;  %p12418_p0 = scmp.lt.s32.totalorder %s12412_s18, %s19985_s10 }
  0x1b   : > { %v1195_v8 = vrot.slane %v12595_v7, 5  ;;  %v10709_v12 = vrot.slane %v365_v10, 9  ;;  %v1198_v16 = vrot.slane %v12603_v11, 5  ;;  %v12018_v18 = vld [vmem:[%s12592_s12] sm:$0xff]  ;;  %v362_v31 = vld [vmem:[%s12592_s12 + $0xc] sm:$0xf]  ;;  %vm1379_vm10 = vmpackc.low %vm1325_vm5, %vm1325_vm5 }
  0x1c   : > { %725 = vmatpush.bf16.msra.mxu0 %v12053_v2  ;;  %12279 = vmatpush.bf16.msra.mxu1 %v12053_v2  ;;  %v12038_v19 = vld [vmem:[%s12592_s12 + $0xa0] sm:$0xff]  ;;  %vm1321_vm9 = vcmp.gt.f32.partialorder %v422_v32, 0.0  ;;  %v1432_v35 = vsel %vm1378_vm8, %v365_v10, 4048220490  ;;  %v12071_v37 = vld [vmem:[%s19981_s6 + $0x38] sm:$0xff]  ;;  %vm1380_vm14 = vmpackc.low %vm1326_vm7, %vm1326_vm7  ;;  %vm1810_vm7 = vcmask 1041408  }
  0x1d   : > { %12280 = vmatpush.bf16.msra.mxu2 %v12053_v2  ;;  %12281 = vmatpush.bf16.msra.mxu3 %v12053_v2  ;;  %v1197_v13 = vrot.slane %v1195_v8, 4  ;;  %v12042_v20 = vld [vmem:[%s12592_s12 + $0xc0] sm:$0xff]  ;;  %v1196_v21 = vsel %vm12608_vm2, %v10709_v12, %v1195_v8  ;;  %vm1375_vm12 = vmpackc.low %vm1321_vm9, %vm1321_vm9  ;;  %v1433_v39 = vsel %vm1379_vm10, %v12595_v7, 4048220490  ;;  %v12664_v40 = vunpack.c.l.bf16 %v1432_v35  ;;  %v12667_v41 = vld [vmem:[%s12592_s12 + $0x28] sm:$0xf] }
  0x1e   : > { %v12622_v22 = vld [vmem:[%s12592_s12 + $0x24] sm:$0xf]  ;;  %v3961_v33 = vunpack.c.l.b16 %v1196_v21  ;;  %v1429_v43 = vsel %vm1375_vm12, %v362_v31, 4048220490  ;;  %v12673_v44 = vunpack.c.l.bf16 %v1433_v39  ;;  %v12070_v45 = vld [vmem:[%s19981_s6 + $0x30] sm:$0xff]  ;;  %vm1382_vm0 = vmpackc.low %vm1328_vm11, %vm1328_vm11  ;;  %vm2213_vm8 = vcmask 1045504  }
  0x1f   : > { %v1199_v27 = vsel %vm12608_vm2, %v1197_v13, %v1198_v16  ;;  %v1435_v34 = vsel %vm12646_vm6, %v12622_v22, 4048220490  ;;  %v370_v46 = vld [vmem:[%s12592_s12 + $0x2c] sm:$0xf]  ;;  %v1434_v47 = vsel %vm1380_vm14, %v12603_v11, 4048220490  ;;  %v12680_v48 = vunpack.c.l.bf16 %v1429_v43  ;;  %vm1383_vm1 = vmpackc.low %vm1329_vm13, %vm1329_vm13 }
  0x20   : > { %726 = vmatpush.bf16.msra.mxu0 %v12052_v3  ;;  %12282 = vmatpush.bf16.msra.mxu1 %v12052_v3  ;;  %v3962_v36 = vunpack.c.l.b16 %v1199_v27  ;;  %v12669_v42 = vunpack.c.l.bf16 %v1435_v34  ;;  %v1585_v49 = vrot.slane %v12664_v40, 1  ;;  %v1811_v50 = vrot.slane %v12664_v40, 6  ;;  %v363_v51 = vld [vmem:[%s12592_s12 + $0x10] sm:$0xf]  ;;  %v423_v56 = vld [vmem:[%s19976_s1 + $0x20] sm:$0xff]  ;;  %v424_v57 = vld [vmem:[%s19976_s1 + $0x28] sm:$0xff] }
  0x21   : > { %12283 = vmatpush.bf16.msra.mxu2 %v12052_v3  ;;  %12284 = vmatpush.bf16.msra.mxu3 %v12052_v3  ;;  %v12687_v52 = vunpack.c.l.bf16 %v1434_v47  ;;  %v1586_v53 = vrot.slane %v12673_v44, 1  ;;  %v1436_v55 = vsel %vm1382_vm0, %v12667_v41, 4048220490  ;;  %v1437_v58 = vsel %vm1383_vm1, %v370_v46, 4048220490  ;;  %v12060_v62 = vld [vmem:[%s19980_s5 + $0x20] sm:$0xff] }
  0x22   : > { %v12690_v54 = vpack.c.b16 %v3962_v36, %v3961_v33  ;;  %v12701_v59 = vunpack.c.l.bf16 %v1436_v55  ;;  %v1590_v60 = vrot.slane %v12669_v42, 1  ;;  %v364_v61 = vld [vmem:[%s12592_s12 + $0x14] sm:$0xf]  ;;  %vm1322_vm3 = vcmp.gt.f32.partialorder %v423_v56, 0.0  ;;  %v12069_v1 = vld [vmem:[%s19981_s6 + $0x28] sm:$0xff]  ;;  %v431_v3 = vld [vmem:[%s19976_s1 + $0x60] sm:$0xff] }
  0x23   : > { %v1587_v63 = vsel %vm1579_vm15, %v1585_v49, %v1586_v53  ;;  %v1812_v0 = vrot.slane %v12673_v44, 6  ;;  %v12713_v2 = vunpack.c.l.bf16 %v1437_v58  ;;  %vm1323_vm4 = vcmp.gt.f32.partialorder %v424_v57, 0.0  ;;  %vm12715_vm5 = vmpackc.low %vm1322_vm3, %vm1322_vm3  ;;  %v12019_v24 = vld [vmem:[%s12592_s12 + $0x8] sm:$0xff]  ;;  %s12413_s20 = scalar_lea.hbm %s12412_s18, 256  ;;  %s12417_s27 = scalar_lea.hbm %s19985_s10, 512 }
  0x24   : > { %727 = vmatpush.bf16.msra.mxu0 %v12051_v4  ;;  %12285 = vmatpush.bf16.msra.mxu1 %v12051_v4  ;;  %v1591_v7 = vrot.slane %v12701_v59, 1  ;;  %vm12727_vm6 = vmpackc.low %vm1323_vm4, %vm1323_vm4  ;;  %v1430_v11 = vsel %vm12715_vm5, %v363_v51, 4048220490  ;;  %v10710_v13 = vrot.slane %v12622_v22, 9  ;;  %v1205_v16 = vrot.slane %v370_v46, 5  ;;  %v12039_v25 = vld [vmem:[%s12592_s12 + $0xa8] sm:$0xff]  ;;  %p12414_p11 = scmp.ne.s32.totalorder %s12412_s18, %s12413_s20  ;;  %p12419_p1 = scmp.lt.s32.totalorder %s12417_s27, %s12413_s20 }
  0x25   : > { %12286 = vmatpush.bf16.msra.mxu2 %v12051_v4  ;;  %12287 = vmatpush.bf16.msra.mxu3 %v12051_v4  ;;  %v1814_v4 = vrot.slane %v12687_v52, 6  ;;  %v1593_v10 = vrot.slane %v12713_v2, 1  ;;  %v1431_v12 = vsel %vm12727_vm6, %v364_v61, 4048220490  ;;  %v12751_v22 = vunpack.c.l.bf16 %v1430_v11  ;;  %v12043_v30 = vld [vmem:[%s12592_s12 + $0xc8] sm:$0xff] }
  0x26   : > { %v1592_v17 = vsel %vm1579_vm15, %v1590_v60, %v1591_v7  ;;  %v1580_v23 = vrot.slane %v12680_v48, 1  ;;  %v1485_v29 = vunpack.c.l.bf16 %v1431_v12  ;;  %v1588_v34 = vrot.slane %v12687_v52, 1  ;;  %v12057_v61 = vld [vmem:[%s19980_s5 + $0x8] sm:$0xff]  ;;  %p12415_p12 = pnand %p12414_p11, %p12556_p5  ;;  %p12420_p2 = por %p12419_p1, %p12418_p0 }
  0x27   : > { %v12749_v21 = vmax.f32 %v12669_v42, %v1592_v17  ;;  %v12766_v32 = vmax.f32 %v12713_v2, %v1593_v10  ;;  %v1581_v33 = vrot.slane %v12751_v22, 1  ;;  %vm2492_vm9 = vcmask 1040384  }
  0x28   : > { %728 = vmatpush.bf16.msra.mxu0 %v12050_v5  ;;  %12288 = vmatpush.bf16.msra.mxu1 %v12050_v5  ;;  %v12786_v55 = vmax.f32 %v12687_v52, %v1588_v34  ;;  %v1813_v56 = vsel %vm1810_vm7, %v1811_v50, %v1812_v0  ;;  %v1815_v57 = vsel %vm1810_vm7, %v1812_v0, %v1814_v4  ;;  %v3133_v0 = vrot.slane %v12669_v42, 2  ;;  %p12416_p13 = pneg %p12415_p12 }
  0x29   : > { %12289 = vmatpush.bf16.msra.mxu2 %v12050_v5  ;;  %12290 = vmatpush.bf16.msra.mxu3 %v12050_v5  ;;  %v12723_v5 = vmax.f32 %v12680_v48, %v1811_v50  ;;  %v1582_v39 = vsel %vm1579_vm15, %v1580_v23, %v1581_v33  ;;  %v2493_v43 = vrot.slane %v12749_v21, 7  ;;  %v1940_v58 = vmax.f32 %v12751_v22, %v1813_v56 }
  0x2a   : > { %v1708_v47 = vmax.f32 %v12680_v48, %v1582_v39  ;;  %v2496_v60 = vrot.slane %v12766_v32, 7  ;;  %vm1330_vm10 = vcmp.gt.f32.partialorder %v431_v3, 0.0  ;;  %vm3357_vm1 = vsmask.f32 3328  ;;  %p12421_p3 = pnand %p12420_p2, %p12416_p13 }
  0x2b   : > { %v2214_v26 = vrot.slane %v12723_v5, 2  ;;  %v2215_v4 = vrot.slane %v1940_v58, 2  ;;  %vm12831_vm11 = vmpackc.low %vm1330_vm10, %vm1330_vm10  ;;  %v1817_v56 = vrot.slane %v12701_v59, 6  ;;  %v12040_v58 = vld [vmem:[%s12592_s12 + $0xb0] sm:$0xff]  ;;  %vm3358_vm3 = vsmask.f32 7440 }
  0x2c   : > { %729 = vmatpush.bf16.msra.mxu0 %v12049_v6  ;;  %12291 = vmatpush.bf16.msra.mxu1 %v12049_v6  ;;  %vm12892_vm4 = vmor %vm3357_vm1, %vm3358_vm3 }
  0x2d   : > { %12292 = vmatpush.bf16.msra.mxu2 %v12049_v6  ;;  %12293 = vmatpush.bf16.msra.mxu3 %v12049_v6  ;;  %v1202_v6 = vrot.slane %v12667_v41, 5  ;;  %v1589_v41 = vsel %vm1579_vm15, %v1586_v53, %v1588_v34 }
  0x2e   : > { %v12783_v53 = vmax.f32 %v12673_v44, %v1589_v41 }
  0x2f   : > { %v1203_v27 = vsel %vm12608_vm2, %v10710_v13, %v1202_v6  ;;  %v432_v13 = vld [vmem:[%s19976_s1 + $0x68] sm:$0xff] }
  0x30   : > { %730 = vmatpush.bf16.msra.mxu0 %v12048_v9  ;;  %12294 = vmatpush.bf16.msra.mxu1 %v12048_v9  ;;  %v3963_v35 = vunpack.c.l.b16 %v1203_v27  ;;  %vm1331_vm12 = vcmp.gt.f32.partialorder %v432_v13, 0.0 }
  0x31   : > { %12295 = vmatpush.bf16.msra.mxu2 %v12048_v9  ;;  %12296 = vmatpush.bf16.msra.mxu3 %v12048_v9  ;;  %v12732_v9 = vmax.f32 %v12664_v40, %v1587_v63  ;;  %v1941_v63 = vmax.f32 %v1485_v29, %v1815_v57  ;;  %vm12838_vm14 = vmpackc.low %vm1331_vm12, %vm1331_vm12  ;;  %v12020_v57 = vld [vmem:[%s12592_s12 + $0x10] sm:$0xff] }
  0x33   : > { %731 = vmatmul.bf16.vlgmr.msra.gmra.mxu0 %v12018_v18  ;;  %831 = vmatmul.bf16.vlgmr.msra.gmra.mxu1 %v12038_v19  ;;  %v12059_v18 = vld [vmem:[%s19980_s5 + $0x18] sm:$0xff]  ;;  %v12068_v19 = vld [vmem:[%s19981_s6 + $0x20] sm:$0xff]  ;;  %v2621_v50 = vmax.f32 %v12732_v9, %v2493_v43  ;;  %v2217_v8 = vrot.slane %v1941_v63, 2 }
  0x34   : > { %851 = vmatmul.bf16.vlgmr.msra.gmra.mxu2 %v12042_v20  ;;  %3872 = vmatpush.bf16.msrb.mxu1 %v12071_v37  ;;  %v1594_v20 = vsel %vm1579_vm15, %v1591_v7, %v1593_v10  ;;  %v1583_v37 = vrot.slane %v1485_v29, 1  ;;  %v3136_v7 = vrot.slane %v12713_v2, 2 }
  0x35   : > { %4073 = vmatpush.bf16.msrb.mxu2 %v12063_v14  ;;  %v1204_v14 = vrot.slane %v1202_v6, 4  ;;  %v12763_v31 = vmax.f32 %v12701_v59, %v1594_v20  ;;  %v2861_v12 = vrot.slane %v2621_v50, 1  ;;  %v433_v20 = vld [vmem:[%s19976_s1 + $0x70] sm:$0xff]  ;;  %v2218_v23 = vsel %vm2213_vm8, %v2215_v4, %v2217_v8 }
  0x36   : > { %v1584_v46 = vsel %vm1579_vm15, %v1581_v33, %v1583_v37  ;;  %v1710_v49 = vmax.f32 %v1485_v29, %v1583_v37  ;;  %vm1332_vm13 = vcmp.gt.f32.partialorder %v433_v20, 0.0 }
  0x37   : > { %v1709_v51 = vmax.f32 %v12751_v22, %v1584_v46  ;;  %v2494_v48 = vrot.slane %v12763_v31, 7  ;;  %v12065_v22 = vld [vmem:[%s19981_s6 + $0x8] sm:$0xff]  ;;  %vm12844_vm0 = vmpackc.low %vm1332_vm13, %vm1332_vm13 }
  0x38   : > { %3873 = vmatpush.bf16.msrb.mxu1 %v12070_v45  ;;  %v12067_v45 = vld [vmem:[%s19981_s6 + $0x18] sm:$0xff] }
  0x39   : > { %4074 = vmatpush.bf16.msrb.mxu2 %v12062_v28  ;;  %v1206_v28 = vsel %vm12608_vm2, %v1204_v14, %v1205_v16  ;;  %v2495_v5 = vsel %vm2492_vm9, %v2493_v43, %v2494_v48  ;;  %v2497_v6 = vsel %vm2492_vm9, %v2494_v48, %v2496_v60  ;;  %v12056_v14 = vld [vmem:[%s19980_s5] sm:$0xff]  ;;  %v1816_v16 = vrot.slane %v12669_v42, 6  ;;  %v373_v43 = vld [vmem:[%s12592_s12 + $0x38] sm:$0xf] }
  0x3a   : > { %v3964_v36 = vunpack.c.l.b16 %v1206_v28  ;;  %v2622_v10 = vmax.f32 %v12783_v53, %v2495_v5  ;;  %v2623_v11 = vmax.f32 %v12786_v55, %v2497_v6  ;;  %v372_v28 = vld [vmem:[%s12592_s12 + $0x34] sm:$0xf]  ;;  %v2343_v29 = vmax.f32 %v1709_v51, %v2218_v23 }
  0x3b   : > { %v1209_v33 = vrot.slane %v372_v28, 5  ;;  %v1212_v50 = vrot.slane %v373_v43, 5 }
  0x3c   : > { %3874 = vmatpush.bf16.msrb.mxu1 %v12069_v1  ;;  %v3134_v1 = vrot.slane %v12701_v59, 2  ;;  %v12819_v17 = vpack.c.b16 %v3964_v36, %v3963_v35  ;;  %v2862_v27 = vrot.slane %v2622_v10, 1 }
  0x3d   : > { %4075 = vmatpush.bf16.msrb.mxu2 %v12061_v38  ;;  %v12058_v38 = vld [vmem:[%s19980_s5 + $0x10] sm:$0xff] }
  0x3e   : > { %v2863_v34 = vsel %vm1579_vm15, %v2861_v12, %v2862_v27  ;;  %v3135_v35 = vsel %vm2213_vm8, %v3133_v0, %v3134_v1  ;;  %v3137_v36 = vsel %vm2213_vm8, %v3134_v1, %v3136_v7  ;;  %v1440_v0 = vsel %vm12844_vm0, %v373_v43, 4048220490 }
  0x40   : > { %3875 = vmatpush.bf16.msrb.mxu1 %v12068_v19  ;;  %v371_v19 = vld [vmem:[%s12592_s12 + $0x30] sm:$0xf] }
  0x41   : > { %4076 = vmatpush.bf16.msrb.mxu2 %v12060_v62  ;;  %v12066_v62 = vld [vmem:[%s19981_s6 + $0x10] sm:$0xff]  ;;  %v1438_v46 = vsel %vm12831_vm11, %v371_v19, 4048220490  ;;  %v10711_v51 = vrot.slane %v371_v19, 9 }
  0x42   : > { %v12860_v1 = vunpack.c.l.bf16 %v1438_v46 }
  0x43   : > { %736 = vmatmul.bf16.gmra.mxu0 %v12019_v24  ;;  %836 = vmatmul.bf16.gmra.mxu1 %v12039_v25  ;;  %v2344_v25 = vmax.f32 %v1710_v49, %v2217_v8  ;;  %v12868_v8 = vunpack.c.l.bf16 %v1440_v0 }
  0x44   : > { %856 = vmatmul.bf16.gmra.mxu2 %v12043_v30  ;;  %3876 = vmatpush.bf16.msrb.mxu1 %v12067_v45  ;;  %v2864_v30 = vrot.slane %v2623_v11, 1  ;;  %v1595_v10 = vrot.slane %v12860_v1, 1  ;;  %v1821_v45 = vrot.slane %v12860_v1, 6 }
  0x45   : > { %4077 = vmatpush.bf16.msrb.mxu2 %v12059_v18  ;;  %v2216_v18 = vsel %vm2213_vm8, %v2214_v26, %v2215_v4 }
  0x46   : > { %v2342_v24 = vmax.f32 %v1708_v47, %v2216_v18  ;;  %v2991_v41 = vmax.f32 %v2344_v25, %v2864_v30  ;;  %v12064_v47 = vld [vmem:[%s19981_s6] sm:$0xff] }
  0x48   : > { %3877 = vmatpush.bf16.msrb.mxu1 %v12066_v62  ;;  %v2989_v39 = vmax.f32 %v2342_v24, %v2863_v34  ;;  %v3263_v60 = vmax.f32 %v2991_v41, %v3136_v7  ;;  %v1439_v62 = vsel %vm12838_vm14, %v372_v28, 4048220490  ;;  %v12866_v7 = vsel %vm12608_vm2, %v10711_v51, %v1209_v33 }
  0x49   : > { %4078 = vmatpush.bf16.msrb.mxu2 %v12058_v38  ;;  %v2865_v38 = vsel %vm1579_vm15, %v2862_v27, %v2864_v30  ;;  %v12862_v5 = vunpack.c.l.bf16 %v1439_v62  ;;  %v3965_v27 = vunpack.c.l.b16 %v12866_v7  ;;  %v1942_v41 = vmax.f32 %v12664_v40, %v1816_v16 }
  0x4a   : > { %v2990_v49 = vmax.f32 %v2343_v29, %v2865_v38  ;;  %v3261_v48 = vmax.f32 %v2989_v39, %v3135_v35  ;;  %v3311_v4 = vpack.c.bf16 %v3263_v60, %v3263_v60  ;;  %v1818_v38 = vsel %vm1810_vm7, %v1816_v16, %v1817_v56 }
  0x4b   : > { %v1819_v39 = vrot.slane %v12713_v2, 6  ;;  %v1943_v46 = vmax.f32 %v12673_v44, %v1818_v38 }
  0x4c   : > { %3878 = vmatpush.bf16.msrb.mxu1 %v12065_v22  ;;  %v3262_v63 = vmax.f32 %v2990_v49, %v3137_v36  ;;  %v3309_v3 = vpack.c.bf16 %v3261_v48, %v3261_v48  ;;  %v3380_v13 = vshll.u32 %v3311_v4, 16  ;;  %v1598_v22 = vrot.slane %v12868_v8, 1 }
  0x4d   : > { %4079 = vmatpush.bf16.msrb.mxu2 %v12057_v61  ;;  %v1211_v61 = vrot.slane %v1209_v33, 4  ;;  %v1820_v51 = vsel %vm1810_vm7, %v1817_v56, %v1819_v39  ;;  %v2220_v40 = vrot.slane %v1943_v46, 2 }
  0x4e   : > { %v3310_v6 = vpack.c.bf16 %v3262_v63, %v3262_v63  ;;  %v3361_v11 = vshrl.u32 %v3309_v3, 16  ;;  %v3364_v12 = vshll.u32 %v3309_v3, 16  ;;  %v3382_v33 = vrot.slane %v3380_v13, 5  ;;  %v12021_v3 = vld [vmem:[%s12592_s12 + $0x18] sm:$0xff] }
  0x4f   : > { %v12875_v20 = vsel %vm12608_vm2, %v1211_v61, %v1212_v50  ;;  %v12888_v35 = vmax.f32 %v12868_v8, %v1598_v22  ;;  %v1944_v60 = vmax.f32 %v12687_v52, %v1820_v51 }
  0x50   : > { %3879 = vmatpush.bf16.msrb.mxu1 %v12064_v47  ;;  %v3370_v18 = vshll.u32 %v3310_v6, 16  ;;  %v3374_v19 = vshrl.u32 %v3310_v6, 16  ;;  %v3363_v23 = vrot.slane %v3361_v11, 4  ;;  %v3366_v24 = vrot.slane %v3364_v12, 5  ;;  %v12041_v12 = vld [vmem:[%s12592_s12 + $0xb8] sm:$0xff] }
  0x51   : > { %4080 = vmatpush.bf16.msrb.mxu2 %v12056_v14  ;;  %v1596_v14 = vrot.slane %v12862_v5, 1  ;;  %v2501_v16 = vrot.slane %v12888_v35, 7  ;;  %v3966_v61 = vunpack.c.l.b16 %v12875_v20  ;;  %v2222_v0 = vrot.slane %v1944_v60, 2  ;;  %v374_v20 = vld [vmem:[%s12592_s12 + $0x3c] sm:$0xf] }
  0x52   : > { %v3372_v28 = vrot.slane %v3370_v18, 5  ;;  %v3376_v26 = vrot.slane %v3374_v19, 4  ;;  %v3367_v30 = vor.u32 %v3366_v24, %v3363_v23  ;;  %v3138_v19 = vrot.slane %v12860_v1, 2 }
  0x53   : > { %741 = vmatmul.bf16.gmra.mxu0 %v12020_v57  ;;  %841 = vmatmul.bf16.gmra.mxu1 %v12040_v58  ;;  %v1597_v25 = vsel %vm1579_vm15, %v1595_v10, %v1596_v14  ;;  %v1599_v29 = vsel %vm1579_vm15, %v1596_v14, %v1598_v22  ;;  %v2219_v57 = vrot.slane %v1942_v41, 2  ;;  %v2223_v13 = vsel %vm2213_vm8, %v2220_v40, %v2222_v0  ;;  %v375_v22 = vld [vmem:[%s12592_s12 + $0x40] sm:$0xf] }
  0x54   : > { %4081 = vmatmul.bf16.vlgmr.msrb.gmra.mxu2 %v12690_v54  ;;  %v12882_v54 = vmax.f32 %v12860_v1, %v1597_v25  ;;  %v12885_v34 = vmax.f32 %v12862_v5, %v1599_v29  ;;  %v3377_v37 = vor.u32 %v3376_v26, %v3372_v28  ;;  %v3368_v43 = vrot.slane %v3367_v30, 4  ;;  %v376_v26 = vld [vmem:[%s12592_s12 + $0x44] sm:$0xf]  ;;  %v434_v30 = vld [vmem:[%s19976_s1 + $0x78] sm:$0xff] }
  0x55   : > { %v2221_v50 = vsel %vm2213_vm8, %v2219_v57, %v2220_v40  ;;  %v2347_v18 = vmax.f32 %v12786_v55, %v2222_v0  ;;  %v2346_v23 = vmax.f32 %v12783_v53, %v2223_v13  ;;  %v3141_v29 = vrot.slane %v12868_v8, 2 }
  0x56   : > { %v2498_v47 = vrot.slane %v12882_v54, 7  ;;  %v3378_v49 = vrot.slane %v3377_v37, 4  ;;  %v2499_v58 = vrot.slane %v12885_v34, 7  ;;  %v3373_v48 = vsel %vm12892_vm4, %v3368_v43, %v3372_v28  ;;  %v436_v43 = vld [vmem:[%s19976_s1 + $0x88] sm:$0xff] }
  0x57   : > { %v3760_v63 = vunpack.c.l.b16 %v3373_v48  ;;  %v2345_v14 = vmax.f32 %v12732_v9, %v2221_v50  ;;  %v3139_v28 = vrot.slane %v12862_v5, 2  ;;  %v435_v9 = vld [vmem:[%s19976_s1 + $0x80] sm:$0xff]  ;;  %v10712_v55 = vrot.slane %v374_v20, 9  ;;  %v12044_v48 = vld [vmem:[%s12592_s12 + $0xd0] sm:$0xff] }
  0x58   : > { %v3383_v44 = vsel %vm12892_vm4, %v3378_v49, %v3382_v33  ;;  %v2500_v62 = vsel %vm2492_vm9, %v2498_v47, %v2499_v58  ;;  %v2624_v56 = vmax.f32 %v12749_v21, %v2498_v47  ;;  %v2502_v52 = vsel %vm2492_vm9, %v2499_v58, %v2501_v16  ;;  %861 = vmatmul.bf16.vlgmr.msra.gmra.mxu3 %v12044_v48 }
  0x59   : > { %v3761_v4 = vunpack.c.l.b16 %v3383_v44  ;;  %v2625_v6 = vmax.f32 %v12763_v31, %v2500_v62  ;;  %v2626_v10 = vmax.f32 %v12766_v32, %v2502_v52  ;;  %v1216_v33 = vrot.slane %v375_v22, 5 }
  0x5a   : > { %v2866_v11 = vrot.slane %v2624_v56, 1  ;;  %v1219_v37 = vrot.slane %v376_v26, 5  ;;  %v3140_v41 = vsel %vm2213_vm8, %v3138_v19, %v3139_v28  ;;  %v3142_v49 = vsel %vm2213_vm8, %v3139_v28, %v3141_v29 }
  0x5b   : > { %v2867_v24 = vrot.slane %v2625_v6, 1  ;;  %v2869_v25 = vrot.slane %v2626_v10, 1  ;;  %v1218_v51 = vrot.slane %v1216_v33, 4  ;;  %v12949_v57 = vpack.c.b16 %v3966_v61, %v3965_v27 }
  0x5c   : > { %vm1333_vm5 = vcmp.gt.f32.partialorder %v434_v30, 0.0  ;;  %vm1334_vm6 = vcmp.gt.f32.partialorder %v435_v9, 0.0  ;;  %v12954_v16 = vsel %vm12608_vm2, %v10712_v55, %v1216_v33  ;;  %vm1335_vm10 = vcmp.gt.f32.partialorder %v436_v43, 0.0 }
  0x5d   : > { %v2868_v53 = vsel %vm1579_vm15, %v2866_v11, %v2867_v24  ;;  %v2870_v38 = vsel %vm1579_vm15, %v2867_v24, %v2869_v25  ;;  %v2994_v39 = vmax.f32 %v2347_v18, %v2869_v25  ;;  %vm1387_vm11 = vmpackc.low %vm1333_vm5, %vm1333_vm5  ;;  %v3792_v44 = vpack.c.b16 %v3761_v4, %v3760_v63 }
  0x5e   : > { %v2992_v46 = vmax.f32 %v2345_v14, %v2868_v53  ;;  %v2993_v47 = vmax.f32 %v2346_v23, %v2870_v38  ;;  %vm1388_vm12 = vmpackc.low %vm1334_vm6, %vm1334_vm6  ;;  %v1441_v7 = vsel %vm1387_vm11, %v374_v20, 4048220490  ;;  %v3967_v6 = vunpack.c.l.b16 %v12954_v16 }
  0x5f   : > { %v3266_v58 = vmax.f32 %v2994_v39, %v3141_v29  ;;  %vm1389_vm13 = vmpackc.low %vm1335_vm10, %vm1335_vm10  ;;  %v1442_v56 = vsel %vm1388_vm12, %v375_v22, 4048220490  ;;  %v12958_v50 = vunpack.c.l.bf16 %v1441_v7  ;;  %v1824_v55 = vrot.slane %v12868_v8, 6  ;;  %v12022_v39 = vld [vmem:[%s12592_s12 + $0x20] sm:$0xff] }
  0x60   : > { %v3264_v60 = vmax.f32 %v2992_v46, %v3140_v41  ;;  %v3265_v40 = vmax.f32 %v2993_v47, %v3142_v49  ;;  %v1443_v52 = vsel %vm1389_vm13, %v376_v26, 4048220490  ;;  %v1822_v26 = vrot.slane %v12862_v5, 6 }
  0x61   : > { %v3314_v62 = vpack.c.bf16 %v3266_v58, %v3266_v58  ;;  %v1600_v13 = vrot.slane %v12958_v50, 1  ;;  %v1945_v38 = vmax.f32 %v12669_v42, %v1821_v45 }
  0x62   : > { %v3312_v27 = vpack.c.bf16 %v3264_v60, %v3264_v60  ;;  %v3313_v61 = vpack.c.bf16 %v3265_v40, %v3265_v40  ;;  %v1823_v53 = vsel %vm1810_vm7, %v1821_v45, %v1822_v26  ;;  %v1825_v47 = vsel %vm1810_vm7, %v1822_v26, %v1824_v55 }
  0x63   : > { %746 = vmatmul.bf16.gmra.mxu0 %v12021_v3  ;;  %846 = vmatmul.bf16.gmra.mxu1 %v12041_v12  ;;  %v3404_v0 = vshll.u32 %v3314_v62, 16  ;;  %v12960_v3 = vunpack.c.l.bf16 %v1442_v56  ;;  %v12963_v12 = vunpack.c.l.bf16 %v1443_v52  ;;  %v1946_v49 = vmax.f32 %v12701_v59, %v1823_v53 }
  0x64   : > { %4086 = vmatmul.bf16.gmra.mxu2 %v12819_v17  ;;  %v1220_v17 = vsel %vm12608_vm2, %v1218_v51, %v1219_v37  ;;  %v3385_v63 = vshrl.u32 %v3312_v27, 16  ;;  %v3388_v4 = vshll.u32 %v3312_v27, 16  ;;  %v3394_v10 = vshll.u32 %v3313_v61, 16 }
  0x65   : > { %v3398_v11 = vshrl.u32 %v3313_v61, 16  ;;  %v1601_v14 = vrot.slane %v12960_v3, 1  ;;  %v3968_v18 = vunpack.c.l.b16 %v1220_v17  ;;  %v3406_v24 = vrot.slane %v3404_v0, 5 }
  0x66   : > { %v3387_v19 = vrot.slane %v3385_v63, 4  ;;  %v3390_v20 = vrot.slane %v3388_v4, 5  ;;  %v3396_v22 = vrot.slane %v3394_v10, 5  ;;  %v1603_v28 = vrot.slane %v12963_v12, 1  ;;  %v12045_v63 = vld [vmem:[%s12592_s12 + $0xd8] sm:$0xff] }
  0x67   : > { %v3400_v23 = vrot.slane %v3398_v11, 4  ;;  %v1602_v25 = vsel %vm1579_vm15, %v1600_v13, %v1601_v14  ;;  %v1947_v51 = vmax.f32 %v12713_v2, %v1825_v47  ;;  %v2224_v58 = vrot.slane %v1945_v38, 2 }
  0x68   : > { %v3391_v29 = vor.u32 %v3390_v20, %v3387_v19  ;;  %v12971_v9 = vmax.f32 %v12958_v50, %v1602_v25  ;;  %v1604_v33 = vsel %vm1579_vm15, %v1601_v14, %v1603_v28  ;;  %v12976_v37 = vmax.f32 %v12963_v12, %v1603_v28  ;;  %866 = vmatmul.bf16.gmra.mxu3 %v12045_v63 }
  0x69   : > { %v3401_v30 = vor.u32 %v3400_v23, %v3396_v22  ;;  %v12986_v46 = vmax.f32 %v12960_v3, %v1604_v33  ;;  %v2225_v62 = vrot.slane %v1946_v49, 2  ;;  %v2227_v17 = vrot.slane %v1947_v51, 2  ;;  %v377_v23 = vld [vmem:[%s12592_s12 + $0x48] sm:$0xf]  ;;  %v379_v33 = vld [vmem:[%s12592_s12 + $0x50] sm:$0xf] }
  0x6a   : > { %v3392_v41 = vrot.slane %v3391_v29, 4  ;;  %v2503_v48 = vrot.slane %v12971_v9, 7  ;;  %v2506_v40 = vrot.slane %v12976_v37, 7  ;;  %v13002_v61 = vpack.c.b16 %v3968_v18, %v3967_v6  ;;  %v438_v6 = vld [vmem:[%s19976_s1 + $0x98] sm:$0xff] }
  0x6b   : > { %v3402_v43 = vrot.slane %v3401_v30, 4  ;;  %v2504_v45 = vrot.slane %v12986_v46, 7  ;;  %v2226_v56 = vsel %vm2213_vm8, %v2224_v58, %v2225_v62  ;;  %v2228_v0 = vsel %vm2213_vm8, %v2225_v62, %v2227_v17 }
  0x6c   : > { %v3397_v60 = vsel %vm12892_vm4, %v3392_v41, %v3396_v22  ;;  %v2627_v27 = vmax.f32 %v12882_v54, %v2503_v48  ;;  %v3143_v52 = vrot.slane %v12958_v50, 2  ;;  %v2350_v4 = vmax.f32 %v12766_v32, %v2227_v17 }
  0x6d   : > { %v3407_v42 = vsel %vm12892_vm4, %v3402_v43, %v3406_v24  ;;  %v3762_v16 = vunpack.c.l.b16 %v3397_v60  ;;  %v2505_v2 = vsel %vm2492_vm9, %v2503_v48, %v2504_v45  ;;  %v2507_v7 = vsel %vm2492_vm9, %v2504_v45, %v2506_v40  ;;  %v439_v24 = vld [vmem:[%s19976_s1 + $0xa0] sm:$0xff] }
  0x6e   : > { %v3763_v59 = vunpack.c.l.b16 %v3407_v42  ;;  %v2628_v10 = vmax.f32 %v12885_v34, %v2505_v2  ;;  %v2629_v11 = vmax.f32 %v12888_v35, %v2507_v7  ;;  %v2349_v13 = vmax.f32 %v12763_v31, %v2228_v0  ;;  %v378_v31 = vld [vmem:[%s12592_s12 + $0x4c] sm:$0xf] }
  0x6f   : > { %v2871_v14 = vrot.slane %v2627_v27, 1  ;;  %v3146_v32 = vrot.slane %v12963_v12, 2  ;;  %v1826_v19 = vrot.slane %v12958_v50, 6  ;;  %v10713_v28 = vrot.slane %v377_v23, 9  ;;  %v12023_v27 = vld [vmem:[%s12592_s12 + $0x28] sm:$0xff] }
  0x70   : > { %v3793_v18 = vpack.c.b16 %v3763_v59, %v3762_v16  ;;  %v2872_v20 = vrot.slane %v2628_v10, 1  ;;  %v2874_v22 = vrot.slane %v2629_v11, 1  ;;  %vm1337_vm0 = vcmp.gt.f32.partialorder %v438_v6, 0.0 }
  0x71   : > { %v1223_v41 = vrot.slane %v378_v31, 5  ;;  %vm1338_vm3 = vcmp.gt.f32.partialorder %v439_v24, 0.0  ;;  %vm1391_vm5 = vmpackc.low %vm1337_vm0, %vm1337_vm0  ;;  %v1226_v47 = vrot.slane %v379_v33, 5  ;;  %v1827_v7 = vrot.slane %v12960_v3, 6 }
  0x72   : > { %v2873_v26 = vsel %vm1579_vm15, %v2871_v14, %v2872_v20  ;;  %v2875_v29 = vsel %vm1579_vm15, %v2872_v20, %v2874_v22  ;;  %v2997_v30 = vmax.f32 %v2350_v4, %v2874_v22  ;;  %vm1392_vm6 = vmpackc.low %vm1338_vm3, %vm1338_vm3  ;;  %v1445_v51 = vsel %vm1391_vm5, %v378_v31, 4048220490 }
  0x73   : > { %751 = vmatmul.bf16.gmra.mxu0 %v12022_v39  ;;  %3880 = vmatmul.bf16.vlgmr.msrb.gmra.mxu1 %v3792_v44  ;;  %v2348_v44 = vmax.f32 %v12749_v21, %v2226_v56  ;;  %v3144_v21 = vrot.slane %v12960_v3, 2  ;;  %v2996_v39 = vmax.f32 %v2349_v13, %v2875_v29  ;;  %v13040_v60 = vsel %vm12608_vm2, %v10713_v28, %v1223_v41 }
  0x74   : > { %4091 = vmatmul.bf16.gmra.mxu2 %v12949_v57  ;;  %v437_v57 = vld [vmem:[%s19976_s1 + $0x90] sm:$0xff]  ;;  %v3269_v43 = vmax.f32 %v2997_v30, %v3146_v32  ;;  %v1446_v42 = vsel %vm1392_vm6, %v379_v33, 4048220490  ;;  %v13044_v16 = vunpack.c.l.bf16 %v1445_v51  ;;  %v1225_v2 = vrot.slane %v1223_v41, 4  ;;  %v12046_v30 = vld [vmem:[%s12592_s12 + $0xe0] sm:$0xff] }
  0x75   : > { %v3145_v25 = vsel %vm2213_vm8, %v3143_v52, %v3144_v21  ;;  %vm1336_vm14 = vcmp.gt.f32.partialorder %v437_v57, 0.0  ;;  %v3147_v55 = vsel %vm2213_vm8, %v3144_v21, %v3146_v32  ;;  %v2995_v38 = vmax.f32 %v2348_v44, %v2873_v26 }
  0x76   : > { %vm13032_vm1 = vmpackc.low %vm1336_vm14, %vm1336_vm14  ;;  %v3268_v48 = vmax.f32 %v2996_v39, %v3147_v55  ;;  %v3317_v45 = vpack.c.bf16 %v3269_v43, %v3269_v43  ;;  %v13046_v62 = vunpack.c.l.bf16 %v1446_v42  ;;  %v1606_v52 = vrot.slane %v13044_v16, 1  ;;  %v12079_v55 = vld [vmem:[%s19982_s7 + $0x38] sm:$0xff] }
  0x77   : > { %v1444_v49 = vsel %vm13032_vm1, %v377_v23, 4048220490  ;;  %v3267_v58 = vmax.f32 %v2995_v38, %v3145_v25  ;;  %v3969_v14 = vunpack.c.l.b16 %v13040_v60  ;;  %v13061_v24 = vsel %vm12608_vm2, %v1225_v2, %v1226_v47  ;;  %4322 = vmatpush.bf16.msrb.mxu3 %v12079_v55 }
  0x78   : > { %v13042_v40 = vunpack.c.l.bf16 %v1444_v49  ;;  %v3316_v59 = vpack.c.bf16 %v3268_v48, %v3268_v48  ;;  %v3428_v56 = vshll.u32 %v3317_v45, 16  ;;  %v1608_v63 = vrot.slane %v13046_v62, 1  ;;  %871 = vmatmul.bf16.gmra.mxu3 %v12046_v30  ;;  %v12024_v30 = vld [vmem:[%s12592_s12 + $0x30] sm:$0xff] }
  0x79   : > { %v3315_v17 = vpack.c.bf16 %v3267_v58, %v3267_v58  ;;  %v1828_v29 = vsel %vm1810_vm7, %v1826_v19, %v1827_v7  ;;  %v1948_v33 = vmax.f32 %v12860_v1, %v1826_v19  ;;  %v12078_v1 = vld [vmem:[%s19982_s7 + $0x30] sm:$0xff] }
  0x7a   : > { %v1605_v0 = vrot.slane %v13042_v40, 1  ;;  %v3418_v10 = vshll.u32 %v3316_v59, 16  ;;  %v3422_v11 = vshrl.u32 %v3316_v59, 16  ;;  %v1609_v6 = vsel %vm1579_vm15, %v1606_v52, %v1608_v63 }
  0x7b   : > { %v3409_v44 = vshrl.u32 %v3315_v17, 16  ;;  %v3412_v4 = vshll.u32 %v3315_v17, 16  ;;  %v13056_v13 = vmax.f32 %v13046_v62, %v1608_v63  ;;  %v3430_v23 = vrot.slane %v3428_v56, 5  ;;  %4323 = vmatpush.bf16.msrb.mxu3 %v12078_v1 }
  0x7c   : > { %v1607_v57 = vsel %vm1579_vm15, %v1605_v0, %v1606_v52  ;;  %v3420_v20 = vrot.slane %v3418_v10, 5  ;;  %v3424_v22 = vrot.slane %v3422_v11, 4  ;;  %v13067_v31 = vmax.f32 %v13044_v16, %v1609_v6  ;;  %v380_v10 = vld [vmem:[%s12592_s12 + $0x54] sm:$0xf] }
  0x7d   : > { %v3411_v21 = vrot.slane %v3409_v44, 4  ;;  %v3414_v32 = vrot.slane %v3412_v4, 5  ;;  %v13064_v25 = vmax.f32 %v13042_v40, %v1607_v57  ;;  %v1949_v53 = vmax.f32 %v12862_v5, %v1828_v29 }
  0x7e   : > { %v3425_v26 = vor.u32 %v3424_v22, %v3420_v20  ;;  %v2509_v38 = vrot.slane %v13067_v31, 7  ;;  %v2511_v47 = vrot.slane %v13056_v13, 7  ;;  %v2229_v51 = vrot.slane %v1948_v33, 2 }
  0x7f   : > { %v3415_v28 = vor.u32 %v3414_v32, %v3411_v21  ;;  %v2230_v58 = vrot.slane %v1949_v53, 2  ;;  %v3970_v17 = vunpack.c.l.b16 %v13061_v24  ;;  %v3148_v4 = vrot.slane %v13042_v40, 2  ;;  %v381_v32 = vld [vmem:[%s12592_s12 + $0x58] sm:$0xf] }
  0x80   : > { %v3426_v41 = vrot.slane %v3425_v26, 4  ;;  %v2512_v42 = vsel %vm2492_vm9, %v2509_v38, %v2511_v47  ;;  %v3149_v21 = vrot.slane %v13044_v16, 2  ;;  %v3151_v22 = vrot.slane %v13046_v62, 2 }
  0x81   : > { %v3416_v39 = vrot.slane %v3415_v28, 4  ;;  %v2231_v59 = vsel %vm2213_vm8, %v2229_v51, %v2230_v58  ;;  %v2632_v56 = vmax.f32 %v12976_v37, %v2512_v42  ;;  %v12077_v42 = vld [vmem:[%s19982_s7 + $0x28] sm:$0xff] }
  0x82   : > { %v3431_v19 = vsel %vm12892_vm4, %v3426_v41, %v3430_v23  ;;  %v2351_v63 = vmax.f32 %v12882_v54, %v2231_v59  ;;  %v440_v54 = vld [vmem:[%s19976_s1 + $0xa8] sm:$0xff]  ;;  %v1230_v23 = vrot.slane %v381_v32, 5  ;;  %v3150_v29 = vsel %vm2213_vm8, %v3148_v4, %v3149_v21  ;;  %v382_v41 = vld [vmem:[%s12592_s12 + $0x5c] sm:$0xf]  ;;  %4324 = vmatpush.bf16.msrb.mxu3 %v12077_v42 }
  0x83   : > { %756 = vmatmul.bf16.gmra.mxu0 %v12023_v27  ;;  %3885 = vmatmul.bf16.gmra.mxu1 %v3793_v18  ;;  %v1829_v18 = vrot.slane %v12963_v12, 6  ;;  %v3421_v5 = vsel %vm12892_vm4, %v3416_v39, %v3420_v20  ;;  %v2879_v6 = vrot.slane %v2632_v56, 1  ;;  %v1831_v20 = vrot.slane %v13042_v40, 6  ;;  %v12047_v42 = vld [vmem:[%s12592_s12 + $0xe8] sm:$0xff] }
  0x84   : > { %4096 = vmatmul.bf16.gmra.mxu2 %v13002_v61  ;;  %v2508_v61 = vrot.slane %v13064_v25, 7  ;;  %v3764_v45 = vunpack.c.l.b16 %v3421_v5  ;;  %vm1339_vm10 = vcmp.gt.f32.partialorder %v440_v54, 0.0  ;;  %v1832_v59 = vrot.slane %v13044_v16, 6 }
  0x85   : > { %v1830_v43 = vsel %vm1810_vm7, %v1827_v7, %v1829_v18  ;;  %v3765_v7 = vunpack.c.l.b16 %v3431_v19  ;;  %v442_v18 = vld [vmem:[%s19976_s1 + $0xb8] sm:$0xff]  ;;  %vm1393_vm13 = vmpackc.low %vm1339_vm10, %vm1339_vm10 }
  0x86   : > { %v1950_v49 = vmax.f32 %v12868_v8, %v1830_v43  ;;  %v2510_v48 = vsel %vm2492_vm9, %v2508_v61, %v2509_v38  ;;  %v2630_v8 = vmax.f32 %v12971_v9, %v2508_v61  ;;  %v3152_v61 = vsel %vm2213_vm8, %v3149_v21, %v3151_v22 }
  0x87   : > { %v2631_v27 = vmax.f32 %v12986_v46, %v2510_v48  ;;  %v3794_v55 = vpack.c.b16 %v3765_v7, %v3764_v45  ;;  %v3997_v38 = vpack.c.b16 %v3970_v17, %v3969_v14  ;;  %vm1341_vm12 = vcmp.gt.f32.partialorder %v442_v18, 0.0 }
  0x88   : > { %v2232_v2 = vrot.slane %v1950_v49, 2  ;;  %v2876_v0 = vrot.slane %v2630_v8, 1  ;;  %v1233_v49 = vrot.slane %v382_v41, 5  ;;  %v1232_v48 = vrot.slane %v1230_v23, 4  ;;  %vm1395_vm0 = vmpackc.low %vm1341_vm12, %vm1341_vm12  ;;  %876 = vmatmul.bf16.gmra.mxu3 %v12047_v42 }
  0x89   : > { %v2877_v57 = vrot.slane %v2631_v27, 1  ;;  %v1447_v1 = vsel %vm1393_vm13, %v380_v10, 4048220490  ;;  %v1449_v45 = vsel %vm1395_vm0, %v382_v41, 4048220490 }
  0x8a   : > { %v2233_v52 = vsel %vm2213_vm8, %v2230_v58, %v2232_v2  ;;  %v2353_v44 = vmax.f32 %v12888_v35, %v2232_v2  ;;  %v441_v35 = vld [vmem:[%s19976_s1 + $0xb0] sm:$0xff]  ;;  %v13132_v19 = vunpack.c.l.bf16 %v1447_v1  ;;  %v1234_v21 = vsel %vm12608_vm2, %v1232_v48, %v1233_v49 }
  0x8b   : > { %v2352_v11 = vmax.f32 %v12885_v34, %v2233_v52  ;;  %v10714_v34 = vrot.slane %v380_v10, 9  ;;  %v2878_v24 = vsel %vm1579_vm15, %v2876_v0, %v2877_v57  ;;  %v2880_v28 = vsel %vm1579_vm15, %v2877_v57, %v2879_v6 }
  0x8c   : > { %v3000_v26 = vmax.f32 %v2353_v44, %v2879_v6  ;;  %v2998_v33 = vmax.f32 %v2351_v63, %v2878_v24  ;;  %vm1340_vm11 = vcmp.gt.f32.partialorder %v441_v35, 0.0  ;;  %v13140_v0 = vunpack.c.l.bf16 %v1449_v45 }
  0x8d   : > { %v2999_v53 = vmax.f32 %v2352_v11, %v2880_v28  ;;  %v13130_v58 = vsel %vm12608_vm2, %v10714_v34, %v1230_v23  ;;  %vm1394_vm14 = vmpackc.low %vm1340_vm11, %vm1340_vm11  ;;  %v1610_v52 = vrot.slane %v13132_v19, 1  ;;  %v1833_v23 = vsel %vm1810_vm7, %v1831_v20, %v1832_v59 }
  0x8e   : > { %v3272_v39 = vmax.f32 %v3000_v26, %v3151_v22  ;;  %v3270_v43 = vmax.f32 %v2998_v33, %v3150_v29  ;;  %v1448_v5 = vsel %vm1394_vm14, %v381_v32, 4048220490  ;;  %v3971_v44 = vunpack.c.l.b16 %v13130_v58  ;;  %v12025_v58 = vld [vmem:[%s12592_s12 + $0x38] sm:$0xff] }
  0x8f   : > { %v3271_v47 = vmax.f32 %v2999_v53, %v3152_v61  ;;  %v13137_v17 = vunpack.c.l.bf16 %v1448_v5  ;;  %v1613_v22 = vrot.slane %v13140_v0, 1  ;;  %v1834_v26 = vrot.slane %v13046_v62, 6 }
  0x90   : > { %v3320_v51 = vpack.c.bf16 %v3272_v39, %v3272_v39  ;;  %v3318_v60 = vpack.c.bf16 %v3270_v43, %v3270_v43  ;;  %v1951_v29 = vmax.f32 %v12958_v50, %v1831_v20  ;;  %v1952_v33 = vmax.f32 %v12960_v3, %v1833_v23  ;;  %v12076_v3 = vld [vmem:[%s19982_s7 + $0x20] sm:$0xff] }
  0x91   : > { %v3319_v14 = vpack.c.bf16 %v3271_v47, %v3271_v47  ;;  %v1611_v63 = vrot.slane %v13137_v17, 1  ;;  %v13157_v28 = vmax.f32 %v13140_v0, %v1613_v22  ;;  %v3972_v53 = vunpack.c.l.b16 %v1234_v21  ;;  %4325 = vmatpush.bf16.msrb.mxu3 %v12076_v3 }
  0x92   : > { %v3452_v8 = vshll.u32 %v3320_v51, 16  ;;  %v3433_v2 = vshrl.u32 %v3318_v60, 16  ;;  %v3436_v7 = vshll.u32 %v3318_v60, 16  ;;  %v1835_v61 = vsel %vm1810_vm7, %v1832_v59, %v1834_v26  ;;  %v12075_v59 = vld [vmem:[%s19982_s7 + $0x18] sm:$0xff] }
  0x93   : > { %761 = vmatmul.bf16.gmra.mxu0 %v12024_v30  ;;  %3890 = vmatmul.bf16.gmra.mxu1 %v3794_v55  ;;  %v3442_v27 = vshll.u32 %v3319_v14, 16  ;;  %v3446_v56 = vshrl.u32 %v3319_v14, 16  ;;  %v1612_v32 = vsel %vm1579_vm15, %v1610_v52, %v1611_v63  ;;  %v1614_v24 = vsel %vm1579_vm15, %v1611_v63, %v1613_v22 }
  0x94   : > { %4101 = vmatmul.bf16.gmra.mxu2 %v3997_v38  ;;  %v3435_v4 = vrot.slane %v3433_v2, 4  ;;  %v3438_v10 = vrot.slane %v3436_v7, 5  ;;  %v3454_v6 = vrot.slane %v3452_v8, 5  ;;  %v13150_v34 = vmax.f32 %v13132_v19, %v1612_v32  ;;  %v13204_v32 = vld [vmem:[%s12592_s12 + $0x68] sm:$0xf] }
  0x95   : > { %v3444_v11 = vrot.slane %v3442_v27, 5  ;;  %v3448_v57 = vrot.slane %v3446_v56, 4  ;;  %v13164_v55 = vmax.f32 %v13137_v17, %v1614_v24  ;;  %v2234_v38 = vrot.slane %v1951_v29, 2  ;;  %4326 = vmatpush.bf16.msrb.mxu3 %v12075_v59 }
  0x96   : > { %v3439_v54 = vor.u32 %v3438_v10, %v3435_v4  ;;  %v2513_v39 = vrot.slane %v13150_v34, 7  ;;  %v1953_v20 = vmax.f32 %v12963_v12, %v1835_v61  ;;  %v2235_v43 = vrot.slane %v1952_v33, 2  ;;  %v13196_v10 = vld [vmem:[%s12592_s12 + $0x60] sm:$0xf] }
  0x97   : > { %v3449_v35 = vor.u32 %v3448_v57, %v3444_v11  ;;  %v2516_v51 = vrot.slane %v13157_v28, 7  ;;  %v2514_v1 = vrot.slane %v13164_v55, 7  ;;  %v3998_v5 = vpack.c.b16 %v3972_v53, %v3971_v44 }
  0x98   : > { %v3440_v18 = vrot.slane %v3439_v54, 4  ;;  %v2237_v48 = vrot.slane %v1953_v20, 2  ;;  %v2633_v60 = vmax.f32 %v13064_v25, %v2513_v39  ;;  %v2236_v12 = vsel %vm2213_vm8, %v2234_v38, %v2235_v43 }
  0x99   : > { %v3450_v30 = vrot.slane %v3449_v35, 4  ;;  %v2515_v45 = vsel %vm2492_vm9, %v2513_v39, %v2514_v1  ;;  %v2517_v2 = vsel %vm2492_vm9, %v2514_v1, %v2516_v51  ;;  %v3153_v56 = vrot.slane %v13132_v19, 2  ;;  %v12074_v35 = vld [vmem:[%s19982_s7 + $0x10] sm:$0xff] }
  0x9a   : > { %v3445_v41 = vsel %vm12892_vm4, %v3440_v18, %v3444_v11  ;;  %v2238_v8 = vsel %vm2213_vm8, %v2235_v43, %v2237_v48  ;;  %v2634_v7 = vmax.f32 %v13067_v31, %v2515_v45  ;;  %v2881_v27 = vrot.slane %v2633_v60, 1  ;;  %v13199_v11 = vld [vmem:[%s12592_s12 + $0x64] sm:$0xf]  ;;  %4327 = vmatpush.bf16.msrb.mxu3 %v12074_v35 }
  0x9b   : > { %v3455_v50 = vsel %vm12892_vm4, %v3450_v30, %v3454_v6  ;;  %v3766_v47 = vunpack.c.l.b16 %v3445_v41  ;;  %v2354_v52 = vmax.f32 %v12971_v9, %v2236_v12  ;;  %v2356_v63 = vmax.f32 %v12976_v37, %v2237_v48  ;;  %v12073_v41 = vld [vmem:[%s19982_s7 + $0x8] sm:$0xff]  ;;  %v13252_v35 = vld [vmem:[%s19976_s1 + $0x140] sm:$0xff] }
  0x9c   : > { %v3767_v49 = vunpack.c.l.b16 %v3455_v50  ;;  %v2635_v44 = vmax.f32 %v13056_v13, %v2517_v2  ;;  %v3154_v4 = vrot.slane %v13137_v17, 2  ;;  %v2355_v57 = vmax.f32 %v12986_v46, %v2238_v8 }
  0x9d   : > { %v2882_v6 = vrot.slane %v2634_v7, 1  ;;  %v3156_v21 = vrot.slane %v13140_v0, 2  ;;  %v1237_v9 = vrot.slane %v13199_v11, 5  ;;  %v10715_v22 = vrot.slane %v13196_v10, 9  ;;  %v443_v7 = vld [vmem:[%s19976_s1 + $0xc0] sm:$0xff] }
  0x9e   : > { %v3795_v14 = vpack.c.b16 %v3767_v49, %v3766_v47  ;;  %v2884_v37 = vrot.slane %v2635_v44, 1  ;;  %v1240_v54 = vrot.slane %v13204_v32, 5  ;;  %v3155_v46 = vsel %vm2213_vm8, %v3153_v56, %v3154_v4  ;;  %4328 = vmatpush.bf16.msrb.mxu3 %v12073_v41  ;;  %v13237_v56 = vld [vmem:[%s19979_s4] ss:$0 sm:$0xff]  ;;  %v444_v44 = vld [vmem:[%s19976_s1 + $0xc8] sm:$0xff] }
  0x9f   : > { %v2883_v23 = vsel %vm1579_vm15, %v2881_v27, %v2882_v6  ;;  %v1239_v24 = vrot.slane %v1237_v9, 4  ;;  %v3157_v30 = vsel %vm2213_vm8, %v3154_v4, %v3156_v21  ;;  %v1238_v38 = vsel %vm12608_vm2, %v10715_v22, %v1237_v9 }
  0xa0   : > { %v2885_v26 = vsel %vm1579_vm15, %v2882_v6, %v2884_v37  ;;  %v3001_v29 = vmax.f32 %v2354_v52, %v2883_v23  ;;  %v3003_v18 = vmax.f32 %v2356_v63, %v2884_v37  ;;  %v3973_v47 = vunpack.c.l.b16 %v1238_v38  ;;  %v445_v6 = vld [vmem:[%s19976_s1 + $0xd0] sm:$0xff] }
  0xa1   : > { %v3002_v33 = vmax.f32 %v2355_v57, %v2885_v26  ;;  %v1241_v39 = vsel %vm12608_vm2, %v1239_v24, %v1240_v54  ;;  %vm1342_vm1 = vcmp.gt.f32.partialorder %v443_v7, 0.0  ;;  %vm1343_vm3 = vcmp.gt.f32.partialorder %v444_v44, 0.0  ;;  %v421_v44 = vld [vmem:[%s19976_s1 + $0x10] sm:$0xff] }
  0xa2   : > { %v3273_v53 = vmax.f32 %v3001_v29, %v3155_v46  ;;  %v3275_v61 = vmax.f32 %v3003_v18, %v3156_v21  ;;  %v3974_v49 = vunpack.c.l.b16 %v1241_v39  ;;  %vm1344_vm5 = vcmp.gt.f32.partialorder %v445_v6, 0.0  ;;  %vm13256_vm6 = vmpackc.low %vm1342_vm1, %vm1342_vm1 }
  0xa3   : > { %766 = vmatmul.bf16.gmra.mxu0 %v12025_v58  ;;  %3895 = vmatmul.bf16.gmra.mxu1 %v3795_v14  ;;  %v3274_v50 = vmax.f32 %v3002_v33, %v3157_v30  ;;  %v13226_v14 = vld [vmem:[%s19978_s3] ss:$0 sm:$0xff]  ;;  %vm13263_vm10 = vmpackc.low %vm1343_vm3, %vm1343_vm3  ;;  %v1450_v41 = vsel %vm13256_vm6, %v13196_v10, 4048220490 }
  0xa4   : > { %4106 = vmatmul.bf16.gmra.mxu2 %v3998_v5  ;;  %v3321_v20 = vpack.c.bf16 %v3273_v53, %v3273_v53  ;;  %v3323_v43 = vpack.c.bf16 %v3275_v61, %v3275_v61  ;;  %v12026_v5 = vld [vmem:[%s12592_s12 + $0x40] sm:$0xff]  ;;  %v3999_v27 = vpack.c.b16 %v3974_v49, %v3973_v47  ;;  %vm1398_vm11 = vmpackc.low %vm1344_vm5, %vm1344_vm5  ;;  %v13282_v49 = vunpack.c.l.bf16 %v1450_v41 }
  0xa5   : > { %v3322_v3 = vpack.c.bf16 %v3274_v50, %v3274_v50  ;;  %v1451_v50 = vsel %vm13263_vm10, %v13199_v11, 4048220490  ;;  %v13280_v47 = vld [vmem:[%s19976_s1 + $0x180] sm:$0xff]  ;;  %v1839_v41 = vrot.slane %v13140_v0, 6 }
  0xa6   : > { %v3457_v51 = vshrl.u32 %v3321_v20, 16  ;;  %v3460_v58 = vshll.u32 %v3321_v20, 16  ;;  %v3476_v60 = vshll.u32 %v3323_v43, 16  ;;  %v1452_v20 = vsel %vm1398_vm11, %v13204_v32, 4048220490  ;;  %v12027_v32 = vld [vmem:[%s12592_s12 + $0x48] sm:$0xff] }
  0xa7   : > { %v3466_v48 = vshll.u32 %v3322_v3, 16  ;;  %v3470_v1 = vshrl.u32 %v3322_v3, 16 }
  0xa8   : > { %v3459_v12 = vrot.slane %v3457_v51, 4  ;;  %v3462_v42 = vrot.slane %v3460_v58, 5  ;;  %v3478_v57 = vrot.slane %v3476_v60, 5  ;;  %v13284_v51 = vunpack.c.l.bf16 %v1451_v50  ;;  %v390_v50 = vld [vmem:[%s12592_s12 + $0x7c] sm:$0xf] }
  0xa9   : > { %v3468_v59 = vrot.slane %v3466_v48, 5  ;;  %v3472_v2 = vrot.slane %v3470_v1, 4  ;;  %v13286_v58 = vunpack.c.l.bf16 %v1452_v20 }
  0xaa   : > { %v3463_v63 = vor.u32 %v3462_v42, %v3459_v12  ;;  %v1615_v42 = vrot.slane %v13282_v49, 1 }
  0xab   : > { %v3473_v4 = vor.u32 %v3472_v2, %v3468_v59  ;;  %v13301_v2 = vld [vmem:[%s19976_s1 + $0x148] sm:$0xff] }
  0xac   : > { %v3464_v9 = vrot.slane %v3463_v63, 4 }
  0xad   : > { %v3474_v37 = vrot.slane %v3473_v4, 4 }
  0xae   : > { %v3469_v54 = vsel %vm12892_vm4, %v3464_v9, %v3468_v59  ;;  %v1618_v59 = vrot.slane %v13286_v58, 1 }
  0xaf   : > { %v3479_v23 = vsel %vm12892_vm4, %v3474_v37, %v3478_v57  ;;  %v3768_v46 = vunpack.c.l.b16 %v3469_v54  ;;  %v1836_v37 = vrot.slane %v13132_v19, 6 }
  0xb0   : > { %v13229_v8 = vpop.f32.mrf.mxu0  ;;  %v832_v45 = vpop.f32.mrf.mxu1  ;;  %v3769_v29 = vunpack.c.l.b16 %v3479_v23  ;;  %v461_v23 = vld [vmem:[%s19976_s1 + $0x150] sm:$0xff] }
  0xb1   : > { %v926_v52 = vmul.f32 %v13226_v14, %v832_v45  ;;  %v1616_v45 = vrot.slane %v13284_v51, 1 }
  0xb2   : > { %v3796_v38 = vpack.c.b16 %v3769_v29, %v3768_v46 }
  0xb3   : > { %v990_v21 = vadd.f32 %v13237_v56, %v926_v52  ;;  %771 = vmatmul.bf16.gmra.mxu0 %v12026_v5  ;;  %v1617_v57 = vsel %vm1579_vm15, %v1615_v42, %v1616_v45  ;;  %v1619_v6 = vsel %vm1579_vm15, %v1616_v45, %v1618_v59 }
  0xb4   : > { %4111 = vmatmul.bf16.gmra.mxu2 %v3999_v27  ;;  %3900 = vmatmul.bf16.gmra.mxu1 %v3796_v38  ;;  %v13320_v46 = vmax.f32 %v13282_v49, %v1617_v57  ;;  %v13323_v24 = vmax.f32 %v13284_v51, %v1619_v6  ;;  %v3158_v57 = vrot.slane %v13282_v49, 2  ;;  %v3159_v6 = vrot.slane %v13284_v51, 2 }
  0xb5   : > { %v1050_v22 = vmax.f32 %v990_v21, 0.0 }
  0xb7   : > { %v13261_v26 = vmul.f32 %v1050_v22, %v13252_v35  ;;  %v852_v30 = vpop.f32.mrf.mxu2 }
  0xb8   : > { %v934_v33 = vmul.f32 %v13226_v14, %v852_v30  ;;  %v734_v53 = vpop.f32.mrf.mxu0  ;;  %v834_v61 = vpop.f32.mrf.mxu1 }
  0xb9   : > { %20364 = vst [vmem:[#allocation5_spill] sm:$0xff] %v13261_v26  ;;  %v927_v43 = vmul.f32 %v13226_v14, %v834_v61  ;;  %v886_v61 = vmul.f32 %v13226_v14, %v13229_v8  ;;  %v887_v38 = vmul.f32 %v13226_v14, %v734_v53  ;;  %v13349_v8 = vmax.f32 %v13286_v58, %v1618_v59 }
  0xba   : > { %v998_v39 = vadd.f32 %v13237_v56, %v934_v33  ;;  %v2518_v53 = vrot.slane %v13320_v46, 7 }
  0xbb   : > { %v991_v11 = vadd.f32 %v13237_v56, %v927_v43 }
  0xbc   : > { %v1058_v3 = vmax.f32 %v998_v39, 0.0  ;;  %v1837_v39 = vrot.slane %v13137_v17, 6 }
  0xbd   : > { %v1051_v60 = vmax.f32 %v991_v11, 0.0  ;;  %v12072_v11 = vld [vmem:[%s19982_s7] sm:$0xff] }
  0xbe   : > { %v13289_v10 = vmul.f32 %v1058_v3, %v13280_v47  ;;  %v1954_v3 = vmax.f32 %v13042_v40, %v1836_v37  ;;  %4329 = vmatpush.bf16.msrb.mxu3 %v12072_v11  ;;  %v950_v40 = vadd.f32 %v13237_v56, %v886_v61  ;;  %v1840_v42 = vsel %vm1810_vm7, %v1837_v39, %v1839_v41 }
  0xbf   : > { %v1111_v7 = vmul.f32 %v1051_v60, %v13301_v2  ;;  %v951_v60 = vadd.f32 %v13237_v56, %v887_v38 }
  0xc0   : > { %20367 = vst [vmem:[#allocation6_spill] sm:$0xff] %v13289_v10  ;;  %v737_v48 = vpop.f32.mrf.mxu0  ;;  %v837_v1 = vpop.f32.mrf.mxu1  ;;  %v2239_v45 = vrot.slane %v1954_v3, 2 }
  0xc1   : > { %v888_v5 = vmul.f32 %v13226_v14, %v737_v48  ;;  %v928_v12 = vmul.f32 %v13226_v14, %v837_v1  ;;  %v13306_v63 = vpack.c.bf16 %v1111_v7, %v1111_v7  ;;  %v1956_v7 = vmax.f32 %v13046_v62, %v1840_v42 }
  0xc2   : > { %v3161_v62 = vrot.slane %v13286_v58, 2  ;;  %v1011_v38 = vmax.f32 %v951_v60, 0.0  ;;  %v3160_v42 = vsel %vm2213_vm8, %v3158_v57, %v3159_v6 }
  0xc3   : > { %v952_v27 = vadd.f32 %v13237_v56, %v888_v5  ;;  %776 = vmatmul.bf16.gmra.mxu0 %v12027_v32  ;;  %v992_v52 = vadd.f32 %v13237_v56, %v928_v12  ;;  %20368 = vst [vmem:[#allocation7_spill] sm:$0xff] %v13306_v63  ;;  %v19987_v9 = vshll.u32 %v13306_v63, 16  ;;  %v5662_v22 = vshrl.u32 %v13306_v63, 16 }
  0xc4   : > { %v2519_v32 = vrot.slane %v13323_v24, 7  ;;  %v1838_v12 = vsel %vm1810_vm7, %v1836_v37, %v1837_v39  ;;  %v2242_v37 = vrot.slane %v1956_v7, 2  ;;  %v3162_v60 = vsel %vm2213_vm8, %v3159_v6, %v3161_v62 }
  0xc5   : > { %v1012_v4 = vmax.f32 %v952_v27, 0.0  ;;  %v1052_v21 = vmax.f32 %v992_v52, 0.0  ;;  %v13327_v29 = vrot.slane %v19987_v9, 6  ;;  %v13331_v30 = vrot.slane %v5662_v22, 5 }
  0xc6   : > { %v1955_v59 = vmax.f32 %v13044_v16, %v1838_v12  ;;  %v2520_v27 = vsel %vm2492_vm9, %v2518_v53, %v2519_v32  ;;  %v2521_v52 = vrot.slane %v13349_v8, 7  ;;  %v1010_v22 = vmax.f32 %v950_v40, 0.0  ;;  %v13383_v40 = vld [vmem:[%s12592_s12 + $0x6c] sm:$0xf]  ;;  %v13386_v12 = vld [vmem:[%s12592_s12 + $0x70] sm:$0xf] }
  0xc7   : > { %v1072_v54 = vmul.f32 %v1012_v4, %v421_v44  ;;  %20369 = vst [vmem:[#allocation8_spill] sm:$0xff] %v13327_v29  ;;  %v13329_v18 = vmul.f32 %v1052_v21, %v461_v23  ;;  %v2636_v44 = vmax.f32 %v13150_v34, %v2518_v53  ;;  %v2637_v4 = vmax.f32 %v13164_v55, %v2520_v27 }
  0xc8   : > { %20371 = vst [vmem:[#allocation10_spill] sm:$0xff] %v13331_v30  ;;  %v2240_v21 = vrot.slane %v1955_v59, 2  ;;  %v2522_v16 = vsel %vm2492_vm9, %v2519_v32, %v2521_v52  ;;  %v10716_v59 = vrot.slane %v13383_v40, 9 }
  0xc9   : > { %20370 = vst [vmem:[#allocation9_spill] sm:$0xff] %v13329_v18  ;;  %v13333_v33 = vpack.c.bf16 %v1072_v54, %v1072_v54  ;;  %v2638_v54 = vmax.f32 %v13157_v28, %v2522_v16  ;;  %v2886_v23 = vrot.slane %v2636_v44, 1  ;;  %v2887_v61 = vrot.slane %v2637_v4, 1  ;;  %v420_v4 = vld [vmem:[%s19976_s1 + $0x8] sm:$0xff]  ;;  %v446_v16 = vld [vmem:[%s19976_s1 + $0xd8] sm:$0xff] }
  0xca   : > { %v2241_v39 = vsel %vm2213_vm8, %v2239_v45, %v2240_v21  ;;  %v2243_v41 = vsel %vm2213_vm8, %v2240_v21, %v2242_v37  ;;  %v13391_v45 = vld [vmem:[%s12592_s12 + $0x74] sm:$0xf]  ;;  %vm1345_vm12 = vcmp.gt.f32.partialorder %v446_v16, 0.0 }
  0xcb   : > { %20372 = vst [vmem:[#allocation11_spill] sm:$0xff] %v13333_v33  ;;  %v19988_v20 = vshll.u32 %v13333_v33, 16  ;;  %v5467_v43 = vshrl.u32 %v13333_v33, 16  ;;  %v2357_v3 = vmax.f32 %v13064_v25, %v2241_v39  ;;  %v2358_v11 = vmax.f32 %v13067_v31, %v2243_v41  ;;  %v419_v25 = vld [vmem:[%s19976_s1] sm:$0xff]  ;;  %v13398_v31 = vpop.f32.mrf.mxu2  ;;  %vm13425_vm0 = vmpackc.low %vm1345_vm12, %vm1345_vm12 }
  0xcc   : > { %v2888_v53 = vsel %vm1579_vm15, %v2886_v23, %v2887_v61  ;;  %v2889_v32 = vrot.slane %v2638_v54, 1  ;;  %20375 = vst [vmem:[#allocation14_spill] sm:$0xff] %v13398_v31  ;;  %v1247_v44 = vrot.slane %v13391_v45, 5  ;;  %v1070_v54 = vmul.f32 %v1010_v22, %v419_v25  ;;  %v448_v22 = vld [vmem:[%s19976_s1 + $0xe8] sm:$0xff] }
  0xcd   : > { %v13353_v48 = vrot.slane %v5467_v43, 5  ;;  %v13357_v1 = vrot.slane %v19988_v20, 6  ;;  %v2359_v43 = vmax.f32 %v13056_v13, %v2242_v37  ;;  %v1244_v13 = vrot.slane %v13386_v12, 5 }
  0xce   : > { %v2890_v7 = vsel %vm1579_vm15, %v2887_v61, %v2889_v32  ;;  %v3004_v27 = vmax.f32 %v2357_v3, %v2888_v53  ;;  %v447_v61 = vld [vmem:[%s19976_s1 + $0xe0] sm:$0xff]  ;;  %v1071_v41 = vmul.f32 %v1011_v38, %v420_v4  ;;  %v12028_v53 = vld [vmem:[%s12592_s12 + $0x50] sm:$0xff]  ;;  %vm1347_vm14 = vcmp.gt.f32.partialorder %v448_v22, 0.0 }
  0xcf   : > { %20373 = vst [vmem:[#allocation12_spill] sm:$0xff] %v13353_v48  ;;  %v3006_v52 = vmax.f32 %v2359_v43, %v2889_v32  ;;  %v3005_v57 = vmax.f32 %v2358_v11, %v2890_v7  ;;  %v1246_v6 = vrot.slane %v1244_v13, 4  ;;  %v1245_v39 = vsel %vm12608_vm2, %v10716_v59, %v1244_v13  ;;  %vm13436_vm3 = vmpackc.low %vm1347_vm14, %vm1347_vm14 }
  0xd0   : > { %20374 = vst [vmem:[#allocation13_spill] sm:$0xff] %v13357_v1  ;;  %v3276_v21 = vmax.f32 %v3004_v27, %v3160_v42  ;;  %vm1346_vm13 = vcmp.gt.f32.partialorder %v447_v61, 0.0  ;;  %v13419_v13 = vpack.c.bf16 %v1070_v54, %v1070_v54  ;;  %v13421_v27 = vpack.c.bf16 %v1071_v41, %v1071_v41 }
  0xd1   : > { %v3278_v37 = vmax.f32 %v3006_v52, %v3161_v62  ;;  %v3277_v23 = vmax.f32 %v3005_v57, %v3162_v60  ;;  %v1248_v11 = vsel %vm12608_vm2, %v1246_v6, %v1247_v44  ;;  %v3975_v60 = vunpack.c.l.b16 %v1245_v39  ;;  %vm13431_vm1 = vmpackc.low %vm1346_vm13, %vm1346_vm13 }
  0xd2   : > { %v3324_v43 = vpack.c.bf16 %v3276_v21, %v3276_v21  ;;  %v3976_v38 = vunpack.c.l.b16 %v1248_v11  ;;  %20376 = vst [vmem:[#allocation15_spill] sm:$0xff] %v13419_v13  ;;  %v4210_v11 = vunpack.c.l.b16 %v13419_v13  ;;  %v4211_v61 = vunpack.c.l.b16 %v13421_v27 }
  0xd3   : > { %v3326_v3 = vpack.c.bf16 %v3278_v37, %v3278_v37  ;;  %v3325_v62 = vpack.c.bf16 %v3277_v23, %v3277_v23  ;;  %781 = vmatmul.bf16.gmra.mxu0 %v12028_v53  ;;  %20377 = vst [vmem:[#allocation16_spill] sm:$0xff] %v13421_v27  ;;  %v857_v23 = vpop.f32.mrf.mxu2  ;;  %v1453_v53 = vsel %vm13425_vm0, %v13383_v40, 4048220490  ;;  %v1455_v40 = vsel %vm13436_vm3, %v13391_v45, 4048220490  ;;  %v739_v37 = vpop.f32.mrf.mxu0 }
  0xd4   : > { %v3481_v32 = vshrl.u32 %v3324_v43, 16  ;;  %v3484_v42 = vshll.u32 %v3324_v43, 16  ;;  %v4000_v54 = vpack.c.b16 %v3976_v38, %v3975_v60  ;;  %v936_v43 = vmul.f32 %v13226_v14, %v857_v23 }
  0xd5   : > { %v3490_v25 = vshll.u32 %v3325_v62, 16  ;;  %v3494_v7 = vshrl.u32 %v3325_v62, 16  ;;  %v3500_v59 = vshll.u32 %v3326_v3, 16  ;;  %v4242_v60 = vpack.c.b16 %v4211_v61, %v4210_v11 }
  0xd6   : > { %v3483_v52 = vrot.slane %v3481_v32, 4  ;;  %v3486_v44 = vrot.slane %v3484_v42, 5  ;;  %4116 = vmatmul.bf16.gmra.mxu2 %v4000_v54  ;;  %v1454_v32 = vsel %vm13431_vm1, %v13386_v12, 4048220490  ;;  %v1000_v42 = vadd.f32 %v13237_v56, %v936_v43 }
  0xd7   : > { %v3492_v4 = vrot.slane %v3490_v25, 5  ;;  %v3496_v57 = vrot.slane %v3494_v7, 4  ;;  %v3502_v41 = vrot.slane %v3500_v59, 5  ;;  %v13451_v25 = vpop.f32.mrf.mxu1  ;;  %v13460_v12 = vunpack.c.l.bf16 %v1454_v32  ;;  %4330 = vmatmul.bf16.vlgmr.msrb.gmra.mxu3 %v4242_v60 }
  0xd8   : > { %v3487_v21 = vor.u32 %v3486_v44, %v3483_v52  ;;  %20384 = vst [vmem:[#allocation17_spill] sm:$0xff] %v13451_v25  ;;  %v1060_v38 = vmax.f32 %v1000_v42, 0.0  ;;  %v13458_v44 = vunpack.c.l.bf16 %v1453_v53  ;;  %v1842_v11 = vrot.slane %v13284_v51, 6 }
  0xd9   : > { %v3497_v39 = vor.u32 %v3496_v57, %v3492_v4  ;;  %v1621_v54 = vrot.slane %v13460_v12, 1  ;;  %vm1358_vm14 = vcmp.gt.f32.partialorder %v13252_v35, 0.0 }
  0xda   : > { %v3488_v3 = vrot.slane %v3487_v21, 4  ;;  %v13470_v21 = vunpack.c.l.bf16 %v1455_v40  ;;  %v1620_v45 = vrot.slane %v13458_v44, 1  ;;  %vm13618_vm0 = vmpackc.low %vm1358_vm14, %vm1358_vm14 }
  0xdb   : > { %v3498_v62 = vrot.slane %v3497_v39, 4  ;;  %v1841_v39 = vrot.slane %v13282_v49, 6  ;;  %v742_v53 = vpop.f32.mrf.mxu0 }
  0xdc   : > { %v3493_v22 = vsel %vm12892_vm4, %v3488_v3, %v3492_v4  ;;  %v13465_v4 = vld [vmem:[%s19976_s1 + $0x190] sm:$0xff]  ;;  %v1623_v23 = vrot.slane %v13470_v21, 1 }
  0xdd   : > { %v3503_v7 = vsel %vm12892_vm4, %v3498_v62, %v3502_v41  ;;  %v3770_v59 = vunpack.c.l.b16 %v3493_v22  ;;  %v13468_v57 = vmul.f32 %v1060_v38, %v13465_v4  ;;  %v1622_v41 = vsel %vm1579_vm15, %v1620_v45, %v1621_v54  ;;  %v463_v45 = vld [vmem:[%s19976_s1 + $0x160] sm:$0xff] }
  0xde   : > { %v3771_v52 = vunpack.c.l.b16 %v3503_v7  ;;  %v1624_v16 = vsel %vm1579_vm15, %v1621_v54, %v1623_v23  ;;  %v13481_v61 = vmax.f32 %v13458_v44, %v1622_v41  ;;  %v889_v62 = vmul.f32 %v13226_v14, %v739_v37 }
  0xdf   : > { %20385 = vst [vmem:[#allocation18_spill] sm:$0xff] %v13468_v57  ;;  %v842_v43 = vpop.f32.mrf.mxu1  ;;  %v1843_v42 = vsel %vm1810_vm7, %v1841_v39, %v1842_v11  ;;  %v1844_v22 = vrot.slane %v13286_v58, 6  ;;  %v13488_v60 = vmax.f32 %v13460_v12, %v1624_v16  ;;  %v13491_v7 = vmax.f32 %v13470_v21, %v1623_v23 }
  0xe0   : > { %v3797_v6 = vpack.c.b16 %v3771_v52, %v3770_v59  ;;  %v930_v3 = vmul.f32 %v13226_v14, %v842_v43  ;;  %v1957_v59 = vmax.f32 %v13132_v19, %v1841_v39  ;;  %v1958_v52 = vmax.f32 %v13137_v17, %v1843_v42 }
  0xe1   : > { %v1845_v38 = vsel %vm1810_vm7, %v1842_v11, %v1844_v22  ;;  %v890_v37 = vmul.f32 %v13226_v14, %v742_v53  ;;  %v2523_v54 = vrot.slane %v13481_v61, 7  ;;  %v2524_v43 = vrot.slane %v13488_v60, 7 }
  0xe2   : > { %3905 = vmatmul.bf16.gmra.mxu1 %v3797_v6  ;;  %v994_v32 = vadd.f32 %v13237_v56, %v930_v3  ;;  %v13497_v6 = vadd.f32 %v13237_v56, %v889_v62  ;;  %v1959_v41 = vmax.f32 %v13140_v0, %v1845_v38  ;;  %v2244_v19 = vrot.slane %v1957_v59, 2 }
  0xe3   : > { %v2245_v39 = vrot.slane %v1958_v52, 2  ;;  %v2526_v17 = vrot.slane %v13491_v7, 7  ;;  %v2525_v62 = vsel %vm2492_vm9, %v2523_v54, %v2524_v43  ;;  %v13515_v42 = vadd.f32 %v13237_v56, %v890_v37 }
  0xe4   : > { %v1054_v40 = vmax.f32 %v994_v32, 0.0  ;;  %v2247_v16 = vrot.slane %v1959_v41, 2  ;;  %v2639_v32 = vmax.f32 %v13320_v46, %v2523_v54  ;;  %v2640_v52 = vmax.f32 %v13323_v24, %v2525_v62 }
  0xe5   : > { %v2246_v11 = vsel %vm2213_vm8, %v2244_v19, %v2245_v39  ;;  %v2527_v53 = vsel %vm2492_vm9, %v2524_v43, %v2526_v17  ;;  %v389_v19 = vld [vmem:[%s12592_s12 + $0x78] sm:$0xf] }
  0xe6   : > { %v1114_v23 = vmul.f32 %v1054_v40, %v463_v45  ;;  %v2248_v40 = vsel %vm2213_vm8, %v2245_v39, %v2247_v16  ;;  %v2362_v38 = vmax.f32 %v13157_v28, %v2247_v16  ;;  %v2641_v45 = vmax.f32 %v13349_v8, %v2527_v53  ;;  %v12029_v16 = vld [vmem:[%s12592_s12 + $0x58] sm:$0xff] }
  0xe7   : > { %v2361_v41 = vmax.f32 %v13164_v55, %v2248_v40  ;;  %v2891_v43 = vrot.slane %v2639_v32, 1  ;;  %v2892_v39 = vrot.slane %v2640_v52, 1  ;;  %v3163_v28 = vrot.slane %v13458_v44, 2  ;;  %v449_v32 = vld [vmem:[%s19976_s1 + $0xf0] sm:$0xff]  ;;  %v450_v40 = vld [vmem:[%s19976_s1 + $0xf8] sm:$0xff]  ;;  %786 = vmatmul.bf16.gmra.mxu0 %v12029_v16 }
  0xe8   : > { %v13507_v3 = vpack.c.bf16 %v1114_v23, %v1114_v23  ;;  %v2360_v23 = vmax.f32 %v13150_v34, %v2246_v11  ;;  %v2894_v17 = vrot.slane %v2641_v45, 1  ;;  %v3164_v53 = vrot.slane %v13460_v12, 2 }
  0xe9   : > { %v2893_v34 = vsel %vm1579_vm15, %v2891_v43, %v2892_v39  ;;  %v1251_v52 = vrot.slane %v390_v50, 5  ;;  %v391_v43 = vld [vmem:[%s12592_s12 + $0x80] sm:$0xf]  ;;  %vm1348_vm5 = vcmp.gt.f32.partialorder %v449_v32, 0.0  ;;  %vm1349_vm6 = vcmp.gt.f32.partialorder %v450_v40, 0.0 }
  0xea   : > { %20386 = vst [vmem:[#allocation19_spill] sm:$0xff] %v13507_v3  ;;  %v19986_v22 = vshll.u32 %v13507_v3, 16  ;;  %v5677_v59 = vshrl.u32 %v13507_v3, 16  ;;  %v2895_v55 = vsel %vm1579_vm15, %v2892_v39, %v2894_v17  ;;  %v3009_v11 = vmax.f32 %v2362_v38, %v2894_v17  ;;  %v451_v38 = vld [vmem:[%s19976_s1 + $0x100] sm:$0xff]  ;;  %vm13558_vm11 = vmpackc.low %vm1348_vm5, %vm1348_vm5 }
  0xeb   : > { %v3007_v45 = vmax.f32 %v2360_v23, %v2893_v34  ;;  %v3008_v62 = vmax.f32 %v2361_v41, %v2895_v55  ;;  %v3165_v9 = vsel %vm2213_vm8, %v3163_v28, %v3164_v53  ;;  %v1253_v20 = vrot.slane %v1251_v52, 4  ;;  %vm13562_vm12 = vmpackc.low %vm1349_vm6, %vm1349_vm6 }
  0xec   : > { %v13523_v54 = vrot.slane %v5677_v59, 5  ;;  %v13527_v37 = vrot.slane %v19986_v22, 6  ;;  %v3166_v59 = vrot.slane %v13470_v21, 2  ;;  %v10717_v22 = vrot.slane %v389_v19, 9 }
  0xed   : > { %v1254_v0 = vrot.slane %v391_v43, 5  ;;  %v1014_v23 = vmax.f32 %v13515_v42, 0.0  ;;  %vm1350_vm10 = vcmp.gt.f32.partialorder %v451_v38, 0.0  ;;  %v1456_v42 = vsel %vm13558_vm11, %v389_v19, 4048220490 }
  0xee   : > { %20387 = vst [vmem:[#allocation20_spill] sm:$0xff] %v13523_v54  ;;  %v3167_v5 = vsel %vm2213_vm8, %v3164_v53, %v3166_v59  ;;  %v3281_v39 = vmax.f32 %v3009_v11, %v3166_v59  ;;  %v1252_v17 = vsel %vm12608_vm2, %v10717_v22, %v1251_v52  ;;  %v3279_v54 = vmax.f32 %v3007_v45, %v3165_v9  ;;  %vm13566_vm13 = vmpackc.low %vm1350_vm10, %vm1350_vm10  ;;  %v12344_v52 = vld [vmem:[%s19976_s1 + $0x20] sm:$0xff] }
  0xef   : > { %20388 = vst [vmem:[#allocation21_spill] sm:$0xff] %v13527_v37  ;;  %v3280_v37 = vmax.f32 %v3008_v62, %v3167_v5  ;;  %v1255_v28 = vsel %vm12608_vm2, %v1253_v20, %v1254_v0  ;;  %v3977_v20 = vunpack.c.l.b16 %v1252_v17  ;;  %v20396_v32 = vmax.f32 %v13497_v6, 0.0 }
  0xf0   : > { %v3329_v41 = vpack.c.bf16 %v3281_v39, %v3281_v39  ;;  %v3327_v53 = vpack.c.bf16 %v3279_v54, %v3279_v54  ;;  %v3978_v0 = vunpack.c.l.b16 %v1255_v28  ;;  %v13572_v54 = vpop.f32.mrf.mxu1  ;;  %v1074_v19 = vmul.f32 %v12344_v52, %v1014_v23 }
  0xf1   : > { %v3328_v59 = vpack.c.bf16 %v3280_v37, %v3280_v37  ;;  %20395 = vst [vmem:[#allocation22_spill] sm:$0xff] %v13572_v54  ;;  %v12343_v37 = vld [vmem:[%s19976_s1 + $0x18] sm:$0xff]  ;;  %v1457_v45 = vsel %vm13562_vm12, %v390_v50, 4048220490  ;;  %v1458_v38 = vsel %vm13566_vm13, %v391_v43, 4048220490  ;;  %v13586_v16 = vunpack.c.l.bf16 %v1456_v42 }
  0xf2   : > { %v3524_v9 = vshll.u32 %v3329_v41, 16  ;;  %v3505_v62 = vshrl.u32 %v3327_v53, 16  ;;  %v3508_v34 = vshll.u32 %v3327_v53, 16  ;;  %v1073_v40 = vmul.f32 %v12343_v37, %v20396_v32 }
  0xf3   : > { %v3514_v55 = vshll.u32 %v3328_v59, 16  ;;  %v3518_v11 = vshrl.u32 %v3328_v59, 16  ;;  %v4001_v37 = vpack.c.b16 %v3978_v0, %v3977_v20  ;;  %v13588_v32 = vunpack.c.l.bf16 %v1457_v45 }
  0xf4   : > { %v3507_v39 = vrot.slane %v3505_v62, 4  ;;  %v3510_v17 = vrot.slane %v3508_v34, 5  ;;  %v3526_v59 = vrot.slane %v3524_v9, 5  ;;  %v13590_v30 = vunpack.c.l.bf16 %v1458_v38 }
  0xf5   : > { %v3516_v41 = vrot.slane %v3514_v55, 5  ;;  %v3520_v28 = vrot.slane %v3518_v11, 4  ;;  %v13592_v23 = vpack.c.bf16 %v1073_v40, %v1073_v40  ;;  %v13594_v50 = vpack.c.bf16 %v1074_v19, %v1074_v19  ;;  %4121 = vmatmul.bf16.gmra.mxu2 %v4001_v37 }
  0xf6   : > { %v3511_v53 = vor.u32 %v3510_v17, %v3507_v39  ;;  %v1625_v9 = vrot.slane %v13586_v16, 1  ;;  %v1626_v62 = vrot.slane %v13588_v32, 1  ;;  %v1628_v34 = vrot.slane %v13590_v30, 1 }
  0xf7   : > { %v3521_v6 = vor.u32 %v3520_v28, %v3516_v41  ;;  %20397 = vst [vmem:[#allocation23_spill] sm:$0xff] %v13592_v23  ;;  %v4212_v55 = vunpack.c.l.b16 %v13592_v23  ;;  %v4213_v11 = vunpack.c.l.b16 %v13594_v50  ;;  %v1846_v38 = vrot.slane %v13458_v44, 6 }
  0xf8   : > { %20398 = vst [vmem:[#allocation24_spill] sm:$0xff] %v13594_v50  ;;  %v3512_v22 = vrot.slane %v3511_v53, 4  ;;  %v847_v40 = vpop.f32.mrf.mxu1  ;;  %v1627_v39 = vsel %vm1579_vm15, %v1625_v9, %v1626_v62  ;;  %v1629_v17 = vsel %vm1579_vm15, %v1626_v62, %v1628_v34  ;;  %v1847_v53 = vrot.slane %v13460_v12, 6  ;;  %v13637_v9 = vpop.f32.mrf.mxu0 }
  0xf9   : > { %v3522_v43 = vrot.slane %v3521_v6, 4  ;;  %v932_v19 = vmul.f32 %v13226_v14, %v847_v40  ;;  %v13607_v45 = vpack.c.b16 %v4213_v11, %v4212_v55  ;;  %v13616_v6 = vld [vmem:[%s12592_s12 + $0xa0] sm:$0xf]  ;;  %v13626_v37 = vmax.f32 %v13588_v32, %v1629_v17 }
  0xfa   : > { %v3517_v5 = vsel %vm12892_vm4, %v3512_v22, %v3516_v41  ;;  %v465_v22 = vld [vmem:[%s19976_s1 + $0x170] sm:$0xff]  ;;  %v13642_v62 = vmax.f32 %v13590_v30, %v1628_v34  ;;  %vm1366_vm12 = vcmp.gt.f32.partialorder %v13280_v47, 0.0  ;;  %vm1359_vm13 = vcmp.gt.f32.partialorder %v13301_v2, 0.0  ;;  %v13746_v47 = vld [vmem:[%s12592_s12 + $0xa4] sm:$0xf] }
  0xfb   : > { %v3527_v42 = vsel %vm12892_vm4, %v3522_v43, %v3526_v59  ;;  %v3772_v20 = vunpack.c.l.b16 %v3517_v5  ;;  %20399 = vst [vmem:[#allocation25_spill] sm:$0xff] %v13607_v45  ;;  %v996_v41 = vadd.f32 %v13237_v56, %v932_v19  ;;  %4335 = vmatmul.bf16.gmra.mxu3 %v13607_v45  ;;  %v13623_v59 = vmax.f32 %v13586_v16, %v1627_v39  ;;  %vm13730_vm14 = vmpackc.low %vm1366_vm12, %vm1366_vm12 }
  0xfc   : > { %v3773_v0 = vunpack.c.l.b16 %v3527_v42  ;;  %v1848_v5 = vsel %vm1810_vm7, %v1846_v38, %v1847_v53  ;;  %v1466_v42 = vsel %vm13618_vm0, %v13616_v6, 4048220490  ;;  %v2529_v40 = vrot.slane %v13626_v37, 7  ;;  %vm13751_vm0 = vmpackc.low %vm1359_vm13, %vm1359_vm13 }
  0xfd   : > { %v1056_v28 = vmax.f32 %v996_v41, 0.0  ;;  %v1961_v55 = vmax.f32 %v13284_v51, %v1848_v5  ;;  %v2528_v11 = vrot.slane %v13623_v59, 7  ;;  %v13648_v39 = vunpack.c.l.bf16 %v1466_v42  ;;  %v12111_v51 = vld [vmem:[%s19982_s7 + $0x138] sm:$0xff] }
  0xfe   : > { %v3798_v52 = vpack.c.b16 %v3773_v0, %v3772_v20  ;;  %v1849_v20 = vrot.slane %v13470_v21, 6  ;;  %v1960_v0 = vmax.f32 %v13282_v49, %v1846_v38  ;;  %v2531_v49 = vrot.slane %v13642_v62, 7  ;;  %v12030_v38 = vld [vmem:[%s12592_s12 + $0x60] sm:$0xff]  ;;  %6192 = vmatpush.bf16.msrb.mxu0 %v12111_v51 }
  0xff   : > { %v13631_v43 = vmul.f32 %v1056_v28, %v465_v22  ;;  %v2250_v41 = vrot.slane %v1961_v55, 2  ;;  %v2530_v28 = vsel %vm2492_vm9, %v2528_v11, %v2529_v40  ;;  %v2642_v34 = vmax.f32 %v13481_v61, %v2528_v11  ;;  %791 = vmatmul.bf16.gmra.mxu0 %v12030_v38 }
 0x100   : > { %3910 = vmatmul.bf16.gmra.mxu1 %v3798_v52  ;;  %v1850_v52 = vsel %vm1810_vm7, %v1847_v53, %v1849_v20  ;;  %v2249_v19 = vrot.slane %v1960_v0, 2  ;;  %v2643_v53 = vmax.f32 %v13488_v60, %v2530_v28  ;;  %v3168_v22 = vrot.slane %v13586_v16, 2  ;;  %v454_v28 = vld [vmem:[%s19976_s1 + $0x118] sm:$0xff]  ;;  %v747_v51 = vpop.f32.mrf.mxu0 }
 0x101   : > { %20402 = vst [vmem:[#allocation26_spill] sm:$0xff] %v13631_v43  ;;  %v1962_v17 = vmax.f32 %v13286_v58, %v1850_v52  ;;  %v3169_v5 = vrot.slane %v13588_v32, 2  ;;  %v2532_v42 = vsel %vm2492_vm9, %v2529_v40, %v2531_v49  ;;  %v2896_v20 = vrot.slane %v2642_v34, 1  ;;  %v453_v40 = vld [vmem:[%s19976_s1 + $0x110] sm:$0xff]  ;;  %v393_v49 = vld [vmem:[%s12592_s12 + $0x88] sm:$0xf] }
 0x102   : > { %v2251_v58 = vsel %vm2213_vm8, %v2249_v19, %v2250_v41  ;;  %v3171_v0 = vrot.slane %v13590_v30, 2  ;;  %v452_v19 = vld [vmem:[%s19976_s1 + $0x108] sm:$0xff]  ;;  %v1258_v45 = vrot.slane %v393_v49, 5  ;;  %vm1352_vm3 = vcmp.gt.f32.partialorder %v453_v40, 0.0  ;;  %v13701_v40 = vpop.f32.mrf.mxu2 }
 0x103   : > { %v2252_v35 = vrot.slane %v1962_v17, 2  ;;  %v2363_v11 = vmax.f32 %v13320_v46, %v2251_v58  ;;  %v2644_v17 = vmax.f32 %v13491_v7, %v2532_v42  ;;  %v3170_v58 = vsel %vm2213_vm8, %v3168_v22, %v3169_v5  ;;  %v392_v42 = vld [vmem:[%s12592_s12 + $0x84] sm:$0xf]  ;;  %vm13692_vm10 = vmpackc.low %vm1352_vm3, %vm1352_vm3  ;;  %20407 = vst [vmem:[#allocation27_spill] sm:$0xff] %v13701_v40 }
 0x104   : > { %vm1351_vm1 = vcmp.gt.f32.partialorder %v452_v19, 0.0  ;;  %vm1353_vm5 = vcmp.gt.f32.partialorder %v454_v28, 0.0  ;;  %v10718_v3 = vrot.slane %v392_v42, 9 }
 0x105   : > { %v2253_v55 = vsel %vm2213_vm8, %v2250_v41, %v2252_v35  ;;  %v2365_v52 = vmax.f32 %v13349_v8, %v2252_v35  ;;  %v2897_v8 = vrot.slane %v2643_v53, 1  ;;  %v2899_v35 = vrot.slane %v2644_v17, 1  ;;  %vm13687_vm6 = vmpackc.low %vm1351_vm1, %vm1351_vm1 }
 0x106   : > { %v2364_v46 = vmax.f32 %v13323_v24, %v2253_v55  ;;  %v3172_v53 = vsel %vm2213_vm8, %v3169_v5, %v3171_v0  ;;  %v394_v55 = vld [vmem:[%s12592_s12 + $0x8c] sm:$0xf]  ;;  %v1459_v19 = vsel %vm13687_vm6, %v392_v42, 4048220490  ;;  %vm1407_vm11 = vmpackc.low %vm1353_vm5, %vm1353_vm5 }
 0x107   : > { %v2898_v29 = vsel %vm1579_vm15, %v2896_v20, %v2897_v8  ;;  %v2900_v38 = vsel %vm1579_vm15, %v2897_v8, %v2899_v35  ;;  %v3012_v24 = vmax.f32 %v2365_v52, %v2899_v35  ;;  %v1460_v52 = vsel %vm13692_vm10, %v393_v49, 4048220490 }
 0x108   : > { %v3010_v41 = vmax.f32 %v2363_v11, %v2898_v29  ;;  %v3011_v17 = vmax.f32 %v2364_v46, %v2900_v38  ;;  %v892_v29 = vmul.f32 %v13226_v14, %v747_v51  ;;  %v1260_v46 = vrot.slane %v1258_v45, 4  ;;  %v849_v38 = vpop.f32.mrf.mxu1 }
 0x109   : > { %v3284_v5 = vmax.f32 %v3012_v24, %v3171_v0  ;;  %v1261_v8 = vrot.slane %v394_v55, 5  ;;  %v1461_v35 = vsel %vm1407_vm11, %v394_v55, 4048220490  ;;  %v13704_v42 = vunpack.c.l.bf16 %v1459_v19 }
 0x10a   : > { %v3282_v11 = vmax.f32 %v3010_v41, %v3170_v58  ;;  %v3283_v28 = vmax.f32 %v3011_v17, %v3172_v53  ;;  %v1259_v0 = vsel %vm12608_vm2, %v10718_v3, %v1258_v45  ;;  %v13708_v41 = vunpack.c.l.bf16 %v1460_v52  ;;  %v749_v52 = vpop.f32.mrf.mxu0 }
 0x10b   : > { %v3332_v34 = vpack.c.bf16 %v3284_v5, %v3284_v5  ;;  %v13710_v49 = vunpack.c.l.bf16 %v1461_v35  ;;  %v956_v58 = vadd.f32 %v13237_v56, %v892_v29  ;;  %v1262_v19 = vsel %vm12608_vm2, %v1260_v46, %v1261_v8 }
 0x10c   : > { %v3330_v22 = vpack.c.bf16 %v3282_v11, %v3282_v11  ;;  %v3331_v51 = vpack.c.bf16 %v3283_v28, %v3283_v28  ;;  %v1630_v3 = vrot.slane %v13704_v42, 1  ;;  %v3979_v45 = vunpack.c.l.b16 %v1259_v0 }
 0x10d   : > { %v3548_v20 = vshll.u32 %v3332_v34, 16  ;;  %v1631_v63 = vrot.slane %v13708_v41, 1  ;;  %v1633_v29 = vrot.slane %v13710_v49, 1  ;;  %v1016_v57 = vmax.f32 %v956_v58, 0.0 }
 0x10e   : > { %v3529_v24 = vshrl.u32 %v3330_v22, 16  ;;  %v3532_v53 = vshll.u32 %v3330_v22, 16  ;;  %v3538_v55 = vshll.u32 %v3331_v51, 16  ;;  %v3542_v17 = vshrl.u32 %v3331_v51, 16 }
 0x10f   : > { %v1851_v22 = vrot.slane %v13586_v16, 6  ;;  %v3980_v34 = vunpack.c.l.b16 %v1262_v19  ;;  %v3550_v43 = vrot.slane %v3548_v20, 5  ;;  %v893_v46 = vmul.f32 %v13226_v14, %v749_v52 }
 0x110   : > { %v3531_v11 = vrot.slane %v3529_v24, 4  ;;  %v3534_v5 = vrot.slane %v3532_v53, 5  ;;  %v3540_v28 = vrot.slane %v3538_v55, 5  ;;  %v3544_v35 = vrot.slane %v3542_v17, 4  ;;  %v4082_v17 = vpop.f32.mrf.mxu2 }
 0x111   : > { %v933_v8 = vmul.f32 %v13226_v14, %v849_v38  ;;  %v1852_v0 = vrot.slane %v13588_v32, 6  ;;  %v1854_v24 = vrot.slane %v13590_v30, 6  ;;  %v4002_v55 = vpack.c.b16 %v3980_v34, %v3979_v45  ;;  %v13743_v45 = vld [vmem:[%s12592_s12 + $0xc0] sm:$0xf] }
 0x112   : > { %v3535_v51 = vor.u32 %v3534_v5, %v3531_v11  ;;  %v3545_v10 = vor.u32 %v3544_v35, %v3540_v28  ;;  %v1632_v58 = vsel %vm1579_vm15, %v1630_v3, %v1631_v63  ;;  %v1634_v19 = vsel %vm1579_vm15, %v1631_v63, %v1633_v29  ;;  %v3881_v11 = vpop.f32.mrf.mxu1 }
 0x113   : > { %v997_v20 = vadd.f32 %v13237_v56, %v933_v8  ;;  %v1963_v38 = vmax.f32 %v13458_v44, %v1851_v22  ;;  %4126 = vmatmul.bf16.gmra.mxu2 %v4002_v55  ;;  %v13740_v3 = vadd.f32 %v4082_v17, %v3881_v11  ;;  %v13759_v34 = vmax.f32 %v13704_v42, %v1632_v58 }
 0x114   : > { %v3536_v53 = vrot.slane %v3535_v51, 4  ;;  %v3546_v40 = vrot.slane %v3545_v10, 4  ;;  %v12345_v10 = vld [vmem:[%s19976_s1 + $0x30] sm:$0xff]  ;;  %v13762_v8 = vmax.f32 %v13708_v41, %v1634_v19  ;;  %v13765_v2 = vmax.f32 %v13710_v49, %v1633_v29  ;;  %v13782_v19 = vpop.f32.mrf.mxu0 }
 0x115   : > { %v1076_v5 = vmul.f32 %v12345_v10, %v1016_v57  ;;  %20410 = vst [vmem:[#allocation28_spill] sm:$0xff] %v13740_v3  ;;  %v1057_v35 = vmax.f32 %v997_v20, 0.0  ;;  %v2254_v17 = vrot.slane %v1963_v38, 2  ;;  %v20432_v14 = vsel %vm13751_vm0, %v13746_v47, 4048220490 }
 0x116   : > { %v3541_v63 = vsel %vm12892_vm4, %v3536_v53, %v3540_v28  ;;  %v3551_v57 = vsel %vm12892_vm4, %v3546_v40, %v3550_v43  ;;  %v957_v28 = vadd.f32 %v13237_v56, %v893_v46  ;;  %v13770_v53 = vld [vmem:[%s19976_s1 + $0x178] sm:$0xff]  ;;  %v1853_v40 = vsel %vm1810_vm7, %v1851_v22, %v1852_v0 }
 0x117   : > { %v3774_v52 = vunpack.c.l.b16 %v3541_v63  ;;  %v3775_v51 = vunpack.c.l.b16 %v3551_v57  ;;  %v1117_v56 = vmul.f32 %v1057_v35, %v13770_v53  ;;  %v1855_v46 = vsel %vm1810_vm7, %v1852_v0, %v1854_v24  ;;  %v12031_v0 = vld [vmem:[%s12592_s12 + $0x68] sm:$0xff] }
 0x118   : > { %v1017_v20 = vmax.f32 %v957_v28, 0.0  ;;  %v1964_v10 = vmax.f32 %v13460_v12, %v1853_v40  ;;  %v1965_v22 = vmax.f32 %v13470_v21, %v1855_v46  ;;  %v13789_v24 = vpack.c.bf16 %v1076_v5, %v1076_v5  ;;  %796 = vmatmul.bf16.gmra.mxu0 %v12031_v0  ;;  %v12346_v40 = vld [vmem:[%s19976_s1 + $0x38] sm:$0xff] }
 0x119   : > { %v3799_v58 = vpack.c.b16 %v3775_v51, %v3774_v52  ;;  %v13784_v11 = vpack.c.bf16 %v1117_v56, %v1117_v56  ;;  %v2533_v63 = vrot.slane %v13759_v34, 7  ;;  %v2534_v57 = vrot.slane %v13762_v8, 7 }
 0x11a   : > { %20414 = vst [vmem:[#allocation30_spill] sm:$0xff] %v13789_v24  ;;  %v2536_v38 = vrot.slane %v13765_v2, 7  ;;  %v2255_v21 = vrot.slane %v1964_v10, 2  ;;  %v2257_v51 = vrot.slane %v1965_v22, 2  ;;  %v1077_v46 = vmul.f32 %v12346_v40, %v1017_v20 }
 0x11b   : > { %20413 = vst [vmem:[#allocation29_spill] sm:$0xff] %v13784_v11  ;;  %3915 = vmatmul.bf16.gmra.mxu1 %v3799_v58  ;;  %v19998_v35 = vshll.u32 %v13784_v11, 16  ;;  %v5692_v12 = vshrl.u32 %v13784_v11, 16  ;;  %v2535_v5 = vsel %vm2492_vm9, %v2533_v63, %v2534_v57  ;;  %v2645_v29 = vmax.f32 %v13623_v59, %v2533_v63 }
 0x11c   : > { %v2537_v56 = vsel %vm2492_vm9, %v2534_v57, %v2536_v38  ;;  %v2256_v10 = vsel %vm2213_vm8, %v2254_v17, %v2255_v21  ;;  %v2258_v22 = vsel %vm2213_vm8, %v2255_v21, %v2257_v51  ;;  %v2368_v0 = vmax.f32 %v13491_v7, %v2257_v51  ;;  %v455_v17 = vld [vmem:[%s19976_s1 + $0x120] sm:$0xff]  ;;  %v754_v55 = vpop.f32.mrf.mxu0 }
 0x11d   : > { %v13803_v58 = vrot.slane %v5692_v12, 5  ;;  %v13807_v43 = vrot.slane %v19998_v35, 6  ;;  %v2646_v57 = vmax.f32 %v13626_v37, %v2535_v5  ;;  %v2366_v38 = vmax.f32 %v13481_v61, %v2256_v10  ;;  %v396_v10 = vld [vmem:[%s12592_s12 + $0x94] sm:$0xf]  ;;  %v395_v35 = vld [vmem:[%s12592_s12 + $0x90] sm:$0xf] }
 0x11e   : > { %v2367_v12 = vmax.f32 %v13488_v60, %v2258_v22  ;;  %v2647_v40 = vmax.f32 %v13642_v62, %v2537_v56  ;;  %v2901_v63 = vrot.slane %v2645_v29, 1  ;;  %v3173_v7 = vrot.slane %v13704_v42, 2  ;;  %v456_v56 = vld [vmem:[%s19976_s1 + $0x128] sm:$0xff]  ;;  %v13832_v22 = vpop.f32.mrf.mxu2 }
 0x11f   : > { %20415 = vst [vmem:[#allocation31_spill] sm:$0xff] %v13803_v58  ;;  %v2902_v21 = vrot.slane %v2646_v57, 1  ;;  %v3174_v51 = vrot.slane %v13708_v41, 2  ;;  %v13825_v20 = vpack.c.bf16 %v1077_v46, %v1077_v46  ;;  %v3176_v60 = vrot.slane %v13710_v49, 2  ;;  %v457_v46 = vld [vmem:[%s19976_s1 + $0x130] sm:$0xff] }
 0x120   : > { %20416 = vst [vmem:[#allocation32_spill] sm:$0xff] %v13807_v43  ;;  %v2904_v61 = vrot.slane %v2647_v40, 1  ;;  %v1265_v40 = vrot.slane %v396_v10, 5  ;;  %vm1354_vm1 = vcmp.gt.f32.partialorder %v455_v17, 0.0  ;;  %v397_v43 = vld [vmem:[%s12592_s12 + $0x98] sm:$0xf] }
 0x121   : > { %20417 = vst [vmem:[#allocation33_spill] sm:$0xff] %v13825_v20  ;;  %v2903_v29 = vsel %vm1579_vm15, %v2901_v63, %v2902_v21  ;;  %v3175_v57 = vsel %vm2213_vm8, %v3173_v7, %v3174_v51  ;;  %v3177_v58 = vsel %vm2213_vm8, %v3174_v51, %v3176_v60  ;;  %vm13843_vm3 = vmpackc.low %vm1354_vm1, %vm1354_vm1  ;;  %v13850_v63 = vld [vmem:[%s19976_s1 + $0x188] sm:$0xff]  ;;  %v10719_v11 = vrot.slane %v395_v35, 9 }
 0x122   : > { %20418 = vst [vmem:[#allocation34_spill] sm:$0xff] %v13832_v22  ;;  %v2905_v5 = vsel %vm1579_vm15, %v2902_v21, %v2904_v61  ;;  %v3013_v28 = vmax.f32 %v2366_v38, %v2903_v29  ;;  %v3015_v52 = vmax.f32 %v2368_v0, %v2904_v61  ;;  %v1268_v17 = vrot.slane %v397_v43, 5  ;;  %v13854_v38 = vpop.f32.mrf.mxu1 }
 0x123   : > { %v3014_v7 = vmax.f32 %v2367_v12, %v2905_v5  ;;  %vm1355_vm5 = vcmp.gt.f32.partialorder %v456_v56, 0.0  ;;  %vm1356_vm6 = vcmp.gt.f32.partialorder %v457_v46, 0.0  ;;  %v1462_v0 = vsel %vm13843_vm3, %v395_v35, 4048220490  ;;  %20421 = vst [vmem:[#allocation35_spill] sm:$0xff] %v13854_v38 }
 0x124   : > { %v3285_v18 = vmax.f32 %v3013_v28, %v3175_v57  ;;  %v3287_v21 = vmax.f32 %v3015_v52, %v3176_v60  ;;  %vm1409_vm10 = vmpackc.low %vm1355_vm5, %vm1355_vm5  ;;  %v1267_v61 = vrot.slane %v1265_v40, 4  ;;  %v13856_v31 = vunpack.c.l.bf16 %v1462_v0 }
 0x125   : > { %v3286_v51 = vmax.f32 %v3014_v7, %v3177_v58  ;;  %vm1410_vm11 = vmpackc.low %vm1356_vm6, %vm1356_vm6  ;;  %v1463_v29 = vsel %vm1409_vm10, %v396_v10, 4048220490  ;;  %vm1367_vm12 = vcmp.gt.f32.partialorder %v13850_v63, 0.0  ;;  %v1266_v60 = vsel %vm12608_vm2, %v10719_v11, %v1265_v40 }
 0x126   : > { %v3333_v12 = vpack.c.bf16 %v3285_v18, %v3285_v18  ;;  %v3335_v5 = vpack.c.bf16 %v3287_v21, %v3287_v21  ;;  %v1464_v56 = vsel %vm1410_vm11, %v397_v43, 4048220490  ;;  %v13859_v28 = vunpack.c.l.bf16 %v1463_v29  ;;  %vm13915_vm13 = vmpackc.low %vm1367_vm12, %vm1367_vm12 }
 0x127   : > { %v3334_v52 = vpack.c.bf16 %v3286_v51, %v3286_v51  ;;  %v13863_v35 = vunpack.c.l.bf16 %v1464_v56  ;;  %v1635_v58 = vrot.slane %v13856_v31, 1  ;;  %v1269_v18 = vsel %vm12608_vm2, %v1267_v61, %v1268_v17 }
 0x128   : > { %v3553_v22 = vshrl.u32 %v3333_v12, 16  ;;  %v3556_v57 = vshll.u32 %v3333_v12, 16  ;;  %v3572_v10 = vshll.u32 %v3335_v5, 16  ;;  %v1636_v46 = vrot.slane %v13859_v28, 1  ;;  %v4087_v12 = vpop.f32.mrf.mxu2 }
 0x129   : > { %v3562_v7 = vshll.u32 %v3334_v52, 16  ;;  %v3566_v0 = vshrl.u32 %v3334_v52, 16  ;;  %v1638_v43 = vrot.slane %v13863_v35, 1  ;;  %v3981_v40 = vunpack.c.l.b16 %v1266_v60  ;;  %v757_v52 = vpop.f32.mrf.mxu0 }
 0x12a   : > { %v3555_v21 = vrot.slane %v3553_v22, 4  ;;  %v3558_v51 = vrot.slane %v3556_v57, 5  ;;  %v1637_v11 = vsel %vm1579_vm15, %v1635_v58, %v1636_v46  ;;  %v20422_v29 = vrot.slane %v13704_v42, 6 }
 0x12b   : > { %v3564_v5 = vrot.slane %v3562_v7, 5  ;;  %v3568_v38 = vrot.slane %v3566_v0, 4  ;;  %v1639_v54 = vsel %vm1579_vm15, %v1636_v46, %v1638_v43  ;;  %v3574_v1 = vrot.slane %v3572_v10, 5 }
 0x12c   : > { %v1966_v56 = vmax.f32 %v13586_v16, %v20422_v29  ;;  %v3559_v48 = vor.u32 %v3558_v51, %v3555_v21  ;;  %v13876_v17 = vmax.f32 %v13856_v31, %v1637_v11  ;;  %v3982_v61 = vunpack.c.l.b16 %v1269_v18  ;;  %v13883_v16 = vld [vmem:[%s19978_s3] ss:$0 sm:$0xff] }
 0x12d   : > { %v3569_v22 = vor.u32 %v3568_v38, %v3564_v5  ;;  %v4214_v58 = vunpack.c.l.b16 %v13789_v24  ;;  %v4215_v60 = vunpack.c.l.b16 %v13825_v20  ;;  %v895_v57 = vmul.f32 %v13883_v16, %v754_v55  ;;  %v3886_v38 = vpop.f32.mrf.mxu1 }
 0x12e   : > { %v3560_v46 = vrot.slane %v3559_v48, 4  ;;  %v13887_v10 = vmax.f32 %v13859_v28, %v1639_v54  ;;  %v4003_v7 = vpack.c.b16 %v3982_v61, %v3981_v40  ;;  %v896_v0 = vmul.f32 %v13883_v16, %v757_v52 }
 0x12f   : > { %v3570_v18 = vrot.slane %v3569_v22, 4  ;;  %v13891_v21 = vmax.f32 %v13863_v35, %v1638_v43  ;;  %v13893_v51 = vpack.c.b16 %v4215_v60, %v4214_v58  ;;  %v13895_v11 = vadd.f32 %v4087_v12, %v3886_v38  ;;  %v13910_v22 = vld [vmem:[%s12592_s12 + $0xc4] sm:$0xf]  ;;  %v13925_v58 = vld [vmem:[%s19979_s4] ss:$0 sm:$0xff] }
 0x130   : > { %v2259_v29 = vrot.slane %v1966_v56, 2  ;;  %v3565_v55 = vsel %vm12892_vm4, %v3560_v46, %v3564_v5  ;;  %4131 = vmatmul.bf16.gmra.mxu2 %v4003_v7  ;;  %v20425_v48 = vrot.slane %v13708_v41, 6  ;;  %v20426_v54 = vrot.slane %v13704_v42, 6 }
 0x131   : > { %20423 = vst [vmem:[#allocation36_spill] sm:$0xff] %v13893_v51  ;;  %v20427_v52 = vrot.slane %v13710_v49, 6  ;;  %v3575_v12 = vsel %vm12892_vm4, %v3570_v18, %v3574_v1  ;;  %v3776_v5 = vunpack.c.l.b16 %v3565_v55  ;;  %4340 = vmatmul.bf16.gmra.mxu3 %v13893_v51  ;;  %v959_v60 = vadd.f32 %v13925_v58, %v895_v57 }
 0x132   : > { %20424 = vst [vmem:[#allocation37_spill] sm:$0xff] %v13895_v11  ;;  %v1858_v40 = vsel %vm1810_vm7, %v20426_v54, %v20425_v48  ;;  %v20428_v43 = vmov %v20425_v48  ;;  %v3777_v46 = vunpack.c.l.b16 %v3575_v12  ;;  %v960_v7 = vadd.f32 %v13925_v58, %v896_v0 }
 0x133   : > { %v1860_v61 = vsel %vm1810_vm7, %v20428_v43, %v20427_v52  ;;  %v1967_v63 = vmax.f32 %v13588_v32, %v1858_v40  ;;  %v2538_v48 = vrot.slane %v13876_v17, 7  ;;  %v20431_v1 = vsel %vm13730_vm14, %v13743_v45, 4048220490  ;;  %v12349_v43 = vld [vmem:[%s19976_s1 + $0x150] sm:$0xff] }
 0x134   : > { %v1968_v38 = vmax.f32 %v13590_v30, %v1860_v61  ;;  %v13936_v18 = vunpack.c.l.bf16 %v20431_v1  ;;  %v2539_v54 = vrot.slane %v13887_v10, 7  ;;  %v2541_v57 = vrot.slane %v13891_v21, 7  ;;  %v13953_v61 = vpop.f32.mrf.mxu2 }
 0x135   : > { %v2260_v55 = vrot.slane %v1967_v63, 2  ;;  %v1475_v32 = vsel %vm13915_vm13, %v13910_v22, 4048220490  ;;  %v3800_v0 = vpack.c.b16 %v3777_v46, %v3776_v5  ;;  %v2648_v30 = vmax.f32 %v13759_v34, %v2538_v48  ;;  %20433 = vst [vmem:[#allocation38_spill] sm:$0xff] %v13953_v61 }
 0x136   : > { %v2262_v40 = vrot.slane %v1968_v38, 2  ;;  %v13948_v52 = vunpack.c.l.bf16 %v20432_v14  ;;  %vm1360_vm14 = vcmp.gt.f32.partialorder %v12349_v43, 0.0  ;;  %v2540_v12 = vsel %vm2492_vm9, %v2538_v48, %v2539_v54  ;;  %v12032_v48 = vld [vmem:[%s12592_s12 + $0x70] sm:$0xff] }
 0x137   : > { %v2261_v56 = vsel %vm2213_vm8, %v2259_v29, %v2260_v55  ;;  %v2542_v5 = vsel %vm2492_vm9, %v2539_v54, %v2541_v57  ;;  %3920 = vmatmul.bf16.gmra.mxu1 %v3800_v0  ;;  %v1019_v44 = vmax.f32 %v959_v60, 0.0  ;;  %v1020_v63 = vmax.f32 %v960_v7, 0.0  ;;  %v458_v29 = vld [vmem:[%s19976_s1 + $0x138] sm:$0xff]  ;;  %801 = vmatmul.bf16.gmra.mxu0 %v12032_v48  ;;  %vm14010_vm6 = vmpackc.low %vm1360_vm14, %vm1360_vm14 }
 0x138   : > { %v2263_v46 = vsel %vm2213_vm8, %v2260_v55, %v2262_v40  ;;  %v2369_v38 = vmax.f32 %v13623_v59, %v2261_v56  ;;  %v2371_v1 = vmax.f32 %v13642_v62, %v2262_v40  ;;  %v2649_v14 = vmax.f32 %v13762_v8, %v2540_v12  ;;  %v398_v55 = vld [vmem:[%s12592_s12 + $0x9c] sm:$0xf] }
 0x139   : > { %v2650_v61 = vmax.f32 %v13765_v2, %v2542_v5  ;;  %v2906_v51 = vrot.slane %v2648_v30, 1  ;;  %v2370_v54 = vmax.f32 %v13626_v37, %v2263_v46  ;;  %v3178_v60 = vrot.slane %v13856_v31, 2  ;;  %v462_v48 = vld [vmem:[%s19976_s1 + $0x158] sm:$0xff] }
 0x13a   : > { %v3179_v7 = vrot.slane %v13859_v28, 2  ;;  %v3181_v59 = vrot.slane %v13863_v35, 2  ;;  %v2907_v62 = vrot.slane %v2649_v14, 1  ;;  %v10720_v0 = vrot.slane %v398_v55, 9 }
 0x13b   : > { %v2909_v57 = vrot.slane %v2650_v61, 1  ;;  %v20434_v40 = vrot.slane %v13616_v6, 5  ;;  %v1275_v37 = vrot.slane %v13746_v47, 5  ;;  %vm1357_vm0 = vcmp.gt.f32.partialorder %v458_v29, 0.0  ;;  %v12351_v6 = vld [vmem:[%s19976_s1 + $0x50] sm:$0xff] }
 0x13c   : > { %v3180_v56 = vsel %vm2213_vm8, %v3178_v60, %v3179_v7  ;;  %v3182_v12 = vsel %vm2213_vm8, %v3179_v7, %v3181_v59  ;;  %v2908_v5 = vsel %vm1579_vm15, %v2906_v51, %v2907_v62  ;;  %v12350_v60 = vld [vmem:[%s19976_s1 + $0x48] sm:$0xff]  ;;  %vm13996_vm1 = vmpackc.low %vm1357_vm0, %vm1357_vm0  ;;  %vm1368_vm3 = vcmp.gt.f32.partialorder %v13465_v4, 0.0 }
 0x13d   : > { %v1274_v30 = vrot.slane %v20434_v40, 4  ;;  %v2910_v46 = vsel %vm1579_vm15, %v2907_v62, %v2909_v57  ;;  %v3018_v25 = vmax.f32 %v2371_v1, %v2909_v57  ;;  %v20435_v14 = vmov %v20434_v40  ;;  %v13991_v1 = vpop.f32.mrf.mxu1  ;;  %vm14024_vm10 = vmpackc.low %vm1368_vm3, %vm1368_vm3 }
 0x13e   : > { %v1273_v61 = vsel %vm12608_vm2, %v10720_v0, %v20435_v14  ;;  %v1079_v47 = vmul.f32 %v12350_v60, %v1019_v44  ;;  %v3016_v29 = vmax.f32 %v2369_v38, %v2908_v5  ;;  %v3017_v7 = vmax.f32 %v2370_v54, %v2910_v46  ;;  %20436 = vst [vmem:[#allocation39_spill] sm:$0xff] %v13991_v1  ;;  %v862_v60 = vpop.f32.mrf.mxu3  ;;  %v14061_v1 = vld [vmem:[%s19976_s1 + $0x1a0] sm:$0xff] }
 0x13f   : > { %v1276_v51 = vsel %vm12608_vm2, %v1274_v30, %v1275_v37  ;;  %v1080_v62 = vmul.f32 %v12351_v6, %v1020_v63  ;;  %v3290_v57 = vmax.f32 %v3018_v25, %v3181_v59  ;;  %v3983_v40 = vunpack.c.l.b16 %v1273_v61  ;;  %v4092_v63 = vpop.f32.mrf.mxu2  ;;  %v14006_v59 = vld [vmem:[%s12592_s12 + $0xa8] sm:$0xf] }
 0x140   : > { %v3984_v44 = vunpack.c.l.b16 %v1276_v51  ;;  %v3288_v54 = vmax.f32 %v3016_v29, %v3180_v56  ;;  %v3289_v30 = vmax.f32 %v3017_v7, %v3182_v12  ;;  %v14003_v5 = vunpack.c.l.bf16 %v1475_v32  ;;  %v14016_v32 = vpop.f32.mrf.mxu0  ;;  %v14019_v29 = vld [vmem:[%s12592_s12 + $0xc8] sm:$0xf] }
 0x141   : > { %vm1361_vm5 = vcmp.gt.f32.partialorder %v462_v48, 0.0  ;;  %v3338_v25 = vpack.c.bf16 %v3290_v57, %v3290_v57  ;;  %v1465_v56 = vsel %vm13996_vm1, %v398_v55, 4048220490  ;;  %20441 = vst [vmem:[#allocation40_spill] sm:$0xff] %v14016_v32  ;;  %v14028_v7 = vpack.c.bf16 %v1079_v47, %v1079_v47  ;;  %v14034_v57 = vld [vmem:[%s12592_s12 + $0xac] sm:$0xf] }
 0x142   : > { %v3336_v14 = vpack.c.bf16 %v3288_v54, %v3288_v54  ;;  %v3337_v61 = vpack.c.bf16 %v3289_v30, %v3289_v30  ;;  %v4004_v12 = vpack.c.b16 %v3984_v44, %v3983_v40  ;;  %v14030_v51 = vpack.c.bf16 %v1080_v62, %v1080_v62  ;;  %vm14038_vm11 = vmpackc.low %vm1361_vm5, %vm1361_vm5 }
 0x143   : > { %20444 = vst [vmem:[#allocation41_spill] sm:$0xff] %v14028_v7  ;;  %v3596_v6 = vshll.u32 %v3338_v25, 16  ;;  %v938_v55 = vmul.f32 %v13883_v16, %v862_v60  ;;  %v1468_v62 = vsel %vm14010_vm6, %v14006_v59, 4048220490  ;;  %v14046_v30 = vunpack.c.l.bf16 %v1465_v56  ;;  %v470_v25 = vld [vmem:[%s19976_s1 + $0x198] sm:$0xff] }
 0x144   : > { %20445 = vst [vmem:[#allocation42_spill] sm:$0xff] %v14030_v51  ;;  %v3577_v4 = vshrl.u32 %v3336_v14, 16  ;;  %v3580_v40 = vshll.u32 %v3336_v14, 16  ;;  %v3586_v44 = vshll.u32 %v3337_v61, 16  ;;  %v3590_v54 = vshrl.u32 %v3337_v61, 16  ;;  %4136 = vmatmul.bf16.gmra.mxu2 %v4004_v12 }
 0x145   : > { %v1002_v48 = vadd.f32 %v13925_v58, %v938_v55  ;;  %v1476_v61 = vsel %vm14024_vm10, %v14019_v29, 4048220490  ;;  %v1469_v46 = vsel %vm14038_vm11, %v14034_v57, 4048220490  ;;  %v3598_v56 = vrot.slane %v3596_v6, 5 }
 0x146   : > { %v3579_v60 = vrot.slane %v3577_v4, 4  ;;  %v3582_v38 = vrot.slane %v3580_v40, 5  ;;  %v3588_v14 = vrot.slane %v3586_v44, 5  ;;  %v3592_v37 = vrot.slane %v3590_v54, 4  ;;  %v3891_v44 = vpop.f32.mrf.mxu1 }
 0x147   : > { %v1062_v12 = vmax.f32 %v1002_v48, 0.0  ;;  %v4216_v4 = vunpack.c.l.b16 %v14028_v7  ;;  %v4217_v40 = vunpack.c.l.b16 %v14030_v51  ;;  %v14065_v43 = vunpack.c.l.bf16 %v1468_v62 }
 0x148   : > { %v3583_v47 = vor.u32 %v3582_v38, %v3579_v60  ;;  %v3593_v55 = vor.u32 %v3592_v37, %v3588_v14  ;;  %vm1369_vm12 = vcmp.gt.f32.partialorder %v470_v25, 0.0  ;;  %v14070_v6 = vadd.f32 %v4092_v63, %v3891_v44  ;;  %v14081_v25 = vpop.f32.mrf.mxu2 }
 0x149   : > { %v14068_v0 = vmul.f32 %v1062_v12, %v14061_v1  ;;  %v1640_v54 = vrot.slane %v14046_v30, 1  ;;  %v14073_v48 = vpack.c.b16 %v4217_v40, %v4216_v4  ;;  %v14077_v7 = vunpack.c.l.bf16 %v1476_v61  ;;  %20452 = vst [vmem:[#allocation47_spill] sm:$0xff] %v14081_v25  ;;  %vm14088_vm13 = vmpackc.low %vm1369_vm12, %vm1369_vm12 }
 0x14a   : > { %20449 = vst [vmem:[#allocation44_spill] sm:$0xff] %v14070_v6  ;;  %v3584_v38 = vrot.slane %v3583_v47, 4  ;;  %v3594_v37 = vrot.slane %v3593_v55, 4  ;;  %v14079_v62 = vunpack.c.l.bf16 %v1469_v46  ;;  %v14086_v47 = vld [vmem:[%s12592_s12 + $0xcc] sm:$0xf]  ;;  %v14097_v46 = vpop.f32.mrf.mxu0  ;;  %v20456_v44 = vrot.slane %v13948_v52, 1 }
 0x14b   : > { %20448 = vst [vmem:[#allocation43_spill] sm:$0xff] %v14068_v0  ;;  %4345 = vmatmul.bf16.gmra.mxu3 %v14073_v48  ;;  %v20457_v12 = vrot.slane %v13648_v39, 1  ;;  %v20458_v25 = vrot.slane %v14003_v5, 1  ;;  %v1658_v0 = vrot.slane %v14077_v7, 1  ;;  %v1864_v55 = vrot.slane %v13863_v35, 6 }
 0x14c   : > { %20450 = vst [vmem:[#allocation45_spill] sm:$0xff] %v14073_v48  ;;  %v3589_v4 = vsel %vm12892_vm4, %v3584_v38, %v3588_v14  ;;  %v3599_v61 = vsel %vm12892_vm4, %v3594_v37, %v3598_v56  ;;  %v20459_v14 = vrot.slane %v13936_v18, 1  ;;  %v1645_v38 = vrot.slane %v14065_v43, 1 }
 0x14d   : > { %20451 = vst [vmem:[#allocation46_spill] sm:$0xff] %v14077_v7  ;;  %v1644_v60 = vsel %vm1579_vm15, %v20457_v12, %v20456_v44  ;;  %v3778_v63 = vunpack.c.l.b16 %v3589_v4  ;;  %v3779_v26 = vunpack.c.l.b16 %v3599_v61  ;;  %v1861_v37 = vrot.slane %v13856_v31, 6 }
 0x14e   : > { %20453 = vst [vmem:[#allocation48_spill] sm:$0xff] %v14086_v47  ;;  %v1657_v56 = vsel %vm1579_vm15, %v20459_v14, %v20458_v25  ;;  %v20460_v40 = vmov %v20457_v12  ;;  %v1477_v4 = vsel %vm14088_vm13, %v14086_v47, 4048220490  ;;  %v14123_v25 = vmax.f32 %v13948_v52, %v20456_v44  ;;  %v14156_v44 = vpop.f32.mrf.mxu3 }
 0x14f   : > { %v1642_v48 = vsel %vm1579_vm15, %v1640_v54, %v20460_v40  ;;  %v3801_v61 = vpack.c.b16 %v3779_v26, %v3778_v63  ;;  %v12352_v54 = vld [vmem:[%s19976_s1 + $0x160] sm:$0xff]  ;;  %v1862_v40 = vrot.slane %v13859_v28, 6  ;;  %v14131_v12 = vmax.f32 %v13936_v18, %v1657_v56  ;;  %20465 = vst [vmem:[#allocation49_spill] sm:$0xff] %v14156_v44 }
 0x150   : > { %vm1362_vm14 = vcmp.gt.f32.partialorder %v12352_v54, 0.0  ;;  %v14135_v63 = vmax.f32 %v14046_v30, %v1642_v48  ;;  %v14140_v51 = vunpack.c.l.bf16 %v1477_v4  ;;  %v20461_v6 = vrot.slane %v14003_v5, 1  ;;  %v14150_v48 = vld [vmem:[%s12592_s12 + $0xb0] sm:$0xf] }
 0x151   : > { %3925 = vmatmul.bf16.gmra.mxu1 %v3801_v61  ;;  %v1863_v54 = vsel %vm1810_vm7, %v1861_v37, %v1862_v40  ;;  %v20462_v26 = vrot.slane %v14079_v62, 1  ;;  %vm14152_vm0 = vmpackc.low %vm1362_vm14, %vm1362_vm14  ;;  %v1865_v4 = vsel %vm1810_vm7, %v1862_v40, %v1864_v55  ;;  %v1969_v14 = vmax.f32 %v13704_v42, %v1861_v37  ;;  %v14173_v55 = vpop.f32.mrf.mxu2 }
 0x152   : > { %v1659_v56 = vsel %vm1579_vm15, %v20461_v6, %v1658_v0  ;;  %v20021_v6 = vrot.slane %v14140_v51, 6  ;;  %v14163_v32 = vmax.f32 %v13648_v39, %v1644_v60  ;;  %v14170_v23 = vmax.f32 %v14077_v7, %v1658_v0  ;;  %v14187_v40 = vpop.f32.mrf.mxu0 }
 0x153   : > { %v1647_v61 = vsel %vm1579_vm15, %v1645_v38, %v20462_v26  ;;  %v1970_v38 = vmax.f32 %v13708_v41, %v1863_v54  ;;  %v12110_v26 = vld [vmem:[%s19982_s7 + $0x130] sm:$0xff]  ;;  %v1971_v42 = vmax.f32 %v13710_v49, %v1865_v4  ;;  %v2543_v37 = vrot.slane %v14135_v63, 7 }
 0x154   : > { %20466 = vst [vmem:[#allocation50_spill] sm:$0xff] %v14170_v23  ;;  %v14178_v60 = vmax.f32 %v14003_v5, %v1659_v56  ;;  %v14181_v41 = vmax.f32 %v14065_v43, %v1647_v61  ;;  %v1470_v0 = vsel %vm14152_vm0, %v14150_v48, 4048220490  ;;  %6193 = vmatpush.bf16.msrb.mxu0 %v12110_v26  ;;  %v1282_v56 = vrot.slane %v14150_v48, 5 }
 0x155   : > { %v2264_v4 = vrot.slane %v1969_v14, 2  ;;  %v14195_v61 = vmax.f32 %v13936_v18, %v20021_v6  ;;  %v2265_v54 = vrot.slane %v1970_v38, 2  ;;  %v2267_v44 = vrot.slane %v1971_v42, 2  ;;  %v12033_v42 = vld [vmem:[%s12592_s12 + $0x78] sm:$0xff] }
 0x156   : > { %v2544_v24 = vrot.slane %v14163_v32, 7  ;;  %v14198_v26 = vunpack.c.l.bf16 %v1470_v0  ;;  %v891_v20 = vmul.f32 %v13883_v16, %v13637_v9  ;;  %v2546_v50 = vrot.slane %v14123_v25, 7  ;;  %806 = vmatmul.bf16.gmra.mxu0 %v12033_v42 }
 0x157   : > { %v2651_v49 = vmax.f32 %v13876_v17, %v2543_v37  ;;  %v2266_v14 = vsel %vm2213_vm8, %v2264_v4, %v2265_v54  ;;  %v2268_v48 = vsel %vm2213_vm8, %v2265_v54, %v2267_v44  ;;  %v3183_v38 = vrot.slane %v14046_v30, 2 }
 0x158   : > { %v2545_v6 = vsel %vm2492_vm9, %v2543_v37, %v2544_v24  ;;  %v2372_v11 = vmax.f32 %v13759_v34, %v2266_v14  ;;  %v2374_v0 = vmax.f32 %v13765_v2, %v2267_v44  ;;  %v2547_v33 = vsel %vm2492_vm9, %v2544_v24, %v2546_v50  ;;  %v867_v2 = vpop.f32.mrf.mxu3 }
 0x159   : > { %v2652_v9 = vmax.f32 %v13887_v10, %v2545_v6  ;;  %v2653_v13 = vmax.f32 %v13891_v21, %v2547_v33  ;;  %v2911_v27 = vrot.slane %v2651_v49, 1  ;;  %v3184_v4 = vrot.slane %v13648_v39, 2  ;;  %v14222_v49 = vpop.f32.mrf.mxu2 }
 0x15a   : > { %v3186_v54 = vrot.slane %v13948_v52, 2  ;;  %v1648_v37 = vrot.slane %v14198_v26, 1  ;;  %v2373_v3 = vmax.f32 %v13762_v8, %v2268_v48  ;;  %v1279_v34 = vrot.slane %v14034_v57, 5  ;;  %20467 = vst [vmem:[#allocation51_spill] sm:$0xff] %v14222_v49  ;;  %v14230_v48 = vpop.f32.mrf.mxu1 }
 0x15b   : > { %v2912_v47 = vrot.slane %v2652_v9, 1  ;;  %v955_v50 = vadd.f32 %v13925_v58, %v891_v20  ;;  %v2914_v44 = vrot.slane %v2653_v13, 1  ;;  %v3185_v6 = vsel %vm2213_vm8, %v3183_v38, %v3184_v4  ;;  %20469 = vst [vmem:[#allocation52_spill] sm:$0xff] %v14230_v48 }
 0x15c   : > { %v940_v33 = vmul.f32 %v13883_v16, %v867_v2  ;;  %v3187_v14 = vsel %vm2213_vm8, %v3184_v4, %v3186_v54  ;;  %v20468_v42 = vrot.slane %v14006_v59, 9  ;;  %v1281_v57 = vrot.slane %v1279_v34, 4  ;;  %v767_v2 = vpop.f32.mrf.mxu0  ;;  %v12034_v4 = vld [vmem:[%s12592_s12 + $0x80] sm:$0xff] }
 0x15d   : > { %v2913_v24 = vsel %vm1579_vm15, %v2911_v27, %v2912_v47  ;;  %v2915_v13 = vsel %vm1579_vm15, %v2912_v47, %v2914_v44  ;;  %v3021_v38 = vmax.f32 %v2374_v0, %v2914_v44  ;;  %v20470_v48 = vrot.slane %v14079_v62, 1  ;;  %v464_v47 = vld [vmem:[%s19976_s1 + $0x168] sm:$0xff] }
 0x15e   : > { %v1280_v8 = vsel %vm12608_vm2, %v20468_v42, %v1279_v34  ;;  %v3019_v20 = vmax.f32 %v2372_v11, %v2913_v24  ;;  %v3020_v7 = vmax.f32 %v2373_v3, %v2915_v13  ;;  %v1283_v27 = vsel %vm12608_vm2, %v1281_v57, %v1282_v56 }
 0x15f   : > { %v3985_v9 = vunpack.c.l.b16 %v1280_v8  ;;  %v1004_v59 = vadd.f32 %v13925_v58, %v940_v33  ;;  %v3293_v34 = vmax.f32 %v3021_v38, %v3186_v54  ;;  %v3986_v23 = vunpack.c.l.b16 %v1283_v27  ;;  %v14248_v54 = vld [vmem:[%s19976_s1 + $0x1b0] sm:$0xff] }
 0x160   : > { %v3291_v42 = vmax.f32 %v3019_v20, %v3185_v6  ;;  %v1649_v11 = vsel %vm1579_vm15, %v20470_v48, %v1648_v37  ;;  %v3292_v0 = vmax.f32 %v3020_v7, %v3187_v14  ;;  %v900_v44 = vmul.f32 %v13883_v16, %v767_v2 }
 0x161   : > { %v1064_v3 = vmax.f32 %v1004_v59, 0.0  ;;  %v1015_v56 = vmax.f32 %v955_v50, 0.0  ;;  %v3341_v33 = vpack.c.bf16 %v3293_v34, %v3293_v34  ;;  %v4005_v8 = vpack.c.b16 %v3986_v23, %v3985_v9  ;;  %v14266_v59 = vld [vmem:[%s12592_s12 + $0xb4] sm:$0xf] }
 0x162   : > { %v3339_v24 = vpack.c.bf16 %v3291_v42, %v3291_v42  ;;  %v898_v6 = vmul.f32 %v13883_v16, %v14097_v46  ;;  %v3340_v57 = vpack.c.bf16 %v3292_v0, %v3292_v0  ;;  %v899_v7 = vmul.f32 %v13883_v16, %v14187_v40 }
 0x163   : > { %v14255_v14 = vmul.f32 %v1064_v3, %v14248_v54  ;;  %vm1363_vm1 = vcmp.gt.f32.partialorder %v464_v47, 0.0  ;;  %4141 = vmatmul.bf16.gmra.mxu2 %v4005_v8  ;;  %v964_v23 = vadd.f32 %v13925_v58, %v900_v44  ;;  %v1866_v13 = vrot.slane %v14046_v30, 6  ;;  %v14273_v3 = vpop.f32.mrf.mxu2  ;;  %v3896_v44 = vpop.f32.mrf.mxu1 }
 0x164   : > { %v3601_v50 = vshrl.u32 %v3339_v24, 16  ;;  %v3604_v48 = vshll.u32 %v3339_v24, 16  ;;  %v3610_v20 = vshll.u32 %v3340_v57, 16  ;;  %v3614_v38 = vshrl.u32 %v3340_v57, 16  ;;  %vm14268_vm3 = vmpackc.low %vm1363_vm1, %vm1363_vm1 }
 0x165   : > { %20471 = vst [vmem:[#allocation53_spill] sm:$0xff] %v14255_v14  ;;  %v3620_v9 = vshll.u32 %v3341_v33, 16  ;;  %v14260_v46 = vmax.f32 %v14079_v62, %v1649_v11  ;;  %v14263_v2 = vmax.f32 %v14198_v26, %v1648_v37  ;;  %v962_v34 = vadd.f32 %v13925_v58, %v898_v6  ;;  %v12353_v37 = vld [vmem:[%s19976_s1 + $0x28] sm:$0xff]  ;;  %v12354_v6 = vld [vmem:[%s19976_s1 + $0x170] sm:$0xff]  ;;  %v769_v14 = vpop.f32.mrf.mxu0 }
 0x166   : > { %v3603_v40 = vrot.slane %v3601_v50, 4  ;;  %v3606_v27 = vrot.slane %v3604_v48, 5  ;;  %v3612_v47 = vrot.slane %v3610_v20, 5  ;;  %v3616_v0 = vrot.slane %v3614_v38, 4  ;;  %811 = vmatmul.bf16.gmra.mxu0 %v12034_v4 }
 0x167   : > { %v963_v11 = vadd.f32 %v13925_v58, %v899_v7  ;;  %v1075_v24 = vmul.f32 %v12353_v37, %v1015_v56  ;;  %v1024_v8 = vmax.f32 %v964_v23, 0.0  ;;  %v14280_v57 = vadd.f32 %v14173_v55, %v3896_v44  ;;  %v12355_v55 = vld [vmem:[%s19976_s1 + $0x70] sm:$0xff] }
 0x168   : > { %v3607_v33 = vor.u32 %v3606_v27, %v3603_v40  ;;  %vm1364_vm5 = vcmp.gt.f32.partialorder %v12354_v6, 0.0  ;;  %v3617_v50 = vor.u32 %v3616_v0, %v3612_v47  ;;  %v3622_v48 = vrot.slane %v3620_v9, 5 }
 0x169   : > { %v20474_v7 = vrot.slane %v13648_v39, 6  ;;  %v1471_v56 = vsel %vm14268_vm3, %v14266_v59, 4048220490  ;;  %v1084_v38 = vmul.f32 %v12355_v55, %v1024_v8  ;;  %v20475_v40 = vrot.slane %v13948_v52, 6  ;;  %vm14303_vm6 = vmpackc.low %vm1364_vm5, %vm1364_vm5 }
 0x16a   : > { %v3608_v23 = vrot.slane %v3607_v33, 4  ;;  %v1022_v0 = vmax.f32 %v962_v34, 0.0  ;;  %v3618_v44 = vrot.slane %v3617_v50, 4  ;;  %v1023_v37 = vmax.f32 %v963_v11, 0.0 }
 0x16b   : > { %v1868_v20 = vsel %vm1810_vm7, %v1866_v13, %v20474_v7  ;;  %v20476_v27 = vmov %v20474_v7  ;;  %v1972_v6 = vmax.f32 %v13856_v31, %v1866_v13  ;;  %v14301_v7 = vld [vmem:[%s12592_s12 + $0xb8] sm:$0xf]  ;;  %vm1365_vm10 = vcmp.gt.f32.partialorder %v13770_v53, 0.0 }
 0x16c   : > { %v1870_v9 = vsel %vm1810_vm7, %v20476_v27, %v20475_v40  ;;  %v3613_v33 = vsel %vm12892_vm4, %v3608_v23, %v3612_v47  ;;  %v14310_v8 = vpack.c.bf16 %v1084_v38, %v1084_v38  ;;  %v1973_v34 = vmax.f32 %v13859_v28, %v1868_v20  ;;  %v12095_v47 = vld [vmem:[%s19982_s7 + $0xb8] sm:$0xff]  ;;  %vm14340_vm11 = vmpackc.low %vm1365_vm10, %vm1365_vm10  ;;  %v12357_v38 = vld [vmem:[%s19976_s1 + $0x68] sm:$0xff] }
 0x16d   : > { %v14313_v50 = vpack.c.bf16 %v1075_v24, %v1075_v24  ;;  %v3623_v31 = vsel %vm12892_vm4, %v3618_v44, %v3622_v48  ;;  %v3780_v13 = vunpack.c.l.b16 %v3613_v33  ;;  %v1974_v11 = vmax.f32 %v13863_v35, %v1870_v9  ;;  %v12103_v28 = vld [vmem:[%s19982_s7 + $0xf8] sm:$0xff]  ;;  %5334 = vmatpush.bf16.msra.mxu2 %v12095_v47 }
 0x16e   : > { %20479 = vst [vmem:[#allocation54_spill] sm:$0xff] %v14310_v8  ;;  %v14318_v55 = vunpack.c.l.bf16 %v1471_v56  ;;  %v3781_v40 = vunpack.c.l.b16 %v3623_v31  ;;  %v20032_v27 = vshll.u32 %v14310_v8, 16  ;;  %v5527_v49 = vshrl.u32 %v14310_v8, 16  ;;  %v12087_v35 = vld [vmem:[%s19982_s7 + $0x78] sm:$0xff]  ;;  %v12356_v56 = vld [vmem:[%s19976_s1 + $0x60] sm:$0xff]  ;;  %5827 = vmatpush.bf16.msra.mxu3 %v12103_v28 }
 0x16f   : > { %20480 = vst [vmem:[#allocation55_spill] sm:$0xff] %v14313_v50  ;;  %v1472_v24 = vsel %vm14303_vm6, %v14301_v7, 4048220490  ;;  %v14335_v48 = vld [vmem:[%s12592_s12 + $0xbc] sm:$0xf]  ;;  %v1082_v23 = vmul.f32 %v12356_v56, %v1022_v0  ;;  %v1083_v9 = vmul.f32 %v12357_v38, %v1023_v37  ;;  %v2269_v44 = vrot.slane %v1972_v6, 2  ;;  %4956 = vmatpush.bf16.msra.mxu1 %v12087_v35 }
 0x170   : > { %v3802_v42 = vpack.c.b16 %v3781_v40, %v3780_v13  ;;  %v14350_v33 = vrot.slane %v5527_v49, 5  ;;  %v14354_v53 = vrot.slane %v20032_v27, 6  ;;  %v2270_v31 = vrot.slane %v1973_v34, 2  ;;  %v14366_v49 = vpop.f32.mrf.mxu2  ;;  %v14368_v13 = vpop.f32.mrf.mxu3 }
 0x171   : > { %v1286_v0 = vrot.slane %v14301_v7, 5  ;;  %v20485_v56 = vrot.slane %v14003_v5, 6  ;;  %v20486_v37 = vrot.slane %v13936_v18, 6  ;;  %20487 = vst [vmem:[#allocation58_spill] sm:$0xff] %v14366_v49  ;;  %v2272_v40 = vrot.slane %v1974_v11, 2  ;;  %v14388_v7 = vpop.f32.mrf.mxu1 }
 0x172   : > { %20483 = vst [vmem:[#allocation56_spill] sm:$0xff] %v14350_v33  ;;  %v14370_v34 = vunpack.c.l.bf16 %v1472_v24  ;;  %v1473_v47 = vsel %vm14340_vm11, %v14335_v48, 4048220490  ;;  %3930 = vmatmul.bf16.gmra.mxu1 %v3802_v42  ;;  %v2548_v28 = vrot.slane %v14181_v41, 7  ;;  %v14378_v38 = vpack.c.bf16 %v1082_v23, %v1082_v23 }
 0x173   : > { %20484 = vst [vmem:[#allocation57_spill] sm:$0xff] %v14354_v53  ;;  %v14364_v6 = vsel %vm1810_vm7, %v20486_v37, %v20485_v56  ;;  %v14380_v56 = vpack.c.bf16 %v1083_v9, %v1083_v9  ;;  %v2549_v11 = vrot.slane %v14260_v46, 7  ;;  %v2551_v35 = vrot.slane %v14263_v2, 7 }
 0x174   : > { %20488 = vst [vmem:[#allocation59_spill] sm:$0xff] %v14368_v13  ;;  %v2271_v24 = vsel %vm2213_vm8, %v2269_v44, %v2270_v31  ;;  %v2273_v20 = vsel %vm2213_vm8, %v2270_v31, %v2272_v40  ;;  %v2654_v42 = vmax.f32 %v14135_v63, %v2548_v28  ;;  %v3189_v37 = vrot.slane %v14079_v62, 2 }
 0x175   : > { %20489 = vst [vmem:[#allocation60_spill] sm:$0xff] %v14378_v38  ;;  %v2550_v4 = vsel %vm2492_vm9, %v2548_v28, %v2549_v11  ;;  %v2552_v23 = vsel %vm2492_vm9, %v2549_v11, %v2551_v35  ;;  %v3191_v9 = vrot.slane %v14198_v26, 2  ;;  %v10722_v27 = vrot.slane %v14266_v59, 9 }
 0x176   : > { %20490 = vst [vmem:[#allocation61_spill] sm:$0xff] %v14380_v56  ;;  %v2377_v49 = vmax.f32 %v13891_v21, %v2272_v40  ;;  %v2655_v44 = vmax.f32 %v14163_v32, %v2550_v4  ;;  %v2656_v31 = vmax.f32 %v14123_v25, %v2552_v23  ;;  %v2916_v13 = vrot.slane %v2654_v42, 1 }
 0x177   : > { %20491 = vst [vmem:[#allocation62_spill] sm:$0xff] %v14388_v7  ;;  %v2375_v33 = vmax.f32 %v13876_v17, %v2271_v24  ;;  %v2376_v7 = vmax.f32 %v13887_v10, %v2273_v20  ;;  %v1287_v28 = vsel %vm12608_vm2, %v10722_v27, %v1286_v0  ;;  %v1288_v11 = vrot.slane %v1286_v0, 4 }
 0x178   : > { %v2917_v35 = vrot.slane %v2655_v44, 1  ;;  %v2919_v53 = vrot.slane %v2656_v31, 1  ;;  %v20492_v59 = vrot.slane %v14065_v43, 2  ;;  %v1289_v21 = vrot.slane %v14335_v48, 5  ;;  %v14412_v31 = vpop.f32.mrf.mxu2 }
 0x179   : > { %v3192_v40 = vsel %vm2213_vm8, %v3189_v37, %v3191_v9  ;;  %v3987_v4 = vunpack.c.l.b16 %v1287_v28  ;;  %v4218_v42 = vunpack.c.l.b16 %v14378_v38  ;;  %v4219_v17 = vunpack.c.l.b16 %v14380_v56 }
 0x17a   : > { %v3190_v8 = vsel %vm2213_vm8, %v20492_v59, %v3189_v37  ;;  %v2918_v10 = vsel %vm1579_vm15, %v2916_v13, %v2917_v35  ;;  %v2920_v27 = vsel %vm1579_vm15, %v2917_v35, %v2919_v53  ;;  %v3024_v0 = vmax.f32 %v2377_v49, %v2919_v53  ;;  %v872_v37 = vpop.f32.mrf.mxu3 }
 0x17b   : > { %v1290_v24 = vsel %vm12608_vm2, %v1288_v11, %v1289_v21  ;;  %v3022_v20 = vmax.f32 %v2375_v33, %v2918_v10  ;;  %v3023_v23 = vmax.f32 %v2376_v7, %v2920_v27  ;;  %v14414_v48 = vpack.c.b16 %v4219_v17, %v4218_v42 }
 0x17c   : > { %v3988_v44 = vunpack.c.l.b16 %v1290_v24  ;;  %v1650_v28 = vrot.slane %v14318_v55, 1  ;;  %v14417_v59 = vunpack.c.l.bf16 %v1473_v47  ;;  %v3296_v38 = vmax.f32 %v3024_v0, %v3191_v9  ;;  %v3901_v9 = vpop.f32.mrf.mxu1 }
 0x17d   : > { %20493 = vst [vmem:[#allocation63_spill] sm:$0xff] %v14414_v48  ;;  %v942_v13 = vmul.f32 %v13883_v16, %v872_v37  ;;  %v20494_v53 = vrot.slane %v13936_v18, 6  ;;  %v3294_v33 = vmax.f32 %v3022_v20, %v3190_v8  ;;  %v3295_v7 = vmax.f32 %v3023_v23, %v3192_v40  ;;  %4350 = vmatmul.bf16.gmra.mxu3 %v14414_v48  ;;  %v772_v8 = vpop.f32.mrf.mxu0  ;;  %v14442_v37 = vld [vmem:[%s19976_s1 + $0x1c0] sm:$0xff] }
 0x17e   : > { %v4006_v11 = vpack.c.b16 %v3988_v44, %v3987_v4  ;;  %v1651_v35 = vrot.slane %v14370_v34, 1  ;;  %v3344_v21 = vpack.c.bf16 %v3296_v38, %v3296_v38  ;;  %v901_v42 = vmul.f32 %v13883_v16, %v769_v14 }
 0x17f   : > { %v14423_v49 = vmax.f32 %v14318_v55, %v20494_v53  ;;  %v1006_v47 = vadd.f32 %v13925_v58, %v942_v13  ;;  %v20495_v17 = vrot.slane %v14318_v55, 6  ;;  %v3342_v27 = vpack.c.bf16 %v3294_v33, %v3294_v33 }
 0x180   : > { %v3343_v0 = vpack.c.bf16 %v3295_v7, %v3295_v7  ;;  %4146 = vmatmul.bf16.gmra.mxu2 %v4006_v11  ;;  %v14435_v40 = vadd.f32 %v14273_v3, %v3901_v9  ;;  %v1653_v4 = vrot.slane %v14417_v59, 1  ;;  %vm1370_vm12 = vcmp.gt.f32.partialorder %v14061_v1, 0.0 }
 0x181   : > { %v14432_v10 = vmax.f32 %v14065_v43, %v20495_v17  ;;  %v3644_v14 = vshll.u32 %v3344_v21, 16  ;;  %v1066_v38 = vmax.f32 %v1006_v47, 0.0  ;;  %v3625_v24 = vshrl.u32 %v3342_v27, 16  ;;  %vm14461_vm13 = vmpackc.low %vm1370_vm12, %vm1370_vm12 }
 0x182   : > { %20496 = vst [vmem:[#allocation64_spill] sm:$0xff] %v14435_v40  ;;  %v3628_v20 = vshll.u32 %v3342_v27, 16  ;;  %v3634_v23 = vshll.u32 %v3343_v0, 16  ;;  %v3638_v44 = vshrl.u32 %v3343_v0, 16  ;;  %v1652_v13 = vsel %vm1579_vm15, %v1650_v28, %v1651_v35  ;;  %v14456_v0 = vld [vmem:[%s12592_s12 + $0xd0] sm:$0xf] }
 0x183   : > { %v965_v3 = vadd.f32 %v13925_v58, %v901_v42  ;;  %v14447_v53 = vmul.f32 %v1066_v38, %v14442_v37  ;;  %v902_v33 = vmul.f32 %v13883_v16, %v772_v8  ;;  %v3627_v7 = vrot.slane %v3625_v24, 4  ;;  %v472_v38 = vld [vmem:[%s19976_s1 + $0x1a8] sm:$0xff] }
 0x184   : > { %v3630_v11 = vrot.slane %v3628_v20, 5  ;;  %v3636_v21 = vrot.slane %v3634_v23, 5  ;;  %v3640_v47 = vrot.slane %v3638_v44, 4  ;;  %v1982_v28 = vmax.f32 %v14370_v34, %v14364_v6  ;;  %v14469_v44 = vpop.f32.mrf.mxu2 }
 0x185   : > { %20497 = vst [vmem:[#allocation65_spill] sm:$0xff] %v14447_v53  ;;  %v1654_v8 = vsel %vm1579_vm15, %v1651_v35, %v1653_v4  ;;  %v3646_v23 = vrot.slane %v3644_v14, 5  ;;  %v14472_v6 = vmax.f32 %v14318_v55, %v1652_v13  ;;  %v14475_v1 = vmax.f32 %v14417_v59, %v1653_v4  ;;  %v14564_v53 = vpop.f32.mrf.mxu1 }
 0x186   : > { %v3631_v24 = vor.u32 %v3630_v11, %v3627_v7  ;;  %v3641_v20 = vor.u32 %v3640_v47, %v3636_v21  ;;  %20500 = vst [vmem:[#allocation66_spill] sm:$0xff] %v14469_v44  ;;  %v1025_v17 = vmax.f32 %v965_v3, 0.0  ;;  %v966_v9 = vadd.f32 %v13925_v58, %v902_v33 }
 0x187   : > { %v20501_v35 = vrot.slane %v14065_v43, 6  ;;  %v1478_v14 = vsel %vm14461_vm13, %v14456_v0, 4048220490  ;;  %vm1371_vm14 = vcmp.gt.f32.partialorder %v472_v38, 0.0  ;;  %v14485_v13 = vmax.f32 %v14370_v34, %v1654_v8  ;;  %v12094_v43 = vld [vmem:[%s19982_s7 + $0xb0] sm:$0xff]  ;;  %20510 = vst [vmem:[#allocation69_spill] sm:$0xff] %v14564_v53 }
 0x188   : > { %v3632_v7 = vrot.slane %v3631_v24, 4  ;;  %v3642_v11 = vrot.slane %v3641_v20, 4  ;;  %v20502_v4 = vrot.slane %v14079_v62, 6  ;;  %v20504_v47 = vrot.slane %v14198_v26, 6  ;;  %vm14517_vm0 = vmpackc.low %vm1371_vm14, %vm1371_vm14  ;;  %5335 = vmatpush.bf16.msra.mxu2 %v12094_v43 }
 0x189   : > { %v1975_v27 = vmax.f32 %v14046_v30, %v20501_v35  ;;  %v20503_v3 = vmov %v20501_v35  ;;  %v14530_v38 = vmul.f32 %v13883_v16, %v13782_v19  ;;  %vm1372_vm1 = vcmp.gt.f32.partialorder %v14248_v54, 0.0  ;;  %v774_v19 = vpop.f32.mrf.mxu0 }
 0x18a   : > { %v1873_v33 = vsel %vm1810_vm7, %v20503_v3, %v20502_v4  ;;  %v20505_v30 = vmov %v20502_v4  ;;  %v3637_v42 = vsel %vm12892_vm4, %v3632_v7, %v3636_v21  ;;  %v3647_v24 = vsel %vm12892_vm4, %v3642_v11, %v3646_v23  ;;  %v14507_v4 = vld [vmem:[%s12592_s12 + $0xd4] sm:$0xf]  ;;  %v12358_v21 = vld [vmem:[%s19976_s1 + $0x78] sm:$0xff]  ;;  %vm14593_vm5 = vmpackc.low %vm1372_vm1, %vm1372_vm1 }
 0x18b   : > { %v1875_v35 = vsel %vm1810_vm7, %v20505_v30, %v20504_v47  ;;  %v1976_v8 = vmax.f32 %v13648_v39, %v1873_v33  ;;  %v3782_v3 = vunpack.c.l.b16 %v3637_v42  ;;  %v3783_v44 = vunpack.c.l.b16 %v3647_v24  ;;  %v12109_v39 = vld [vmem:[%s19982_s7 + $0x128] sm:$0xff] }
 0x18c   : > { %v1977_v20 = vmax.f32 %v13948_v52, %v1875_v35  ;;  %v1085_v7 = vmul.f32 %v12358_v21, %v1025_v17  ;;  %v1026_v47 = vmax.f32 %v966_v9, 0.0  ;;  %v2274_v23 = vrot.slane %v1975_v27, 2  ;;  %v12093_v9 = vld [vmem:[%s19982_s7 + $0xa8] sm:$0xff]  ;;  %v474_v27 = vld [vmem:[%s19976_s1 + $0x1b8] sm:$0xff]  ;;  %6194 = vmatpush.bf16.msrb.mxu0 %v12109_v39  ;;  %v12092_v52 = vld [vmem:[%s19982_s7 + $0xa0] sm:$0xff] }
 0x18d   : > { %v2275_v11 = vrot.slane %v1976_v8, 2  ;;  %v2553_v30 = vrot.slane %v14472_v6, 7  ;;  %v12035_v17 = vld [vmem:[%s12592_s12 + $0x88] sm:$0xff]  ;;  %v14526_v35 = vrot.slane %v1982_v28, 2  ;;  %v3803_v42 = vpack.c.b16 %v3783_v44, %v3782_v3  ;;  %v14547_v3 = vpop.f32.mrf.mxu3  ;;  %5336 = vmatpush.bf16.msra.mxu2 %v12093_v9 }
 0x18e   : > { %v2277_v33 = vrot.slane %v1977_v20, 2  ;;  %v2554_v24 = vrot.slane %v14485_v13, 7  ;;  %v2556_v28 = vrot.slane %v14475_v1, 7  ;;  %816 = vmatmul.bf16.gmra.mxu0 %v12035_v17  ;;  %v14541_v21 = vunpack.c.l.bf16 %v1478_v14  ;;  %20508 = vst [vmem:[#allocation67_spill] sm:$0xff] %v14547_v3  ;;  %v14555_v17 = vpop.f32.mrf.mxu2 }
 0x18f   : > { %v2276_v20 = vsel %vm2213_vm8, %v2274_v23, %v2275_v11  ;;  %v1479_v44 = vsel %vm14517_vm0, %v14507_v4, 4048220490  ;;  %3935 = vmatmul.bf16.gmra.mxu1 %v3803_v42  ;;  %vm1373_vm3 = vcmp.gt.f32.partialorder %v474_v27, 0.0  ;;  %v14549_v39 = vpack.c.bf16 %v1085_v7, %v1085_v7  ;;  %v12359_v23 = vld [vmem:[%s19976_s1 + $0x80] sm:$0xff] }
 0x190   : > { %v2278_v43 = vsel %vm2213_vm8, %v2275_v11, %v2277_v33  ;;  %v1086_v11 = vmul.f32 %v12359_v23, %v1026_v47  ;;  %v2555_v14 = vsel %vm2492_vm9, %v2553_v30, %v2554_v24  ;;  %v2378_v42 = vmax.f32 %v14135_v63, %v2276_v20  ;;  %vm14602_vm6 = vmpackc.low %vm1373_vm3, %vm1373_vm3 }
 0x191   : > { %20509 = vst [vmem:[#allocation68_spill] sm:$0xff] %v14549_v39  ;;  %v2379_v7 = vmax.f32 %v14163_v32, %v2278_v43  ;;  %v2380_v8 = vmax.f32 %v14123_v25, %v2277_v33  ;;  %v2557_v48 = vsel %vm2492_vm9, %v2554_v24, %v2556_v28  ;;  %v2657_v47 = vmax.f32 %v14181_v41, %v2553_v30 }
 0x192   : > { %v2658_v23 = vmax.f32 %v14260_v46, %v2555_v14  ;;  %v2659_v9 = vmax.f32 %v14263_v2, %v2557_v48  ;;  %v3193_v3 = vrot.slane %v14318_v55, 2  ;;  %v3194_v40 = vrot.slane %v14370_v34, 2  ;;  %5337 = vmatpush.bf16.msra.mxu2 %v12092_v52 }
 0x193   : > { %v3196_v63 = vrot.slane %v14417_v59, 2  ;;  %v1293_v32 = vrot.slane %v13910_v22, 5  ;;  %v903_v25 = vmul.f32 %v13883_v16, %v774_v19  ;;  %v14574_v33 = vpack.c.bf16 %v1086_v11, %v1086_v11 }
 0x194   : > { %v2921_v24 = vrot.slane %v2657_v47, 1  ;;  %v2922_v20 = vrot.slane %v2658_v23, 1  ;;  %v2924_v43 = vrot.slane %v2659_v9, 1  ;;  %v3195_v30 = vsel %vm2213_vm8, %v3193_v3, %v3194_v40 }
 0x195   : > { %20511 = vst [vmem:[#allocation70_spill] sm:$0xff] %v14574_v33  ;;  %v3197_v48 = vsel %vm2213_vm8, %v3194_v40, %v3196_v63  ;;  %v20512_v28 = vrot.slane %v13743_v45, 9  ;;  %v1295_v22 = vrot.slane %v1293_v32, 4  ;;  %v20513_v3 = vrot.slane %v14019_v29, 5  ;;  %v414_v29 = vld [vmem:[%s12592_s12 + $0xdc] sm:$0xf] }
 0x196   : > { %v2923_v16 = vsel %vm1579_vm15, %v2921_v24, %v2922_v20  ;;  %v2925_v19 = vsel %vm1579_vm15, %v2922_v20, %v2924_v43  ;;  %v3027_v11 = vmax.f32 %v2380_v8, %v2924_v43  ;;  %v967_v45 = vadd.f32 %v13925_v58, %v903_v25  ;;  %v14606_v43 = vpop.f32.mrf.mxu3 }
 0x197   : > { %v1294_v14 = vsel %vm12608_vm2, %v20512_v28, %v1293_v32  ;;  %v3025_v23 = vmax.f32 %v2378_v42, %v2923_v16  ;;  %v3026_v52 = vmax.f32 %v2379_v7, %v2925_v19  ;;  %v1297_v40 = vsel %vm12608_vm2, %v1295_v22, %v20513_v3  ;;  %v413_v7 = vld [vmem:[%s12592_s12 + $0xd8] sm:$0xf]  ;;  %20518 = vst [vmem:[#allocation71_spill] sm:$0xff] %v14606_v43  ;;  %v14612_v19 = vpop.f32.mrf.mxu2  ;;  %v3906_v3 = vpop.f32.mrf.mxu1 }
 0x198   : > { %v3989_v47 = vunpack.c.l.b16 %v1294_v14  ;;  %v20042_v9 = vrot.slane %v14541_v21, 6  ;;  %v3299_v8 = vmax.f32 %v3027_v11, %v3196_v63  ;;  %v3990_v24 = vunpack.c.l.b16 %v1297_v40  ;;  %20519 = vst [vmem:[#allocation72_spill] sm:$0xff] %v14612_v19 }
 0x199   : > { %v4220_v42 = vunpack.c.l.b16 %v14549_v39  ;;  %v3297_v58 = vmax.f32 %v3025_v23, %v3195_v30  ;;  %v3298_v25 = vmax.f32 %v3026_v52, %v3197_v48  ;;  %v1027_v54 = vmax.f32 %v967_v45, 0.0  ;;  %v12360_v30 = vld [vmem:[%s19976_s1 + $0x88] sm:$0xff]  ;;  %v777_v52 = vpop.f32.mrf.mxu0 }
 0x19a   : > { %v4221_v28 = vunpack.c.l.b16 %v14574_v33  ;;  %v2036_v63 = vrot.slane %v14541_v21, 1  ;;  %v14610_v14 = vunpack.c.l.bf16 %v1479_v44  ;;  %v3347_v22 = vpack.c.bf16 %v3299_v8, %v3299_v8 }
 0x19b   : > { %v4007_v16 = vpack.c.b16 %v3990_v24, %v3989_v47  ;;  %v3345_v27 = vpack.c.bf16 %v3297_v58, %v3297_v58  ;;  %v3346_v11 = vpack.c.bf16 %v3298_v25, %v3298_v25  ;;  %v1087_v48 = vmul.f32 %v12360_v30, %v1027_v54 }
 0x19c   : > { %v14617_v23 = vpack.c.b16 %v4221_v28, %v4220_v42  ;;  %v1480_v40 = vsel %vm14593_vm5, %v413_v7, 4048220490  ;;  %v1481_v44 = vsel %vm14602_vm6, %v414_v29, 4048220490  ;;  %v3668_v47 = vshll.u32 %v3347_v22, 16 }
 0x19d   : > { %4151 = vmatmul.bf16.gmra.mxu2 %v4007_v16  ;;  %v14624_v45 = vadd.f32 %v14412_v31, %v3906_v3  ;;  %v3649_v8 = vshrl.u32 %v3345_v27, 16  ;;  %v3652_v24 = vshll.u32 %v3345_v27, 16  ;;  %v3658_v58 = vshll.u32 %v3346_v11, 16 }
 0x19e   : > { %20520 = vst [vmem:[#allocation73_spill] sm:$0xff] %v14617_v23  ;;  %v3662_v25 = vshrl.u32 %v3346_v11, 16  ;;  %4355 = vmatmul.bf16.gmra.mxu3 %v14617_v23  ;;  %v20522_v42 = vrot.slane %v14140_v51, 1  ;;  %v2038_v7 = vrot.slane %v14610_v14, 1  ;;  %v14632_v29 = vpack.c.bf16 %v1087_v48, %v1087_v48 }
 0x19f   : > { %20521 = vst [vmem:[#allocation74_spill] sm:$0xff] %v14624_v45  ;;  %v3651_v20 = vrot.slane %v3649_v8, 4  ;;  %v3654_v28 = vrot.slane %v3652_v24, 5  ;;  %v3660_v31 = vrot.slane %v3658_v58, 5  ;;  %v14634_v16 = vunpack.c.l.bf16 %v1480_v40 }
 0x1a0   : > { %v2037_v54 = vsel %vm1579_vm15, %v20522_v42, %v2036_v63  ;;  %20523 = vst [vmem:[#allocation75_spill] sm:$0xff] %v14632_v29  ;;  %v3664_v22 = vrot.slane %v3662_v25, 4  ;;  %v14636_v27 = vunpack.c.l.bf16 %v1481_v44  ;;  %v20041_v11 = vshll.u32 %v14632_v29, 16  ;;  %v14658_v25 = vpop.f32.mrf.mxu3 }
 0x1a1   : > { %v5542_v30 = vshrl.u32 %v14632_v29, 16  ;;  %vm1374_vm10 = vcmp.gt.f32.partialorder %v14442_v37, 0.0  ;;  %v3655_v3 = vor.u32 %v3654_v28, %v3651_v20  ;;  %v3670_v32 = vrot.slane %v3668_v47, 5  ;;  %20527 = vst [vmem:[#allocation78_spill] sm:$0xff] %v14658_v25  ;;  %v779_v53 = vpop.f32.mrf.mxu0  ;;  %v20540_v29 = vld [vmem:[#allocation48_spill] sm:$0xff] }
 0x1a2   : > { %v3665_v42 = vor.u32 %v3664_v22, %v3660_v31  ;;  %v20524_v48 = vrot.slane %v14140_v51, 6  ;;  %v14649_v40 = vmax.f32 %v14140_v51, %v2037_v54  ;;  %v14655_v24 = vrot.slane %v20041_v11, 6  ;;  %vm14667_vm11 = vmpackc.low %vm1374_vm10, %vm1374_vm10 }
 0x1a3   : > { %v14651_v44 = vrot.slane %v5542_v30, 5  ;;  %v2039_v37 = vsel %vm1579_vm15, %v2036_v63, %v2038_v7  ;;  %v3656_v58 = vrot.slane %v3655_v3, 4  ;;  %v20528_v20 = vrot.slane %v14370_v34, 6  ;;  %v415_v30 = vld [vmem:[%s12592_s12 + $0xe0] sm:$0xf] }
 0x1a4   : > { %v14646_v8 = vsel %vm1810_vm7, %v20524_v48, %v20042_v9  ;;  %20526 = vst [vmem:[#allocation77_spill] sm:$0xff] %v14655_v24  ;;  %v3666_v47 = vrot.slane %v3665_v42, 4  ;;  %v20529_v28 = vrot.slane %v14318_v55, 6  ;;  %v2055_v54 = vrot.slane %v14634_v16, 1  ;;  %v14676_v3 = vld [vmem:[%s19978_s3] ss:$0 sm:$0xff] }
 0x1a5   : > { %20525 = vst [vmem:[#allocation76_spill] sm:$0xff] %v14651_v44  ;;  %v904_v42 = vmul.f32 %v14676_v3, %v777_v52  ;;  %v3661_v11 = vsel %vm12892_vm4, %v3656_v58, %v3660_v31  ;;  %v20532_v9 = vrot.slane %v14417_v59, 6  ;;  %v20533_v19 = vrot.slane %v14370_v34, 6  ;;  %v12086_v31 = vld [vmem:[%s19982_s7 + $0x70] sm:$0xff]  ;;  %v20538_v58 = vld [vmem:[#allocation46_spill] sm:$0xff] }
 0x1a6   : > { %v1878_v22 = vsel %vm1810_vm7, %v20529_v28, %v20528_v20  ;;  %v12091_v20 = vld [vmem:[%s19982_s7 + $0x98] sm:$0xff]  ;;  %v3671_v63 = vsel %vm12892_vm4, %v3666_v47, %v3670_v32  ;;  %v3784_v47 = vunpack.c.l.b16 %v3661_v11  ;;  %v12036_v28 = vld [vmem:[%s12592_s12 + $0x90] sm:$0xff]  ;;  %v14712_v25 = vmax.f32 %v14541_v21, %v2039_v37  ;;  %4957 = vmatpush.bf16.msra.mxu1 %v12086_v31  ;;  %v20536_v31 = vld [vmem:[#allocation50_spill] sm:$0xff] }
 0x1a7   : > { %v1979_v55 = vmax.f32 %v14079_v62, %v1878_v22  ;;  %v1880_v52 = vsel %vm1810_vm7, %v20533_v19, %v20532_v9  ;;  %v14693_v62 = vpop.f32.mrf.mxu2  ;;  %v12102_v22 = vld [vmem:[%s19982_s7 + $0xf0] sm:$0xff]  ;;  %v3785_v34 = vunpack.c.l.b16 %v3671_v63  ;;  %5338 = vmatpush.bf16.msra.mxu2 %v12091_v20  ;;  %v14704_v9 = vpop.f32.mrf.mxu1  ;;  %v14715_v43 = vmax.f32 %v14610_v14, %v2038_v7  ;;  %v14722_v20 = vld [vmem:[%s19979_s4] ss:$0 sm:$0xff]  ;;  %821 = vmatmul.bf16.gmra.mxu0 %v12036_v28 }
 0x1a8   : > { %20534 = vst [vmem:[#allocation79_spill] sm:$0xff] %v14704_v9  ;;  %v12090_v19 = vld [vmem:[%s19982_s7 + $0x90] sm:$0xff]  ;;  %v1482_v11 = vsel %vm14667_vm11, %v415_v30, 4048220490  ;;  %5828 = vmatpush.bf16.msra.mxu3 %v12102_v22  ;;  %v14725_v32 = vadd.f32 %v14722_v20, %v904_v42  ;;  %v1980_v37 = vmax.f32 %v14198_v26, %v1880_v52  ;;  %v20535_v7 = vrot.slane %v14636_v27, 1 }
 0x1a9   : > { %v3804_v63 = vpack.c.b16 %v3785_v34, %v3784_v47  ;;  %v2280_v23 = vrot.slane %v1979_v55, 2  ;;  %v2558_v30 = vrot.slane %v14131_v12, 7  ;;  %v2559_v22 = vrot.slane %v14178_v60, 7 }
 0x1aa   : > { %v14731_v48 = vsel %vm1579_vm15, %v2055_v54, %v20535_v7  ;;  %v2561_v47 = vrot.slane %v20536_v31, 7  ;;  %v14736_v34 = vunpack.c.l.bf16 %v1482_v11  ;;  %v20537_v42 = vrot.slane %v14432_v10, 2  ;;  %v12089_v54 = vld [vmem:[%s19982_s7 + $0x88] sm:$0xff] }
 0x1ab   : > { %3940 = vmatmul.bf16.gmra.mxu1 %v3804_v63  ;;  %v2282_v55 = vrot.slane %v1980_v37, 2  ;;  %v3199_v28 = vrot.slane %v14003_v5, 2  ;;  %5339 = vmatpush.bf16.msra.mxu2 %v12090_v19  ;;  %v2560_v52 = vsel %vm2492_vm9, %v2558_v30, %v2559_v22  ;;  %v2660_v11 = vmax.f32 %v14472_v6, %v2558_v30 }
 0x1ac   : > { %v2281_v26 = vsel %vm2213_vm8, %v20537_v42, %v2280_v23  ;;  %v2562_v7 = vsel %vm2492_vm9, %v2559_v22, %v2561_v47  ;;  %v3201_v63 = vrot.slane %v20538_v58, 2  ;;  %v1028_v10 = vmax.f32 %v14725_v32, 0.0  ;;  %v4331_v22 = vpop.f32.mrf.mxu3  ;;  %v782_v47 = vpop.f32.mrf.mxu0 }
 0x1ad   : > { %v2283_v42 = vsel %vm2213_vm8, %v2280_v23, %v2282_v55  ;;  %v2381_v37 = vmax.f32 %v14181_v41, %v2281_v26  ;;  %v2661_v19 = vmax.f32 %v14485_v13, %v2560_v52  ;;  %v2383_v44 = vmax.f32 %v14263_v2, %v2282_v55 }
 0x1ae   : > { %v2382_v9 = vmax.f32 %v14260_v46, %v2283_v42  ;;  %v2662_v24 = vmax.f32 %v14475_v1, %v2562_v7  ;;  %v2926_v45 = vrot.slane %v2660_v11, 1  ;;  %v20539_v39 = vrot.slane %v13936_v18, 2  ;;  %v12088_v46 = vld [vmem:[%s19982_s7 + $0x80] sm:$0xff]  ;;  %v20544_v11 = vld [vmem:[#allocation28_spill] sm:$0xff] }
 0x1af   : > { %v2927_v30 = vrot.slane %v2661_v19, 1  ;;  %v10724_v23 = vrot.slane %v20540_v29, 9  ;;  %v20541_v41 = vrot.slane %v14456_v0, 5  ;;  %5340 = vmatpush.bf16.msra.mxu2 %v12089_v54  ;;  %v3202_v55 = vsel %vm2213_vm8, %v3199_v28, %v3201_v63  ;;  %v14768_v18 = vpop.f32.mrf.mxu2  ;;  %v3911_v19 = vpop.f32.mrf.mxu1 }
 0x1b0   : > { %v3200_v32 = vsel %vm2213_vm8, %v20539_v39, %v3199_v28  ;;  %v2929_v2 = vrot.slane %v2662_v24, 1  ;;  %v1303_v52 = vrot.slane %v14507_v4, 5  ;;  %v905_v7 = vmul.f32 %v14676_v3, %v779_v53  ;;  %20542 = vst [vmem:[#allocation50_spill] sm:$0xff] %v14768_v18 }
 0x1b1   : > { %v1302_v26 = vrot.slane %v20541_v41, 4  ;;  %v2928_v39 = vsel %vm1579_vm15, %v2926_v45, %v2927_v30  ;;  %v20543_v29 = vmov %v20541_v41  ;;  %v14776_v42 = vadd.f32 %v4331_v22, %v20544_v11 }
 0x1b2   : > { %v1301_v54 = vsel %vm12608_vm2, %v10724_v23, %v20543_v29  ;;  %v906_v24 = vmul.f32 %v14676_v3, %v782_v47  ;;  %v2930_v28 = vsel %vm1579_vm15, %v2927_v30, %v2929_v2  ;;  %v3028_v4 = vmax.f32 %v2381_v37, %v2928_v39 }
 0x1b3   : > { %v3030_v41 = vmax.f32 %v2383_v44, %v2929_v2  ;;  %v1304_v53 = vsel %vm12608_vm2, %v1302_v26, %v1303_v52  ;;  %v3029_v18 = vmax.f32 %v2382_v9, %v2930_v28  ;;  %v3991_v45 = vunpack.c.l.b16 %v1301_v54  ;;  %5341 = vmatpush.bf16.msra.mxu2 %v12088_v46 }
 0x1b4   : > { %v3992_v33 = vunpack.c.l.b16 %v1304_v53  ;;  %v969_v0 = vadd.f32 %v14722_v20, %v905_v7  ;;  %v3300_v23 = vmax.f32 %v3028_v4, %v3200_v32  ;;  %v970_v22 = vadd.f32 %v14722_v20, %v906_v24  ;;  %v12364_v24 = vld [vmem:[%s19976_s1 + $0xa0] sm:$0xff] }
 0x1b5   : > { %v3302_v29 = vmax.f32 %v3030_v41, %v3201_v63  ;;  %v14785_v47 = vadd.f32 %v14555_v17, %v3911_v19  ;;  %v2566_v30 = vrot.slane %v14715_v43, 7  ;;  %v3301_v37 = vmax.f32 %v3029_v18, %v3202_v55 }
 0x1b6   : > { %v4008_v44 = vpack.c.b16 %v3992_v33, %v3991_v45  ;;  %v1029_v2 = vmax.f32 %v969_v0, 0.0  ;;  %v3348_v39 = vpack.c.bf16 %v3300_v23, %v3300_v23  ;;  %v1030_v9 = vmax.f32 %v970_v22, 0.0  ;;  %v12363_v33 = vld [vmem:[%s19976_s1 + $0x90] sm:$0xff]  ;;  %v12365_v45 = vld [vmem:[%s19976_s1 + $0x98] sm:$0xff]  ;;  %v12085_v22 = vld [vmem:[%s19982_s7 + $0x68] sm:$0xff] }
 0x1b7   : > { %v3350_v26 = vpack.c.bf16 %v3302_v29, %v3302_v29  ;;  %v20545_v52 = vrot.slane %v20538_v58, 6  ;;  %v20546_v7 = vrot.slane %v14003_v5, 6  ;;  %v2063_v63 = vmax.f32 %v14634_v16, %v14731_v48  ;;  %v14810_v23 = vpop.f32.mrf.mxu2  ;;  %v784_v29 = vpop.f32.mrf.mxu0  ;;  %4958 = vmatpush.bf16.msra.mxu1 %v12085_v22 }
 0x1b8   : > { %v20054_v17 = vrot.slane %v14736_v34, 1  ;;  %v3349_v46 = vpack.c.bf16 %v3301_v37, %v3301_v37  ;;  %4156 = vmatmul.bf16.gmra.mxu2 %v4008_v44  ;;  %v1088_v18 = vmul.f32 %v12363_v33, %v1028_v10  ;;  %v3673_v54 = vshrl.u32 %v3348_v39, 16  ;;  %v12108_v37 = vld [vmem:[%s19982_s7 + $0x120] sm:$0xff]  ;;  %v14852_v22 = vpop.f32.mrf.mxu3 }
 0x1b9   : > { %v1885_v32 = vsel %vm1810_vm7, %v20546_v7, %v20545_v52  ;;  %v3676_v11 = vshll.u32 %v3348_v39, 16  ;;  %v1090_v19 = vmul.f32 %v12364_v24, %v1030_v9  ;;  %v3692_v4 = vshll.u32 %v3350_v26, 16  ;;  %v14827_v52 = vpop.f32.mrf.mxu1  ;;  %v12037_v7 = vld [vmem:[%s12592_s12 + $0x98] sm:$0xff]  ;;  %6195 = vmatpush.bf16.msrb.mxu0 %v12108_v37  ;;  %20552 = vst [vmem:[#allocation80_spill] sm:$0xff] %v14852_v22  ;;  %s350_s12 = sand.u32 1, %s12451_s14  }
 0x1ba   : > { %v1983_v55 = vmax.f32 %v14417_v59, %v1885_v32  ;;  %v3682_v28 = vshll.u32 %v3349_v46, 16  ;;  %v3686_v48 = vshrl.u32 %v3349_v46, 16  ;;  %v3675_v53 = vrot.slane %v3673_v54, 4  ;;  %20548 = vst [vmem:[#allocation46_spill] sm:$0xff] %v14827_v52  ;;  %v12084_v54 = vld [vmem:[%s19982_s7 + $0x60] sm:$0xff]  ;;  %826 = vmatmul.bf16.gmra.mxu0 %v12037_v7  ;;  %s10555_s21 = sshll.u32 %s350_s12, 8 }
 0x1bb   : > { %v3678_v59 = vrot.slane %v3676_v11, 5  ;;  %v1089_v10 = vmul.f32 %v12365_v45, %v1029_v2  ;;  %v14808_v0 = vpack.c.bf16 %v1090_v19, %v1090_v19  ;;  %v14818_v44 = vrot.slane %v2063_v63, 7  ;;  %4959 = vmatpush.bf16.msra.mxu1 %v12084_v54  ;;  %s19725_s25 = scalar_lea.vmem [#allocation2], %s10555_s21  ;;  %s10474_s17 = scalar_lea.sflag [#allocation3], %s350_s12 }
 0x1bc   : > { %v14803_v41 = vrot.slane %v1983_v55, 2  ;;  %v20547_v39 = vrot.slane %v14636_v27, 1  ;;  %v3684_v26 = vrot.slane %v3682_v28, 5  ;;  %v3688_v9 = vrot.slane %v3686_v48, 4  ;;  %s10486_s30 = sshll.u32 %s19725_s25, 4  ;;  %s10487_s30 = int_to_ptr.vmem [resolvable:$true] %s10486_s30 }
 0x1bd   : > { %v3679_v32 = vor.u32 %v3678_v59, %v3675_v53  ;;  %v20053_v46 = vshll.u32 %v14808_v0, 16  ;;  %v5557_v55 = vshrl.u32 %v14808_v0, 16  ;;  %v20549_v63 = vrot.slane %v14423_v49, 2 }
 0x1be   : > { %v14825_v2 = vsel %vm1579_vm15, %v20547_v39, %v20054_v17  ;;  %v14839_v11 = vpack.c.bf16 %v1088_v18, %v1088_v18  ;;  %v3689_v24 = vor.u32 %v3688_v9, %v3684_v26  ;;  %v3694_v19 = vrot.slane %v3692_v4, 5 }
 0x1bf   : > { %v2286_v33 = vsel %vm2213_vm8, %v20549_v63, %v14526_v35  ;;  %v2288_v28 = vsel %vm2213_vm8, %v14526_v35, %v14803_v41  ;;  %v3680_v48 = vrot.slane %v3679_v32, 4  ;;  %v14844_v53 = vpack.c.bf16 %v1089_v10, %v1089_v10  ;;  %v20559_v10 = vld [vmem:[#allocation15_spill] sm:$0xff] }
 0x1c0   : > { %v14846_v49 = vrot.slane %v5557_v55, 5  ;;  %v14850_v59 = vrot.slane %v20053_v46, 6  ;;  %v3690_v45 = vrot.slane %v3689_v24, 4  ;;  %v2384_v18 = vmax.f32 %v14472_v6, %v2286_v33  ;;  %v20555_v24 = vld [vmem:[#allocation16_spill] sm:$0xff] }
 0x1c1   : > { %v2385_v4 = vmax.f32 %v14485_v13, %v2288_v28  ;;  %v2564_v37 = vrot.slane %v14712_v25, 7  ;;  %v3685_v35 = vsel %vm12892_vm4, %v3680_v48, %v3684_v26  ;;  %v2386_v39 = vmax.f32 %v14475_v1, %v14803_v41 }
 0x1c2   : > { %20550 = vst [vmem:[#allocation48_spill] sm:$0xff] %v14846_v49  ;;  %v20553_v9 = vrot.slane %v14649_v40, 7  ;;  %v3695_v6 = vsel %vm12892_vm4, %v3690_v45, %v3694_v19  ;;  %v3786_v13 = vunpack.c.l.b16 %v3685_v35  ;;  %v3206_v54 = vrot.slane %v14610_v14, 2  ;;  %v14880_v45 = vpop.f32.mrf.mxu2  ;;  %v787_v35 = vpop.f32.mrf.mxu0 }
 0x1c3   : > { %20551 = vst [vmem:[#allocation28_spill] sm:$0xff] %v14850_v59  ;;  %v2567_v26 = vsel %vm2492_vm9, %v2564_v37, %v2566_v30  ;;  %v3787_v63 = vunpack.c.l.b16 %v3695_v6  ;;  %v5095_v28 = vrot.slane %v20555_v24, 5  ;;  %v4222_v19 = vunpack.c.l.b16 %v14839_v11  ;;  %v3916_v6 = vpop.f32.mrf.mxu1 }
 0x1c4   : > { %v2663_v7 = vmax.f32 %v14131_v12, %v20553_v9  ;;  %v20554_v32 = vmov %v20553_v9  ;;  %v2665_v41 = vmax.f32 %v20536_v31, %v2567_v26  ;;  %v4223_v48 = vunpack.c.l.b16 %v14844_v53  ;;  %20556 = vst [vmem:[#allocation16_spill] sm:$0xff] %v14880_v45 }
 0x1c5   : > { %v2565_v55 = vsel %vm2492_vm9, %v20554_v32, %v2564_v37  ;;  %v3805_v9 = vpack.c.b16 %v3787_v63, %v3786_v13  ;;  %v907_v37 = vmul.f32 %v14676_v3, %v784_v29  ;;  %v20560_v46 = vrot.slane %v20559_v10, 9 }
 0x1c6   : > { %v2664_v1 = vmax.f32 %v14178_v60, %v2565_v55  ;;  %v2931_v33 = vrot.slane %v2663_v7, 1  ;;  %v2934_v30 = vrot.slane %v2665_v41, 1  ;;  %v20557_v55 = vrot.slane %v14541_v21, 2 }
 0x1c7   : > { %v20558_v7 = vrot.slane %v14140_v51, 2  ;;  %v5096_v17 = vsel %vm12608_vm2, %v20560_v46, %v5095_v28  ;;  %v5097_v52 = vrot.slane %v5095_v28, 4  ;;  %v14892_v45 = vpack.c.b16 %v4223_v48, %v4222_v19  ;;  %3945 = vmatmul.bf16.gmra.mxu1 %v3805_v9  ;;  %v4336_v19 = vpop.f32.mrf.mxu3 }
 0x1c8   : > { %v2932_v32 = vrot.slane %v2664_v1, 1  ;;  %v3033_v63 = vmax.f32 %v2386_v39, %v2934_v30  ;;  %v20562_v1 = vmov %v20557_v55  ;;  %v5222_v28 = vunpack.c.l.b16 %v5096_v17 }
 0x1c9   : > { %v3205_v26 = vsel %vm2213_vm8, %v20558_v7, %v20557_v55  ;;  %20561 = vst [vmem:[#allocation15_spill] sm:$0xff] %v14892_v45  ;;  %v3207_v51 = vsel %vm2213_vm8, %v20562_v1, %v3206_v54  ;;  %v20563_v7 = vld [vmem:[#allocation11_spill] sm:$0xff]  ;;  %4360 = vmatmul.bf16.gmra.mxu3 %v14892_v45  ;;  %v971_v9 = vadd.f32 %v14722_v20, %v907_v37 }
 0x1ca   : > { %v2933_v13 = vsel %vm1579_vm15, %v2931_v33, %v2932_v32  ;;  %v2935_v29 = vsel %vm1579_vm15, %v2932_v32, %v2934_v30  ;;  %v20564_v22 = vrot.slane %v20563_v7, 5  ;;  %v3305_v48 = vmax.f32 %v3033_v63, %v3206_v54 }
 0x1cb   : > { %v3031_v41 = vmax.f32 %v2384_v18, %v2933_v13  ;;  %v3032_v55 = vmax.f32 %v2385_v4, %v2935_v29  ;;  %v908_v39 = vmul.f32 %v14676_v3, %v787_v35  ;;  %v2064_v32 = vmax.f32 %v14636_v27, %v14825_v2 }
 0x1cc   : > { %v5099_v46 = vsel %vm12608_vm2, %v5097_v52, %v20564_v22  ;;  %v14909_v30 = vadd.f32 %v14693_v62, %v3916_v6  ;;  %v3353_v13 = vpack.c.bf16 %v3305_v48, %v3305_v48  ;;  %v20565_v22 = vld [vmem:[#allocation37_spill] sm:$0xff]  ;;  %v20567_v54 = vrot.slane %v14736_v34, 1  ;;  %v12083_v48 = vld [vmem:[%s19982_s7 + $0x58] sm:$0xff] }
 0x1cd   : > { %v5223_v33 = vunpack.c.l.b16 %v5099_v46  ;;  %v3303_v18 = vmax.f32 %v3031_v41, %v3205_v26  ;;  %v3304_v4 = vmax.f32 %v3032_v55, %v3207_v51  ;;  %v972_v17 = vadd.f32 %v14722_v20, %v908_v39  ;;  %4960 = vmatpush.bf16.msra.mxu1 %v12083_v48 }
 0x1ce   : > { %v14913_v29 = vadd.f32 %v4336_v19, %v20565_v22  ;;  %v2065_v37 = vmax.f32 %v14736_v34, %v20567_v54  ;;  %v20568_v2 = vrot.slane %v14610_v14, 6  ;;  %v20569_v26 = vrot.slane %v14541_v21, 6  ;;  %v12107_v21 = vld [vmem:[%s19982_s7 + $0x118] sm:$0xff]  ;;  %v14930_v14 = vpop.f32.mrf.mxu2 }
 0x1cf   : > { %v5254_v52 = vpack.c.b16 %v5223_v33, %v5222_v28  ;;  %v3351_v35 = vpack.c.bf16 %v3303_v18, %v3303_v18  ;;  %v3352_v63 = vpack.c.bf16 %v3304_v4, %v3304_v4  ;;  %v3716_v6 = vshll.u32 %v3353_v13, 16  ;;  %v14932_v33 = vpop.f32.mrf.mxu0  ;;  %v12101_v13 = vld [vmem:[%s19982_s7 + $0xe8] sm:$0xff]  ;;  %6196 = vmatpush.bf16.msrb.mxu0 %v12107_v21 }
 0x1d0   : > { %20566 = vst [vmem:[#allocation11_spill] sm:$0xff] %v14913_v29  ;;  %v1890_v62 = vsel %vm1810_vm7, %v20569_v26, %v20568_v2  ;;  %v1031_v1 = vmax.f32 %v971_v9, 0.0  ;;  %v1032_v51 = vmax.f32 %v972_v17, 0.0  ;;  %v20570_v9 = vmax.f32 %v14003_v5, %v14646_v8  ;;  %v12082_v5 = vld [vmem:[%s19982_s7 + $0x50] sm:$0xff]  ;;  %5829 = vmatpush.bf16.msra.mxu3 %v12101_v13 }
 0x1d1   : > { %5342 = vmatmul.bf16.vlgmr.msra.gmra.mxu2 %v5254_v52  ;;  %v1986_v41 = vmax.f32 %v20538_v58, %v1890_v62  ;;  %v3697_v55 = vshrl.u32 %v3351_v35, 16  ;;  %v3700_v46 = vshll.u32 %v3351_v35, 16  ;;  %v3706_v28 = vshll.u32 %v3352_v63, 16  ;;  %v14944_v52 = vpop.f32.mrf.mxu1  ;;  %v12106_v8 = vld [vmem:[%s19982_s7 + $0x110] sm:$0xff]  ;;  %4961 = vmatpush.bf16.msra.mxu1 %v12082_v5 }
 0x1d2   : > { %v3710_v19 = vshrl.u32 %v3352_v63, 16  ;;  %v2290_v58 = vrot.slane %v20570_v9, 2  ;;  %v2666_v39 = vmax.f32 %v14649_v40, %v14818_v44  ;;  %v2569_v18 = vrot.slane %v2064_v32, 7  ;;  %20571 = vst [vmem:[#allocation37_spill] sm:$0xff] %v14944_v52  ;;  %v12366_v63 = vld [vmem:[%s19976_s1 + $0xa8] sm:$0xff]  ;;  %v12367_v26 = vld [vmem:[%s19976_s1 + $0xb0] sm:$0xff] }
 0x1d3   : > { %v14939_v4 = vrot.slane %v1986_v41, 2  ;;  %v3699_v17 = vrot.slane %v3697_v55, 4  ;;  %v3702_v22 = vrot.slane %v3700_v46, 5  ;;  %v3708_v54 = vrot.slane %v3706_v28, 5  ;;  %6197 = vmatpush.bf16.msrb.mxu0 %v12106_v8 }
 0x1d4   : > { %v3712_v35 = vrot.slane %v3710_v19, 4  ;;  %v14954_v40 = vadd.f32 %v14722_v20, %v14530_v38  ;;  %v2571_v32 = vrot.slane %v2065_v37, 7  ;;  %v1091_v2 = vmul.f32 %v12366_v63, %v1031_v1 }
 0x1d5   : > { %v1092_v62 = vmul.f32 %v12367_v26, %v1032_v51  ;;  %v3208_v41 = vrot.slane %v14634_v16, 2  ;;  %v3703_v55 = vor.u32 %v3702_v22, %v3699_v17  ;;  %v3718_v28 = vrot.slane %v3716_v6, 5  ;;  %v20574_v26 = vld [vmem:[#allocation24_spill] sm:$0xff] }
 0x1d6   : > { %v3713_v46 = vor.u32 %v3712_v35, %v3708_v54  ;;  %v2936_v19 = vrot.slane %v2666_v39, 1  ;;  %v3209_v38 = vrot.slane %v14636_v27, 2  ;;  %v3211_v37 = vrot.slane %v14736_v34, 2  ;;  %v12081_v27 = vld [vmem:[%s19982_s7 + $0x48] sm:$0xff]  ;;  %v14991_v35 = vpop.f32.mrf.mxu2 }
 0x1d7   : > { %v20572_v48 = vrot.slane %v14195_v61, 2  ;;  %v3704_v21 = vrot.slane %v3703_v55, 4  ;;  %v2293_v51 = vsel %vm2213_vm8, %v2290_v58, %v14939_v4  ;;  %v2570_v16 = vsel %vm2492_vm9, %v14818_v44, %v2569_v18  ;;  %v12105_v61 = vld [vmem:[%s19982_s7 + $0x108] sm:$0xff]  ;;  %20573 = vst [vmem:[#allocation81_spill] sm:$0xff] %v14991_v35  ;;  %v14993_v5 = vpop.f32.mrf.mxu0  ;;  %4962 = vmatpush.bf16.msra.mxu1 %v12081_v27  ;;  %v20575_v55 = vld [vmem:[#allocation23_spill] sm:$0xff] }
 0x1d8   : > { %v3714_v9 = vrot.slane %v3713_v46, 4  ;;  %v14978_v34 = vpack.c.bf16 %v1091_v2, %v1091_v2  ;;  %v14980_v6 = vpack.c.bf16 %v1092_v62, %v1092_v62  ;;  %v2572_v39 = vsel %vm2492_vm9, %v2569_v18, %v2571_v32  ;;  %6198 = vmatpush.bf16.msrb.mxu0 %v12105_v61 }
 0x1d9   : > { %v2291_v1 = vsel %vm2213_vm8, %v20572_v48, %v2290_v58  ;;  %v2389_v58 = vmax.f32 %v20536_v31, %v14939_v4  ;;  %v3709_v44 = vsel %vm12892_vm4, %v3704_v21, %v3708_v54  ;;  %v2667_v17 = vmax.f32 %v14712_v25, %v2570_v16  ;;  %v3921_v4 = vpop.f32.mrf.mxu1  ;;  %v12104_v25 = vld [vmem:[%s19982_s7 + $0x100] sm:$0xff] }
 0x1da   : > { %v3719_v13 = vsel %vm12892_vm4, %v3714_v9, %v3718_v28  ;;  %v2668_v22 = vmax.f32 %v14715_v43, %v2572_v39  ;;  %v3788_v8 = vunpack.c.l.b16 %v3709_v44  ;;  %v2387_v31 = vmax.f32 %v14131_v12, %v2291_v1  ;;  %v12080_v43 = vld [vmem:[%s19982_s7 + $0x40] sm:$0xff] }
 0x1db   : > { %v3789_v63 = vunpack.c.l.b16 %v3719_v13  ;;  %v2388_v18 = vmax.f32 %v14178_v60, %v2293_v51  ;;  %v2937_v32 = vrot.slane %v2667_v17, 1  ;;  %v3210_v2 = vsel %vm2213_vm8, %v3208_v41, %v3209_v38  ;;  %4963 = vmatpush.bf16.msra.mxu1 %v12080_v43 }
 0x1dc   : > { %v2939_v54 = vrot.slane %v2668_v22, 1  ;;  %v5102_v62 = vrot.slane %v20574_v26, 5  ;;  %v10870_v60 = vrot.slane %v20575_v55, 9  ;;  %v5105_v46 = vrot.slane %v14313_v50, 5  ;;  %6199 = vmatpush.bf16.msrb.mxu0 %v12104_v25 }
 0x1dd   : > { %v3806_v12 = vpack.c.b16 %v3789_v63, %v3788_v8  ;;  %v909_v41 = vmul.f32 %v14676_v3, %v14932_v33  ;;  %v2938_v28 = vsel %vm1579_vm15, %v2936_v19, %v2937_v32  ;;  %v3212_v21 = vsel %vm2213_vm8, %v3209_v38, %v3211_v37 }
 0x1de   : > { %v2940_v48 = vsel %vm1579_vm15, %v2937_v32, %v2939_v54  ;;  %v3036_v1 = vmax.f32 %v2389_v58, %v2939_v54  ;;  %v3034_v9 = vmax.f32 %v2387_v31, %v2938_v28  ;;  %v5103_v16 = vsel %vm12608_vm2, %v10870_v60, %v5102_v62  ;;  %v15020_v31 = vpop.f32.mrf.mxu2  ;;  %v12368_v60 = vld [vmem:[%s19976_s1 + $0xb8] sm:$0xff] }
 0x1df   : > { %3950 = vmatmul.bf16.gmra.mxu1 %v3806_v12  ;;  %v3035_v51 = vmax.f32 %v2388_v18, %v2940_v48  ;;  %v5104_v27 = vrot.slane %v5102_v62, 4  ;;  %v1018_v61 = vmax.f32 %v14954_v40, 0.0  ;;  %v973_v44 = vadd.f32 %v14722_v20, %v909_v41  ;;  %v15022_v40 = vpop.f32.mrf.mxu0  ;;  %v20579_v62 = vld [vmem:[#allocation40_spill] sm:$0xff] }
 0x1e0   : > { %v3308_v39 = vmax.f32 %v3036_v1, %v3211_v37  ;;  %v4224_v33 = vunpack.c.l.b16 %v14978_v34  ;;  %v3306_v19 = vmax.f32 %v3034_v9, %v3210_v2  ;;  %v4225_v13 = vunpack.c.l.b16 %v14980_v6 }
 0x1e1   : > { %v3307_v58 = vmax.f32 %v3035_v51, %v3212_v21  ;;  %v5106_v38 = vsel %vm12608_vm2, %v5104_v27, %v5105_v46  ;;  %v5224_v22 = vunpack.c.l.b16 %v5103_v16  ;;  %v1033_v63 = vmax.f32 %v973_v44, 0.0  ;;  %v15029_v2 = vpop.f32.mrf.mxu1  ;;  %v15045_v44 = vpop.f32.mrf.mxu3 }
 0x1e2   : > { %v3356_v17 = vpack.c.bf16 %v3308_v39, %v3308_v39  ;;  %v5225_v8 = vunpack.c.l.b16 %v5106_v38  ;;  %v3354_v37 = vpack.c.bf16 %v3306_v19, %v3306_v19  ;;  %v15024_v32 = vpack.c.b16 %v4225_v13, %v4224_v33  ;;  %20578 = vst [vmem:[#allocation84_spill] sm:$0xff] %v15029_v2  ;;  %v12369_v33 = vld [vmem:[%s19976_s1 + $0x40] sm:$0xff] }
 0x1e3   : > { %v3355_v18 = vpack.c.bf16 %v3307_v58, %v3307_v58  ;;  %v15027_v54 = vadd.f32 %v14810_v23, %v3921_v4  ;;  %v897_v43 = vmul.f32 %v14676_v3, %v20579_v62  ;;  %v1093_v46 = vmul.f32 %v12368_v60, %v1033_v63  ;;  %20581 = vst [vmem:[#allocation85_spill] sm:$0xff] %v15045_v44 }
 0x1e4   : > { %20576 = vst [vmem:[#allocation82_spill] sm:$0xff] %v15024_v32  ;;  %v3740_v25 = vshll.u32 %v3356_v17, 16  ;;  %v15033_v12 = vpack.c.b16 %v5225_v8, %v5224_v22  ;;  %v3721_v41 = vshrl.u32 %v3354_v37, 16  ;;  %v3724_v28 = vshll.u32 %v3354_v37, 16  ;;  %4365 = vmatmul.bf16.gmra.mxu3 %v15024_v32 }
 0x1e5   : > { %20577 = vst [vmem:[#allocation83_spill] sm:$0xff] %v15027_v54  ;;  %v3730_v48 = vshll.u32 %v3355_v18, 16  ;;  %v3734_v1 = vshrl.u32 %v3355_v18, 16  ;;  %v15040_v23 = vpack.c.bf16 %v1093_v46, %v1093_v46  ;;  %v961_v16 = vadd.f32 %v14722_v20, %v897_v43 }
 0x1e6   : > { %20580 = vst [vmem:[#allocation40_spill] sm:$0xff] %v15033_v12  ;;  %5347 = vmatmul.bf16.gmra.mxu2 %v15033_v12  ;;  %v3723_v4 = vrot.slane %v3721_v41, 4  ;;  %v3726_v21 = vrot.slane %v3724_v28, 5  ;;  %v1078_v19 = vmul.f32 %v12369_v33, %v1018_v61  ;;  %v3742_v13 = vrot.slane %v3740_v25, 5  ;;  %v15058_v37 = vpop.f32.mrf.mxu2 }
 0x1e7   : > { %v3732_v9 = vrot.slane %v3730_v48, 5  ;;  %v3736_v51 = vrot.slane %v3734_v1, 4  ;;  %v20055_v27 = vshll.u32 %v15040_v23, 16  ;;  %v5572_v39 = vshrl.u32 %v15040_v23, 16  ;;  %20584 = vst [vmem:[#allocation88_spill] sm:$0xff] %v15058_v37  ;;  %v797_v18 = vpop.f32.mrf.mxu0 }
 0x1e8   : > { %v3727_v58 = vor.u32 %v3726_v21, %v3723_v4  ;;  %v20056_v17 = vshll.u32 %v20555_v24, 16  ;;  %v20057_v22 = vshrl.u32 %v20555_v24, 16  ;;  %v20059_v62 = vshrl.u32 %v20559_v10, 16  ;;  %v20586_v21 = vld [vmem:[#allocation33_spill] sm:$0xff] }
 0x1e9   : > { %v3737_v38 = vor.u32 %v3736_v51, %v3732_v9  ;;  %v15052_v8 = vrot.slane %v5572_v39, 5  ;;  %v15056_v63 = vrot.slane %v20055_v27, 6  ;;  %v20058_v61 = vshll.u32 %v20559_v10, 16  ;;  %v3926_v28 = vpop.f32.mrf.mxu1 }
 0x1ea   : > { %v3728_v43 = vrot.slane %v3727_v58, 4  ;;  %v1021_v25 = vmax.f32 %v961_v16, 0.0  ;;  %v910_v41 = vmul.f32 %v14676_v3, %v14993_v5  ;;  %v15066_v48 = vpack.c.bf16 %v1078_v19, %v1078_v19 }
 0x1eb   : > { %20582 = vst [vmem:[#allocation86_spill] sm:$0xff] %v15052_v8  ;;  %v3738_v60 = vrot.slane %v3737_v38, 4  ;;  %v5109_v51 = vrot.slane %v20586_v21, 5  ;;  %v15075_v16 = vrot.slane %v20056_v17, 5  ;;  %v4459_v5 = vrot.slane %v20057_v22, 4  ;;  %v20587_v38 = vld [vmem:[#allocation30_spill] sm:$0xff]  ;;  %v4341_v17 = vpop.f32.mrf.mxu3 }
 0x1ec   : > { %20583 = vst [vmem:[#allocation87_spill] sm:$0xff] %v15056_v63  ;;  %v3733_v1 = vsel %vm12892_vm4, %v3728_v43, %v3732_v9  ;;  %v4446_v19 = vrot.slane %v20059_v62, 4  ;;  %v4449_v9 = vrot.slane %v20058_v61, 5  ;;  %v5956_v58 = vrot.slane %v20563_v7, 6 }
 0x1ed   : > { %20585 = vst [vmem:[#allocation89_spill] sm:$0xff] %v15066_v48  ;;  %v3743_v4 = vsel %vm12892_vm4, %v3738_v60, %v3742_v13  ;;  %v3790_v39 = vunpack.c.l.b16 %v3733_v1  ;;  %v10871_v13 = vrot.slane %v20587_v38, 9  ;;  %v20588_v43 = vshll.u32 %v20563_v7, 16  ;;  %v12370_v1 = vld [vmem:[%s19976_s1 + $0x58] sm:$0xff] }
 0x1ee   : > { %v3791_v33 = vunpack.c.l.b16 %v3743_v4  ;;  %v1081_v4 = vmul.f32 %v12370_v1, %v1021_v25  ;;  %v974_v27 = vadd.f32 %v14722_v20, %v910_v41  ;;  %v5111_v61 = vrot.slane %v5109_v51, 4  ;;  %v20591_v1 = vld [vmem:[#allocation44_spill] sm:$0xff] }
 0x1ef   : > { %v4465_v60 = vrot.slane %v20588_v43, 5  ;;  %v5110_v22 = vsel %vm12608_vm2, %v10871_v13, %v5109_v51  ;;  %v5112_v62 = vrot.slane %v15066_v48, 5  ;;  %vm5949_vm15 = vcmask 1045508   ;;  %v15109_v51 = vpop.f32.mrf.mxu0 }
 0x1f0   : > { %v3807_v46 = vpack.c.b16 %v3791_v33, %v3790_v39  ;;  %v4460_v7 = vor.u32 %v4459_v5, %v15075_v16  ;;  %vm15096_vm8 = vmor %vm1810_vm7, %vm5949_vm15  ;;  %v10981_v25 = vrot.slane %v20559_v10, 10  ;;  %v5953_v41 = vrot.slane %v20555_v24, 6  ;;  %v15104_v33 = vpop.f32.mrf.mxu2 }
 0x1f1   : > { %v911_v39 = vmul.f32 %v14676_v3, %v15022_v40  ;;  %v4450_v5 = vor.u32 %v4449_v9, %v4446_v19  ;;  %v5113_v13 = vsel %vm12608_vm2, %v5111_v61, %v5112_v62  ;;  %v15114_v35 = vadd.f32 %v4341_v17, %v20591_v1 }
 0x1f2   : > { %3955 = vmatmul.bf16.gmra.mxu1 %v3807_v46  ;;  %v12100_v46 = vld [vmem:[%s19982_s7 + $0xe0] sm:$0xff]  ;;  %v912_v12 = vmul.f32 %v14676_v3, %v797_v18  ;;  %v5226_v2 = vunpack.c.l.b16 %v5110_v22  ;;  %v5227_v52 = vunpack.c.l.b16 %v5113_v13  ;;  %v5954_v40 = vsel %vm15096_vm8, %v10981_v25, %v5953_v41  ;;  %v15128_v22 = vpop.f32.mrf.mxu1 }
 0x1f3   : > { %20592 = vst [vmem:[#allocation44_spill] sm:$0xff] %v15114_v35  ;;  %v5955_v32 = vrot.slane %v5953_v41, 4  ;;  %5830 = vmatpush.bf16.msra.mxu3 %v12100_v46  ;;  %v1034_v45 = vmax.f32 %v974_v27, 0.0  ;;  %v975_v44 = vadd.f32 %v14722_v20, %v911_v39  ;;  %v4461_v9 = vrot.slane %v4460_v7, 4  ;;  %v12373_v7 = vld [vmem:[%s19976_s1 + $0xc8] sm:$0xff]  ;;  %v15151_v13 = vpop.f32.mrf.mxu3 }
 0x1f4   : > { %v976_v19 = vadd.f32 %v14722_v20, %v912_v12  ;;  %v15121_v37 = vpack.c.b16 %v5227_v52, %v5226_v2  ;;  %v15126_v18 = vadd.f32 %v14930_v14, %v3926_v28  ;;  %20595 = vst [vmem:[#allocation92_spill] sm:$0xff] %v15128_v22  ;;  %v6080_v62 = vunpack.c.l.b16 %v5954_v40  ;;  %v12371_v14 = vld [vmem:[%s19976_s1 + $0xd0] sm:$0xff] }
 0x1f5   : > { %v5957_v17 = vsel %vm15096_vm8, %v5955_v32, %v5956_v58  ;;  %v1035_v25 = vmax.f32 %v975_v44, 0.0  ;;  %v15130_v27 = vpack.c.bf16 %v1081_v4, %v1081_v4  ;;  %v4451_v39 = vrot.slane %v4450_v5, 4  ;;  %v12372_v44 = vld [vmem:[%s19976_s1 + $0xc0] sm:$0xff]  ;;  %20597 = vst [vmem:[#allocation94_spill] sm:$0xff] %v15151_v13 }
 0x1f6   : > { %20593 = vst [vmem:[#allocation90_spill] sm:$0xff] %v15121_v37  ;;  %v6081_v61 = vunpack.c.l.b16 %v5957_v17  ;;  %v1036_v41 = vmax.f32 %v976_v19, 0.0  ;;  %v4466_v12 = vsel %vm12892_vm4, %v4461_v9, %v4465_v60  ;;  %5352 = vmatmul.bf16.gmra.mxu2 %v15121_v37  ;;  %v20065_v2 = vshll.u32 %v20574_v26, 16  ;;  %v20599_v9 = vld [vmem:[#allocation42_spill] sm:$0xff] }
 0x1f7   : > { %20594 = vst [vmem:[#allocation91_spill] sm:$0xff] %v15126_v18  ;;  %v20066_v28 = vshrl.u32 %v20574_v26, 16  ;;  %v1094_v58 = vmul.f32 %v12372_v44, %v1034_v45  ;;  %v802_v4 = vpop.f32.mrf.mxu0  ;;  %v4456_v60 = vsel %vm12892_vm4, %v4451_v39, %v15075_v16  ;;  %v1095_v46 = vmul.f32 %v12373_v7, %v1035_v25  ;;  %v20601_v44 = vld [vmem:[#allocation41_spill] sm:$0xff] }
 0x1f8   : > { %20596 = vst [vmem:[#allocation93_spill] sm:$0xff] %v15130_v27  ;;  %v6112_v52 = vpack.c.b16 %v6081_v61, %v6080_v62  ;;  %v1096_v32 = vmul.f32 %v12371_v14, %v1036_v41  ;;  %v15153_v1 = vpop.f32.mrf.mxu2  ;;  %v4845_v40 = vunpack.c.l.b16 %v4466_v12  ;;  %v20070_v45 = vshrl.u32 %v20575_v55, 16 }
 0x1f9   : > { %20598 = vst [vmem:[#allocation95_spill] sm:$0xff] %v15153_v1  ;;  %v5116_v17 = vrot.slane %v20599_v9, 5  ;;  %v15161_v62 = vrot.slane %v20065_v2, 5  ;;  %v4483_v61 = vrot.slane %v20066_v28, 4  ;;  %v5119_v25 = vrot.slane %v15130_v27, 5 }
 0x1fa   : > { %6200 = vmatmul.bf16.vlgmr.msrb.gmra.mxu0 %v6112_v52  ;;  %v15149_v5 = vpack.c.bf16 %v1096_v32, %v1096_v32  ;;  %v15166_v41 = vpack.c.bf16 %v1094_v58, %v1094_v58  ;;  %v4844_v39 = vunpack.c.l.b16 %v4456_v60  ;;  %v15170_v14 = vpack.c.bf16 %v1095_v46, %v1095_v46  ;;  %v3931_v22 = vpop.f32.mrf.mxu1 }
 0x1fb   : > { %v10872_v7 = vrot.slane %v20601_v44, 9  ;;  %v5118_v2 = vrot.slane %v5116_v17, 4  ;;  %v4470_v58 = vrot.slane %v20070_v45, 4  ;;  %v20603_v60 = vshll.u32 %v20575_v55, 16 }
 0x1fc   : > { %v20069_v16 = vshll.u32 %v15149_v5, 16  ;;  %v5587_v12 = vshrl.u32 %v15149_v5, 16  ;;  %v4876_v19 = vpack.c.b16 %v4845_v40, %v4844_v39  ;;  %v4484_v46 = vor.u32 %v4483_v61, %v15161_v62 }
 0x1fd   : > { %v4473_v37 = vrot.slane %v20603_v60, 5  ;;  %v5117_v52 = vsel %vm12608_vm2, %v10872_v7, %v5116_v17  ;;  %v10982_v13 = vrot.slane %v20575_v55, 10  ;;  %v5963_v60 = vrot.slane %v14313_v50, 6 }
 0x1fe   : > { %v15174_v32 = vrot.slane %v20069_v16, 6  ;;  %v15177_v28 = vrot.slane %v5587_v12, 5  ;;  %v5120_v16 = vsel %vm12608_vm2, %v5118_v2, %v5119_v25  ;;  %v5960_v12 = vrot.slane %v20574_v26, 6  ;;  %v4346_v25 = vpop.f32.mrf.mxu3 }
 0x1ff   : > { %v5229_v39 = vunpack.c.l.b16 %v5120_v16  ;;  %v15193_v45 = vpop.f32.mrf.mxu0  ;;  %v20604_v61 = vshll.u32 %v14313_v50, 16  ;;  %v4226_v17 = vunpack.c.l.b16 %v15166_v41  ;;  %v4227_v2 = vunpack.c.l.b16 %v15170_v14 }
 0x200   : > { %20600 = vst [vmem:[#allocation96_spill] sm:$0xff] %v15174_v32  ;;  %v4474_v7 = vor.u32 %v4473_v37, %v4470_v58  ;;  %v5228_v40 = vunpack.c.l.b16 %v5117_v52  ;;  %v5961_v16 = vsel %vm15096_vm8, %v10982_v13, %v5960_v12  ;;  %v4485_v32 = vrot.slane %v4484_v46, 4  ;;  %v15207_v49 = vpop.f32.mrf.mxu2 }
 0x201   : > { %20602 = vst [vmem:[#allocation97_spill] sm:$0xff] %v15177_v28  ;;  %v4489_v1 = vrot.slane %v20604_v61, 5  ;;  %v5962_v28 = vrot.slane %v5960_v12, 4  ;;  %v15203_v8 = vpack.c.b16 %v4227_v2, %v4226_v17  ;;  %v914_v61 = vmul.f32 %v14676_v3, %v802_v4 }
 0x202   : > { %4964 = vmatmul.bf16.vlgmr.msra.gmra.mxu1 %v4876_v19  ;;  %v913_v19 = vmul.f32 %v14676_v3, %v15109_v51  ;;  %v15209_v59 = vpack.c.b16 %v5229_v39, %v5228_v40  ;;  %v15214_v37 = vadd.f32 %v15020_v31, %v3931_v22  ;;  %v15217_v13 = vadd.f32 %v4346_v25, %v14280_v57 }
 0x203   : > { %20605 = vst [vmem:[#allocation98_spill] sm:$0xff] %v15203_v8  ;;  %v5964_v51 = vsel %vm15096_vm8, %v5962_v28, %v5963_v60  ;;  %v6082_v52 = vunpack.c.l.b16 %v5961_v16  ;;  %4370 = vmatmul.bf16.gmra.mxu3 %v15203_v8  ;;  %v978_v46 = vadd.f32 %v14722_v20, %v914_v61  ;;  %v4475_v4 = vrot.slane %v4474_v7, 4  ;;  %v20609_v28 = vld [vmem:[#allocation54_spill] sm:$0xff] }
 0x204   : > { %v977_v63 = vadd.f32 %v14722_v20, %v913_v19  ;;  %20606 = vst [vmem:[#allocation99_spill] sm:$0xff] %v15209_v59  ;;  %v6083_v58 = vunpack.c.l.b16 %v5964_v51  ;;  %v4490_v40 = vsel %vm12892_vm4, %v4485_v32, %v4489_v1  ;;  %v5126_v12 = vrot.slane %v20609_v28, 5  ;;  %v15233_v19 = vpop.f32.mrf.mxu1  ;;  %v20612_v32 = vld [vmem:[#allocation60_spill] sm:$0xff]  ;;  %v12375_v51 = vld [vmem:[%s19976_s1 + $0xe0] sm:$0xff] }
 0x205   : > { %20607 = vst [vmem:[#allocation100_spill] sm:$0xff] %v15214_v37  ;;  %v1038_v22 = vmax.f32 %v978_v46, 0.0  ;;  %v4480_v57 = vsel %vm12892_vm4, %v4475_v4, %v15161_v62  ;;  %v20077_v60 = vshll.u32 %v20586_v21, 16  ;;  %v20079_v17 = vshrl.u32 %v20586_v21, 16  ;;  %v12374_v62 = vld [vmem:[%s19976_s1 + $0xd8] sm:$0xff] }
 0x206   : > { %20608 = vst [vmem:[#allocation101_spill] sm:$0xff] %v15217_v13  ;;  %5357 = vmatmul.bf16.gmra.mxu2 %v15209_v59  ;;  %v1037_v39 = vmax.f32 %v977_v63, 0.0  ;;  %v15225_v31 = vpack.c.b16 %v6083_v58, %v6082_v52  ;;  %v5123_v2 = vrot.slane %v14380_v56, 5  ;;  %v10873_v63 = vrot.slane %v20612_v32, 9 }
 0x207   : > { %20611 = vst [vmem:[#allocation102_spill] sm:$0xff] %v15233_v19  ;;  %v807_v1 = vpop.f32.mrf.mxu0  ;;  %v4847_v25 = vunpack.c.l.b16 %v4490_v40  ;;  %v1098_v52 = vmul.f32 %v12375_v51, %v1038_v22  ;;  %v4846_v40 = vunpack.c.l.b16 %v4480_v57  ;;  %v15251_v16 = vrot.slane %v20077_v60, 5 }
 0x208   : > { %20610 = vst [vmem:[#allocation54_spill] sm:$0xff] %v15225_v31  ;;  %v1097_v61 = vmul.f32 %v12374_v62, %v1037_v39  ;;  %v5125_v58 = vrot.slane %v5123_v2, 4  ;;  %v5124_v7 = vsel %vm12608_vm2, %v10873_v63, %v5123_v2  ;;  %v4507_v39 = vrot.slane %v20079_v17, 4  ;;  %v15265_v60 = vpop.f32.mrf.mxu2 }
 0x209   : > { %v5967_v22 = vrot.slane %v20586_v21, 6  ;;  %v15258_v51 = vpack.c.b16 %v4847_v25, %v4846_v40  ;;  %v20614_v4 = vshrl.u32 %v20587_v38, 16  ;;  %v20615_v46 = vshll.u32 %v20587_v38, 16  ;;  %20616 = vst [vmem:[#allocation103_spill] sm:$0xff] %v15265_v60 }
 0x20a   : > { %6205 = vmatmul.bf16.gmra.mxu0 %v15225_v31  ;;  %v5127_v62 = vsel %vm12608_vm2, %v5125_v58, %v5126_v12  ;;  %v15267_v31 = vpack.c.bf16 %v1097_v61, %v1097_v61  ;;  %v15269_v17 = vpack.c.bf16 %v1098_v52, %v1098_v52  ;;  %v5230_v59 = vunpack.c.l.b16 %v5124_v7  ;;  %v12099_v7 = vld [vmem:[%s19982_s7 + $0xd8] sm:$0xff] }
 0x20b   : > { %20613 = vst [vmem:[#allocation60_spill] sm:$0xff] %v15258_v51  ;;  %v4494_v57 = vrot.slane %v20614_v4, 4  ;;  %v4497_v2 = vrot.slane %v20615_v46, 5  ;;  %v5231_v12 = vunpack.c.l.b16 %v5127_v62  ;;  %v10983_v4 = vrot.slane %v20587_v38, 10  ;;  %5831 = vmatpush.bf16.msra.mxu3 %v12099_v7  ;;  %v20633_v38 = vld [vmem:[#allocation68_spill] sm:$0xff] }
 0x20c   : > { %20617 = vst [vmem:[#allocation104_spill] sm:$0xff] %v15267_v31  ;;  %v4508_v46 = vor.u32 %v4507_v39, %v15251_v16  ;;  %v5969_v61 = vrot.slane %v5967_v22, 4  ;;  %v5970_v52 = vrot.slane %v15066_v48, 6  ;;  %v20620_v25 = vshll.u32 %v15066_v48, 16 }
 0x20d   : > { %20618 = vst [vmem:[#allocation105_spill] sm:$0xff] %v15269_v17  ;;  %v15277_v63 = vpack.c.b16 %v5231_v12, %v5230_v59  ;;  %v4498_v62 = vor.u32 %v4497_v2, %v4494_v57  ;;  %v5968_v40 = vsel %vm15096_vm8, %v10983_v4, %v5967_v22  ;;  %v915_v8 = vmul.f32 %v14676_v3, %v15193_v45  ;;  %v15293_v12 = vpop.f32.mrf.mxu3  ;;  %v15300_v2 = vld [vmem:[%s19978_s3] ss:$0 sm:$0xff] }
 0x20e   : > { %v4513_v58 = vrot.slane %v20620_v25, 5  ;;  %v5971_v59 = vsel %vm15096_vm8, %v5969_v61, %v5970_v52  ;;  %20621 = vst [vmem:[#allocation107_spill] sm:$0xff] %v15293_v12  ;;  %v4228_v60 = vunpack.c.l.b16 %v15267_v31  ;;  %v4229_v57 = vunpack.c.l.b16 %v15269_v17  ;;  %v3936_v25 = vpop.f32.mrf.mxu1  ;;  %v20626_v61 = vld [vmem:[#allocation70_spill] sm:$0xff] }
 0x20f   : > { %20619 = vst [vmem:[#allocation106_spill] sm:$0xff] %v15277_v63  ;;  %v15289_v39 = vpop.f32.mrf.mxu0  ;;  %v916_v22 = vmul.f32 %v15300_v2, %v807_v1  ;;  %v6085_v3 = vunpack.c.l.b16 %v5971_v59  ;;  %v979_v45 = vadd.f32 %v14722_v20, %v915_v8  ;;  %v15305_v4 = vadd.f32 %v15104_v33, %v3936_v25 }
 0x210   : > { %v4509_v52 = vrot.slane %v4508_v46, 4  ;;  %v15308_v12 = vpack.c.b16 %v4229_v57, %v4228_v60  ;;  %v20624_v37 = vshrl.u32 %v20612_v32, 16  ;;  %v6084_v7 = vunpack.c.l.b16 %v5968_v40  ;;  %v12377_v40 = vld [vmem:[%s19976_s1 + $0xe8] sm:$0xff] }
 0x211   : > { %20622 = vst [vmem:[#allocation108_spill] sm:$0xff] %v15305_v4  ;;  %v980_v19 = vadd.f32 %v14722_v20, %v916_v22  ;;  %v1039_v59 = vmax.f32 %v979_v45, 0.0  ;;  %v20625_v33 = vshll.u32 %v20612_v32, 16  ;;  %v5130_v46 = vrot.slane %v20626_v61, 5 }
 0x212   : > { %4969 = vmatmul.bf16.gmra.mxu1 %v15258_v51  ;;  %20623 = vst [vmem:[#allocation109_spill] sm:$0xff] %v15308_v12  ;;  %v20087_v51 = vshll.u32 %v20601_v44, 16  ;;  %v15314_v1 = vrot.slane %v20624_v37, 4  ;;  %v4499_v60 = vrot.slane %v4498_v62, 4  ;;  %v4514_v20 = vsel %vm12892_vm4, %v4509_v52, %v4513_v58  ;;  %v20629_v52 = vld [vmem:[#allocation75_spill] sm:$0xff] }
 0x213   : > { %v15319_v25 = vrot.slane %v20625_v33, 5  ;;  %4375 = vmatmul.bf16.gmra.mxu3 %v15308_v12  ;;  %v15326_v37 = vpack.c.b16 %v6085_v3, %v6084_v7  ;;  %v1099_v57 = vmul.f32 %v12377_v40, %v1039_v59  ;;  %v20628_v22 = vshrl.u32 %v20601_v44, 16  ;;  %v15335_v33 = vpop.f32.mrf.mxu2 }
 0x214   : > { %v4521_v62 = vrot.slane %v20087_v51, 5  ;;  %v5133_v8 = vrot.slane %v20629_v52, 5  ;;  %v4504_v3 = vsel %vm12892_vm4, %v4499_v60, %v15251_v16  ;;  %v1040_v7 = vmax.f32 %v980_v19, 0.0 }
 0x215   : > { %20627 = vst [vmem:[#allocation110_spill] sm:$0xff] %v15326_v37  ;;  %v4518_v45 = vrot.slane %v20628_v22, 4  ;;  %v15344_v59 = vpack.c.bf16 %v1099_v57, %v1099_v57  ;;  %v20630_v40 = vshll.u32 %v20599_v9, 16  ;;  %v20631_v51 = vshrl.u32 %v20599_v9, 16 }
 0x216   : > { %5362 = vmatmul.bf16.gmra.mxu2 %v15277_v63  ;;  %v20632_v4 = vshll.u32 %v20609_v28, 16  ;;  %v4849_v16 = vunpack.c.l.b16 %v4514_v20  ;;  %v5132_v60 = vrot.slane %v5130_v46, 4  ;;  %v4351_v63 = vpop.f32.mrf.mxu3  ;;  %v10874_v35 = vrot.slane %v20633_v38, 9 }
 0x217   : > { %v15348_v22 = vrot.slane %v20630_v40, 5  ;;  %v4531_v58 = vrot.slane %v20631_v51, 4  ;;  %v812_v12 = vpop.f32.mrf.mxu0  ;;  %v20098_v57 = vshll.u32 %v15344_v59, 16  ;;  %v5602_v21 = vshrl.u32 %v15344_v59, 16  ;;  %v12378_v51 = vld [vmem:[%s19976_s1 + $0xf0] sm:$0xff] }
 0x218   : > { %v15354_v13 = vrot.slane %v20632_v4, 5  ;;  %v4522_v40 = vor.u32 %v4521_v62, %v4518_v45  ;;  %v1100_v48 = vmul.f32 %v12378_v51, %v1040_v7  ;;  %v5134_v4 = vsel %vm12608_vm2, %v5132_v60, %v5133_v8 }
 0x219   : > { %v5974_v20 = vrot.slane %v20599_v9, 6  ;;  %v10875_v19 = vrot.slane %v14839_v11, 9  ;;  %v15371_v18 = vrot.slane %v20098_v57, 6  ;;  %v4532_v45 = vor.u32 %v4531_v58, %v15348_v22 }
 0x21a   : > { %6210 = vmatmul.bf16.gmra.mxu0 %v15326_v37  ;;  %v4848_v37 = vunpack.c.l.b16 %v4504_v3  ;;  %v15367_v3 = vrot.slane %v5602_v21, 5  ;;  %v5140_v62 = vrot.slane %v14808_v0, 5  ;;  %v5131_v51 = vsel %vm12608_vm2, %v10874_v35, %v5130_v46 }
 0x21b   : > { %20635 = vst [vmem:[#allocation111_spill] sm:$0xff] %v15371_v18  ;;  %v5977_v8 = vrot.slane %v15130_v27, 6  ;;  %v4523_v21 = vrot.slane %v4522_v40, 4  ;;  %v20637_v9 = vshll.u32 %v15130_v27, 16  ;;  %v5233_v57 = vunpack.c.l.b16 %v5134_v4 }
 0x21c   : > { %20634 = vst [vmem:[#allocation75_spill] sm:$0xff] %v15367_v3  ;;  %v15375_v7 = vpack.c.b16 %v4849_v16, %v4848_v37  ;;  %v15385_v58 = vpack.c.bf16 %v1100_v48, %v1100_v48  ;;  %v10984_v37 = vrot.slane %v20601_v44, 10  ;;  %v5976_v16 = vrot.slane %v5974_v20, 4  ;;  %v20639_v3 = vld [vmem:[#allocation64_spill] sm:$0xff] }
 0x21d   : > { %v4537_v26 = vrot.slane %v20637_v9, 5  ;;  %v917_v35 = vmul.f32 %v15300_v2, %v15289_v39  ;;  %v4528_v46 = vsel %vm12892_vm4, %v4523_v21, %v15348_v22  ;;  %v4533_v60 = vrot.slane %v4532_v45, 4  ;;  %v15396_v9 = vpop.f32.mrf.mxu2  ;;  %v15405_v39 = vld [vmem:[%s19979_s4] ss:$0 sm:$0xff]  ;;  %v15408_v45 = vpop.f32.mrf.mxu1 }
 0x21e   : > { %20636 = vst [vmem:[#allocation112_spill] sm:$0xff] %v15375_v7  ;;  %v5232_v40 = vunpack.c.l.b16 %v5131_v51  ;;  %v15394_v18 = vadd.f32 %v4351_v63, %v20639_v3  ;;  %v5975_v48 = vsel %vm15096_vm8, %v10984_v37, %v5974_v20  ;;  %v918_v63 = vmul.f32 %v15300_v2, %v812_v12 }
 0x21f   : > { %20638 = vst [vmem:[#allocation113_spill] sm:$0xff] %v15385_v58  ;;  %v814_v4 = vpop.f32.mrf.mxu0  ;;  %v981_v22 = vadd.f32 %v15405_v39, %v917_v35  ;;  %v4546_v20 = vor.u32 %v15319_v25, %v15314_v1  ;;  %v20644_v21 = vshll.u32 %v14380_v56, 16  ;;  %v20646_v35 = vshrl.u32 %v14380_v56, 16  ;;  %v12380_v25 = vld [vmem:[%s19976_s1 + $0xf8] sm:$0xff] }
 0x220   : > { %20640 = vst [vmem:[#allocation64_spill] sm:$0xff] %v15394_v18  ;;  %v15411_v3 = vpack.c.b16 %v5233_v57, %v5232_v40  ;;  %v4538_v12 = vsel %vm12892_vm4, %v4533_v60, %v4537_v26  ;;  %v6086_v57 = vunpack.c.l.b16 %v5975_v48  ;;  %v5981_v1 = vrot.slane %v14380_v56, 6 }
 0x221   : > { %20641 = vst [vmem:[#allocation114_spill] sm:$0xff] %v15396_v9  ;;  %v1041_v37 = vmax.f32 %v981_v22, 0.0  ;;  %v15418_v9 = vpop.f32.mrf.mxu3  ;;  %v4555_v18 = vrot.slane %v20646_v35, 4  ;;  %v4850_v35 = vunpack.c.l.b16 %v4528_v46  ;;  %v4851_v48 = vunpack.c.l.b16 %v4538_v12 }
 0x222   : > { %4974 = vmatmul.bf16.gmra.mxu1 %v15375_v7  ;;  %v5978_v7 = vsel %vm15096_vm8, %v5976_v16, %v5977_v8  ;;  %20642 = vst [vmem:[#allocation115_spill] sm:$0xff] %v15408_v45  ;;  %v4551_v8 = vrot.slane %v20644_v21, 5  ;;  %v982_v16 = vadd.f32 %v15405_v39, %v918_v63  ;;  %v5137_v45 = vrot.slane %v14844_v53, 5 }
 0x223   : > { %20643 = vst [vmem:[#allocation116_spill] sm:$0xff] %v15411_v3  ;;  %v6087_v51 = vunpack.c.l.b16 %v5978_v7  ;;  %v4547_v7 = vrot.slane %v4546_v20, 4  ;;  %v1101_v40 = vmul.f32 %v12380_v25, %v1041_v37  ;;  %v20649_v46 = vrot.slane %v20612_v32, 10 }
 0x224   : > { %20645 = vst [vmem:[#allocation117_spill] sm:$0xff] %v15418_v9  ;;  %v1042_v22 = vmax.f32 %v982_v16, 0.0  ;;  %v4556_v63 = vor.u32 %v4555_v18, %v4551_v8  ;;  %v5138_v21 = vsel %vm12608_vm2, %v10875_v19, %v5137_v45  ;;  %v5139_v60 = vrot.slane %v5137_v45, 4 }
 0x225   : > { %v15432_v9 = vpack.c.b16 %v6087_v51, %v6086_v57  ;;  %v4552_v26 = vsel %vm12892_vm4, %v4547_v7, %v4551_v8  ;;  %v15436_v20 = vpack.c.bf16 %v1101_v40, %v1101_v40  ;;  %v5234_v19 = vunpack.c.l.b16 %v5138_v21 }
 0x226   : > { %5367 = vmatmul.bf16.gmra.mxu2 %v15411_v3  ;;  %v12381_v3 = vld [vmem:[%s19976_s1 + $0x100] sm:$0xff]  ;;  %v4557_v16 = vrot.slane %v4556_v63, 4  ;;  %v5141_v18 = vsel %vm12608_vm2, %v5139_v60, %v5140_v62  ;;  %v5982_v45 = vsel %vm15096_vm8, %v20649_v46, %v5981_v1  ;;  %v5983_v51 = vrot.slane %v5981_v1, 4  ;;  %v15458_v63 = vpop.f32.mrf.mxu2 }
 0x227   : > { %20647 = vst [vmem:[#allocation118_spill] sm:$0xff] %v15432_v9  ;;  %v1102_v37 = vmul.f32 %v12381_v3, %v1042_v22  ;;  %v817_v8 = vpop.f32.mrf.mxu0  ;;  %v4852_v57 = vunpack.c.l.b16 %v4552_v26  ;;  %v919_v7 = vmul.f32 %v15300_v2, %v814_v4  ;;  %v5235_v40 = vunpack.c.l.b16 %v5141_v18 }
 0x228   : > { %20648 = vst [vmem:[#allocation119_spill] sm:$0xff] %v15436_v20  ;;  %v4562_v3 = vsel %vm12892_vm4, %v4557_v16, %v15354_v13  ;;  %v20650_v62 = vrot.slane %v20609_v28, 6  ;;  %v4231_v1 = vunpack.c.l.b16 %v15436_v20  ;;  %v6088_v13 = vunpack.c.l.b16 %v5982_v45 }
 0x229   : > { %v15448_v12 = vpack.c.bf16 %v1102_v37, %v1102_v37  ;;  %v4853_v25 = vunpack.c.l.b16 %v4562_v3  ;;  %v3941_v37 = vpop.f32.mrf.mxu1  ;;  %v4230_v26 = vunpack.c.l.b16 %v15385_v58  ;;  %v4356_v4 = vpop.f32.mrf.mxu3  ;;  %v15469_v18 = vpack.c.b16 %v5235_v40, %v5234_v19 }
 0x22a   : > { %6215 = vmatmul.bf16.gmra.mxu0 %v15432_v9  ;;  %v5985_v22 = vsel %vm15096_vm8, %v5983_v51, %v20650_v62  ;;  %v15465_v16 = vadd.f32 %v15207_v49, %v3941_v37  ;;  %v15471_v51 = vpack.c.b16 %v4851_v48, %v4850_v35  ;;  %v983_v49 = vadd.f32 %v15405_v39, %v919_v7  ;;  %v12098_v48 = vld [vmem:[%s19982_s7 + $0xd0] sm:$0xff] }
 0x22b   : > { %v20107_v21 = vshll.u32 %v15448_v12, 16  ;;  %v5617_v60 = vshrl.u32 %v15448_v12, 16  ;;  %v15467_v28 = vpack.c.b16 %v4853_v25, %v4852_v57  ;;  %20653 = vst [vmem:[#allocation122_spill] sm:$0xff] %v15469_v18  ;;  %v6089_v46 = vunpack.c.l.b16 %v5985_v22  ;;  %v20659_v25 = vld [vmem:[#allocation74_spill] sm:$0xff]  ;;  %5832 = vmatpush.bf16.msra.mxu3 %v12098_v48 }
 0x22c   : > { %20651 = vst [vmem:[#allocation120_spill] sm:$0xff] %v15465_v16  ;;  %v15479_v45 = vpack.c.b16 %v4231_v1, %v4230_v26  ;;  %v920_v57 = vmul.f32 %v15300_v2, %v817_v8  ;;  %v15486_v19 = vadd.f32 %v4356_v4, %v20659_v25  ;;  %v20108_v40 = vshrl.u32 %v20626_v61, 16  ;;  %v12382_v48 = vld [vmem:[%s19976_s1 + $0x108] sm:$0xff] }
 0x22d   : > { %20652 = vst [vmem:[#allocation121_spill] sm:$0xff] %v15467_v28  ;;  %v15473_v3 = vrot.slane %v5617_v60, 5  ;;  %v15477_v62 = vrot.slane %v20107_v21, 6  ;;  %v15481_v9 = vpack.c.b16 %v6089_v46, %v6088_v13  ;;  %v1043_v22 = vmax.f32 %v983_v49, 0.0 }
 0x22e   : > { %20654 = vst [vmem:[#allocation123_spill] sm:$0xff] %v15471_v51  ;;  %4380 = vmatmul.bf16.gmra.mxu3 %v15479_v45  ;;  %v984_v7 = vadd.f32 %v15405_v39, %v920_v57  ;;  %v20115_v60 = vshrl.u32 %v14839_v11, 16  ;;  %v20661_v46 = vshrl.u32 %v20559_v10, 16  ;;  %v20662_v49 = vshll.u32 %v20559_v10, 16  ;;  %v12383_v10 = vld [vmem:[%s19976_s1 + $0x110] sm:$0xff] }
 0x22f   : > { %20655 = vst [vmem:[#allocation124_spill] sm:$0xff] %v15473_v3  ;;  %v819_v8 = vpop.f32.mrf.mxu0  ;;  %v5144_v35 = vrot.slane %v14980_v6, 5  ;;  %v1103_v21 = vmul.f32 %v12382_v48, %v1043_v22  ;;  %v4579_v13 = vrot.slane %v20108_v40, 4  ;;  %v5991_v37 = vrot.slane %v20629_v52, 6 }
 0x230   : > { %20656 = vst [vmem:[#allocation125_spill] sm:$0xff] %v15477_v62  ;;  %v1044_v4 = vmax.f32 %v984_v7, 0.0  ;;  %v15504_v25 = vrot.slane %v20661_v46, 5  ;;  %v15508_v57 = vrot.slane %v20662_v49, 6  ;;  %v5988_v7 = vrot.slane %v20626_v61, 6  ;;  %v15518_v46 = vpop.f32.mrf.mxu2 }
 0x231   : > { %20657 = vst [vmem:[#allocation126_spill] sm:$0xff] %v15479_v45  ;;  %v20663_v1 = vshll.u32 %v20629_v52, 16  ;;  %v4590_v22 = vrot.slane %v20115_v60, 4  ;;  %v5147_v40 = vrot.slane %v15040_v23, 5  ;;  %v20664_v45 = vshll.u32 %v14839_v11, 16 }
 0x232   : > { %20658 = vst [vmem:[#allocation127_spill] sm:$0xff] %v15481_v9  ;;  %4979 = vmatmul.bf16.gmra.mxu1 %v15471_v51  ;;  %v1104_v49 = vmul.f32 %v12383_v10, %v1044_v4  ;;  %v20665_v62 = vshrl.u32 %v20633_v38, 16  ;;  %v20666_v4 = vshll.u32 %v20633_v38, 16  ;;  %v15542_v60 = vpack.c.bf16 %v1103_v21, %v1103_v21 }
 0x233   : > { %20660 = vst [vmem:[#allocation74_spill] sm:$0xff] %v15486_v19  ;;  %v15525_v26 = vrot.slane %v20663_v1, 5  ;;  %v4593_v3 = vrot.slane %v20664_v45, 5  ;;  %v20667_v1 = vshll.u32 %v20626_v61, 16  ;;  %v5146_v16 = vrot.slane %v5144_v35, 4  ;;  %v15562_v61 = vpop.f32.mrf.mxu1 }
 0x234   : > { %v4566_v51 = vrot.slane %v20665_v62, 4  ;;  %v4569_v52 = vrot.slane %v20666_v4, 5  ;;  %20668 = vst [vmem:[#allocation128_spill] sm:$0xff] %v15542_v60  ;;  %v15544_v48 = vpack.c.bf16 %v1104_v49, %v1104_v49  ;;  %v10876_v4 = vrot.slane %v14978_v34, 9 }
 0x235   : > { %v15540_v10 = vrot.slane %v20667_v1, 5  ;;  %v20670_v1 = vshll.u32 %v14808_v0, 16  ;;  %v10877_v49 = vrot.slane %v15166_v41, 9  ;;  %v5148_v27 = vsel %vm12608_vm2, %v5146_v16, %v5147_v40  ;;  %20671 = vst [vmem:[#allocation130_spill] sm:$0xff] %v15562_v61 }
 0x236   : > { %5372 = vmatmul.bf16.gmra.mxu2 %v15469_v18  ;;  %20669 = vst [vmem:[#allocation129_spill] sm:$0xff] %v15544_v48  ;;  %v921_v18 = vmul.f32 %v15300_v2, %v819_v8  ;;  %v5154_v19 = vrot.slane %v15149_v5, 5  ;;  %v4570_v45 = vor.u32 %v4569_v52, %v4566_v51  ;;  %v4233_v50 = vunpack.c.l.b16 %v15544_v48 }
 0x237   : > { %v822_v44 = vpop.f32.mrf.mxu0  ;;  %v4609_v21 = vrot.slane %v20670_v1, 5  ;;  %v4580_v62 = vor.u32 %v4579_v13, %v15540_v10  ;;  %v4232_v1 = vunpack.c.l.b16 %v15542_v60  ;;  %v4594_v56 = vor.u32 %v4593_v3, %v4590_v22 }
 0x238   : > { %v985_v8 = vadd.f32 %v15405_v39, %v921_v18  ;;  %v5237_v29 = vunpack.c.l.b16 %v5148_v27  ;;  %v5990_v16 = vrot.slane %v5988_v7, 4  ;;  %v20672_v18 = vshll.u32 %v14844_v53, 16 }
 0x239   : > { %v20673_v51 = vshrl.u32 %v14844_v53, 16  ;;  %v10986_v54 = vrot.slane %v20633_v38, 10  ;;  %v4595_v22 = vrot.slane %v4594_v56, 4  ;;  %v4581_v61 = vrot.slane %v4580_v62, 4 }
 0x23a   : > { %6220 = vmatmul.bf16.gmra.mxu0 %v15481_v9  ;;  %v5145_v9 = vsel %vm12608_vm2, %v10876_v4, %v5144_v35  ;;  %v1045_v55 = vmax.f32 %v985_v8, 0.0  ;;  %v4599_v40 = vrot.slane %v20672_v18, 5  ;;  %v12384_v35 = vld [vmem:[%s19976_s1 + $0x118] sm:$0xff]  ;;  %v15574_v8 = vpack.c.b16 %v4233_v50, %v4232_v1 }
 0x23b   : > { %v4603_v52 = vrot.slane %v20673_v51, 4  ;;  %v5236_v13 = vunpack.c.l.b16 %v5145_v9  ;;  %v5992_v27 = vsel %vm15096_vm8, %v5990_v16, %v5991_v37  ;;  %v15578_v3 = vpop.f32.mrf.mxu2  ;;  %v4571_v9 = vrot.slane %v4570_v45, 4  ;;  %v15610_v51 = vpop.f32.mrf.mxu3 }
 0x23c   : > { %v1105_v4 = vmul.f32 %v12384_v35, %v1045_v55  ;;  %20674 = vst [vmem:[#allocation131_spill] sm:$0xff] %v15574_v8  ;;  %v5151_v50 = vrot.slane %v15170_v14, 5  ;;  %v5989_v37 = vsel %vm15096_vm8, %v10986_v54, %v5988_v7  ;;  %v4600_v56 = vsel %vm12892_vm4, %v4595_v22, %v4599_v40 }
 0x23d   : > { %v4604_v18 = vor.u32 %v4603_v52, %v4599_v40  ;;  %v15587_v55 = vpack.c.b16 %v5237_v29, %v5236_v13  ;;  %v6091_v52 = vunpack.c.l.b16 %v5992_v27  ;;  %v5995_v35 = vrot.slane %v14844_v53, 6  ;;  %20678 = vst [vmem:[#allocation135_spill] sm:$0xff] %v15610_v51 }
 0x23e   : > { %v15583_v38 = vpack.c.bf16 %v1105_v4, %v1105_v4  ;;  %4385 = vmatmul.bf16.gmra.mxu3 %v15574_v8  ;;  %v922_v4 = vmul.f32 %v15300_v2, %v822_v44  ;;  %v5152_v54 = vsel %vm12608_vm2, %v10877_v49, %v5151_v50  ;;  %v5153_v7 = vrot.slane %v5151_v50, 4 }
 0x23f   : > { %20675 = vst [vmem:[#allocation132_spill] sm:$0xff] %v15587_v55  ;;  %v4605_v1 = vrot.slane %v4604_v18, 4  ;;  %v824_v16 = vpop.f32.mrf.mxu0  ;;  %v4856_v27 = vunpack.c.l.b16 %v4600_v56  ;;  %v4586_v18 = vsel %vm12892_vm4, %v4581_v61, %v15525_v26  ;;  %v6090_v44 = vunpack.c.l.b16 %v5989_v37 }
 0x240   : > { %v20130_v45 = vshll.u32 %v15583_v38, 16  ;;  %v5632_v62 = vshrl.u32 %v15583_v38, 16  ;;  %v5238_v49 = vunpack.c.l.b16 %v5152_v54  ;;  %v20682_v26 = vrot.slane %v14839_v11, 10 }
 0x241   : > { %v4610_v29 = vsel %vm12892_vm4, %v4605_v1, %v4609_v21  ;;  %v5155_v21 = vsel %vm12608_vm2, %v5153_v7, %v5154_v19  ;;  %v15622_v61 = vpack.c.b16 %v6091_v52, %v6090_v44  ;;  %v4576_v37 = vsel %vm12892_vm4, %v4571_v9, %v15540_v10 }
 0x242   : > { %4984 = vmatmul.bf16.gmra.mxu1 %v15467_v28  ;;  %v15601_v13 = vrot.slane %v5632_v62, 5  ;;  %v15605_v40 = vrot.slane %v20130_v45, 6  ;;  %v4857_v22 = vunpack.c.l.b16 %v4610_v29  ;;  %v5239_v56 = vunpack.c.l.b16 %v5155_v21 }
 0x243   : > { %v5997_v29 = vrot.slane %v5995_v35, 4  ;;  %20681 = vst [vmem:[#allocation138_spill] sm:$0xff] %v15622_v61  ;;  %v5996_v19 = vsel %vm15096_vm8, %v20682_v26, %v5995_v35  ;;  %v986_v54 = vadd.f32 %v15405_v39, %v922_v4  ;;  %v4855_v52 = vunpack.c.l.b16 %v4586_v18 }
 0x244   : > { %20676 = vst [vmem:[#allocation133_spill] sm:$0xff] %v15601_v13  ;;  %v3946_v50 = vpop.f32.mrf.mxu1  ;;  %v15617_v62 = vpack.c.b16 %v4857_v22, %v4856_v27  ;;  %v15632_v7 = vpack.c.b16 %v5239_v56, %v5238_v49  ;;  %v20684_v27 = vrot.slane %v14808_v0, 6  ;;  %v15639_v22 = vpop.f32.mrf.mxu2  ;;  %v6092_v35 = vunpack.c.l.b16 %v5996_v19  ;;  %v20706_v13 = vld [vmem:[#allocation12_spill] sm:$0xff] }
 0x245   : > { %20677 = vst [vmem:[#allocation134_spill] sm:$0xff] %v15605_v40  ;;  %v15620_v45 = vadd.f32 %v15335_v33, %v3946_v50  ;;  %v923_v50 = vmul.f32 %v15300_v2, %v824_v16  ;;  %v4854_v9 = vunpack.c.l.b16 %v4576_v37  ;;  %v1046_v4 = vmax.f32 %v986_v54, 0.0 }
 0x246   : > { %5377 = vmatmul.bf16.gmra.mxu2 %v15587_v55  ;;  %20679 = vst [vmem:[#allocation136_spill] sm:$0xff] %v15617_v62  ;;  %v5999_v33 = vsel %vm15096_vm8, %v5997_v29, %v20684_v27  ;;  %v20131_v18 = vshrl.u32 %v14980_v6, 16  ;;  %v20686_v26 = vshrl.u32 %v20555_v24, 16  ;;  %v20687_v19 = vshll.u32 %v20555_v24, 16 }
 0x247   : > { %20680 = vst [vmem:[#allocation137_spill] sm:$0xff] %v15620_v45  ;;  %v827_v44 = vpop.f32.mrf.mxu0  ;;  %v6093_v21 = vunpack.c.l.b16 %v5999_v33  ;;  %v987_v0 = vadd.f32 %v15405_v39, %v923_v50  ;;  %v15652_v16 = vpack.c.b16 %v4855_v52, %v4854_v9  ;;  %v20691_v50 = vld [vmem:[#allocation17_spill] sm:$0xff]  ;;  %vm5455_vm7 = vsmask.f32 2304  ;;  %v12386_v9 = vld [vmem:[%s19976_s1 + $0x128] sm:$0xff] }
 0x248   : > { %20683 = vst [vmem:[#allocation139_spill] sm:$0xff] %v15632_v7  ;;  %v924_v10 = vmul.f32 %v15300_v2, %v827_v44  ;;  %v5462_v27 = vrot.slane %v20686_v26, 5  ;;  %v5463_v33 = vrot.slane %v20687_v19, 6  ;;  %v12097_v19 = vld [vmem:[%s19982_s7 + $0xc8] sm:$0xff]  ;;  %vm5456_vm9 = vsmask.f32 6416 }
 0x249   : > { %v15643_v49 = vpack.c.b16 %v6093_v21, %v6092_v35  ;;  %20688 = vst [vmem:[#allocation141_spill] sm:$0xff] %v15652_v16  ;;  %v1047_v44 = vmax.f32 %v987_v0, 0.0  ;;  %v20690_v35 = vld [vmem:[#allocation5_spill] sm:$0xff]  ;;  %5833 = vmatpush.bf16.msra.mxu3 %v12097_v19  ;;  %vm15706_vm12 = vmor %vm5455_vm7, %vm5456_vm9  ;;  %v20704_v51 = vshll.u32 %v14978_v34, 16 }
 0x24a   : > { %6225 = vmatmul.bf16.gmra.mxu0 %v15622_v61  ;;  %v988_v56 = vadd.f32 %v15405_v39, %v924_v10  ;;  %v15659_v21 = vpack.c.bf16 %v20690_v35, %v20690_v35  ;;  %v15663_v10 = vmul.f32 %v15300_v2, %v20691_v50  ;;  %v6005_v50 = vrot.slane %v15040_v23, 6 }
 0x24b   : > { %20685 = vst [vmem:[#allocation140_spill] sm:$0xff] %v15643_v49  ;;  %v1107_v0 = vmul.f32 %v12386_v9, %v1047_v44  ;;  %v15687_v44 = vrot.slane %v20131_v18, 4  ;;  %v20694_v35 = vshrl.u32 %v15166_v41, 16  ;;  %v4617_v8 = vrot.slane %v20704_v51, 5 }
 0x24c   : > { %v4361_v29 = vpop.f32.mrf.mxu3  ;;  %v1048_v54 = vmax.f32 %v988_v56, 0.0  ;;  %v15667_v24 = vpop.f32.mrf.mxu1  ;;  %v12387_v56 = vld [vmem:[%s19976_s1 + $0x130] sm:$0xff] }
 0x24d   : > { %v15655_v37 = vadd.f32 %v4361_v29, %v14785_v47  ;;  %20692 = vst [vmem:[#allocation5_spill] sm:$0xff] %v15667_v24  ;;  %v12385_v47 = vld [vmem:[%s19976_s1 + $0x120] sm:$0xff] }
 0x24e   : > { %v1106_v52 = vmul.f32 %v12385_v47, %v1046_v4  ;;  %v1108_v29 = vmul.f32 %v12387_v56, %v1048_v54  ;;  %v20138_v4 = vshll.u32 %v15166_v41, 16  ;;  %v5464_v47 = vor.u32 %v5463_v33, %v5462_v27  ;;  %v20705_v24 = vld [vmem:[#allocation13_spill] sm:$0xff] }
 0x24f   : > { %20689 = vst [vmem:[#allocation142_spill] sm:$0xff] %v15655_v37  ;;  %v20693_v56 = vshll.u32 %v15040_v23, 16  ;;  %v15699_v27 = vrot.slane %v20694_v35, 4  ;;  %v20700_v35 = vor.u32 %v15508_v57, %v15504_v25  ;;  %v829_v25 = vpop.f32.mrf.mxu0  ;;  %v20707_v40 = vor.u32 %v20705_v24, %v20706_v13 }
 0x250   : > { %v15690_v9 = vpack.c.bf16 %v1108_v29, %v1108_v29  ;;  %v15710_v19 = vpack.c.bf16 %v1106_v52, %v1106_v52  ;;  %v4641_v33 = vrot.slane %v20138_v4, 5  ;;  %v5466_v55 = vrot.slane %v5464_v47, 4 }
 0x251   : > { %v15694_v26 = vrot.slane %v20693_v56, 5  ;;  %v15712_v56 = vpack.c.bf16 %v1107_v0, %v1107_v0  ;;  %v5461_v18 = vrot.slane %v20700_v35, 4  ;;  %v5158_v52 = vrot.slane %v15269_v17, 5 }
 0x252   : > { %4989 = vmatmul.bf16.gmra.mxu1 %v15652_v16  ;;  %20698 = vst [vmem:[#allocation143_spill] sm:$0xff] %v15710_v19  ;;  %v20143_v23 = vshll.u32 %v15690_v9, 16  ;;  %v5647_v61 = vshrl.u32 %v15690_v9, 16  ;;  %v20703_v4 = vshrl.u32 %v14978_v34, 16  ;;  %v925_v13 = vmul.f32 %v15300_v2, %v829_v25 }
 0x253   : > { %20699 = vst [vmem:[#allocation144_spill] sm:$0xff] %v15712_v56  ;;  %v5465_v57 = vsel %vm15706_vm12, %v5461_v18, %v5464_v47  ;;  %v4234_v18 = vunpack.c.l.b16 %v15710_v19  ;;  %v20708_v47 = vshll.u32 %v15149_v5, 16  ;;  %v5160_v16 = vrot.slane %v5158_v52, 4 }
 0x254   : > { %v15702_v1 = vpop.f32.mrf.mxu2  ;;  %v15727_v0 = vrot.slane %v20143_v23, 6  ;;  %v15731_v35 = vrot.slane %v5647_v61, 5  ;;  %v4614_v54 = vrot.slane %v20703_v4, 4  ;;  %v4235_v61 = vunpack.c.l.b16 %v15712_v56 }
 0x255   : > { %20695 = vst [vmem:[#allocation17_spill] sm:$0xff] %v15702_v1  ;;  %v5161_v1 = vrot.slane %v15344_v59, 5  ;;  %v4657_v4 = vrot.slane %v20708_v47, 5  ;;  %v5715_v24 = vunpack.c.l.b16 %v5465_v57  ;;  %v989_v51 = vadd.f32 %v15405_v39, %v925_v13  ;;  %v15777_v13 = vpop.f32.mrf.mxu3 }
 0x256   : > { %5382 = vmatmul.bf16.gmra.mxu2 %v15632_v7  ;;  %20701 = vst [vmem:[#allocation145_spill] sm:$0xff] %v15727_v0  ;;  %v5472_v7 = vsel %vm15706_vm12, %v5466_v55, %v20707_v40  ;;  %v20709_v40 = vshll.u32 %v14980_v6, 16  ;;  %v15756_v28 = vpack.c.b16 %v4235_v61, %v4234_v18  ;;  %v4618_v47 = vor.u32 %v4617_v8, %v4614_v54 }
 0x257   : > { %20702 = vst [vmem:[#allocation146_spill] sm:$0xff] %v15731_v35  ;;  %v5716_v45 = vunpack.c.l.b16 %v5472_v7  ;;  %v10879_v25 = vrot.slane %v15385_v58, 9  ;;  %v5162_v57 = vsel %vm12608_vm2, %v5160_v16, %v5161_v1  ;;  %v10988_v54 = vrot.slane %v14978_v34, 10 }
 0x258   : > { %v15754_v23 = vrot.slane %v20709_v40, 5  ;;  %20710 = vst [vmem:[#allocation13_spill] sm:$0xff] %v15756_v28  ;;  %v20712_v40 = vrot.slane %v14980_v6, 6  ;;  %4390 = vmatmul.bf16.gmra.mxu3 %v15756_v28  ;;  %v1049_v61 = vmax.f32 %v989_v51, 0.0  ;;  %v4642_v16 = vor.u32 %v4641_v33, %v15699_v27  ;;  %v12388_v51 = vld [vmem:[%s19976_s1 + $0x138] sm:$0xff] }
 0x259   : > { %v15769_v18 = vpack.c.b16 %v5716_v45, %v5715_v24  ;;  %20714 = vst [vmem:[#allocation148_spill] sm:$0xff] %v15777_v13  ;;  %v20715_v45 = vshll.u32 %v15170_v14, 16  ;;  %v4619_v28 = vrot.slane %v4618_v47, 4  ;;  %v5165_v47 = vrot.slane %v15436_v20, 5 }
 0x25a   : > { %6230 = vmatmul.bf16.gmra.mxu0 %v15643_v49  ;;  %v10878_v49 = vrot.slane %v15267_v31, 9  ;;  %v6004_v35 = vrot.slane %v20712_v40, 4  ;;  %v1109_v13 = vmul.f32 %v12388_v51, %v1049_v61  ;;  %v4643_v33 = vrot.slane %v4642_v16, 4 }
 0x25b   : > { %v4647_v24 = vrot.slane %v20715_v45, 5 }
 0x25c   : > { %v3951_v55 = vpop.f32.mrf.mxu1  ;;  %v15772_v7 = vpop.f32.mrf.mxu2  ;;  %v5159_v8 = vsel %vm12608_vm2, %v10878_v49, %v5158_v52  ;;  %v6006_v1 = vsel %vm15096_vm8, %v6004_v35, %v6005_v50  ;;  %v4628_v49 = vor.u32 %v15687_v44, %v15754_v23  ;;  %v5241_v52 = vunpack.c.l.b16 %v5162_v57 }
 0x25d   : > { %v15759_v37 = vadd.f32 %v15458_v63, %v3951_v55  ;;  %v5168_v63 = vrot.slane %v15448_v12, 5  ;;  %20713 = vst [vmem:[#allocation147_spill] sm:$0xff] %v15772_v7  ;;  %v20716_v55 = vshrl.u32 %v15170_v14, 16  ;;  %v20717_v50 = vrot.slane %v14980_v6, 6 }
 0x25e   : > { %v5240_v45 = vunpack.c.l.b16 %v5159_v8  ;;  %v15797_v44 = vpack.c.bf16 %v1109_v13, %v1109_v13  ;;  %v6009_v57 = vrot.slane %v15170_v14, 6  ;;  %v4648_v61 = vsel %vm12892_vm4, %v4643_v33, %v4647_v24 }
 0x25f   : > { %20711 = vst [vmem:[#allocation12_spill] sm:$0xff] %v15759_v37  ;;  %v4651_v40 = vrot.slane %v20716_v55, 4  ;;  %v6003_v27 = vsel %vm15096_vm8, %v10988_v54, %v20717_v50  ;;  %v6095_v55 = vunpack.c.l.b16 %v6006_v1  ;;  %v5166_v7 = vsel %vm12608_vm2, %v10879_v25, %v5165_v47  ;;  %v20799_v37 = vld [vmem:[#allocation56_spill] sm:$0xff] }
 0x260   : > { %20718 = vst [vmem:[#allocation149_spill] sm:$0xff] %v15797_v44  ;;  %v4629_v16 = vrot.slane %v4628_v49, 4  ;;  %v6094_v8 = vunpack.c.l.b16 %v6003_v27  ;;  %v4860_v1 = vunpack.c.l.b16 %v4648_v61  ;;  %v20721_v25 = vrot.slane %v15166_v41, 10 }
 0x261   : > { %v4652_v35 = vor.u32 %v4651_v40, %v4647_v24  ;;  %v15807_v40 = vpack.c.b16 %v5241_v52, %v5240_v45  ;;  %v5242_v24 = vunpack.c.l.b16 %v5166_v7 }
 0x262   : > { %4994 = vmatmul.bf16.gmra.mxu1 %v15617_v62  ;;  %v5167_v62 = vrot.slane %v5165_v47, 4  ;;  %v4634_v49 = vsel %vm12892_vm4, %v4629_v16, %v15694_v26  ;;  %v20727_v26 = vrot.slane %v15149_v5, 6  ;;  %v20730_v5 = vld [vmem:[#allocation22_spill] sm:$0xff] }
 0x263   : > { %v4653_v51 = vrot.slane %v4652_v35, 4  ;;  %20720 = vst [vmem:[#allocation151_spill] sm:$0xff] %v15807_v40 }
 0x264   : > { %v3953_v0 = vpop.f32.mrf.mxu1  ;;  %v5169_v50 = vsel %vm12608_vm2, %v5167_v62, %v5168_v63  ;;  %v4236_v62 = vunpack.c.l.b16 %v15797_v44  ;;  %v4237_v63 = vunpack.c.l.b16 %v15659_v21 }
 0x265   : > { %v15805_v54 = vadd.f32 %v15518_v46, %v3953_v0  ;;  %v4658_v13 = vsel %vm12892_vm4, %v4653_v51, %v4657_v4  ;;  %v5243_v35 = vunpack.c.l.b16 %v5169_v50  ;;  %v6010_v46 = vsel %vm15096_vm8, %v20721_v25, %v6009_v57  ;;  %v12389_v25 = vld [vmem:[%s19976_s1 + $0x158] sm:$0xff] }
 0x266   : > { %v4861_v33 = vunpack.c.l.b16 %v4658_v13  ;;  %v6011_v0 = vrot.slane %v6009_v57, 4  ;;  %5387 = vmatmul.bf16.gmra.mxu2 %v15807_v40  ;;  %v15821_v4 = vpack.c.b16 %v6095_v55, %v6094_v8  ;;  %v993_v57 = vadd.f32 %v15405_v39, %v15663_v10 }
 0x267   : > { %20719 = vst [vmem:[#allocation150_spill] sm:$0xff] %v15805_v54  ;;  %v4366_v52 = vpop.f32.mrf.mxu3  ;;  %v15832_v45 = vpack.c.b16 %v5243_v35, %v5242_v24  ;;  %v6096_v61 = vunpack.c.l.b16 %v6010_v46  ;;  %v15840_v16 = vpack.c.b16 %v4237_v63, %v4236_v62  ;;  %v4859_v8 = vunpack.c.l.b16 %v4634_v49  ;;  %v20734_v49 = vld [vmem:[#allocation14_spill] sm:$0xff]  ;;  %v20735_v62 = vld [vmem:[#allocation9_spill] sm:$0xff] }
 0x268   : > { %20722 = vst [vmem:[#allocation152_spill] sm:$0xff] %v15821_v4  ;;  %v15828_v27 = vadd.f32 %v4366_v52, %v14909_v30  ;;  %v15830_v47 = vpack.c.b16 %v4861_v33, %v4860_v1  ;;  %v6013_v55 = vsel %vm15096_vm8, %v6011_v0, %v20727_v26  ;;  %v4624_v30 = vsel %vm12892_vm4, %v4619_v28, %v15754_v23  ;;  %v12096_v0 = vld [vmem:[%s19982_s7 + $0xc0] sm:$0xff] }
 0x269   : > { %v15825_v7 = vpop.f32.mrf.mxu2  ;;  %20726 = vst [vmem:[#allocation156_spill] sm:$0xff] %v15832_v45  ;;  %v6097_v51 = vunpack.c.l.b16 %v6013_v55  ;;  %v931_v1 = vmul.f32 %v15300_v2, %v20730_v5  ;;  %v1053_v50 = vmax.f32 %v993_v57, 0.0  ;;  %v4858_v24 = vunpack.c.l.b16 %v4624_v30  ;;  %4395 = vmatmul.bf16.gmra.mxu3 %v15840_v16 }
 0x26a   : > { %20723 = vst [vmem:[#allocation153_spill] sm:$0xff] %v15825_v7  ;;  %6235 = vmatmul.bf16.gmra.mxu0 %v15821_v4  ;;  %5834 = vmatpush.bf16.msra.mxu3 %v12096_v0  ;;  %v935_v52 = vmul.f32 %v15300_v2, %v20734_v49  ;;  %v15870_v63 = vpack.c.bf16 %v20735_v62, %v20735_v62  ;;  %v20158_v57 = vshrl.u32 %v15269_v17, 16  ;;  %v6016_v49 = vrot.slane %v15269_v17, 6 }
 0x26b   : > { %20724 = vst [vmem:[#allocation154_spill] sm:$0xff] %v15828_v27  ;;  %v15846_v13 = vpack.c.b16 %v6097_v51, %v6096_v61  ;;  %v15854_v35 = vpack.c.b16 %v4859_v8, %v4858_v24  ;;  %v995_v28 = vadd.f32 %v15405_v39, %v931_v1  ;;  %v1113_v46 = vmul.f32 %v12389_v25, %v1053_v50 }
 0x26c   : > { %20725 = vst [vmem:[#allocation155_spill] sm:$0xff] %v15830_v47  ;;  %v20161_v61 = vshrl.u32 %v15385_v58, 16  ;;  %v20162_v51 = vshll.u32 %v15385_v58, 16  ;;  %v5172_v8 = vrot.slane %v15544_v48, 5  ;;  %v4238_v50 = vunpack.c.l.b16 %v15870_v63 }
 0x26d   : > { %20728 = vst [vmem:[#allocation157_spill] sm:$0xff] %v15840_v16  ;;  %v15872_v26 = vpack.c.bf16 %v1113_v46, %v1113_v46  ;;  %v15894_v0 = vadd.f32 %v15405_v39, %v935_v52  ;;  %v5175_v62 = vrot.slane %v15583_v38, 5  ;;  %v20739_v52 = vshll.u32 %v15269_v17, 16 }
 0x26e   : > { %20729 = vst [vmem:[#allocation158_spill] sm:$0xff] %v15846_v13  ;;  %v4686_v55 = vrot.slane %v20161_v61, 4  ;;  %v5174_v4 = vrot.slane %v5172_v8, 4  ;;  %v20743_v16 = vshll.u32 %v15267_v31, 16  ;;  %v20745_v25 = vshll.u32 %v15344_v59, 16 }
 0x26f   : > { %v3956_v10 = vpop.f32.mrf.mxu1  ;;  %20732 = vst [vmem:[#allocation159_spill] sm:$0xff] %v15854_v35  ;;  %v4239_v24 = vunpack.c.l.b16 %v15872_v26  ;;  %v10882_v54 = vrot.slane %v15797_v44, 9 }
 0x270   : > { %v15852_v33 = vadd.f32 %v15578_v3, %v3956_v10  ;;  %v1055_v3 = vmax.f32 %v995_v28, 0.0  ;;  %v12390_v10 = vld [vmem:[%s19976_s1 + $0x168] sm:$0xff] }
 0x271   : > { %v15857_v23 = vpop.f32.mrf.mxu2 }
 0x272   : > { %20731 = vst [vmem:[#allocation22_spill] sm:$0xff] %v15852_v33  ;;  %4999 = vmatmul.bf16.gmra.mxu1 %v15854_v35  ;;  %v1115_v28 = vmul.f32 %v12390_v10, %v1055_v3  ;;  %v4689_v3 = vrot.slane %v20162_v51, 5  ;;  %v20749_v35 = vshll.u32 %v15436_v20, 16 }
 0x273   : > { %20733 = vst [vmem:[#allocation160_spill] sm:$0xff] %v15857_v23 }
 0x274   : > { %v15919_v51 = vpack.c.bf16 %v1115_v28, %v1115_v28 }
 0x276   : > { %5392 = vmatmul.bf16.gmra.mxu2 %v15832_v45  ;;  %v20741_v45 = vld [vmem:[#allocation27_spill] sm:$0xff] }
 0x277   : > { %v3958_v30 = vpop.f32.mrf.mxu1  ;;  %v15882_v1 = vpop.f32.mrf.mxu0  ;;  %v15917_v61 = vmul.f32 %v15300_v2, %v20741_v45  ;;  %v5176_v2 = vsel %vm12608_vm2, %v5174_v4, %v5175_v62  ;;  %v20746_v45 = vshll.u32 %v15448_v12, 16  ;;  %v4695_v4 = vrot.slane %v20749_v35, 5 }
 0x278   : > { %v15880_v5 = vadd.f32 %v15639_v22, %v3958_v30  ;;  %20737 = vst [vmem:[#allocation9_spill] sm:$0xff] %v15882_v1  ;;  %v4675_v30 = vrot.slane %v20158_v57, 4  ;;  %v15909_v22 = vrot.slane %v20739_v52, 5  ;;  %v15913_v57 = vpack.c.b16 %v4239_v24, %v4238_v50  ;;  %v20744_v1 = vld [vmem:[#allocation26_spill] sm:$0xff] }
 0x279   : > { %v15905_v10 = vpop.f32.mrf.mxu2  ;;  %v4665_v52 = vrot.slane %v20743_v16, 5  ;;  %v15927_v46 = vpack.c.bf16 %v20744_v1, %v20744_v1  ;;  %v15931_v50 = vrot.slane %v20745_v25, 5  ;;  %v6019_v24 = vrot.slane %v15344_v59, 6 }
 0x27a   : > { %20736 = vst [vmem:[#allocation14_spill] sm:$0xff] %v15880_v5  ;;  %6240 = vmatmul.bf16.gmra.mxu0 %v15846_v13  ;;  %v20742_v13 = vshrl.u32 %v15267_v31, 16  ;;  %4400 = vmatmul.bf16.gmra.mxu3 %v15913_v57  ;;  %v4676_v16 = vor.u32 %v4675_v30, %v15909_v22  ;;  %v10880_v1 = vrot.slane %v15542_v60, 9  ;;  %v4690_v59 = vor.u32 %v4689_v3, %v4686_v55 }
 0x27b   : > { %20738 = vst [vmem:[#allocation161_spill] sm:$0xff] %v15905_v10  ;;  %v6018_v10 = vrot.slane %v6016_v49, 4  ;;  %v20750_v62 = vshrl.u32 %v15436_v20, 16  ;;  %v5245_v30 = vunpack.c.l.b16 %v5176_v2  ;;  %v10990_v5 = vrot.slane %v15267_v31, 10 }
 0x27c   : > { %20740 = vst [vmem:[#allocation162_spill] sm:$0xff] %v15913_v57  ;;  %v4662_v40 = vrot.slane %v20742_v13, 4  ;;  %v4705_v13 = vrot.slane %v20746_v45, 5  ;;  %v5173_v45 = vsel %vm12608_vm2, %v10880_v1, %v5172_v8  ;;  %v4691_v3 = vrot.slane %v4690_v59, 4 }
 0x27d   : > { %v4699_v57 = vrot.slane %v20750_v62, 4  ;;  %v6020_v55 = vsel %vm15096_vm8, %v6018_v10, %v6019_v24  ;;  %v6023_v35 = vrot.slane %v15436_v20, 6  ;;  %v20752_v62 = vshrl.u32 %v20612_v32, 16 }
 0x27e   : > { %v4666_v7 = vor.u32 %v4665_v52, %v4662_v40  ;;  %v10991_v8 = vrot.slane %v15385_v58, 10  ;;  %v6026_v52 = vrot.slane %v15448_v12, 6  ;;  %v4677_v1 = vrot.slane %v4676_v16, 4 }
 0x27f   : > { %v4965_v28 = vpop.f32.mrf.mxu1  ;;  %v15944_v25 = vpop.f32.mrf.mxu0  ;;  %v15961_v40 = vrot.slane %v20752_v62, 5  ;;  %v20754_v24 = vshll.u32 %v20612_v32, 16  ;;  %v6099_v62 = vunpack.c.l.b16 %v6020_v55  ;;  %v6025_v12 = vrot.slane %v6023_v35, 4 }
 0x280   : > { %v15942_v23 = vadd.f32 %v4965_v28, %v14776_v42  ;;  %20748 = vst [vmem:[#allocation26_spill] sm:$0xff] %v15944_v25  ;;  %v15954_v42 = vpop.f32.mrf.mxu3  ;;  %v4700_v28 = vor.u32 %v4699_v57, %v4695_v4  ;;  %v5244_v25 = vunpack.c.l.b16 %v5173_v45  ;;  %v4696_v57 = vsel %vm12892_vm4, %v4691_v3, %v4695_v4 }
 0x281   : > { %20751 = vst [vmem:[#allocation163_spill] sm:$0xff] %v15954_v42  ;;  %v15965_v2 = vpop.f32.mrf.mxu2  ;;  %v6017_v42 = vsel %vm15096_vm8, %v10990_v5, %v6016_v49  ;;  %v15973_v59 = vrot.slane %v20754_v24, 6  ;;  %v4667_v20 = vrot.slane %v4666_v7, 4  ;;  %v4682_v16 = vsel %vm12892_vm4, %v4677_v1, %v15931_v50 }
 0x282   : > { %20747 = vst [vmem:[#allocation27_spill] sm:$0xff] %v15942_v23  ;;  %5004 = vmatmul.bf16.gmra.mxu1 %v15830_v47  ;;  %v4701_v10 = vrot.slane %v4700_v28, 4  ;;  %v6024_v47 = vsel %vm15096_vm8, %v10991_v8, %v6023_v35  ;;  %v15980_v45 = vpack.c.b16 %v5245_v30, %v5244_v25  ;;  %v6098_v32 = vunpack.c.l.b16 %v6017_v42 }
 0x283   : > { %20753 = vst [vmem:[#allocation164_spill] sm:$0xff] %v15965_v2  ;;  %v4864_v4 = vunpack.c.l.b16 %v4696_v57  ;;  %v6027_v55 = vsel %vm15096_vm8, %v6025_v12, %v6026_v52  ;;  %v6100_v7 = vunpack.c.l.b16 %v6024_v47  ;;  %v4240_v50 = vunpack.c.l.b16 %v15919_v51  ;;  %v20760_v52 = vld [vmem:[#allocation6_spill] sm:$0xff]  ;;  %v20778_v2 = vld [vmem:[#allocation7_spill] sm:$0xff] }
 0x284   : > { %20755 = vst [vmem:[#allocation165_spill] sm:$0xff] %v15980_v45  ;;  %v4706_v5 = vsel %vm12892_vm4, %v4701_v10, %v4705_v13  ;;  %v6101_v35 = vunpack.c.l.b16 %v6027_v55  ;;  %v4241_v25 = vunpack.c.l.b16 %v15927_v46  ;;  %v15993_v30 = vpack.c.b16 %v6099_v62, %v6098_v32 }
 0x285   : > { %v4865_v3 = vunpack.c.l.b16 %v4706_v5  ;;  %v5179_v42 = vrot.slane %v15712_v56, 5  ;;  %v16002_v1 = vpack.c.bf16 %v20760_v52, %v20760_v52  ;;  %v1059_v10 = vmax.f32 %v15894_v0, 0.0  ;;  %v20764_v5 = vld [vmem:[#allocation83_spill] sm:$0xff] }
 0x286   : > { %5397 = vmatmul.bf16.gmra.mxu2 %v15980_v45  ;;  %20758 = vst [vmem:[#allocation168_spill] sm:$0xff] %v15993_v30  ;;  %v16004_v47 = vpack.c.b16 %v6101_v35, %v6100_v7  ;;  %v5182_v24 = vrot.slane %v15690_v9, 5  ;;  %v4672_v62 = vsel %vm12892_vm4, %v4667_v20, %v15909_v22  ;;  %v4863_v55 = vunpack.c.l.b16 %v4682_v16  ;;  %v12391_v16 = vld [vmem:[%s19976_s1 + $0x188] sm:$0xff]  ;;  %v20771_v20 = vld [vmem:[#allocation11_spill] sm:$0xff] }
 0x287   : > { %v15984_v49 = vpop.f32.mrf.mxu1  ;;  %v15988_v28 = vpop.f32.mrf.mxu0  ;;  %v15995_v13 = vpack.c.b16 %v4865_v3, %v4864_v4  ;;  %20761 = vst [vmem:[#allocation6_spill] sm:$0xff] %v16002_v1  ;;  %v20177_v4 = vshll.u32 %v15659_v21, 16  ;;  %v1001_v3 = vadd.f32 %v15405_v39, %v15917_v61  ;;  %v16020_v0 = vpack.c.b16 %v4241_v25, %v4240_v50  ;;  %v20769_v25 = vld [vmem:[#allocation18_spill] sm:$0xff] }
 0x288   : > { %20756 = vst [vmem:[#allocation166_spill] sm:$0xff] %v15984_v49  ;;  %v4371_v57 = vpop.f32.mrf.mxu3  ;;  %v20767_v7 = vshrl.u32 %v15659_v21, 16  ;;  %v5181_v52 = vrot.slane %v5179_v42, 4  ;;  %v4862_v61 = vunpack.c.l.b16 %v4672_v62  ;;  %v1119_v50 = vmul.f32 %v12391_v16, %v1059_v10 }
 0x289   : > { %20757 = vst [vmem:[#allocation167_spill] sm:$0xff] %v15988_v28  ;;  %v16012_v12 = vpop.f32.mrf.mxu2  ;;  %v16015_v32 = vadd.f32 %v4371_v57, %v20764_v5  ;;  %v16034_v8 = vrot.slane %v20177_v4, 6  ;;  %v4780_v39 = vshrl.u32 %v15870_v63, 16  ;;  %v1061_v62 = vmax.f32 %v1001_v3, 0.0 }
 0x28a   : > { %20759 = vst [vmem:[#allocation169_spill] sm:$0xff] %v15995_v13  ;;  %6245 = vmatmul.bf16.gmra.mxu0 %v15993_v30  ;;  %v16024_v35 = vrot.slane %v20767_v7, 4  ;;  %v20768_v57 = vmov %v20767_v7  ;;  %4405 = vmatmul.bf16.gmra.mxu3 %v16020_v0  ;;  %v16043_v7 = vpack.c.bf16 %v20769_v25, %v20769_v25  ;;  %v5183_v4 = vsel %vm12608_vm2, %v5181_v52, %v5182_v24  ;;  %v20775_v25 = vld [vmem:[#allocation61_spill] sm:$0xff] }
 0x28b   : > { %20762 = vst [vmem:[#allocation170_spill] sm:$0xff] %v16004_v47  ;;  %v16030_v5 = vrot.slane %v20768_v57, 5  ;;  %v10881_v57 = vrot.slane %v15710_v19, 9  ;;  %v16052_v45 = vpack.c.b16 %v4863_v55, %v4862_v61  ;;  %v4783_v10 = vshll.u32 %v15870_v63, 16  ;;  %v12127_v61 = vld [vmem:[%s19982_s7 + $0x1b8] sm:$0xff] }
 0x28c   : > { %20763 = vst [vmem:[#allocation171_spill] sm:$0xff] %v16012_v12  ;;  %v20776_v28 = vshrl.u32 %v20775_v25, 16  ;;  %v20777_v24 = vshll.u32 %v20775_v25, 16  ;;  %v16077_v25 = vpack.c.bf16 %v1119_v50, %v1119_v50  ;;  %v6926_v3 = vshrl.u32 %v16043_v7, 16  ;;  %6598 = vmatpush.bf16.msrb.mxu2 %v12127_v61 }
 0x28d   : > { %20765 = vst [vmem:[#allocation83_spill] sm:$0xff] %v16015_v32  ;;  %v5180_v16 = vsel %vm12608_vm2, %v10881_v57, %v5179_v42  ;;  %v20779_v42 = vshll.u32 %v20778_v2, 16  ;;  %v16090_v50 = vrot.slane %v4780_v39, 4  ;;  %v16094_v49 = vrot.slane %v4780_v39, 5 }
 0x28e   : > { %20766 = vst [vmem:[#allocation172_spill] sm:$0xff] %v16020_v0  ;;  %v5522_v12 = vrot.slane %v20776_v28, 5  ;;  %v5523_v52 = vrot.slane %v20777_v24, 6  ;;  %v12135_v28 = vld [vmem:[%s19982_s7 + $0x1f8] sm:$0xff]  ;;  %v16092_v24 = vrot.slane %v4783_v10, 5  ;;  %v16102_v33 = vrot.slane %v6926_v3, 5 }
 0x28f   : > { %20770 = vst [vmem:[#allocation18_spill] sm:$0xff] %v16043_v7  ;;  %v4970_v22 = vpop.f32.mrf.mxu1  ;;  %v16054_v0 = vpop.f32.mrf.mxu0  ;;  %v16075_v57 = vrot.slane %v20779_v42, 5  ;;  %6796 = vmatpush.bf16.msrb.mxu3 %v12135_v28  ;;  %v20814_v1 = vshrl.u32 %v15542_v60, 16  ;;  %v20816_v17 = vrot.slane %v20778_v2, 5 }
 0x290   : > { %v16050_v30 = vadd.f32 %v4970_v22, %v20771_v20  ;;  %20773 = vst [vmem:[#allocation173_spill] sm:$0xff] %v16052_v45  ;;  %v5247_v22 = vunpack.c.l.b16 %v5183_v4  ;;  %v16083_v4 = vpop.f32.mrf.mxu3 }
 0x291   : > { %20774 = vst [vmem:[#allocation174_spill] sm:$0xff] %v16054_v0  ;;  %v16081_v55 = vpop.f32.mrf.mxu2 }
 0x292   : > { %20772 = vst [vmem:[#allocation11_spill] sm:$0xff] %v16050_v30  ;;  %5009 = vmatmul.bf16.gmra.mxu1 %v16052_v45  ;;  %v12392_v45 = vld [vmem:[%s19976_s1 + $0x198] sm:$0xff]  ;;  %v5246_v30 = vunpack.c.l.b16 %v5180_v16  ;;  %v6030_v16 = vrot.slane %v15544_v48, 6 }
 0x293   : > { %20780 = vst [vmem:[#allocation61_spill] sm:$0xff] %v16077_v25  ;;  %v1121_v42 = vmul.f32 %v12392_v45, %v1061_v62  ;;  %v20785_v45 = vshll.u32 %v16043_v7, 16 }
 0x294   : > { %20781 = vst [vmem:[#allocation7_spill] sm:$0xff] %v16081_v55  ;;  %v5524_v55 = vor.u32 %v5523_v52, %v5522_v12  ;;  %v16100_v23 = vpack.c.b16 %v5247_v22, %v5246_v30  ;;  %v20788_v12 = vor.u32 %v15973_v59, %v15961_v40  ;;  %v20789_v30 = vld [vmem:[#allocation19_spill] sm:$0xff]  ;;  %v12143_v40 = vld [vmem:[%s19982_s7 + $0x238] sm:$0xff] }
 0x295   : > { %20782 = vst [vmem:[#allocation175_spill] sm:$0xff] %v16083_v4  ;;  %v16096_v4 = vrot.slane %v4783_v10, 6  ;;  %v16106_v62 = vrot.slane %v20785_v45, 6  ;;  %v16115_v52 = vpack.c.bf16 %v1121_v42, %v1121_v42  ;;  %v12119_v45 = vld [vmem:[%s19982_s7 + $0x178] sm:$0xff]  ;;  %v20791_v42 = vld [vmem:[#allocation55_spill] sm:$0xff]  ;;  %7001 = vmatpush.bf16.msra.mxu0 %v12143_v40 }
 0x296   : > { %20783 = vst [vmem:[#allocation176_spill] sm:$0xff] %v16100_v23  ;;  %v5521_v39 = vrot.slane %v20788_v12, 4  ;;  %5402 = vmatmul.bf16.gmra.mxu2 %v16100_v23  ;;  %v5482_v12 = vshrl.u32 %v20791_v42, 16  ;;  %v5526_v20 = vrot.slane %v5524_v55, 4  ;;  %6384 = vmatpush.bf16.msrb.mxu1 %v12119_v45  ;;  %v20792_v22 = vld [vmem:[#allocation23_spill] sm:$0xff]  ;;  %v20805_v58 = vshll.u32 %v20791_v42, 16 }
 0x297   : > { %20784 = vst [vmem:[#allocation177_spill] sm:$0xff] %v16102_v33  ;;  %v16109_v61 = vpop.f32.mrf.mxu1  ;;  %v16119_v28 = vpop.f32.mrf.mxu0  ;;  %v20793_v23 = vshrl.u32 %v20792_v22, 16  ;;  %v20798_v33 = vld [vmem:[#allocation57_spill] sm:$0xff] }
 0x298   : > { %20786 = vst [vmem:[#allocation178_spill] sm:$0xff] %v16106_v62  ;;  %v5525_v0 = vsel %vm15706_vm12, %v5521_v39, %v5524_v55  ;;  %v20795_v39 = vld [vmem:[#allocation24_spill] sm:$0xff]  ;;  %v20800_v45 = vor.u32 %v20798_v33, %v20799_v37  ;;  %v5485_v37 = vrot.slane %v20805_v58, 6  ;;  %v20806_v33 = vshll.u32 %v20789_v30, 16 }
 0x299   : > { %20787 = vst [vmem:[#allocation179_spill] sm:$0xff] %v16109_v61  ;;  %v16138_v59 = vpop.f32.mrf.mxu2  ;;  %v4376_v61 = vpop.f32.mrf.mxu3  ;;  %v20796_v55 = vshrl.u32 %v20795_v39, 16  ;;  %v20797_v3 = vshll.u32 %v20795_v39, 16  ;;  %v5723_v7 = vunpack.c.l.b16 %v5525_v0  ;;  %v20808_v0 = vshrl.u32 %v15544_v48, 16 }
 0x29a   : > { %20790 = vst [vmem:[#allocation19_spill] sm:$0xff] %v16119_v28  ;;  %v5473_v28 = vrot.slane %v20793_v23, 5  ;;  %6250 = vmatmul.bf16.gmra.mxu0 %v16004_v47  ;;  %v5532_v40 = vsel %vm15706_vm12, %v5526_v20, %v20800_v45  ;;  %v20801_v23 = vld [vmem:[#allocation91_spill] sm:$0xff]  ;;  %v20803_v47 = vshll.u32 %v20792_v22, 16  ;;  %v16162_v20 = vrot.slane %v20806_v33, 5  ;;  %5835 = vmatmul.bf16.vlgmr.msra.gmra.mxu3 %v15769_v18 }
 0x29b   : > { %20794 = vst [vmem:[#allocation55_spill] sm:$0xff] %v16138_v59  ;;  %v5477_v62 = vrot.slane %v20796_v55, 5  ;;  %v5478_v10 = vrot.slane %v20797_v3, 6  ;;  %v16151_v31 = vadd.f32 %v4376_v61, %v20801_v23  ;;  %v5724_v32 = vunpack.c.l.b16 %v5532_v40  ;;  %v20811_v61 = vld [vmem:[#allocation44_spill] sm:$0xff] }
 0x29c   : > { %v5474_v59 = vrot.slane %v20803_v47, 6  ;;  %v20804_v55 = vrot.slane %v15659_v21, 5  ;;  %v5484_v3 = vrot.slane %v5482_v12, 5  ;;  %v6033_v22 = vrot.slane %v15583_v38, 6 }
 0x29d   : > { %20802 = vst [vmem:[#allocation23_spill] sm:$0xff] %v16151_v31  ;;  %v16167_v47 = vpack.c.b16 %v5724_v32, %v5723_v7  ;;  %v4723_v45 = vrot.slane %v20808_v0, 4  ;;  %v20809_v12 = vshll.u32 %v15544_v48, 16  ;;  %v6032_v7 = vrot.slane %v6030_v16, 4 }
 0x29e   : > { %v5188_v39 = vrot.slane %v20804_v55, 4  ;;  %v20810_v58 = vmov %v20804_v55  ;;  %v5479_v55 = vor.u32 %v5478_v10, %v5477_v62  ;;  %v5475_v0 = vor.u32 %v5474_v59, %v5473_v28 }
 0x29f   : > { %20807 = vst [vmem:[#allocation24_spill] sm:$0xff] %v16167_v47  ;;  %v4975_v40 = vpop.f32.mrf.mxu1  ;;  %v16173_v42 = vrot.slane %v20809_v12, 5  ;;  %v5187_v23 = vsel %vm12608_vm2, %v10882_v54, %v20810_v58  ;;  %v16183_v32 = vpop.f32.mrf.mxu0  ;;  %v4710_v48 = vrot.slane %v20814_v1, 4  ;;  %v20815_v12 = vshll.u32 %v15542_v60, 16 }
 0x2a0   : > { %v16181_v18 = vadd.f32 %v4975_v40, %v20811_v61  ;;  %20813 = vst [vmem:[#allocation56_spill] sm:$0xff] %v16183_v32  ;;  %v5190_v54 = vsel %vm12608_vm2, %v5188_v39, %v20816_v17  ;;  %v5486_v62 = vor.u32 %v5485_v37, %v5484_v3  ;;  %v5248_v61 = vunpack.c.l.b16 %v5187_v23  ;;  %v20818_v39 = vld [vmem:[#allocation70_spill] sm:$0xff] }
 0x2a1   : > { %v4713_v31 = vrot.slane %v20815_v12, 5  ;;  %v10992_v40 = vrot.slane %v15542_v60, 10  ;;  %v6034_v28 = vsel %vm15096_vm8, %v6032_v7, %v6033_v22  ;;  %v16200_v58 = vpop.f32.mrf.mxu2  ;;  %v4724_v12 = vor.u32 %v4723_v45, %v16173_v42 }
 0x2a2   : > { %20812 = vst [vmem:[#allocation57_spill] sm:$0xff] %v16181_v18  ;;  %5014 = vmatmul.bf16.gmra.mxu1 %v15995_v13  ;;  %v5481_v17 = vrot.slane %v5479_v55, 4  ;;  %v20819_v3 = vshrl.u32 %v20818_v39, 16  ;;  %v20820_v33 = vshll.u32 %v15583_v38, 16  ;;  %v5249_v10 = vunpack.c.l.b16 %v5190_v54 }
 0x2a3   : > { %20817 = vst [vmem:[#allocation91_spill] sm:$0xff] %v16200_v58  ;;  %v6031_v32 = vsel %vm15096_vm8, %v10992_v40, %v6030_v16  ;;  %v4714_v22 = vor.u32 %v4713_v31, %v4710_v48  ;;  %v6103_v7 = vunpack.c.l.b16 %v6034_v28  ;;  %v5476_v1 = vrot.slane %v5475_v0, 4 }
 0x2a4   : > { %v5537_v37 = vrot.slane %v20819_v3, 5  ;;  %v4729_v23 = vrot.slane %v20820_v33, 5  ;;  %v5487_v59 = vsel %vm15706_vm12, %v5481_v17, %v5486_v62  ;;  %v20821_v58 = vshll.u32 %v20818_v39, 16  ;;  %v20829_v17 = vld [vmem:[#allocation89_spill] sm:$0xff] }
 0x2a5   : > { %v20822_v13 = vshrl.u32 %v14839_v11, 16  ;;  %v16218_v33 = vpack.c.b16 %v5249_v10, %v5248_v61  ;;  %v4725_v16 = vrot.slane %v4724_v12, 4  ;;  %v6102_v31 = vunpack.c.l.b16 %v6031_v32  ;;  %v12126_v10 = vld [vmem:[%s19982_s7 + $0x1b0] sm:$0xff]  ;;  %v20826_v61 = vld [vmem:[#allocation30_spill] sm:$0xff]  ;;  %v20831_v62 = vld [vmem:[#allocation33_spill] sm:$0xff] }
 0x2a6   : > { %v5538_v45 = vrot.slane %v20821_v58, 6  ;;  %v5193_v48 = vrot.slane %v15872_v26, 5  ;;  %v5480_v0 = vsel %vm15706_vm12, %v5476_v1, %v5479_v55  ;;  %v20827_v32 = vshrl.u32 %v20826_v61, 16  ;;  %6599 = vmatpush.bf16.msrb.mxu2 %v12126_v10 }
 0x2a7   : > { %v16215_v18 = vrot.slane %v20822_v13, 5  ;;  %20823 = vst [vmem:[#allocation44_spill] sm:$0xff] %v16218_v33  ;;  %v16220_v54 = vpop.f32.mrf.mxu1  ;;  %v16227_v28 = vpop.f32.mrf.mxu0  ;;  %5407 = vmatmul.bf16.gmra.mxu2 %v16218_v33  ;;  %v5718_v13 = vunpack.c.l.b16 %v5487_v59  ;;  %v4715_v12 = vrot.slane %v4714_v22, 4  ;;  %v4730_v55 = vsel %vm12892_vm4, %v4725_v16, %v4729_v23  ;;  %v12125_v59 = vld [vmem:[%s19982_s7 + $0x1a8] sm:$0xff] }
 0x2a8   : > { %20824 = vst [vmem:[#allocation70_spill] sm:$0xff] %v16220_v54  ;;  %v5488_v58 = vrot.slane %v20827_v32, 5  ;;  %v16237_v1 = vpack.c.b16 %v6103_v7, %v6102_v31  ;;  %v5497_v39 = vshrl.u32 %v20829_v17, 16  ;;  %v5717_v3 = vunpack.c.l.b16 %v5480_v0  ;;  %v20835_v31 = vld [vmem:[#allocation68_spill] sm:$0xff] }
 0x2a9   : > { %20825 = vst [vmem:[#allocation180_spill] sm:$0xff] %v16227_v28  ;;  %v20830_v38 = vshll.u32 %v20826_v61, 16  ;;  %v20832_v33 = vshrl.u32 %v20831_v62, 16  ;;  %v20833_v22 = vshll.u32 %v20831_v62, 16  ;;  %v4720_v23 = vsel %vm12892_vm4, %v4715_v12, %v16173_v42  ;;  %v16253_v7 = vpop.f32.mrf.mxu2  ;;  %v16264_v12 = vpop.f32.mrf.mxu3 }
 0x2aa   : > { %20828 = vst [vmem:[#allocation30_spill] sm:$0xff] %v16237_v1  ;;  %6255 = vmatmul.bf16.gmra.mxu0 %v16237_v1  ;;  %v5195_v16 = vrot.slane %v5193_v48, 4  ;;  %v20836_v0 = vshrl.u32 %v20835_v31, 16  ;;  %v4867_v54 = vunpack.c.l.b16 %v4730_v55  ;;  %v6037_v62 = vrot.slane %v15712_v56, 6  ;;  %6600 = vmatpush.bf16.msrb.mxu2 %v12125_v59  ;;  %v20844_v59 = vld [vmem:[#allocation101_spill] sm:$0xff] }
 0x2ab   : > { %v5489_v40 = vrot.slane %v20830_v38, 6  ;;  %v5492_v32 = vrot.slane %v20832_v33, 5  ;;  %v5493_v28 = vrot.slane %v20833_v22, 6  ;;  %20834 = vst [vmem:[#allocation89_spill] sm:$0xff] %v16253_v7  ;;  %v20837_v38 = vshll.u32 %v20835_v31, 16 }
 0x2ac   : > { %v5533_v10 = vrot.slane %v20836_v0, 5  ;;  %v16261_v22 = vpack.c.b16 %v5718_v13, %v5717_v3  ;;  %v6040_v42 = vrot.slane %v15690_v9, 6  ;;  %20838 = vst [vmem:[#allocation33_spill] sm:$0xff] %v16264_v12  ;;  %v5499_v1 = vrot.slane %v5497_v39, 5 }
 0x2ad   : > { %v5534_v61 = vrot.slane %v20837_v38, 6  ;;  %v20839_v7 = vshll.u32 %v20829_v17, 16  ;;  %v5539_v25 = vor.u32 %v5538_v45, %v5537_v37  ;;  %v4866_v0 = vunpack.c.l.b16 %v4720_v23 }
 0x2ae   : > { %v20840_v31 = vshll.u32 %v15712_v56, 16  ;;  %5840 = vmatmul.bf16.gmra.mxu3 %v16261_v22  ;;  %v5490_v55 = vor.u32 %v5489_v40, %v5488_v58  ;;  %v5494_v13 = vor.u32 %v5493_v28, %v5492_v32  ;;  %v20841_v33 = vshrl.u32 %v15712_v56, 16  ;;  %v20882_v56 = vld [vmem:[#allocation64_spill] sm:$0xff] }
 0x2af   : > { %v5500_v60 = vrot.slane %v20839_v7, 6  ;;  %v4980_v3 = vpop.f32.mrf.mxu1  ;;  %v20842_v39 = vrot.slane %v15870_v63, 9  ;;  %v20843_v37 = vrot.slane %v20789_v30, 5  ;;  %v5535_v23 = vor.u32 %v5534_v61, %v5533_v10  ;;  %v16289_v58 = vpop.f32.mrf.mxu0 }
 0x2b0   : > { %v16270_v38 = vrot.slane %v20840_v31, 5  ;;  %v4747_v27 = vrot.slane %v20841_v33, 4  ;;  %v10993_v7 = vrot.slane %v15710_v19, 10  ;;  %v16285_v40 = vadd.f32 %v4980_v3, %v20844_v59  ;;  %20847 = vst [vmem:[#allocation181_spill] sm:$0xff] %v16289_v58  ;;  %v20852_v58 = vld [vmem:[#allocation76_spill] sm:$0xff] }
 0x2b1   : > { %v5194_v17 = vsel %vm12608_vm2, %v20842_v39, %v5193_v48  ;;  %v5197_v45 = vsel %vm12608_vm2, %v5195_v16, %v20843_v37  ;;  %v16287_v28 = vpack.c.b16 %v4867_v54, %v4866_v0  ;;  %v6039_v32 = vrot.slane %v6037_v62, 4  ;;  %v12124_v48 = vld [vmem:[%s19982_s7 + $0x1a0] sm:$0xff]  ;;  %v12123_v37 = vld [vmem:[%s19982_s7 + $0x198] sm:$0xff] }
 0x2b2   : > { %20845 = vst [vmem:[#allocation68_spill] sm:$0xff] %v16285_v40  ;;  %v20848_v33 = vshrl.u32 %v15710_v19, 16  ;;  %v20849_v16 = vshll.u32 %v15710_v19, 16  ;;  %v5501_v61 = vor.u32 %v5500_v60, %v5499_v1  ;;  %v5541_v39 = vrot.slane %v5539_v25, 4  ;;  %6601 = vmatpush.bf16.msrb.mxu2 %v12124_v48 }
 0x2b3   : > { %20846 = vst [vmem:[#allocation101_spill] sm:$0xff] %v16287_v28  ;;  %5019 = vmatmul.bf16.gmra.mxu1 %v16287_v28  ;;  %v5250_v3 = vunpack.c.l.b16 %v5194_v17  ;;  %v5251_v54 = vunpack.c.l.b16 %v5197_v45  ;;  %v6041_v0 = vsel %vm15096_vm8, %v6039_v32, %v6040_v42  ;;  %v5491_v59 = vrot.slane %v5490_v55, 4  ;;  %v20851_v45 = vld [vmem:[#allocation77_spill] sm:$0xff] }
 0x2b4   : > { %v4734_v31 = vrot.slane %v20848_v33, 4  ;;  %v4737_v10 = vrot.slane %v20849_v16, 5  ;;  %v12134_v33 = vld [vmem:[%s19982_s7 + $0x1f0] sm:$0xff]  ;;  %v16307_v16 = vpop.f32.mrf.mxu2  ;;  %v4748_v60 = vor.u32 %v4747_v27, %v16270_v38  ;;  %v5496_v1 = vrot.slane %v5494_v13, 4 }
 0x2b5   : > { %20850 = vst [vmem:[#allocation182_spill] sm:$0xff] %v16307_v16  ;;  %v5536_v17 = vrot.slane %v5535_v23, 4  ;;  %v20853_v12 = vor.u32 %v20851_v45, %v20852_v58  ;;  %v20854_v32 = vshll.u32 %v14839_v11, 16  ;;  %v20855_v55 = vshll.u32 %v15690_v9, 16  ;;  %6797 = vmatpush.bf16.msrb.mxu3 %v12134_v33  ;;  %v4381_v58 = vpop.f32.mrf.mxu3  ;;  %v20857_v9 = vld [vmem:[#allocation93_spill] sm:$0xff] }
 0x2b6   : > { %v6038_v16 = vsel %vm15096_vm8, %v10993_v7, %v6037_v62  ;;  %v5495_v27 = vsel %vm15706_vm12, %v5491_v59, %v5494_v13  ;;  %v4738_v23 = vor.u32 %v4737_v10, %v4734_v31  ;;  %v6105_v40 = vunpack.c.l.b16 %v6041_v0  ;;  %v20859_v62 = vld [vmem:[#allocation100_spill] sm:$0xff]  ;;  %6602 = vmatpush.bf16.msrb.mxu2 %v12123_v37 }
 0x2b7   : > { %v5547_v42 = vsel %vm15706_vm12, %v5541_v39, %v20853_v12  ;;  %v16317_v48 = vrot.slane %v20854_v32, 6  ;;  %v4753_v28 = vrot.slane %v20855_v55, 5  ;;  %v5502_v12 = vsel %vm15706_vm12, %v5496_v1, %v5501_v61  ;;  %v20856_v39 = vld [vmem:[#allocation29_spill] sm:$0xff]  ;;  %v16338_v10 = vpop.f32.mrf.mxu1  ;;  %v16340_v59 = vpop.f32.mrf.mxu0 }
 0x2b8   : > { %v5540_v11 = vsel %vm15706_vm12, %v5536_v17, %v5539_v25  ;;  %v5203_v45 = vrot.slane %v20856_v39, 5  ;;  %v5512_v32 = vshrl.u32 %v20857_v9, 16  ;;  %v16331_v55 = vpack.c.b16 %v5251_v54, %v5250_v3  ;;  %20861 = vst [vmem:[#allocation29_spill] sm:$0xff] %v16338_v10  ;;  %v12122_v3 = vld [vmem:[%s19982_s7 + $0x190] sm:$0xff] }
 0x2b9   : > { %v16334_v7 = vadd.f32 %v4381_v58, %v20859_v62  ;;  %v4749_v61 = vrot.slane %v4748_v60, 4  ;;  %v6104_v0 = vunpack.c.l.b16 %v6038_v16  ;;  %20862 = vst [vmem:[#allocation93_spill] sm:$0xff] %v16340_v59  ;;  %v5719_v25 = vunpack.c.l.b16 %v5495_v27  ;;  %v12118_v54 = vld [vmem:[%s19982_s7 + $0x170] sm:$0xff]  ;;  %v20867_v62 = vld [vmem:[#allocation42_spill] sm:$0xff] }
 0x2ba   : > { %20858 = vst [vmem:[#allocation77_spill] sm:$0xff] %v16331_v55  ;;  %5412 = vmatmul.bf16.gmra.mxu2 %v16331_v55  ;;  %v5720_v33 = vunpack.c.l.b16 %v5502_v12  ;;  %v5725_v37 = vunpack.c.l.b16 %v5540_v11  ;;  %v5726_v1 = vunpack.c.l.b16 %v5547_v42  ;;  %v4739_v17 = vrot.slane %v4738_v23, 4  ;;  %v12142_v27 = vld [vmem:[%s19982_s7 + $0x230] sm:$0xff]  ;;  %6385 = vmatpush.bf16.msrb.mxu1 %v12118_v54  ;;  %v12121_v12 = vld [vmem:[%s19982_s7 + $0x188] sm:$0xff]  ;;  %v20864_v42 = vld [vmem:[#allocation41_spill] sm:$0xff] }
 0x2bb   : > { %20860 = vst [vmem:[#allocation76_spill] sm:$0xff] %v16334_v7  ;;  %v4754_v16 = vsel %vm12892_vm4, %v4749_v61, %v4753_v28  ;;  %v16351_v60 = vpack.c.b16 %v6105_v40, %v6104_v0  ;;  %6603 = vmatpush.bf16.msrb.mxu2 %v12122_v3  ;;  %v20865_v23 = vshrl.u32 %v20864_v42, 16  ;;  %v20866_v28 = vshll.u32 %v20864_v42, 16  ;;  %7002 = vmatpush.bf16.msra.mxu0 %v12142_v27 }
 0x2bc   : > { %v20868_v61 = vshrl.u32 %v20867_v62, 16  ;;  %v16367_v31 = vpack.c.b16 %v5726_v1, %v5725_v37  ;;  %v4744_v3 = vsel %vm12892_vm4, %v4739_v17, %v16270_v38  ;;  %v16373_v54 = vpop.f32.mrf.mxu2  ;;  %v10884_v58 = vrot.slane %v15919_v51, 9 }
 0x2bd   : > { %20863 = vst [vmem:[#allocation100_spill] sm:$0xff] %v16351_v60  ;;  %v5503_v11 = vrot.slane %v20865_v23, 5  ;;  %v5504_v40 = vrot.slane %v20866_v28, 6  ;;  %6260 = vmatmul.bf16.gmra.mxu0 %v16351_v60  ;;  %v20871_v23 = vrot.slane %v15927_v46, 5  ;;  %v20872_v42 = vshll.u32 %v20867_v62, 16  ;;  %v20876_v62 = vld [vmem:[#allocation49_spill] sm:$0xff] }
 0x2be   : > { %v5507_v0 = vrot.slane %v20868_v61, 5  ;;  %20869 = vst [vmem:[#allocation41_spill] sm:$0xff] %v16367_v31  ;;  %v4869_v55 = vunpack.c.l.b16 %v4754_v16  ;;  %v20873_v37 = vshrl.u32 %v15797_v44, 16  ;;  %v20874_v61 = vshll.u32 %v15797_v44, 16 }
 0x2bf   : > { %20870 = vst [vmem:[#allocation42_spill] sm:$0xff] %v16373_v54  ;;  %v5202_v13 = vrot.slane %v20871_v23, 4  ;;  %v5508_v28 = vrot.slane %v20872_v42, 6  ;;  %v16384_v38 = vpack.c.b16 %v5720_v33, %v5719_v25  ;;  %v5514_v60 = vrot.slane %v5512_v32, 5  ;;  %v16390_v23 = vld [vmem:[%s19978_s3] ss:$0 sm:$0xff]  ;;  %v16394_v42 = vpop.f32.mrf.mxu3  ;;  %6604 = vmatpush.bf16.msrb.mxu2 %v12121_v12 }
 0x2c0   : > { %v4758_v1 = vrot.slane %v20873_v37, 4  ;;  %v4761_v59 = vrot.slane %v20874_v61, 5  ;;  %v939_v16 = vmul.f32 %v16390_v23, %v20876_v62  ;;  %20877 = vst [vmem:[#allocation49_spill] sm:$0xff] %v16394_v42  ;;  %v20878_v37 = vshll.u32 %v20857_v9, 16  ;;  %v4985_v62 = vpop.f32.mrf.mxu1 }
 0x2c1   : > { %20875 = vst [vmem:[#allocation183_spill] sm:$0xff] %v16384_v38  ;;  %v20879_v25 = vshrl.u32 %v15927_v46, 16  ;;  %v4868_v27 = vunpack.c.l.b16 %v4744_v3  ;;  %v20880_v32 = vshll.u32 %v15659_v21, 16  ;;  %v10994_v17 = vrot.slane %v15797_v44, 10  ;;  %5845 = vmatmul.bf16.gmra.mxu3 %v16384_v38  ;;  %v16419_v44 = vpop.f32.mrf.mxu0 }
 0x2c2   : > { %v5515_v54 = vrot.slane %v20878_v37, 6  ;;  %v20881_v10 = vrot.slane %v15927_v46, 5  ;;  %v5204_v37 = vsel %vm12608_vm2, %v5202_v13, %v5203_v45  ;;  %v5509_v3 = vor.u32 %v5508_v28, %v5507_v0  ;;  %20885 = vst [vmem:[#allocation185_spill] sm:$0xff] %v16419_v44  ;;  %v16429_v45 = vld [vmem:[%s19979_s4] ss:$0 sm:$0xff] }
 0x2c3   : > { %v16400_v33 = vrot.slane %v20879_v25, 4  ;;  %v16404_v61 = vrot.slane %v20880_v32, 5  ;;  %v5505_v25 = vor.u32 %v5504_v40, %v5503_v11  ;;  %v16415_v19 = vadd.f32 %v4985_v62, %v20882_v56  ;;  %v20892_v62 = vld [vmem:[#allocation59_spill] sm:$0xff] }
 0x2c4   : > { %v5201_v9 = vsel %vm12608_vm2, %v10884_v58, %v20881_v10  ;;  %v16417_v32 = vpack.c.b16 %v4869_v55, %v4868_v27  ;;  %v4762_v42 = vor.u32 %v4761_v59, %v4758_v1  ;;  %v20886_v12 = vrot.slane %v15659_v21, 6  ;;  %v12120_v10 = vld [vmem:[%s19982_s7 + $0x180] sm:$0xff] }
 0x2c5   : > { %20883 = vst [vmem:[#allocation64_spill] sm:$0xff] %v16415_v19  ;;  %v1003_v56 = vadd.f32 %v16429_v45, %v939_v16  ;;  %v5516_v13 = vor.u32 %v5515_v54, %v5514_v60  ;;  %v20887_v55 = vshrl.u32 %v14844_v53, 16  ;;  %v20888_v59 = vshll.u32 %v14844_v53, 16  ;;  %6605 = vmatpush.bf16.msrb.mxu2 %v12120_v10  ;;  %v20897_v19 = vld [vmem:[#allocation108_spill] sm:$0xff] }
 0x2c6   : > { %20884 = vst [vmem:[#allocation184_spill] sm:$0xff] %v16417_v32  ;;  %v6046_v7 = vrot.slane %v20886_v12, 4  ;;  %5024 = vmatmul.bf16.gmra.mxu1 %v16417_v32  ;;  %v4772_v40 = vor.u32 %v16024_v35, %v16404_v61  ;;  %v5252_v0 = vunpack.c.l.b16 %v5201_v9  ;;  %v5253_v28 = vunpack.c.l.b16 %v5204_v37  ;;  %v16453_v35 = vpop.f32.mrf.mxu2  ;;  %v20894_v37 = vld [vmem:[#allocation67_spill] sm:$0xff] }
 0x2c7   : > { %v5552_v58 = vrot.slane %v20887_v55, 5  ;;  %v5553_v11 = vrot.slane %v20888_v59, 6  ;;  %v20889_v1 = vmov %v20886_v12  ;;  %v20890_v60 = vshrl.u32 %v15927_v46, 16  ;;  %20893 = vst [vmem:[#allocation59_spill] sm:$0xff] %v16453_v35  ;;  %v21072_v36 = vld [vmem:[#allocation49_spill] sm:$0xff] }
 0x2c8   : > { %v6045_v27 = vsel %vm15096_vm8, %v10994_v17, %v20889_v1  ;;  %v20891_v53 = vshll.u32 %v15927_v46, 16  ;;  %v941_v12 = vmul.f32 %v16390_v23, %v20892_v62  ;;  %v5511_v9 = vrot.slane %v5509_v3, 4 }
 0x2c9   : > { %v16445_v54 = vrot.slane %v20890_v60, 5  ;;  %v943_v21 = vmul.f32 %v16390_v23, %v20894_v37  ;;  %v4763_v55 = vrot.slane %v4762_v42, 4  ;;  %v20895_v17 = vrot.slane %v20778_v2, 6  ;;  %v16470_v42 = vpop.f32.mrf.mxu1 }
 0x2ca   : > { %v16449_v16 = vrot.slane %v20891_v53, 6  ;;  %v5506_v59 = vrot.slane %v5505_v25, 4  ;;  %v1063_v1 = vmax.f32 %v1003_v56, 0.0  ;;  %v6106_v60 = vunpack.c.l.b16 %v6045_v27  ;;  %v4386_v53 = vpop.f32.mrf.mxu3  ;;  %20898 = vst [vmem:[#allocation108_spill] sm:$0xff] %v16470_v42  ;;  %v20954_v42 = vld [vmem:[#allocation120_spill] sm:$0xff] }
 0x2cb   : > { %v6048_v10 = vsel %vm15096_vm8, %v6046_v7, %v20895_v17  ;;  %v5517_v44 = vsel %vm15706_vm12, %v5511_v9, %v5516_v13  ;;  %v5554_v62 = vor.u32 %v5553_v11, %v5552_v58  ;;  %v4773_v32 = vrot.slane %v4772_v40, 4  ;;  %v12117_v9 = vld [vmem:[%s19982_s7 + $0x168] sm:$0xff] }
 0x2cc   : > { %v16463_v35 = vpack.c.b16 %v5253_v28, %v5252_v0  ;;  %v16466_v38 = vadd.f32 %v4386_v53, %v20897_v19  ;;  %v5510_v2 = vsel %vm15706_vm12, %v5506_v59, %v5509_v3  ;;  %v6107_v7 = vunpack.c.l.b16 %v6048_v10  ;;  %v16483_v0 = vpop.f32.mrf.mxu0  ;;  %6386 = vmatpush.bf16.msrb.mxu1 %v12117_v9 }
 0x2cd   : > { %v20899_v25 = vshll.u32 %v15872_v26, 16  ;;  %v20900_v27 = vshrl.u32 %v15872_v26, 16  ;;  %v20901_v58 = vor.u32 %v16317_v48, %v16215_v18  ;;  %v1005_v19 = vadd.f32 %v16429_v45, %v941_v12  ;;  %20902 = vst [vmem:[#allocation186_spill] sm:$0xff] %v16483_v0  ;;  %v12141_v18 = vld [vmem:[%s19982_s7 + $0x228] sm:$0xff]  ;;  %v20931_v0 = vld [vmem:[#allocation53_spill] sm:$0xff] }
 0x2ce   : > { %20896 = vst [vmem:[#allocation67_spill] sm:$0xff] %v16463_v35  ;;  %v1007_v40 = vadd.f32 %v16429_v45, %v943_v21  ;;  %v4768_v3 = vsel %vm12892_vm4, %v4763_v55, %v16404_v61  ;;  %5417 = vmatmul.bf16.gmra.mxu2 %v16463_v35  ;;  %v5722_v28 = vunpack.c.l.b16 %v5517_v44  ;;  %v16495_v48 = vpack.c.b16 %v6107_v7, %v6106_v60  ;;  %v12395_v44 = vld [vmem:[%s19976_s1 + $0x1a8] sm:$0xff]  ;;  %v16508_v60 = vpop.f32.mrf.mxu2  ;;  %v20905_v7 = vld [vmem:[#allocation28_spill] sm:$0xff] }
 0x2cf   : > { %v16474_v56 = vrot.slane %v20899_v25, 5  ;;  %v4795_v13 = vrot.slane %v20900_v27, 4  ;;  %v5551_v11 = vrot.slane %v20901_v58, 4  ;;  %v6051_v12 = vrot.slane %v15872_v26, 6  ;;  %7003 = vmatpush.bf16.msra.mxu0 %v12141_v18  ;;  %20904 = vst [vmem:[#allocation188_spill] sm:$0xff] %v16508_v60  ;;  %v20906_v25 = vld [vmem:[#allocation48_spill] sm:$0xff] }
 0x2d0   : > { %20903 = vst [vmem:[#allocation187_spill] sm:$0xff] %v16495_v48  ;;  %v5556_v21 = vrot.slane %v5554_v62, 4  ;;  %v1123_v55 = vmul.f32 %v12395_v44, %v1063_v1  ;;  %v4778_v17 = vsel %vm12892_vm4, %v4773_v32, %v16075_v57  ;;  %v5721_v10 = vunpack.c.l.b16 %v5510_v2  ;;  %6265 = vmatmul.bf16.gmra.mxu0 %v16495_v48 }
 0x2d1   : > { %v5555_v37 = vsel %vm15706_vm12, %v5551_v11, %v5554_v62  ;;  %v4870_v59 = vunpack.c.l.b16 %v4768_v3  ;;  %v4786_v53 = vor.u32 %v16092_v24, %v16090_v50  ;;  %v4796_v62 = vor.u32 %v4795_v13, %v16474_v56  ;;  %v20910_v50 = vld [vmem:[#allocation35_spill] sm:$0xff]  ;;  %v20911_v13 = vld [vmem:[#allocation34_spill] sm:$0xff] }
 0x2d2   : > { %v20907_v1 = vor.u32 %v20905_v7, %v20906_v25  ;;  %v20908_v57 = vshll.u32 %v20856_v39, 16  ;;  %v16522_v2 = vpack.c.b16 %v5722_v28, %v5721_v10  ;;  %v5727_v58 = vunpack.c.l.b16 %v5555_v37  ;;  %v20912_v7 = vld [vmem:[#allocation43_spill] sm:$0xff]  ;;  %v476_v28 = vld [vmem:[%s19976_s1 + $0x1c8] sm:$0xff] }
 0x2d3   : > { %v1065_v3 = vmax.f32 %v1005_v19, 0.0  ;;  %v1067_v9 = vmax.f32 %v1007_v40, 0.0  ;;  %v4871_v18 = vunpack.c.l.b16 %v4778_v17  ;;  %v6053_v24 = vrot.slane %v6051_v12, 4  ;;  %v20914_v40 = vld [vmem:[#allocation71_spill] sm:$0xff]  ;;  %v4990_v17 = vpop.f32.mrf.mxu1 }
 0x2d4   : > { %v5562_v27 = vsel %vm15706_vm12, %v5556_v21, %v20907_v1  ;;  %v16520_v32 = vrot.slane %v20908_v57, 5  ;;  %20909 = vst [vmem:[#allocation28_spill] sm:$0xff] %v16522_v2  ;;  %v16526_v44 = vadd.f32 %v20911_v13, %v20910_v50  ;;  %v16530_v25 = vpack.c.bf16 %v20912_v7, %v20912_v7  ;;  %5850 = vmatmul.bf16.gmra.mxu3 %v16522_v2  ;;  %v20916_v57 = vld [vmem:[#allocation74_spill] sm:$0xff]  ;;  %v12116_v13 = vld [vmem:[%s19982_s7 + $0x160] sm:$0xff] }
 0x2d5   : > { %v5728_v11 = vunpack.c.l.b16 %v5562_v27  ;;  %v16532_v21 = vpack.c.bf16 %v1123_v55, %v1123_v55  ;;  %v944_v37 = vmul.f32 %v16390_v23, %v20914_v40  ;;  %v16542_v10 = vpack.c.b16 %v4871_v18, %v4870_v59  ;;  %v16547_v55 = vpop.f32.mrf.mxu0  ;;  %v12396_v40 = vld [vmem:[%s19976_s1 + $0x1b8] sm:$0xff]  ;;  %6387 = vmatpush.bf16.msrb.mxu1 %v12116_v13 }
 0x2d6   : > { %v4787_v1 = vrot.slane %v4786_v53, 4  ;;  %v4797_v27 = vrot.slane %v4796_v62, 4  ;;  %v16545_v50 = vadd.f32 %v4990_v17, %v20916_v57  ;;  %20918 = vst [vmem:[#allocation43_spill] sm:$0xff] %v16547_v55  ;;  %v20920_v59 = vshll.u32 %v15919_v51, 16 }
 0x2d7   : > { %v16538_v19 = vpack.c.b16 %v5728_v11, %v5727_v58  ;;  %20915 = vst [vmem:[#allocation35_spill] sm:$0xff] %v16542_v10  ;;  %v12140_v58 = vld [vmem:[%s19982_s7 + $0x220] sm:$0xff]  ;;  %v20919_v11 = vshrl.u32 %v15919_v51, 16  ;;  %v20921_v62 = vshll.u32 %v15927_v46, 16  ;;  %v1125_v17 = vmul.f32 %v12396_v40, %v1065_v3  ;;  %5029 = vmatmul.bf16.gmra.mxu1 %v16542_v10  ;;  %v12139_v3 = vld [vmem:[%s19982_s7 + $0x218] sm:$0xff] }
 0x2d8   : > { %20917 = vst [vmem:[#allocation34_spill] sm:$0xff] %v16545_v50  ;;  %v4809_v53 = vrot.slane %v20920_v59, 5  ;;  %v1127_v57 = vmul.f32 %v1067_v9, %v476_v28  ;;  %v20922_v61 = vrot.slane %v15870_v63, 10  ;;  %v20923_v35 = vrot.slane %v20789_v30, 6  ;;  %7004 = vmatpush.bf16.msra.mxu0 %v12140_v58  ;;  %v12133_v63 = vld [vmem:[%s19982_s7 + $0x1e8] sm:$0xff] }
 0x2d9   : > { %20913 = vst [vmem:[#allocation48_spill] sm:$0xff] %v16538_v19  ;;  %v4806_v7 = vrot.slane %v20919_v11, 4  ;;  %v4815_v18 = vrot.slane %v20921_v62, 5  ;;  %v16585_v9 = vadd.f32 %v16429_v45, %v944_v37  ;;  %v4802_v28 = vsel %vm12892_vm4, %v4797_v27, %v16162_v20  ;;  %6798 = vmatpush.bf16.msrb.mxu3 %v12133_v63  ;;  %v20950_v50 = vld [vmem:[#allocation10_spill] sm:$0xff] }
 0x2da   : > { %v6052_v48 = vsel %vm15096_vm8, %v20922_v61, %v6051_v12  ;;  %v6055_v11 = vsel %vm15096_vm8, %v6053_v24, %v20923_v35  ;;  %v20924_v12 = vshrl.u32 %v14978_v34, 16  ;;  %v20925_v61 = vshll.u32 %v14978_v34, 16  ;;  %v16587_v24 = vpop.f32.mrf.mxu2  ;;  %v12115_v34 = vld [vmem:[%s19982_s7 + $0x158] sm:$0xff] }
 0x2db   : > { %v4810_v59 = vor.u32 %v4809_v53, %v4806_v7  ;;  %v4820_v62 = vor.u32 %v16400_v33, %v4815_v18  ;;  %20926 = vst [vmem:[#allocation71_spill] sm:$0xff] %v16587_v24  ;;  %v4792_v33 = vsel %vm12892_vm4, %v4787_v1, %v16474_v56  ;;  %v10996_v58 = vrot.slane %v15919_v51, 10  ;;  %v20927_v7 = vld [vmem:[#allocation78_spill] sm:$0xff]  ;;  %6388 = vmatpush.bf16.msrb.mxu1 %v12115_v34 }
 0x2dc   : > { %v5563_v30 = vrot.slane %v20924_v12, 5  ;;  %v5564_v35 = vrot.slane %v20925_v61, 6  ;;  %v945_v37 = vmul.f32 %v16390_v23, %v20927_v7  ;;  %v20928_v53 = vshrl.u32 %v14980_v6, 16  ;;  %7005 = vmatpush.bf16.msra.mxu0 %v12139_v3  ;;  %v20937_v3 = vld [vmem:[#allocation60_spill] sm:$0xff] }
 0x2dd   : > { %v4811_v12 = vrot.slane %v4810_v59, 4  ;;  %v20929_v56 = vrot.slane %v15927_v46, 6  ;;  %v20930_v20 = vshll.u32 %v14980_v6, 16  ;;  %v6108_v13 = vunpack.c.l.b16 %v6052_v48  ;;  %v20932_v59 = vld [vmem:[#allocation65_spill] sm:$0xff]  ;;  %v16619_v6 = vpop.f32.mrf.mxu1 }
 0x2de   : > { %v5567_v40 = vrot.slane %v20928_v53, 5  ;;  %v6109_v61 = vunpack.c.l.b16 %v6055_v11  ;;  %v4821_v55 = vrot.slane %v4820_v62, 4  ;;  %v16609_v24 = vpack.c.bf16 %v20931_v0, %v20931_v0  ;;  %20934 = vst [vmem:[#allocation78_spill] sm:$0xff] %v16619_v6  ;;  %v16631_v62 = vpop.f32.mrf.mxu0  ;;  %6606 = vmatmul.bf16.vlgmr.msrb.gmra.mxu2 %v20937_v3  ;;  %v20949_v6 = vld [vmem:[#allocation8_spill] sm:$0xff] }
 0x2df   : > { %v6060_v1 = vrot.slane %v20929_v56, 4  ;;  %v5568_v27 = vrot.slane %v20930_v20, 6  ;;  %v4872_v10 = vunpack.c.l.b16 %v4792_v33  ;;  %v4873_v23 = vunpack.c.l.b16 %v4802_v28  ;;  %20936 = vst [vmem:[#allocation53_spill] sm:$0xff] %v16631_v62  ;;  %v20946_v20 = vld [vmem:[#allocation142_spill] sm:$0xff] }
 0x2e0   : > { %v5565_v7 = vor.u32 %v5564_v35, %v5563_v30  ;;  %v16611_v53 = vpack.c.bf16 %v1125_v17, %v1125_v17  ;;  %v16615_v56 = vpack.c.bf16 %v20932_v59, %v20932_v59  ;;  %v16617_v63 = vpack.c.bf16 %v1127_v57, %v1127_v57  ;;  %v12114_v35 = vld [vmem:[%s19982_s7 + $0x150] sm:$0xff] }
 0x2e1   : > { %v20935_v48 = vrot.slane %v15927_v46, 6  ;;  %v16629_v17 = vadd.f32 %v16429_v45, %v945_v37  ;;  %v4816_v57 = vsel %vm12892_vm4, %v4811_v12, %v4815_v18  ;;  %v20938_v30 = vrot.slane %v20856_v39, 6  ;;  %v12138_v45 = vld [vmem:[%s19982_s7 + $0x210] sm:$0xff]  ;;  %v16654_v18 = vpop.f32.mrf.mxu3  ;;  %6389 = vmatpush.bf16.msrb.mxu1 %v12114_v35 }
 0x2e2   : > { %20933 = vst [vmem:[#allocation74_spill] sm:$0xff] %v16617_v63  ;;  %v20939_v33 = vshrl.u32 %v15166_v41, 16  ;;  %v4826_v39 = vsel %vm12892_vm4, %v4821_v55, %v16520_v32  ;;  %v5569_v34 = vor.u32 %v5568_v27, %v5567_v40  ;;  %v20942_v37 = vshll.u32 %v15166_v41, 16  ;;  %7006 = vmatpush.bf16.msra.mxu0 %v12138_v45  ;;  %v16670_v59 = vpop.f32.mrf.mxu2 }
 0x2e3   : > { %v16625_v0 = vsel %vm15096_vm8, %v10996_v58, %v20935_v48  ;;  %v16640_v46 = vsel %vm15096_vm8, %v6060_v1, %v20938_v30  ;;  %v16652_v58 = vpack.c.b16 %v6109_v61, %v6108_v13  ;;  %20941 = vst [vmem:[#allocation60_spill] sm:$0xff] %v16654_v18  ;;  %v16663_v1 = vpack.c.b16 %v4873_v23, %v4872_v10  ;;  %v12137_v13 = vld [vmem:[%s19982_s7 + $0x208] sm:$0xff] }
 0x2e4   : > { %v16650_v28 = vrot.slane %v20939_v33, 5  ;;  %v16661_v12 = vrot.slane %v20942_v37, 6  ;;  %v5566_v61 = vrot.slane %v5565_v7, 4  ;;  %20944 = vst [vmem:[#allocation190_spill] sm:$0xff] %v16670_v59  ;;  %v16672_v32 = vunpack.c.l.b16 %v4816_v57  ;;  %v12113_v10 = vld [vmem:[%s19982_s7 + $0x148] sm:$0xff]  ;;  %5855 = vmatmul.bf16.gmra.mxu3 %v16167_v47 }
 0x2e5   : > { %20940 = vst [vmem:[#allocation65_spill] sm:$0xff] %v16652_v58  ;;  %6270 = vmatmul.bf16.gmra.mxu0 %v16652_v58  ;;  %v7512_v55 = vshrl.u32 %v16115_v52, 16  ;;  %v7515_v40 = vshll.u32 %v16115_v52, 16  ;;  %v16680_v27 = vunpack.c.l.b16 %v4826_v39  ;;  %v20235_v7 = vshll.u32 %v16530_v25, 16  ;;  %6390 = vmatpush.bf16.msrb.mxu1 %v12113_v10  ;;  %v12136_v10 = vld [vmem:[%s19982_s7 + $0x200] sm:$0xff] }
 0x2e6   : > { %20943 = vst [vmem:[#allocation189_spill] sm:$0xff] %v16663_v1  ;;  %v5570_v23 = vsel %vm15706_vm12, %v5566_v61, %v5569_v34  ;;  %v7525_v48 = vshrl.u32 %v16530_v25, 16  ;;  %v16688_v3 = vor.u32 %v16034_v8, %v16030_v5  ;;  %v7728_v57 = vrot.slane %v16530_v25, 5  ;;  %7007 = vmatpush.bf16.msra.mxu0 %v12137_v13  ;;  %v4995_v61 = vpop.f32.mrf.mxu1  ;;  %v12112_v13 = vld [vmem:[%s19982_s7 + $0x140] sm:$0xff] }
 0x2e7   : > { %v7514_v30 = vrot.slane %v7512_v55, 4  ;;  %v7517_v35 = vrot.slane %v7515_v40, 5  ;;  %v5571_v45 = vrot.slane %v5569_v34, 4  ;;  %v7523_v33 = vrot.slane %v20235_v7, 5  ;;  %v16702_v34 = vpop.f32.mrf.mxu0  ;;  %5034 = vmatmul.bf16.gmra.mxu1 %v16663_v1 }
 0x2e8   : > { %20945 = vst [vmem:[#allocation191_spill] sm:$0xff] %v16688_v3  ;;  %v7527_v39 = vrot.slane %v7525_v48, 4  ;;  %v8130_v37 = vrot.slane %v16530_v25, 6  ;;  %v5661_v11 = vrot.slane %v16688_v3, 4  ;;  %v7338_v8 = vunpack.c.l.b16 %v16115_v52 }
 0x2e9   : > { %v7339_v5 = vunpack.c.l.b16 %v16530_v25  ;;  %v11383_v41 = vrot.slane %v16115_v52, 9  ;;  %v16700_v58 = vadd.f32 %v4995_v61, %v20946_v20  ;;  %20948 = vst [vmem:[#allocation192_spill] sm:$0xff] %v16702_v34  ;;  %v7730_v7 = vrot.slane %v7728_v57, 4  ;;  %v4391_v60 = vpop.f32.mrf.mxu3  ;;  %6391 = vmatpush.bf16.msrb.mxu1 %v12112_v13 }
 0x2ea   : > { %v7731_v62 = vrot.slane %v16532_v21, 5  ;;  %v7518_v59 = vor.u32 %v7517_v35, %v7514_v30  ;;  %v20951_v3 = vor.u32 %v20949_v6, %v20950_v50  ;;  %v16724_v18 = vadd.f32 %v4391_v60, %v20954_v42  ;;  %7008 = vmatpush.bf16.msra.mxu0 %v12136_v10  ;;  %v16728_v35 = vpop.f32.mrf.mxu2 }
 0x2eb   : > { %20947 = vst [vmem:[#allocation142_spill] sm:$0xff] %v16700_v58  ;;  %v16718_v61 = vpack.c.b16 %v7339_v5, %v7338_v8  ;;  %v7729_v34 = vsel %vm12608_vm2, %v11383_v41, %v7728_v57  ;;  %v7528_v58 = vor.u32 %v7527_v39, %v7523_v33  ;;  %v5729_v30 = vunpack.c.l.b16 %v5570_v23 }
 0x2ec   : > { %v16716_v20 = vsel %vm15706_vm12, %v5661_v11, %v20951_v3  ;;  %v7732_v50 = vsel %vm12608_vm2, %v7730_v7, %v7731_v62  ;;  %v7750_v6 = vunpack.c.l.b16 %v7729_v34  ;;  %20955 = vst [vmem:[#allocation120_spill] sm:$0xff] %v16728_v35  ;;  %v20956_v11 = vld [vmem:[#allocation87_spill] sm:$0xff]  ;;  %v20957_v3 = vld [vmem:[#allocation86_spill] sm:$0xff]  ;;  %v7519_v39 = vrot.slane %v7518_v59, 4 }
 0x2ed   : > { %20952 = vst [vmem:[#allocation8_spill] sm:$0xff] %v16716_v20  ;;  %v20958_v8 = vor.u32 %v20956_v11, %v20957_v3  ;;  %v7751_v57 = vunpack.c.l.b16 %v7732_v50  ;;  %v7529_v5 = vrot.slane %v7528_v58, 4  ;;  %v7531_v60 = vshll.u32 %v16532_v21, 16 }
 0x2ee   : > { %20953 = vst [vmem:[#allocation10_spill] sm:$0xff] %v16718_v61  ;;  %v11480_v23 = vrot.slane %v16115_v52, 10  ;;  %v8132_v10 = vrot.slane %v8130_v37, 4  ;;  %v7524_v7 = vsel %vm12892_vm4, %v7519_v39, %v7523_v33  ;;  %v8133_v34 = vrot.slane %v16532_v21, 6  ;;  %v16746_v59 = vpop.f32.mrf.mxu1 }
 0x2ef   : > { %v5577_v41 = vsel %vm15706_vm12, %v5571_v45, %v20958_v8  ;;  %v16737_v62 = vpack.c.b16 %v7751_v57, %v7750_v6  ;;  %v7923_v13 = vrot.slane %v7512_v55, 5  ;;  %v7533_v45 = vrot.slane %v7531_v60, 5  ;;  %20961 = vst [vmem:[#allocation193_spill] sm:$0xff] %v16746_v59  ;;  %v20966_v57 = vld [vmem:[#allocation112_spill] sm:$0xff] }
 0x2f0   : > { %v5730_v42 = vunpack.c.l.b16 %v5577_v41  ;;  %v7552_v50 = vunpack.c.l.b16 %v7524_v7  ;;  %v8131_v58 = vsel %vm15096_vm8, %v11480_v23, %v8130_v37  ;;  %v8134_v52 = vsel %vm15096_vm8, %v8132_v10, %v8133_v34  ;;  %v16750_v41 = vpop.f32.mrf.mxu0  ;;  %6611 = vmatmul.bf16.gmra.mxu2 %v20966_v57  ;;  %v21018_v59 = vld [vmem:[#allocation12_spill] sm:$0xff] }
 0x2f1   : > { %20959 = vst [vmem:[#allocation87_spill] sm:$0xff] %v16737_v62  ;;  %v8152_v6 = vunpack.c.l.b16 %v8131_v58  ;;  %v7924_v3 = vrot.slane %v7515_v40, 6  ;;  %v7927_v8 = vrot.slane %v7525_v48, 5  ;;  %v20963_v33 = vunpack.c.l.b16 %v16625_v0  ;;  %v16763_v10 = vpop.f32.mrf.mxu3  ;;  %v20983_v62 = vld [vmem:[#allocation137_spill] sm:$0xff] }
 0x2f2   : > { %v16742_v11 = vpack.c.b16 %v5730_v42, %v5729_v30  ;;  %20962 = vst [vmem:[#allocation194_spill] sm:$0xff] %v16750_v41  ;;  %v20964_v55 = vunpack.c.l.b16 %v16640_v46  ;;  %v7534_v37 = vsel %vm12892_vm4, %v7529_v5, %v7533_v45  ;;  %v8153_v39 = vunpack.c.l.b16 %v8134_v52 }
 0x2f3   : > { %v20967_v42 = vshll.u32 %v16530_v25, 16  ;;  %v5580_v40 = vor.u32 %v16661_v12, %v16650_v28  ;;  %v7553_v48 = vunpack.c.l.b16 %v7534_v37  ;;  %v7925_v0 = vor.u32 %v7924_v3, %v7923_v13  ;;  %v16776_v25 = vpop.f32.mrf.mxu2 }
 0x2f4   : > { %20960 = vst [vmem:[#allocation86_spill] sm:$0xff] %v16742_v11  ;;  %v16756_v30 = vpack.c.b16 %v20964_v55, %v20963_v33  ;;  %v7932_v46 = vshrl.u32 %v16532_v21, 16  ;;  %v1069_v7 = vmax.f32 %v16629_v17, 0.0  ;;  %v16769_v34 = vpack.c.b16 %v8153_v39, %v8152_v6  ;;  %5860 = vmatmul.bf16.gmra.mxu3 %v16367_v31 }
 0x2f5   : > { %v7928_v23 = vrot.slane %v20967_v42, 6  ;;  %v7935_v33 = vrot.slane %v7531_v60, 6  ;;  %v16773_v5 = vpack.c.b16 %v16680_v27, %v16672_v32  ;;  %20970 = vst [vmem:[#allocation198_spill] sm:$0xff] %v16776_v25  ;;  %v20971_v28 = vshrl.u32 %v15872_v26, 16 }
 0x2f6   : > { %20965 = vst [vmem:[#allocation195_spill] sm:$0xff] %v16756_v30  ;;  %6275 = vmatmul.bf16.gmra.mxu0 %v16756_v30  ;;  %v20972_v13 = vshll.u32 %v15872_v26, 16  ;;  %v16782_v45 = vpack.c.b16 %v7553_v48, %v7552_v50  ;;  %v7926_v17 = vrot.slane %v7925_v0, 4  ;;  %v7934_v6 = vrot.slane %v7932_v46, 5  ;;  %v477_v26 = vld [vmem:[%s19976_s1 + $0x1d0] sm:$0xff]  ;;  %v5000_v42 = vpop.f32.mrf.mxu1 }
 0x2f7   : > { %20968 = vst [vmem:[#allocation196_spill] sm:$0xff] %v16769_v34  ;;  %v7929_v58 = vor.u32 %v7928_v23, %v7927_v8  ;;  %v5672_v12 = vrot.slane %v20971_v28, 5  ;;  %v8518_v60 = vshrl.u32 %v16609_v24, 16  ;;  %v5670_v32 = vor.u32 %v16096_v4, %v16094_v49  ;;  %v478_v28 = vld [vmem:[%s19976_s1 + $0x1d8] sm:$0xff]  ;;  %5039 = vmatmul.bf16.gmra.mxu1 %v16773_v5 }
 0x2f8   : > { %20969 = vst [vmem:[#allocation197_spill] sm:$0xff] %v16773_v5  ;;  %v5673_v21 = vrot.slane %v20972_v13, 6  ;;  %v8521_v3 = vshll.u32 %v16609_v24, 16  ;;  %v8527_v8 = vshll.u32 %v16611_v53, 16  ;;  %v7936_v55 = vor.u32 %v7935_v33, %v7934_v6  ;;  %v20981_v34 = vld [vmem:[#allocation20_spill] sm:$0xff] }
 0x2f9   : > { %20973 = vst [vmem:[#allocation199_spill] sm:$0xff] %v16782_v45  ;;  %v7931_v52 = vrot.slane %v7929_v58, 4  ;;  %v7930_v50 = vsel %vm15706_vm12, %v7926_v17, %v7929_v58  ;;  %v8520_v37 = vrot.slane %v8518_v60, 4  ;;  %v8531_v39 = vshrl.u32 %v16611_v53, 16  ;;  %v16806_v58 = vpop.f32.mrf.mxu0 }
 0x2fa   : > { %v5674_v27 = vor.u32 %v5673_v21, %v5672_v12  ;;  %v20974_v49 = vshrl.u32 %v15170_v14, 16  ;;  %v20975_v23 = vshll.u32 %v15170_v14, 16  ;;  %v5671_v0 = vrot.slane %v5670_v32, 4  ;;  %v20976_v12 = vld [vmem:[#allocation154_spill] sm:$0xff]  ;;  %20978 = vst [vmem:[#allocation200_spill] sm:$0xff] %v16806_v58 }
 0x2fb   : > { %v16804_v13 = vadd.f32 %v5000_v42, %v20976_v12  ;;  %v7937_v33 = vsel %vm15706_vm12, %v7931_v52, %v7936_v55  ;;  %v7955_v21 = vunpack.c.l.b16 %v7930_v50  ;;  %v8523_v17 = vrot.slane %v8521_v3, 5 }
 0x2fc   : > { %v5582_v4 = vrot.slane %v20974_v49, 5  ;;  %v5583_v48 = vrot.slane %v20975_v23, 6  ;;  %v5676_v46 = vrot.slane %v5674_v27, 4  ;;  %v20979_v6 = vmax.f32 %v16585_v9, 0.0  ;;  %v4396_v49 = vpop.f32.mrf.mxu3  ;;  %v20980_v23 = vld [vmem:[#allocation21_spill] sm:$0xff] }
 0x2fd   : > { %20977 = vst [vmem:[#allocation154_spill] sm:$0xff] %v16804_v13  ;;  %v5675_v32 = vsel %vm15706_vm12, %v5671_v0, %v5674_v27  ;;  %v20982_v45 = vor.u32 %v20980_v23, %v20981_v34  ;;  %v7956_v12 = vunpack.c.l.b16 %v7937_v33  ;;  %v16821_v52 = vadd.f32 %v4396_v49, %v20983_v62  ;;  %v12132_v9 = vld [vmem:[%s19982_s7 + $0x1e0] sm:$0xff]  ;;  %v16826_v0 = vpop.f32.mrf.mxu2 }
 0x2fe   : > { %v1128_v14 = vmul.f32 %v20979_v6, %v477_v26  ;;  %v5743_v26 = vunpack.c.l.b16 %v5675_v32  ;;  %v8524_v55 = vor.u32 %v8523_v17, %v8520_v37  ;;  %v1129_v27 = vmul.f32 %v1069_v7, %v478_v28  ;;  %20984 = vst [vmem:[#allocation21_spill] sm:$0xff] %v16826_v0  ;;  %6799 = vmatpush.bf16.msrb.mxu3 %v12132_v9  ;;  %v21017_v13 = vld [vmem:[#allocation25_spill] sm:$0xff] }
 0x2ff   : > { %v5682_v42 = vsel %vm15706_vm12, %v5676_v46, %v20982_v45  ;;  %v5581_v34 = vrot.slane %v5580_v40, 4  ;;  %v16828_v6 = vpack.c.b16 %v7956_v12, %v7955_v21  ;;  %v8529_v45 = vrot.slane %v8527_v8, 5 }
 0x300   : > { %v5744_v50 = vunpack.c.l.b16 %v5682_v42  ;;  %v5584_v46 = vor.u32 %v5583_v48, %v5582_v4  ;;  %v8525_v62 = vrot.slane %v8524_v55, 4  ;;  %v8533_v49 = vrot.slane %v8531_v39, 4  ;;  %v16839_v4 = vpop.f32.mrf.mxu1 }
 0x301   : > { %20985 = vst [vmem:[#allocation20_spill] sm:$0xff] %v16828_v6  ;;  %v8537_v23 = vshll.u32 %v16615_v56, 16  ;;  %v8344_v30 = vunpack.c.l.b16 %v16609_v24  ;;  %v8345_v32 = vunpack.c.l.b16 %v16611_v53  ;;  %v8929_v37 = vrot.slane %v8518_v60, 5  ;;  %v20991_v60 = vld [vmem:[#allocation123_spill] sm:$0xff] }
 0x302   : > { %v16830_v33 = vpack.c.b16 %v5744_v50, %v5743_v26  ;;  %v8530_v7 = vsel %vm12892_vm4, %v8525_v62, %v8529_v45  ;;  %v8534_v40 = vor.u32 %v8533_v49, %v8529_v45  ;;  %v8930_v28 = vrot.slane %v8521_v3, 6  ;;  %20988 = vst [vmem:[#allocation202_spill] sm:$0xff] %v16839_v4  ;;  %v16847_v26 = vpop.f32.mrf.mxu0  ;;  %6616 = vmatmul.bf16.gmra.mxu2 %v20991_v60  ;;  %v20993_v45 = vld [vmem:[#allocation61_spill] sm:$0xff] }
 0x303   : > { %v8933_v21 = vrot.slane %v8531_v39, 5  ;;  %v16837_v17 = vpack.c.bf16 %v1128_v14, %v1128_v14  ;;  %v16841_v48 = vrot.slane %v8537_v23, 5  ;;  %v16843_v42 = vpack.c.b16 %v8345_v32, %v8344_v30  ;;  %20990 = vst [vmem:[#allocation204_spill] sm:$0xff] %v16847_v26 }
 0x304   : > { %20986 = vst [vmem:[#allocation137_spill] sm:$0xff] %v16830_v33  ;;  %v8934_v12 = vrot.slane %v8527_v8, 6  ;;  %v16845_v9 = vpack.c.bf16 %v1129_v27, %v1129_v27  ;;  %v5585_v50 = vsel %vm15706_vm12, %v5581_v34, %v5584_v46  ;;  %v16852_v3 = vrot.slane %v8534_v40, 4  ;;  %v16854_v14 = vpop.f32.mrf.mxu3  ;;  %v20994_v27 = vld [vmem:[#allocation105_spill] sm:$0xff]  ;;  %5865 = vmatmul.bf16.gmra.mxu3 %v16538_v19 }
 0x305   : > { %20987 = vst [vmem:[#allocation201_spill] sm:$0xff] %v16837_v17  ;;  %v8931_v39 = vor.u32 %v8930_v28, %v8929_v37  ;;  %v5586_v55 = vrot.slane %v5584_v46, 4  ;;  %v6515_v62 = vshll.u32 %v20993_v45, 16  ;;  %v6519_v30 = vshrl.u32 %v20993_v45, 16  ;;  %v20997_v34 = vld [vmem:[#allocation113_spill] sm:$0xff]  ;;  %v16877_v28 = vpop.f32.mrf.mxu2 }
 0x306   : > { %20989 = vst [vmem:[#allocation203_spill] sm:$0xff] %v16843_v42  ;;  %v16858_v8 = vor.u32 %v8934_v12, %v8933_v21  ;;  %v20995_v49 = vshrl.u32 %v20994_v27, 16  ;;  %v20996_v42 = vshll.u32 %v20994_v27, 16  ;;  %v20998_v40 = vshrl.u32 %v20997_v34, 16  ;;  %7009 = vmatmul.bf16.vlgmr.msra.gmra.mxu0 %v16261_v22  ;;  %v21000_v21 = vld [vmem:[#allocation96_spill] sm:$0xff]  ;;  %v21001_v12 = vld [vmem:[#allocation97_spill] sm:$0xff] }
 0x307   : > { %20992 = vst [vmem:[#allocation205_spill] sm:$0xff] %v16854_v14  ;;  %v21003_v27 = vld [vmem:[#allocation6_spill] sm:$0xff]  ;;  %v6517_v26 = vrot.slane %v6515_v62, 5  ;;  %v5731_v58 = vunpack.c.l.b16 %v5585_v50  ;;  %v6521_v46 = vrot.slane %v6519_v30, 4  ;;  %v16888_v0 = vunpack.c.l.b16 %v8530_v7  ;;  %6392 = vmatmul.bf16.vlgmr.msrb.gmra.mxu1 %v21017_v13 }
 0x308   : > { %v16862_v32 = vrot.slane %v20995_v49, 5  ;;  %v16866_v6 = vrot.slane %v20996_v42, 6  ;;  %v16870_v37 = vrot.slane %v20998_v40, 5  ;;  %20999 = vst [vmem:[#allocation105_spill] sm:$0xff] %v16877_v28  ;;  %v21002_v49 = vor.u32 %v21000_v21, %v21001_v12  ;;  %v5005_v7 = vpop.f32.mrf.mxu1 }
 0x309   : > { %v21004_v61 = vshrl.u32 %v21003_v27, 16  ;;  %v21005_v40 = vshll.u32 %v21003_v27, 16  ;;  %v21006_v22 = vshrl.u32 %v15919_v51, 16  ;;  %v21007_v21 = vshll.u32 %v15919_v51, 16 }
 0x30a   : > { %v5592_v42 = vsel %vm15706_vm12, %v5586_v55, %v21002_v49  ;;  %v8938_v55 = vshrl.u32 %v16615_v56, 16  ;;  %v6522_v49 = vor.u32 %v6521_v46, %v6517_v26  ;;  %v16900_v50 = vrot.slane %v8537_v23, 6  ;;  %v21013_v46 = vld [vmem:[#allocation18_spill] sm:$0xff] }
 0x30b   : > { %v6508_v60 = vrot.slane %v21004_v61, 4  ;;  %v6511_v57 = vrot.slane %v21005_v40, 5  ;;  %v5732_v41 = vunpack.c.l.b16 %v5592_v42  ;;  %v5683_v28 = vrot.slane %v21006_v22, 5 }
 0x30c   : > { %v5684_v12 = vrot.slane %v21007_v21, 6  ;;  %v16898_v40 = vrot.slane %v8931_v39, 4  ;;  %v5689_v22 = vor.u32 %v16449_v16, %v16445_v54  ;;  %v21009_v51 = vshrl.u32 %v21003_v27, 16  ;;  %v4401_v1 = vpop.f32.mrf.mxu3 }
 0x30d   : > { %v6512_v5 = vor.u32 %v6511_v57, %v6508_v60  ;;  %v16896_v61 = vpack.c.b16 %v5732_v41, %v5731_v58  ;;  %v6722_v57 = vrot.slane %v20993_v45, 5  ;;  %v21010_v60 = vld [vmem:[#allocation83_spill] sm:$0xff]  ;;  %v16910_v41 = vpop.f32.mrf.mxu0  ;;  %v6523_v39 = vrot.slane %v6522_v49, 4 }
 0x30e   : > { %v5685_v42 = vor.u32 %v5684_v12, %v5683_v28  ;;  %v6917_v21 = vrot.slane %v21009_v51, 5  ;;  %v16908_v25 = vadd.f32 %v5005_v7, %v21010_v60  ;;  %21012 = vst [vmem:[#allocation97_spill] sm:$0xff] %v16910_v41  ;;  %v21014_v23 = vshll.u32 %v21013_v46, 16  ;;  %v21015_v28 = vld [vmem:[#allocation104_spill] sm:$0xff]  ;;  %v16927_v41 = vpop.f32.mrf.mxu2 }
 0x30f   : > { %21008 = vst [vmem:[#allocation113_spill] sm:$0xff] %v16896_v61  ;;  %v6513_v58 = vrot.slane %v6512_v5, 4  ;;  %v21016_v12 = vshrl.u32 %v21015_v28, 16  ;;  %v5691_v16 = vrot.slane %v5689_v22, 4  ;;  %v7124_v51 = vrot.slane %v20993_v45, 6  ;;  %v21023_v45 = vld [vmem:[#allocation32_spill] sm:$0xff] }
 0x310   : > { %21011 = vst [vmem:[#allocation96_spill] sm:$0xff] %v16908_v25  ;;  %v6527_v35 = vrot.slane %v21014_v23, 5  ;;  %v5686_v54 = vrot.slane %v5685_v42, 4  ;;  %v16919_v7 = vadd.f32 %v4401_v1, %v21018_v59  ;;  %v21020_v60 = vshll.u32 %v21003_v27, 16  ;;  %v21024_v1 = vld [vmem:[#allocation31_spill] sm:$0xff] }
 0x311   : > { %v5593_v4 = vrot.slane %v21016_v12, 5  ;;  %v6518_v5 = vsel %vm12892_vm4, %v6513_v58, %v6517_v26  ;;  %21021 = vst [vmem:[#allocation83_spill] sm:$0xff] %v16927_v41  ;;  %v21022_v42 = vshll.u32 %v21015_v28, 16  ;;  %v21025_v59 = vor.u32 %v21023_v45, %v21024_v1  ;;  %v21026_v41 = vld [vmem:[#allocation177_spill] sm:$0xff]  ;;  %v16945_v1 = vpop.f32.mrf.mxu1 }
 0x312   : > { %21019 = vst [vmem:[#allocation6_spill] sm:$0xff] %v16919_v7  ;;  %v6528_v49 = vsel %vm12892_vm4, %v6523_v39, %v6527_v35  ;;  %v6918_v23 = vrot.slane %v21020_v60, 6  ;;  %v5690_v13 = vsel %vm15706_vm12, %v5686_v54, %v5689_v22  ;;  %v6546_v58 = vunpack.c.l.b16 %v6518_v5  ;;  %v21027_v7 = vld [vmem:[#allocation178_spill] sm:$0xff] }
 0x313   : > { %v5594_v12 = vrot.slane %v21022_v42, 6  ;;  %v5697_v26 = vsel %vm15706_vm12, %v5691_v16, %v21025_v59  ;;  %v5745_v25 = vunpack.c.l.b16 %v5690_v13  ;;  %v6547_v39 = vunpack.c.l.b16 %v6528_v49 }
 0x314   : > { %v5746_v35 = vunpack.c.l.b16 %v5697_v26  ;;  %v6919_v33 = vor.u32 %v6918_v23, %v6917_v21  ;;  %v6921_v60 = vrot.slane %v6519_v30, 5  ;;  %v6922_v20 = vrot.slane %v6515_v62, 6  ;;  %v4403_v13 = vpop.f32.mrf.mxu3  ;;  %5870 = vmatmul.bf16.gmra.mxu3 %v16742_v11 }
 0x315   : > { %v6930_v28 = vor.u32 %v21027_v7, %v21026_v41  ;;  %v11141_v42 = vrot.slane %v21003_v27, 9  ;;  %v16943_v22 = vpack.c.b16 %v6547_v39, %v6546_v58  ;;  %v6724_v54 = vrot.slane %v6722_v57, 4  ;;  %v16950_v21 = vpop.f32.mrf.mxu0  ;;  %v21031_v41 = vld [vmem:[#allocation121_spill] sm:$0xff] }
 0x316   : > { %v16941_v14 = vpack.c.b16 %v5746_v35, %v5745_v25  ;;  %v6920_v45 = vrot.slane %v6919_v33, 4  ;;  %v6923_v16 = vor.u32 %v6922_v20, %v6921_v60  ;;  %v11238_v30 = vrot.slane %v21003_v27, 10  ;;  %21030 = vst [vmem:[#allocation25_spill] sm:$0xff] %v16950_v21  ;;  %6621 = vmatmul.bf16.gmra.mxu2 %v21031_v41 }
 0x317   : > { %21029 = vst [vmem:[#allocation104_spill] sm:$0xff] %v16943_v22  ;;  %v6723_v5 = vsel %vm12608_vm2, %v11141_v42, %v6722_v57  ;;  %v7126_v62 = vrot.slane %v7124_v51, 4  ;;  %v5595_v7 = vor.u32 %v5594_v12, %v5593_v4  ;;  %v21032_v25 = vrot.slane %v21013_v46, 5  ;;  %v21034_v4 = vld [vmem:[#allocation150_spill] sm:$0xff] }
 0x318   : > { %21028 = vst [vmem:[#allocation18_spill] sm:$0xff] %v16941_v14  ;;  %v6744_v49 = vunpack.c.l.b16 %v6723_v5  ;;  %v8940_v23 = vrot.slane %v8938_v55, 5  ;;  %v6924_v20 = vsel %vm15706_vm12, %v6920_v45, %v6923_v16  ;;  %v6925_v57 = vrot.slane %v6923_v16, 4 }
 0x319   : > { %v6726_v33 = vsel %vm12608_vm2, %v6724_v54, %v21032_v25  ;;  %v21033_v26 = vsel %vm12892_vm4, %v16852_v3, %v16841_v48  ;;  %v16965_v12 = vadd.f32 %v4403_v13, %v21034_v4  ;;  %v6949_v35 = vunpack.c.l.b16 %v6924_v20  ;;  %v21037_v54 = vld [vmem:[#allocation183_spill] sm:$0xff]  ;;  %v16978_v48 = vpop.f32.mrf.mxu2 }
 0x31a   : > { %v6745_v59 = vunpack.c.l.b16 %v6726_v33  ;;  %v8559_v58 = vunpack.c.l.b16 %v21033_v26  ;;  %v7125_v39 = vsel %vm15096_vm8, %v11238_v30, %v7124_v51  ;;  %v21035_v55 = vrot.slane %v21013_v46, 6  ;;  %7014 = vmatmul.bf16.gmra.mxu0 %v21037_v54  ;;  %v21064_v54 = vld [vmem:[#allocation119_spill] sm:$0xff] }
 0x31b   : > { %v21036_v42 = vshll.u32 %v20997_v34, 16  ;;  %v5599_v3 = vor.u32 %v16866_v6, %v16862_v32  ;;  %v6931_v16 = vsel %vm15706_vm12, %v6925_v57, %v6930_v28  ;;  %v5596_v46 = vrot.slane %v5595_v7, 4 }
 0x31c   : > { %v7128_v60 = vsel %vm15096_vm8, %v7126_v62, %v21035_v55  ;;  %v16984_v51 = vpack.c.b16 %v6745_v59, %v6744_v49  ;;  %v6950_v5 = vunpack.c.l.b16 %v6931_v16  ;;  %v7146_v30 = vunpack.c.l.b16 %v7125_v39  ;;  %v4406_v4 = vpop.f32.mrf.mxu3  ;;  %v21045_v16 = vld [vmem:[#allocation22_spill] sm:$0xff] }
 0x31d   : > { %v16975_v45 = vrot.slane %v21036_v42, 6  ;;  %v7147_v62 = vunpack.c.l.b16 %v7128_v60  ;;  %v16987_v34 = vpack.c.b16 %v8559_v58, %v16888_v0  ;;  %v8936_v25 = vsel %vm15706_vm12, %v16898_v40, %v16858_v8  ;;  %v5010_v0 = vpop.f32.mrf.mxu1  ;;  %v17010_v57 = vpop.f32.mrf.mxu0  ;;  %v21044_v42 = vld [vmem:[#allocation36_spill] sm:$0xff] }
 0x31e   : > { %21038 = vst [vmem:[#allocation12_spill] sm:$0xff] %v16984_v51  ;;  %v8937_v33 = vrot.slane %v16858_v8, 4  ;;  %v8942_v6 = vor.u32 %v16900_v50, %v8940_v23  ;;  %v16996_v32 = vpack.c.b16 %v6950_v5, %v6949_v35  ;;  %v8961_v7 = vunpack.c.l.b16 %v8936_v25  ;;  %v21042_v23 = vld [vmem:[#allocation23_spill] sm:$0xff]  ;;  %6397 = vmatmul.bf16.gmra.mxu1 %v21044_v42  ;;  %v21112_v51 = vld [vmem:[#allocation130_spill] sm:$0xff] }
 0x31f   : > { %21039 = vst [vmem:[#allocation32_spill] sm:$0xff] %v16987_v34  ;;  %v16998_v28 = vpack.c.b16 %v7147_v62, %v7146_v30  ;;  %v11625_v49 = vrot.slane %v16609_v24, 9  ;;  %v5600_v13 = vsel %vm15706_vm12, %v5596_v46, %v5599_v3  ;;  %v8734_v8 = vrot.slane %v16611_v53, 5  ;;  %v21047_v25 = vld [vmem:[#allocation111_spill] sm:$0xff] }
 0x320   : > { %21040 = vst [vmem:[#allocation31_spill] sm:$0xff] %v16996_v32  ;;  %v8943_v40 = vsel %vm15706_vm12, %v8937_v33, %v8942_v6  ;;  %v8737_v50 = vrot.slane %v16615_v56, 5  ;;  %v17008_v20 = vadd.f32 %v5010_v0, %v21042_v23  ;;  %v5601_v59 = vrot.slane %v5599_v3, 4  ;;  %v12131_v3 = vld [vmem:[%s19982_s7 + $0x1d8] sm:$0xff]  ;;  %v21048_v33 = vld [vmem:[#allocation75_spill] sm:$0xff] }
 0x321   : > { %21041 = vst [vmem:[#allocation177_spill] sm:$0xff] %v16998_v28  ;;  %v8962_v26 = vunpack.c.l.b16 %v8943_v40  ;;  %v11722_v58 = vrot.slane %v16609_v24, 10  ;;  %v8735_v35 = vsel %vm12608_vm2, %v11625_v49, %v8734_v8  ;;  %v8736_v39 = vrot.slane %v8734_v8, 4  ;;  %v17026_v62 = vpop.f32.mrf.mxu2  ;;  %6800 = vmatpush.bf16.msrb.mxu3 %v12131_v3 }
 0x322   : > { %21043 = vst [vmem:[#allocation178_spill] sm:$0xff] %v17010_v57  ;;  %v9136_v55 = vrot.slane %v16611_v53, 6  ;;  %v9139_v60 = vrot.slane %v16615_v56, 6  ;;  %v17019_v46 = vadd.f32 %v4406_v4, %v21045_v16  ;;  %v5733_v5 = vunpack.c.l.b16 %v5600_v13 }
 0x323   : > { %v17024_v24 = vpack.c.b16 %v8962_v26, %v8961_v7  ;;  %v8756_v30 = vunpack.c.l.b16 %v8735_v35  ;;  %v21049_v53 = vor.u32 %v21047_v25, %v21048_v33  ;;  %v8738_v6 = vsel %vm12608_vm2, %v8736_v39, %v8737_v50 }
 0x324   : > { %v9137_v49 = vsel %vm15096_vm8, %v11722_v58, %v9136_v55  ;;  %v9138_v0 = vrot.slane %v9136_v55, 4  ;;  %v8757_v7 = vunpack.c.l.b16 %v8738_v6  ;;  %v11867_v8 = vrot.slane %v16617_v63, 9  ;;  %5875 = vmatmul.bf16.gmra.mxu3 %v16896_v61 }
 0x325   : > { %21046 = vst [vmem:[#allocation150_spill] sm:$0xff] %v17024_v24  ;;  %v5607_v56 = vsel %vm15706_vm12, %v5601_v59, %v21049_v53  ;;  %v9158_v40 = vunpack.c.l.b16 %v9137_v49  ;;  %v9740_v26 = vrot.slane %v16837_v17, 5  ;;  %v9743_v59 = vrot.slane %v16845_v9, 5  ;;  %v17048_v55 = vpop.f32.mrf.mxu1  ;;  %v17053_v33 = vpop.f32.mrf.mxu0  ;;  %v21053_v53 = vld [vmem:[#allocation141_spill] sm:$0xff] }
 0x326   : > { %v5734_v13 = vunpack.c.l.b16 %v5607_v56  ;;  %v9140_v23 = vsel %vm15096_vm8, %v9138_v0, %v9139_v60  ;;  %v9524_v4 = vshrl.u32 %v16617_v63, 16  ;;  %v17045_v35 = vpack.c.b16 %v8757_v7, %v8756_v30  ;;  %21052 = vst [vmem:[#allocation22_spill] sm:$0xff] %v17053_v33  ;;  %6626 = vmatmul.bf16.gmra.mxu2 %v21053_v53  ;;  %v21055_v56 = vld [vmem:[#allocation80_spill] sm:$0xff]  ;;  %v4408_v49 = vpop.f32.mrf.mxu3 }
 0x327   : > { %v9159_v58 = vunpack.c.l.b16 %v9140_v23  ;;  %v9527_v39 = vshll.u32 %v16617_v63, 16  ;;  %v9741_v16 = vsel %vm12608_vm2, %v11867_v8, %v9740_v26  ;;  %v9742_v3 = vrot.slane %v9740_v26, 4  ;;  %v21056_v8 = vld [vmem:[#allocation14_spill] sm:$0xff] }
 0x328   : > { %v17043_v50 = vpack.c.b16 %v5734_v13, %v5733_v5  ;;  %21051 = vst [vmem:[#allocation36_spill] sm:$0xff] %v17045_v35  ;;  %v9526_v60 = vrot.slane %v9524_v4, 4  ;;  %v9533_v25 = vshll.u32 %v16837_v17, 16  ;;  %v9762_v30 = vunpack.c.l.b16 %v9741_v16  ;;  %v21058_v16 = vld [vmem:[#allocation88_spill] sm:$0xff] }
 0x329   : > { %v17056_v5 = vpack.c.b16 %v9159_v58, %v9158_v40  ;;  %v4412_v6 = vadd.f32 %v21055_v56, %v16526_v44  ;;  %v5610_v0 = vor.u32 %v16975_v45, %v16870_v37  ;;  %v9744_v13 = vsel %vm12608_vm2, %v9742_v3, %v9743_v59  ;;  %v21057_v58 = vld [vmem:[#allocation102_spill] sm:$0xff]  ;;  %v17071_v44 = vpop.f32.mrf.mxu2 }
 0x32a   : > { %21050 = vst [vmem:[#allocation23_spill] sm:$0xff] %v17043_v50  ;;  %v9529_v7 = vrot.slane %v9527_v39, 5  ;;  %v17065_v23 = vadd.f32 %v4408_v49, %v21056_v8  ;;  %v9763_v26 = vunpack.c.l.b16 %v9744_v13  ;;  %v9535_v35 = vrot.slane %v9533_v25, 5  ;;  %7019 = vmatmul.bf16.gmra.mxu0 %v16522_v2 }
 0x32b   : > { %21054 = vst [vmem:[#allocation111_spill] sm:$0xff] %v17056_v5  ;;  %v9537_v40 = vshrl.u32 %v16837_v17, 16  ;;  %v4135_v5 = vadd.f32 %v21058_v16, %v21057_v58  ;;  %v11964_v37 = vrot.slane %v16617_v63, 10  ;;  %v10142_v15 = vrot.slane %v16837_v17, 6 }
 0x32c   : > { %v9530_v56 = vor.u32 %v9529_v7, %v9526_v60  ;;  %v17075_v45 = vpack.c.b16 %v9763_v26, %v9762_v30  ;;  %v9543_v3 = vshll.u32 %v16845_v9, 16  ;;  %v10145_v49 = vrot.slane %v16845_v9, 6  ;;  %v21060_v60 = vld [vmem:[#allocation27_spill] sm:$0xff]  ;;  %v21061_v7 = vld [vmem:[#allocation17_spill] sm:$0xff] }
 0x32d   : > { %v9539_v59 = vrot.slane %v9537_v40, 4  ;;  %v10143_v8 = vsel %vm15096_vm8, %v11964_v37, %v10142_v15  ;;  %v10144_v58 = vrot.slane %v10142_v15, 4  ;;  %v9935_v16 = vrot.slane %v9524_v4, 5  ;;  %v5015_v26 = vpop.f32.mrf.mxu1  ;;  %v21062_v37 = vld [vmem:[#allocation76_spill] sm:$0xff]  ;;  %v17091_v4 = vpop.f32.mrf.mxu0 }
 0x32e   : > { %21059 = vst [vmem:[#allocation75_spill] sm:$0xff] %v17075_v45  ;;  %v9531_v13 = vrot.slane %v9530_v56, 4  ;;  %v5423_v63 = vadd.f32 %v21061_v7, %v21060_v60  ;;  %v9545_v17 = vrot.slane %v9543_v3, 5  ;;  %v9936_v30 = vrot.slane %v9527_v39, 6  ;;  %v5836_v53 = vpop.f32.mrf.mxu3 }
 0x32f   : > { %v9540_v24 = vor.u32 %v9539_v59, %v9535_v35  ;;  %v10146_v56 = vsel %vm15096_vm8, %v10144_v58, %v10145_v49  ;;  %v10164_v34 = vunpack.c.l.b16 %v10143_v8  ;;  %v9939_v2 = vrot.slane %v9537_v40, 5  ;;  %21063 = vst [vmem:[#allocation80_spill] sm:$0xff] %v17091_v4  ;;  %v21132_v4 = vld [vmem:[#allocation15_spill] sm:$0xff] }
 0x330   : > { %v9536_v45 = vsel %vm12892_vm4, %v9531_v13, %v9535_v35  ;;  %v17089_v15 = vadd.f32 %v5015_v26, %v21062_v37  ;;  %v21065_v28 = vshrl.u32 %v21064_v54, 16  ;;  %v21066_v59 = vshll.u32 %v21064_v54, 16  ;;  %v21068_v13 = vld [vmem:[#allocation45_spill] sm:$0xff] }
 0x331   : > { %v9541_v7 = vrot.slane %v9540_v24, 4  ;;  %v17097_v41 = vunpack.c.l.b16 %v9536_v45  ;;  %v10165_v35 = vunpack.c.l.b16 %v10146_v56  ;;  %v9937_v43 = vor.u32 %v9936_v30, %v9935_v16  ;;  %6402 = vmatmul.bf16.gmra.mxu1 %v21068_v13  ;;  %v17105_v26 = vpop.f32.mrf.mxu2  ;;  %v21071_v45 = vld [vmem:[#allocation166_spill] sm:$0xff] }
 0x332   : > { %v5612_v60 = vrot.slane %v21065_v28, 5  ;;  %v5613_v39 = vrot.slane %v21066_v59, 6  ;;  %v9940_v49 = vrot.slane %v9533_v25, 6  ;;  %v17100_v40 = vadd.f32 %v5836_v53, %v5423_v63  ;;  %v21095_v63 = vld [vmem:[#allocation129_spill] sm:$0xff] }
 0x333   : > { %21067 = vst [vmem:[#allocation14_spill] sm:$0xff] %v17097_v41  ;;  %v9546_v8 = vsel %vm12892_vm4, %v9541_v7, %v9545_v17  ;;  %v9944_v58 = vshrl.u32 %v16845_v9, 16  ;;  %v9947_v28 = vrot.slane %v9543_v3, 6  ;;  %v17109_v24 = vpack.c.b16 %v10165_v35, %v10164_v34 }
 0x334   : > { %v17107_v54 = vunpack.c.l.b16 %v9546_v8  ;;  %v5046_v56 = vadd.f32 %v21071_v45, %v4412_v6  ;;  %v9938_v16 = vrot.slane %v9937_v43, 4  ;;  %v9941_v25 = vor.u32 %v9940_v49, %v9939_v2  ;;  %v21074_v2 = vld [vmem:[#allocation136_spill] sm:$0xff]  ;;  %v21076_v45 = vld [vmem:[#allocation125_spill] sm:$0xff]  ;;  %5880 = vmatmul.bf16.gmra.mxu3 %v17043_v50 }
 0x335   : > { %21070 = vst [vmem:[#allocation88_spill] sm:$0xff] %v17109_v24  ;;  %v9946_v30 = vrot.slane %v9944_v58, 5  ;;  %v5614_v37 = vor.u32 %v5613_v39, %v5612_v60  ;;  %v4432_v17 = vadd.f32 %v21072_v36, %v4135_v5  ;;  %v5017_v59 = vpop.f32.mrf.mxu1  ;;  %v5611_v7 = vrot.slane %v5610_v0, 4  ;;  %v17119_v6 = vpop.f32.mrf.mxu0  ;;  %v21075_v60 = vld [vmem:[#allocation147_spill] sm:$0xff] }
 0x336   : > { %21069 = vst [vmem:[#allocation102_spill] sm:$0xff] %v17107_v54  ;;  %v9942_v9 = vsel %vm15706_vm12, %v9938_v16, %v9941_v25  ;;  %v9943_v53 = vrot.slane %v9941_v25, 4  ;;  %6631 = vmatmul.bf16.gmra.mxu2 %v21074_v2  ;;  %v5424_v39 = vadd.f32 %v21075_v60, %v5046_v56  ;;  %v5838_v5 = vpop.f32.mrf.mxu3  ;;  %v21077_v16 = vld [vmem:[#allocation124_spill] sm:$0xff]  ;;  %v21097_v54 = vshll.u32 %v21095_v63, 16 }
 0x337   : > { %v9948_v3 = vor.u32 %v9947_v28, %v9946_v30  ;;  %v9967_v34 = vunpack.c.l.b16 %v9942_v9  ;;  %v17117_v35 = vadd.f32 %v5017_v59, %v4432_v17  ;;  %21073 = vst [vmem:[#allocation27_spill] sm:$0xff] %v17119_v6  ;;  %v5615_v49 = vsel %vm15706_vm12, %v5611_v7, %v5614_v37  ;;  %v21080_v9 = vld [vmem:[#allocation39_spill] sm:$0xff] }
 0x338   : > { %v5616_v8 = vrot.slane %v5614_v37, 4  ;;  %v17127_v28 = vadd.f32 %v5838_v5, %v5424_v39  ;;  %v21078_v25 = vor.u32 %v21076_v45, %v21077_v16  ;;  %v5735_v36 = vunpack.c.l.b16 %v5615_v49  ;;  %v21084_v39 = vld [vmem:[#allocation11_spill] sm:$0xff] }
 0x339   : > { %v9949_v43 = vsel %vm15706_vm12, %v9943_v53, %v9948_v3  ;;  %v17130_v0 = vpop.f32.mrf.mxu2  ;;  %v21081_v53 = vld [vmem:[#allocation38_spill] sm:$0xff]  ;;  %v12130_v16 = vld [vmem:[%s19982_s7 + $0x1d0] sm:$0xff]  ;;  %v5628_v24 = vrot.slane %v21097_v54, 6 }
 0x33a   : > { %v9968_v58 = vunpack.c.l.b16 %v9949_v43  ;;  %7024 = vmatmul.bf16.gmra.mxu0 %v16167_v47  ;;  %v5622_v56 = vsel %vm15706_vm12, %v5616_v8, %v21078_v25  ;;  %v4090_v37 = vadd.f32 %v21081_v53, %v21080_v9  ;;  %v21085_v43 = vld [vmem:[#allocation153_spill] sm:$0xff]  ;;  %6801 = vmatpush.bf16.msrb.mxu3 %v12130_v16  ;;  %v21091_v53 = vld [vmem:[#allocation60_spill] sm:$0xff] }
 0x33b   : > { %v5736_v17 = vunpack.c.l.b16 %v5622_v56  ;;  %v5425_v5 = vadd.f32 %v21085_v43, %v21084_v39  ;;  %v21086_v8 = vld [vmem:[#allocation85_spill] sm:$0xff]  ;;  %v21089_v56 = vld [vmem:[#allocation95_spill] sm:$0xff]  ;;  %v21092_v39 = vld [vmem:[#allocation128_spill] sm:$0xff] }
 0x33c   : > { %v17137_v30 = vpack.c.b16 %v9968_v58, %v9967_v34  ;;  %v4414_v49 = vadd.f32 %v21086_v8, %v4090_v37  ;;  %v21087_v58 = vld [vmem:[#allocation63_spill] sm:$0xff]  ;;  %v21093_v37 = vshrl.u32 %v21092_v39, 16  ;;  %v21100_v16 = vld [vmem:[#allocation160_spill] sm:$0xff] }
 0x33d   : > { %v17142_v3 = vpack.c.b16 %v5736_v17, %v5735_v36  ;;  %v5020_v59 = vpop.f32.mrf.mxu1  ;;  %v17147_v60 = vpop.f32.mrf.mxu0  ;;  %v21090_v17 = vld [vmem:[#allocation179_spill] sm:$0xff] }
 0x33e   : > { %21079 = vst [vmem:[#allocation17_spill] sm:$0xff] %v17137_v30  ;;  %v17145_v7 = vadd.f32 %v5020_v59, %v16466_v38  ;;  %v5841_v34 = vpop.f32.mrf.mxu3  ;;  %v21088_v38 = vld [vmem:[#allocation115_spill] sm:$0xff]  ;;  %v5048_v9 = vadd.f32 %v21090_v17, %v4414_v49  ;;  %v5623_v43 = vrot.slane %v21093_v37, 5  ;;  %v21096_v30 = vshrl.u32 %v21095_v63, 16  ;;  %v21101_v37 = vld [vmem:[#allocation52_spill] sm:$0xff] }
 0x33f   : > { %21082 = vst [vmem:[#allocation76_spill] sm:$0xff] %v17142_v3  ;;  %v17153_v45 = vadd.f32 %v5841_v34, %v5425_v5  ;;  %v4140_v36 = vadd.f32 %v21089_v56, %v21088_v38  ;;  %v21094_v5 = vshll.u32 %v21092_v39, 16  ;;  %v21099_v49 = vld [vmem:[#allocation159_spill] sm:$0xff] }
 0x340   : > { %21083 = vst [vmem:[#allocation119_spill] sm:$0xff] %v17147_v60  ;;  %v5627_v41 = vrot.slane %v21096_v30, 5  ;;  %v5426_v56 = vadd.f32 %v21100_v16, %v5048_v9  ;;  %v21102_v63 = vld [vmem:[#allocation47_spill] sm:$0xff]  ;;  %v21104_v16 = vld [vmem:[#allocation57_spill] sm:$0xff] }
 0x341   : > { %6407 = vmatmul.bf16.gmra.mxu1 %v21087_v58  ;;  %v17158_v25 = vpop.f32.mrf.mxu2  ;;  %v4434_v59 = vadd.f32 %v21091_v53, %v4140_v36  ;;  %v5624_v34 = vrot.slane %v21094_v5, 6  ;;  %v4095_v54 = vadd.f32 %v21102_v63, %v21101_v37  ;;  %v21107_v37 = vld [vmem:[#allocation73_spill] sm:$0xff] }
 0x342   : > { %v5629_v30 = vor.u32 %v5628_v24, %v5627_v41  ;;  %v21106_v24 = vld [vmem:[#allocation94_spill] sm:$0xff] }
 0x343   : > { %v5625_v53 = vor.u32 %v5624_v34, %v5623_v43 }
 0x344   : > { %5885 = vmatmul.bf16.gmra.mxu3 %v17142_v3 }
 0x345   : > { %v5022_v8 = vpop.f32.mrf.mxu1  ;;  %v17174_v38 = vpop.f32.mrf.mxu0 }
 0x346   : > { %v17172_v47 = vadd.f32 %v5022_v8, %v4434_v59  ;;  %21098 = vst [vmem:[#allocation166_spill] sm:$0xff] %v17174_v38  ;;  %6636 = vmatmul.bf16.gmra.mxu2 %v21099_v49  ;;  %v5843_v36 = vpop.f32.mrf.mxu3  ;;  %v5626_v59 = vrot.slane %v5625_v53, 4  ;;  %v21108_v53 = vld [vmem:[#allocation134_spill] sm:$0xff]  ;;  %v21109_v49 = vld [vmem:[#allocation133_spill] sm:$0xff] }
 0x347   : > { %v17178_v17 = vadd.f32 %v5843_v36, %v5426_v56  ;;  %v21105_v56 = vld [vmem:[#allocation161_spill] sm:$0xff]  ;;  %v5631_v36 = vrot.slane %v5629_v30, 4 }
 0x348   : > { %v5427_v43 = vadd.f32 %v21105_v56, %v21104_v16  ;;  %v5630_v34 = vsel %vm15706_vm12, %v5626_v59, %v5629_v30  ;;  %v21113_v59 = vld [vmem:[#allocation103_spill] sm:$0xff] }
 0x349   : > { %v17181_v39 = vpop.f32.mrf.mxu2  ;;  %v5737_v16 = vunpack.c.l.b16 %v5630_v34  ;;  %v4145_v30 = vadd.f32 %v21113_v59, %v21112_v51  ;;  %v21121_v51 = vld [vmem:[#allocation164_spill] sm:$0xff] }
 0x34a   : > { %7029 = vmatmul.bf16.gmra.mxu0 %v16367_v31  ;;  %v4416_v31 = vadd.f32 %v21106_v24, %v4095_v54  ;;  %v21115_v54 = vld [vmem:[#allocation143_spill] sm:$0xff] }
 0x34b   : > { %v21116_v24 = vshrl.u32 %v21115_v54, 16 }
 0x34d   : > { %v5025_v5 = vpop.f32.mrf.mxu1  ;;  %v17189_v9 = vpop.f32.mrf.mxu0  ;;  %v5638_v60 = vrot.slane %v21116_v24, 5  ;;  %v21125_v24 = vld [vmem:[#allocation144_spill] sm:$0xff] }
 0x34e   : > { %v17187_v8 = vadd.f32 %v5025_v5, %v16724_v18  ;;  %21103 = vst [vmem:[#allocation49_spill] sm:$0xff] %v17189_v9  ;;  %v5846_v41 = vpop.f32.mrf.mxu3  ;;  %v21110_v18 = vor.u32 %v21108_v53, %v21109_v49  ;;  %v21114_v9 = vld [vmem:[#allocation70_spill] sm:$0xff]  ;;  %v4436_v49 = vadd.f32 %v16763_v10, %v4145_v30 }
 0x34f   : > { %v17197_v63 = vadd.f32 %v5846_v41, %v5427_v43  ;;  %v5050_v38 = vadd.f32 %v21114_v9, %v4416_v31  ;;  %v21117_v43 = vshll.u32 %v21115_v54, 16 }
 0x350   : > { %v5637_v5 = vsel %vm15706_vm12, %v5631_v36, %v21110_v18  ;;  %v21120_v18 = vld [vmem:[#allocation155_spill] sm:$0xff] }
 0x351   : > { %6412 = vmatmul.bf16.gmra.mxu1 %v21107_v37  ;;  %v17204_v2 = vpop.f32.mrf.mxu2  ;;  %v5738_v56 = vunpack.c.l.b16 %v5637_v5  ;;  %v5639_v41 = vrot.slane %v21117_v43, 6  ;;  %v5428_v5 = vadd.f32 %v21121_v51, %v5050_v38  ;;  %v21126_v43 = vshrl.u32 %v21125_v24, 16  ;;  %v21129_v51 = vld [vmem:[#allocation68_spill] sm:$0xff] }
 0x352   : > { %21111 = vst [vmem:[#allocation147_spill] sm:$0xff] %v17204_v2  ;;  %v21160_v2 = vld [vmem:[#allocation8_spill] sm:$0xff] }
 0x353   : > { %v17213_v6 = vpack.c.b16 %v5738_v56, %v5737_v16  ;;  %v5640_v9 = vor.u32 %v5639_v41, %v5638_v60  ;;  %v21123_v16 = vld [vmem:[#allocation62_spill] sm:$0xff]  ;;  %v21124_v56 = vld [vmem:[#allocation51_spill] sm:$0xff] }
 0x354   : > { %v4100_v10 = vadd.f32 %v21124_v56, %v21123_v16  ;;  %v21131_v56 = vld [vmem:[#allocation107_spill] sm:$0xff] }
 0x355   : > { %21118 = vst [vmem:[#allocation125_spill] sm:$0xff] %v17213_v6  ;;  %v5027_v36 = vpop.f32.mrf.mxu1  ;;  %v17218_v34 = vpop.f32.mrf.mxu0  ;;  %5890 = vmatmul.bf16.gmra.mxu3 %v17213_v6 }
 0x356   : > { %v17216_v53 = vadd.f32 %v5027_v36, %v4436_v49  ;;  %21119 = vst [vmem:[#allocation124_spill] sm:$0xff] %v17218_v34  ;;  %6641 = vmatmul.bf16.gmra.mxu2 %v21120_v18  ;;  %v5848_v31 = vpop.f32.mrf.mxu3  ;;  %v5642_v49 = vrot.slane %v21126_v43, 5  ;;  %v21127_v36 = vshll.u32 %v21125_v24, 16  ;;  %v5641_v18 = vrot.slane %v5640_v9, 4  ;;  %v12129_v24 = vld [vmem:[%s19982_s7 + $0x1c8] sm:$0xff] }
 0x357   : > { %v17222_v59 = vadd.f32 %v5848_v31, %v5428_v5  ;;  %v21130_v5 = vld [vmem:[#allocation171_spill] sm:$0xff]  ;;  %v4418_v34 = vadd.f32 %v21131_v56, %v4100_v10  ;;  %6802 = vmatpush.bf16.msrb.mxu3 %v12129_v24  ;;  %v21137_v10 = vld [vmem:[#allocation145_spill] sm:$0xff] }
 0x358   : > { %v5643_v38 = vrot.slane %v21127_v36, 6  ;;  %v5429_v31 = vadd.f32 %v21130_v5, %v21129_v51  ;;  %v21134_v36 = vld [vmem:[#allocation5_spill] sm:$0xff]  ;;  %v21135_v51 = vld [vmem:[#allocation114_spill] sm:$0xff] }
 0x359   : > { %v17225_v54 = vpop.f32.mrf.mxu2  ;;  %v4150_v9 = vadd.f32 %v21135_v51, %v21134_v36  ;;  %v21138_v5 = vld [vmem:[#allocation146_spill] sm:$0xff]  ;;  %v21140_v56 = vld [vmem:[#allocation205_spill] sm:$0xff]  ;;  %v21143_v36 = vld [vmem:[#allocation7_spill] sm:$0xff] }
 0x35a   : > { %7034 = vmatmul.bf16.gmra.mxu0 %v16538_v19  ;;  %21122 = vst [vmem:[#allocation39_spill] sm:$0xff] %v17225_v54  ;;  %v5644_v16 = vor.u32 %v5643_v38, %v5642_v49  ;;  %v21136_v49 = vld [vmem:[#allocation29_spill] sm:$0xff] }
 0x35b   : > { %v5052_v38 = vadd.f32 %v21136_v49, %v4418_v34 }
 0x35c   : > { %v5646_v43 = vrot.slane %v5644_v16, 4 }
 0x35d   : > { %v5030_v30 = vpop.f32.mrf.mxu1  ;;  %v17237_v41 = vpop.f32.mrf.mxu0  ;;  %v5430_v34 = vadd.f32 %v21143_v36, %v5052_v38  ;;  %v21153_v36 = vld [vmem:[#allocation64_spill] sm:$0xff] }
 0x35e   : > { %v17235_v60 = vadd.f32 %v5030_v30, %v16821_v52  ;;  %21128 = vst [vmem:[#allocation38_spill] sm:$0xff] %v17237_v41  ;;  %v5851_v19 = vpop.f32.mrf.mxu3  ;;  %v5645_v30 = vsel %vm15706_vm12, %v5641_v18, %v5644_v16  ;;  %v4438_v41 = vadd.f32 %v21140_v56, %v4150_v9  ;;  %v21142_v16 = vld [vmem:[#allocation173_spill] sm:$0xff]  ;;  %v21147_v9 = vld [vmem:[#allocation58_spill] sm:$0xff] }
 0x35f   : > { %v17243_v33 = vadd.f32 %v5851_v19, %v5429_v31  ;;  %v21139_v19 = vor.u32 %v21137_v10, %v21138_v5 }
 0x361   : > { %6417 = vmatmul.bf16.gmra.mxu1 %v21132_v4  ;;  %v17248_v52 = vpop.f32.mrf.mxu2  ;;  %v5652_v31 = vsel %vm15706_vm12, %v5646_v43, %v21139_v19  ;;  %v5739_v4 = vunpack.c.l.b16 %v5645_v30  ;;  %v21146_v30 = vld [vmem:[#allocation69_spill] sm:$0xff] }
 0x362   : > { %21133 = vst [vmem:[#allocation11_spill] sm:$0xff] %v17248_v52  ;;  %v5740_v52 = vunpack.c.l.b16 %v5652_v31  ;;  %v4105_v10 = vadd.f32 %v21147_v9, %v21146_v30  ;;  %v21155_v30 = vld [vmem:[#allocation117_spill] sm:$0xff] }
 0x364   : > { %v17267_v24 = vpack.c.b16 %v5740_v52, %v5739_v4  ;;  %v21151_v52 = vld [vmem:[#allocation6_spill] sm:$0xff]  ;;  %v4420_v9 = vadd.f32 %v21155_v30, %v4105_v10 }
 0x365   : > { %v5032_v57 = vpop.f32.mrf.mxu1  ;;  %v17263_v18 = vpop.f32.mrf.mxu0 }
 0x366   : > { %v17261_v54 = vadd.f32 %v5032_v57, %v4438_v41  ;;  %21141 = vst [vmem:[#allocation153_spill] sm:$0xff] %v17263_v18  ;;  %6646 = vmatmul.bf16.gmra.mxu2 %v21142_v16  ;;  %v5853_v51 = vpop.f32.mrf.mxu3  ;;  %5895 = vmatmul.bf16.gmra.mxu3 %v17267_v24  ;;  %v21148_v41 = vld [vmem:[#allocation149_spill] sm:$0xff]  ;;  %v21156_v18 = vld [vmem:[#allocation82_spill] sm:$0xff] }
 0x367   : > { %21144 = vst [vmem:[#allocation85_spill] sm:$0xff] %v17267_v24  ;;  %v17269_v49 = vadd.f32 %v5853_v51, %v5430_v34  ;;  %v21149_v5 = vshrl.u32 %v21148_v41, 16  ;;  %v21150_v38 = vshll.u32 %v21148_v41, 16  ;;  %v21154_v34 = vld [vmem:[#allocation55_spill] sm:$0xff] }
 0x368   : > { %v5431_v51 = vadd.f32 %v21154_v34, %v21153_v36  ;;  %v5742_v36 = vunpack.c.l.b16 %v21160_v2  ;;  %v21166_v2 = vld [vmem:[#allocation79_spill] sm:$0xff] }
 0x369   : > { %v17272_v43 = vpop.f32.mrf.mxu2  ;;  %v5653_v19 = vrot.slane %v21149_v5, 5  ;;  %v5654_v4 = vrot.slane %v21150_v38, 6  ;;  %v21158_v38 = vld [vmem:[#allocation108_spill] sm:$0xff] }
 0x36a   : > { %7039 = vmatmul.bf16.gmra.mxu0 %v16742_v11  ;;  %21145 = vst [vmem:[#allocation115_spill] sm:$0xff] %v17272_v43  ;;  %v5054_v21 = vadd.f32 %v21158_v38, %v4420_v9 }
 0x36b   : > { %v5655_v16 = vor.u32 %v5654_v4, %v5653_v19  ;;  %v21163_v4 = vld [vmem:[#allocation91_spill] sm:$0xff] }
 0x36d   : > { %v5035_v57 = vpop.f32.mrf.mxu1  ;;  %v17284_v56 = vpop.f32.mrf.mxu0  ;;  %v5656_v41 = vrot.slane %v5655_v16, 4 }
 0x36e   : > { %v17282_v31 = vadd.f32 %v5035_v57, %v21151_v52  ;;  %21152 = vst [vmem:[#allocation95_spill] sm:$0xff] %v17284_v56  ;;  %v5856_v11 = vpop.f32.mrf.mxu3  ;;  %v21159_v57 = vld [vmem:[#allocation191_spill] sm:$0xff] }
 0x36f   : > { %v17290_v43 = vadd.f32 %v5856_v11, %v5431_v51  ;;  %v5660_v52 = vsel %vm15706_vm12, %v5656_v41, %v21159_v57  ;;  %v21162_v11 = vld [vmem:[#allocation169_spill] sm:$0xff]  ;;  %v5432_v51 = vadd.f32 %v21163_v4, %v5054_v21  ;;  %v21167_v41 = vld [vmem:[#allocation66_spill] sm:$0xff]  ;;  %v21171_v4 = vld [vmem:[#allocation135_spill] sm:$0xff] }
 0x370   : > { %v5741_v56 = vunpack.c.l.b16 %v5660_v52  ;;  %v4110_v38 = vadd.f32 %v21167_v41, %v21166_v2  ;;  %v21169_v21 = vld [vmem:[#allocation34_spill] sm:$0xff]  ;;  %v12128_v2 = vld [vmem:[%s19982_s7 + $0x1c0] sm:$0xff] }
 0x371   : > { %6422 = vmatmul.bf16.gmra.mxu1 %v21156_v18  ;;  %v17292_v5 = vpop.f32.mrf.mxu2  ;;  %6803 = vmatpush.bf16.msrb.mxu3 %v12128_v2 }
 0x372   : > { %21157 = vst [vmem:[#allocation179_spill] sm:$0xff] %v17292_v5  ;;  %v17306_v16 = vpack.c.b16 %v5742_v36, %v5741_v56  ;;  %v21170_v56 = vld [vmem:[#allocation89_spill] sm:$0xff] }
 0x373   : > { %v5433_v36 = vadd.f32 %v21170_v56, %v21169_v21  ;;  %v21177_v56 = vld [vmem:[#allocation182_spill] sm:$0xff] }
 0x374   : > { %21164 = vst [vmem:[#allocation128_spill] sm:$0xff] %v17306_v16 }
 0x375   : > { %v5037_v34 = vpop.f32.mrf.mxu1  ;;  %v17302_v10 = vpop.f32.mrf.mxu0 }
 0x376   : > { %v17300_v19 = vadd.f32 %v5037_v34, %v16965_v12  ;;  %21161 = vst [vmem:[#allocation60_spill] sm:$0xff] %v17302_v10  ;;  %6651 = vmatmul.bf16.gmra.mxu2 %v21162_v11  ;;  %v5858_v30 = vpop.f32.mrf.mxu3  ;;  %5900 = vmatmul.bf16.gmra.mxu3 %v17306_v16 }
 0x377   : > { %v17308_v9 = vadd.f32 %v5858_v30, %v5432_v51  ;;  %v4422_v51 = vadd.f32 %v21171_v4, %v4110_v38  ;;  %v21172_v30 = vld [vmem:[#allocation98_spill] sm:$0xff]  ;;  %v21176_v38 = vld [vmem:[#allocation101_spill] sm:$0xff] }
 0x379   : > { %v17311_v29 = vpop.f32.mrf.mxu2 }
 0x37a   : > { %7044 = vmatmul.bf16.gmra.mxu0 %v16896_v61  ;;  %21165 = vst [vmem:[#allocation129_spill] sm:$0xff] %v17311_v29 }
 0x37d   : > { %v5040_v12 = vpop.f32.mrf.mxu1  ;;  %v17319_v52 = vpop.f32.mrf.mxu0 }
 0x37e   : > { %v17317_v57 = vadd.f32 %v5040_v12, %v17019_v46  ;;  %21168 = vst [vmem:[#allocation160_spill] sm:$0xff] %v17319_v52  ;;  %v5861_v34 = vpop.f32.mrf.mxu3  ;;  %v21174_v46 = vld [vmem:[#allocation78_spill] sm:$0xff] }
 0x37f   : > { %v17325_v61 = vadd.f32 %v5861_v34, %v5433_v36  ;;  %v5056_v12 = vadd.f32 %v21174_v46, %v4422_v51  ;;  %v21180_v51 = vld [vmem:[#allocation72_spill] sm:$0xff]  ;;  %v21181_v46 = vld [vmem:[#allocation9_spill] sm:$0xff] }
 0x381   : > { %6427 = vmatmul.bf16.gmra.mxu1 %v21172_v30  ;;  %v17330_v41 = vpop.f32.mrf.mxu2  ;;  %v5434_v36 = vadd.f32 %v21177_v56, %v5056_v12  ;;  %v21184_v12 = vld [vmem:[#allocation142_spill] sm:$0xff] }
 0x382   : > { %21173 = vst [vmem:[#allocation52_spill] sm:$0xff] %v17330_v41  ;;  %v21179_v41 = vld [vmem:[#allocation46_spill] sm:$0xff] }
 0x383   : > { %v4115_v2 = vadd.f32 %v21180_v51, %v21179_v41  ;;  %v21185_v56 = vld [vmem:[#allocation42_spill] sm:$0xff] }
 0x385   : > { %v5042_v11 = vpop.f32.mrf.mxu1  ;;  %v17336_v21 = vpop.f32.mrf.mxu0 }
 0x386   : > { %v17334_v52 = vadd.f32 %v5042_v11, %v17065_v23  ;;  %21175 = vst [vmem:[#allocation47_spill] sm:$0xff] %v17336_v21  ;;  %6656 = vmatmul.bf16.gmra.mxu2 %v21176_v38  ;;  %v5863_v34 = vpop.f32.mrf.mxu3  ;;  %v6281_v23 = vadd.f32 %v21181_v46, %v17100_v40  ;;  %v21182_v11 = vld [vmem:[#allocation137_spill] sm:$0xff]  ;;  %v21190_v46 = vld [vmem:[#allocation26_spill] sm:$0xff] }
 0x387   : > { %v17340_v4 = vadd.f32 %v5863_v34, %v5434_v36  ;;  %5905 = vmatmul.bf16.gmra.mxu3 %v21182_v11  ;;  %v5435_v36 = vadd.f32 %v21185_v56, %v21184_v12  ;;  %v21189_v40 = vld [vmem:[#allocation193_spill] sm:$0xff]  ;;  %v21192_v12 = vld [vmem:[#allocation184_spill] sm:$0xff]  ;;  %v21193_v56 = vld [vmem:[#allocation59_spill] sm:$0xff] }
 0x389   : > { %v17343_v10 = vpop.f32.mrf.mxu2 }
 0x38a   : > { %7049 = vmatmul.bf16.gmra.mxu0 %v17043_v50  ;;  %21178 = vst [vmem:[#allocation57_spill] sm:$0xff] %v17343_v10  ;;  %v21186_v50 = vld [vmem:[#allocation148_spill] sm:$0xff]  ;;  %v21187_v10 = vld [vmem:[#allocation109_spill] sm:$0xff] }
 0x38b   : > { %v4424_v29 = vadd.f32 %v21186_v50, %v4115_v2 }
 0x38d   : > { %v6393_v21 = vpop.f32.mrf.mxu1  ;;  %v17352_v38 = vpop.f32.mrf.mxu0  ;;  %v5058_v51 = vadd.f32 %v21189_v40, %v4424_v29  ;;  %v21195_v29 = vld [vmem:[#allocation37_spill] sm:$0xff] }
 0x38e   : > { %v17350_v30 = vadd.f32 %v6393_v21, %v6281_v23  ;;  %21183 = vst [vmem:[#allocation161_spill] sm:$0xff] %v17352_v38  ;;  %v5866_v34 = vpop.f32.mrf.mxu3  ;;  %v6282_v21 = vadd.f32 %v21190_v46, %v17127_v28  ;;  %v21197_v28 = vld [vmem:[#allocation167_spill] sm:$0xff] }
 0x38f   : > { %v17358_v5 = vadd.f32 %v5866_v34, %v5435_v36  ;;  %v5436_v50 = vadd.f32 %v21193_v56, %v5058_v51  ;;  %v21196_v34 = vld [vmem:[#allocation50_spill] sm:$0xff]  ;;  %v6283_v46 = vadd.f32 %v21197_v28, %v17153_v45  ;;  %v21201_v56 = vld [vmem:[#allocation188_spill] sm:$0xff] }
 0x390   : > { %v4120_v40 = vadd.f32 %v21196_v34, %v21195_v29  ;;  %v21200_v51 = vld [vmem:[#allocation154_spill] sm:$0xff]  ;;  %v12159_v45 = vld [vmem:[%s19982_s7 + $0x2b8] sm:$0xff] }
 0x391   : > { %6432 = vmatmul.bf16.gmra.mxu1 %v21187_v10  ;;  %v17360_v41 = vpop.f32.mrf.mxu2  ;;  %v12167_v29 = vld [vmem:[%s19982_s7 + $0x2f8] sm:$0xff]  ;;  %v21205_v28 = vld [vmem:[#allocation202_spill] sm:$0xff]  ;;  %7390 = vmatpush.bf16.msra.mxu2 %v12159_v45 }
 0x392   : > { %21188 = vst [vmem:[#allocation94_spill] sm:$0xff] %v17360_v41  ;;  %7604 = vmatpush.bf16.msra.mxu3 %v12167_v29 }
 0x395   : > { %v6395_v23 = vpop.f32.mrf.mxu1 }
 0x396   : > { %v17365_v18 = vadd.f32 %v6395_v23, %v6282_v21  ;;  %6661 = vmatmul.bf16.gmra.mxu2 %v21192_v12  ;;  %v5868_v2 = vpop.f32.mrf.mxu3 }
 0x397   : > { %v17367_v38 = vpop.f32.mrf.mxu0  ;;  %v17371_v10 = vadd.f32 %v5868_v2, %v5436_v50  ;;  %5910 = vmatmul.bf16.gmra.mxu3 %v16941_v14  ;;  %v5437_v50 = vadd.f32 %v21201_v56, %v21200_v51 }
 0x398   : > { %21191 = vst [vmem:[#allocation134_spill] sm:$0xff] %v17367_v38 }
 0x399   : > { %v17374_v36 = vpop.f32.mrf.mxu2 }
 0x39a   : > { %7054 = vmatmul.bf16.gmra.mxu0 %v17142_v3  ;;  %21194 = vst [vmem:[#allocation133_spill] sm:$0xff] %v17374_v36  ;;  %v21202_v3 = vld [vmem:[#allocation163_spill] sm:$0xff]  ;;  %v21203_v36 = vld [vmem:[#allocation126_spill] sm:$0xff] }
 0x39b   : > { %v4426_v38 = vadd.f32 %v21202_v3, %v4120_v40  ;;  %v21206_v3 = vld [vmem:[#allocation174_spill] sm:$0xff] }
 0x39c   : > { %v6284_v40 = vadd.f32 %v21206_v3, %v17178_v17  ;;  %v21213_v3 = vld [vmem:[#allocation16_spill] sm:$0xff] }
 0x39d   : > { %v6398_v21 = vpop.f32.mrf.mxu1 }
 0x39e   : > { %v17381_v23 = vadd.f32 %v6398_v21, %v6283_v46  ;;  %v5871_v2 = vpop.f32.mrf.mxu3  ;;  %v5060_v46 = vadd.f32 %v21205_v28, %v4426_v38  ;;  %v12175_v38 = vld [vmem:[%s19982_s7 + $0x338] sm:$0xff] }
 0x39f   : > { %v17383_v12 = vpop.f32.mrf.mxu0  ;;  %v17389_v41 = vadd.f32 %v5871_v2, %v5437_v50  ;;  %v21209_v50 = vld [vmem:[#allocation35_spill] sm:$0xff]  ;;  %7802 = vmatpush.bf16.msrb.mxu0 %v12175_v38  ;;  %v21212_v28 = vld [vmem:[#allocation84_spill] sm:$0xff] }
 0x3a0   : > { %21198 = vst [vmem:[#allocation130_spill] sm:$0xff] %v17381_v23  ;;  %v21210_v2 = vld [vmem:[#allocation71_spill] sm:$0xff] }
 0x3a1   : > { %21199 = vst [vmem:[#allocation103_spill] sm:$0xff] %v17383_v12  ;;  %6437 = vmatmul.bf16.gmra.mxu1 %v21203_v36  ;;  %v17397_v34 = vpop.f32.mrf.mxu2  ;;  %v5438_v12 = vadd.f32 %v21210_v2, %v5060_v46  ;;  %v4125_v46 = vadd.f32 %v21213_v3, %v21212_v28  ;;  %v21215_v2 = vld [vmem:[#allocation40_spill] sm:$0xff] }
 0x3a2   : > { %21204 = vst [vmem:[#allocation70_spill] sm:$0xff] %v17397_v34  ;;  %v12151_v34 = vld [vmem:[%s19982_s7 + $0x278] sm:$0xff] }
 0x3a3   : > { %7198 = vmatpush.bf16.msra.mxu1 %v12151_v34  ;;  %v21218_v34 = vld [vmem:[#allocation190_spill] sm:$0xff]  ;;  %v21221_v3 = vld [vmem:[#allocation56_spill] sm:$0xff] }
 0x3a5   : > { %v6400_v21 = vpop.f32.mrf.mxu1 }
 0x3a6   : > { %v17402_v51 = vadd.f32 %v6400_v21, %v6284_v40  ;;  %6666 = vmatmul.bf16.gmra.mxu2 %v21209_v50  ;;  %v5873_v45 = vpop.f32.mrf.mxu3  ;;  %v21214_v40 = vld [vmem:[#allocation19_spill] sm:$0xff] }
 0x3a7   : > { %v17404_v56 = vpop.f32.mrf.mxu0  ;;  %v17414_v29 = vadd.f32 %v5873_v45, %v5438_v12  ;;  %v6285_v21 = vadd.f32 %v21214_v40, %v17197_v63  ;;  %6804 = vmatmul.bf16.vlgmr.msrb.gmra.mxu3 %v21215_v2  ;;  %v21217_v12 = vld [vmem:[#allocation96_spill] sm:$0xff] }
 0x3a8   : > { %21207 = vst [vmem:[#allocation143_spill] sm:$0xff] %v17402_v51  ;;  %v5439_v38 = vadd.f32 %v21218_v34, %v21217_v12  ;;  %v21223_v12 = vld [vmem:[#allocation189_spill] sm:$0xff]  ;;  %v21224_v34 = vld [vmem:[#allocation120_spill] sm:$0xff] }
 0x3a9   : > { %21208 = vst [vmem:[#allocation164_spill] sm:$0xff] %v17404_v56  ;;  %v17417_v17 = vpop.f32.mrf.mxu2 }
 0x3aa   : > { %7059 = vmatmul.bf16.gmra.mxu0 %v17213_v6  ;;  %21211 = vst [vmem:[#allocation62_spill] sm:$0xff] %v17417_v17  ;;  %v21219_v6 = vld [vmem:[#allocation175_spill] sm:$0xff] }
 0x3ab   : > { %v4428_v51 = vadd.f32 %v21219_v6, %v4125_v46  ;;  %v21220_v17 = vld [vmem:[#allocation131_spill] sm:$0xff] }
 0x3ac   : > { %v12158_v46 = vld [vmem:[%s19982_s7 + $0x2b0] sm:$0xff] }
 0x3ad   : > { %v5062_v63 = vadd.f32 %v16945_v1, %v4428_v51  ;;  %7391 = vmatpush.bf16.msra.mxu2 %v12158_v46  ;;  %v12157_v1 = vld [vmem:[%s19982_s7 + $0x2a8] sm:$0xff]  ;;  %v21226_v51 = vld [vmem:[#allocation92_spill] sm:$0xff] }
 0x3ae   : > { %v6403_v50 = vpop.f32.mrf.mxu1  ;;  %v5876_v45 = vpop.f32.mrf.mxu3 }
 0x3af   : > { %v17424_v56 = vadd.f32 %v6403_v50, %v6285_v21  ;;  %v17426_v36 = vpop.f32.mrf.mxu0  ;;  %v17432_v23 = vadd.f32 %v5876_v45, %v5439_v38  ;;  %v6286_v50 = vadd.f32 %v21221_v3, %v17222_v59  ;;  %v5440_v6 = vadd.f32 %v21224_v34, %v5062_v63  ;;  %v21227_v3 = vld [vmem:[#allocation81_spill] sm:$0xff]  ;;  %v21228_v63 = vld [vmem:[#allocation180_spill] sm:$0xff]  ;;  %v21229_v34 = vld [vmem:[#allocation90_spill] sm:$0xff] }
 0x3b0   : > { %21216 = vst [vmem:[#allocation51_spill] sm:$0xff] %v17426_v36 }
 0x3b1   : > { %6442 = vmatmul.bf16.gmra.mxu1 %v21220_v17  ;;  %v17434_v28 = vpop.f32.mrf.mxu2  ;;  %7392 = vmatpush.bf16.msra.mxu2 %v12157_v1  ;;  %v12155_v1 = vld [vmem:[%s19982_s7 + $0x298] sm:$0xff] }
 0x3b6   : > { %v6405_v40 = vpop.f32.mrf.mxu1  ;;  %6671 = vmatmul.bf16.gmra.mxu2 %v21223_v12  ;;  %v5878_v38 = vpop.f32.mrf.mxu3  ;;  %v21231_v12 = vld [vmem:[#allocation198_spill] sm:$0xff] }
 0x3b7   : > { %v17439_v21 = vadd.f32 %v6405_v40, %v6286_v50  ;;  %v17441_v2 = vpop.f32.mrf.mxu0  ;;  %v17448_v45 = vadd.f32 %v5878_v38, %v5440_v6  ;;  %v4130_v50 = vadd.f32 %v21227_v3, %v21226_v51  ;;  %v6287_v40 = vadd.f32 %v21228_v63, %v17243_v33  ;;  %6809 = vmatmul.bf16.gmra.mxu3 %v21229_v34  ;;  %v21232_v51 = vld [vmem:[#allocation33_spill] sm:$0xff] }
 0x3b8   : > { %21222 = vst [vmem:[#allocation144_spill] sm:$0xff] %v17441_v2  ;;  %v5441_v2 = vadd.f32 %v21231_v12, %v17008_v20  ;;  %v12166_v20 = vld [vmem:[%s19982_s7 + $0x2f0] sm:$0xff] }
 0x3b9   : > { %v17454_v59 = vpop.f32.mrf.mxu2  ;;  %v4430_v3 = vadd.f32 %v21232_v51, %v4130_v50  ;;  %7605 = vmatpush.bf16.msra.mxu3 %v12166_v20  ;;  %v21235_v50 = vld [vmem:[#allocation181_spill] sm:$0xff]  ;;  %v12153_v20 = vld [vmem:[%s19982_s7 + $0x288] sm:$0xff] }
 0x3ba   : > { %7064 = vmatmul.bf16.gmra.mxu0 %v17267_v24  ;;  %21225 = vst [vmem:[#allocation68_spill] sm:$0xff] %v17454_v59  ;;  %v12156_v24 = vld [vmem:[%s19982_s7 + $0x2a0] sm:$0xff] }
 0x3bb   : > { %v21233_v59 = vld [vmem:[#allocation13_spill] sm:$0xff]  ;;  %7393 = vmatpush.bf16.msra.mxu2 %v12156_v24  ;;  %v5064_v63 = vadd.f32 %v17048_v55, %v4430_v3  ;;  %v12150_v55 = vld [vmem:[%s19982_s7 + $0x270] sm:$0xff] }
 0x3bc   : > { %v21238_v51 = vld [vmem:[#allocation21_spill] sm:$0xff]  ;;  %7199 = vmatpush.bf16.msra.mxu1 %v12150_v55 }
 0x3bd   : > { %v21242_v55 = vld [vmem:[#allocation105_spill] sm:$0xff] }
 0x3be   : > { %v6408_v6 = vpop.f32.mrf.mxu1  ;;  %v5881_v36 = vpop.f32.mrf.mxu3 }
 0x3bf   : > { %v17461_v38 = vadd.f32 %v6408_v6, %v6287_v40  ;;  %v17463_v46 = vpop.f32.mrf.mxu0  ;;  %v17472_v33 = vadd.f32 %v5881_v36, %v5441_v2  ;;  %v6288_v40 = vadd.f32 %v21235_v50, %v17269_v49  ;;  %7394 = vmatpush.bf16.msra.mxu2 %v12155_v1  ;;  %v21237_v6 = vld [vmem:[#allocation197_spill] sm:$0xff]  ;;  %v12174_v49 = vld [vmem:[%s19982_s7 + $0x330] sm:$0xff] }
 0x3c0   : > { %21230 = vst [vmem:[#allocation171_spill] sm:$0xff] %v17463_v46  ;;  %v5442_v46 = vadd.f32 %v21238_v51, %v5064_v63  ;;  %7803 = vmatpush.bf16.msrb.mxu0 %v12174_v49  ;;  %v21239_v50 = vld [vmem:[#allocation93_spill] sm:$0xff] }
 0x3c1   : > { %6447 = vmatmul.bf16.gmra.mxu1 %v21233_v59  ;;  %v17480_v12 = vpop.f32.mrf.mxu2  ;;  %v21243_v49 = vld [vmem:[#allocation157_spill] sm:$0xff] }
 0x3c2   : > { %21234 = vst [vmem:[#allocation107_spill] sm:$0xff] %v17480_v12  ;;  %v12154_v12 = vld [vmem:[%s19982_s7 + $0x290] sm:$0xff] }
 0x3c3   : > { %7395 = vmatpush.bf16.msra.mxu2 %v12154_v12 }
 0x3c6   : > { %v6410_v36 = vpop.f32.mrf.mxu1  ;;  %6676 = vmatmul.bf16.gmra.mxu2 %v21237_v6  ;;  %v5883_v3 = vpop.f32.mrf.mxu3 }
 0x3c7   : > { %v17485_v2 = vadd.f32 %v6410_v36, %v6288_v40  ;;  %v17487_v24 = vpop.f32.mrf.mxu0  ;;  %v17500_v1 = vadd.f32 %v5883_v3, %v5442_v46  ;;  %v6289_v40 = vadd.f32 %v21239_v50, %v17290_v43  ;;  %v21240_v36 = vld [vmem:[#allocation99_spill] sm:$0xff]  ;;  %7396 = vmatpush.bf16.msra.mxu2 %v12153_v20  ;;  %v5443_v3 = vadd.f32 %v21242_v55, %v17089_v15  ;;  %v21244_v20 = vld [vmem:[#allocation185_spill] sm:$0xff] }
 0x3c8   : > { %21236 = vst [vmem:[#allocation5_spill] sm:$0xff] %v17487_v24  ;;  %6814 = vmatmul.bf16.gmra.mxu3 %v21240_v36  ;;  %v6290_v50 = vadd.f32 %v21244_v20, %v17308_v9  ;;  %v21246_v15 = vld [vmem:[#allocation83_spill] sm:$0xff] }
 0x3c9   : > { %v17506_v63 = vpop.f32.mrf.mxu2  ;;  %v5444_v55 = vadd.f32 %v21246_v15, %v17117_v35 }
 0x3ca   : > { %7069 = vmatmul.bf16.gmra.mxu0 %v17306_v16  ;;  %v12152_v16 = vld [vmem:[%s19982_s7 + $0x280] sm:$0xff] }
 0x3cb   : > { %7397 = vmatpush.bf16.msra.mxu2 %v12152_v16  ;;  %v12173_v16 = vld [vmem:[%s19982_s7 + $0x328] sm:$0xff] }
 0x3cc   : > { %7804 = vmatpush.bf16.msrb.mxu0 %v12173_v16  ;;  %v12172_v16 = vld [vmem:[%s19982_s7 + $0x320] sm:$0xff] }
 0x3ce   : > { %v6413_v51 = vpop.f32.mrf.mxu1  ;;  %v5886_v6 = vpop.f32.mrf.mxu3 }
 0x3cf   : > { %v17511_v46 = vadd.f32 %v6413_v51, %v6289_v40  ;;  %v17513_v12 = vpop.f32.mrf.mxu0  ;;  %v17521_v24 = vadd.f32 %v5886_v6, %v5443_v3  ;;  %v12149_v6 = vld [vmem:[%s19982_s7 + $0x268] sm:$0xff] }
 0x3d0   : > { %21241 = vst [vmem:[#allocation114_spill] sm:$0xff] %v17513_v12  ;;  %7200 = vmatpush.bf16.msra.mxu1 %v12149_v6  ;;  %v12148_v6 = vld [vmem:[%s19982_s7 + $0x260] sm:$0xff]  ;;  %7805 = vmatpush.bf16.msrb.mxu0 %v12172_v16 }
 0x3d1   : > { %6452 = vmatmul.bf16.gmra.mxu1 %v21243_v49  ;;  %v17523_v43 = vpop.f32.mrf.mxu2 }
 0x3d4   : > { %7201 = vmatpush.bf16.msra.mxu1 %v12148_v6  ;;  %v5446_v6 = vadd.f32 %v17026_v62, %v17172_v47  ;;  %v12145_v47 = vld [vmem:[%s19982_s7 + $0x248] sm:$0xff]  ;;  %v21254_v62 = vld [vmem:[#allocation53_spill] sm:$0xff] }
 0x3d6   : > { %v6415_v40 = vpop.f32.mrf.mxu1  ;;  %6681 = vmatmul.bf16.gmra.mxu2 %v16943_v22  ;;  %v5888_v3 = vpop.f32.mrf.mxu3 }
 0x3d7   : > { %v17527_v51 = vadd.f32 %v6415_v40, %v6290_v50  ;;  %v17529_v12 = vpop.f32.mrf.mxu0  ;;  %v17540_v9 = vadd.f32 %v5888_v3, %v5444_v55  ;;  %v21247_v50 = vld [vmem:[#allocation186_spill] sm:$0xff]  ;;  %v5445_v55 = vadd.f32 %v16978_v48, %v17145_v7 }
 0x3d8   : > { %21245 = vst [vmem:[#allocation29_spill] sm:$0xff] %v17529_v12  ;;  %v6291_v35 = vadd.f32 %v21247_v50, %v17325_v61  ;;  %v21248_v40 = vld [vmem:[#allocation106_spill] sm:$0xff] }
 0x3d9   : > { %v17543_v20 = vpop.f32.mrf.mxu2  ;;  %6819 = vmatmul.bf16.gmra.mxu3 %v21248_v40  ;;  %v21250_v61 = vld [vmem:[#allocation162_spill] sm:$0xff] }
 0x3da   : > { %7074 = vmatmul.bf16.gmra.mxu0 %v21182_v11  ;;  %v12165_v48 = vld [vmem:[%s19982_s7 + $0x2e8] sm:$0xff] }
 0x3db   : > { %7606 = vmatpush.bf16.msra.mxu3 %v12165_v48 }
 0x3de   : > { %v6418_v15 = vpop.f32.mrf.mxu1  ;;  %v5891_v3 = vpop.f32.mrf.mxu3 }
 0x3df   : > { %v17548_v22 = vadd.f32 %v6418_v15, %v6291_v35  ;;  %v17550_v12 = vpop.f32.mrf.mxu0  ;;  %v17561_v50 = vadd.f32 %v5891_v3, %v5445_v55  ;;  %v12171_v35 = vld [vmem:[%s19982_s7 + $0x318] sm:$0xff]  ;;  %v21252_v55 = vld [vmem:[#allocation43_spill] sm:$0xff] }
 0x3e0   : > { %21249 = vst [vmem:[#allocation145_spill] sm:$0xff] %v17550_v12  ;;  %v12147_v15 = vld [vmem:[%s19982_s7 + $0x258] sm:$0xff]  ;;  %v6292_v3 = vadd.f32 %v21252_v55, %v17340_v4  ;;  %7806 = vmatpush.bf16.msrb.mxu0 %v12171_v35  ;;  %v12170_v4 = vld [vmem:[%s19982_s7 + $0x310] sm:$0xff]  ;;  %v6293_v55 = vadd.f32 %v21254_v62, %v17358_v5  ;;  %v12168_v5 = vld [vmem:[%s19982_s7 + $0x300] sm:$0xff] }
 0x3e1   : > { %6457 = vmatmul.bf16.gmra.mxu1 %v21250_v61  ;;  %v17569_v7 = vpop.f32.mrf.mxu2 }
 0x3e2   : > { %21251 = vst [vmem:[#allocation146_spill] sm:$0xff] %v17569_v7  ;;  %7202 = vmatpush.bf16.msra.mxu1 %v12147_v15  ;;  %v12146_v7 = vld [vmem:[%s19982_s7 + $0x250] sm:$0xff]  ;;  %v12169_v15 = vld [vmem:[%s19982_s7 + $0x308] sm:$0xff] }
 0x3e4   : > { %7807 = vmatpush.bf16.msrb.mxu0 %v12170_v4 }
 0x3e6   : > { %v6420_v16 = vpop.f32.mrf.mxu1  ;;  %7398 = vmatmul.bf16.vlgmr.msra.gmra.mxu2 %v21044_v42  ;;  %v5893_v35 = vpop.f32.mrf.mxu3  ;;  %7203 = vmatpush.bf16.msra.mxu1 %v12146_v7  ;;  %v12144_v7 = vld [vmem:[%s19982_s7 + $0x240] sm:$0xff] }
 0x3e7   : > { %v17576_v11 = vadd.f32 %v6420_v16, %v6292_v3  ;;  %v17578_v12 = vpop.f32.mrf.mxu0  ;;  %v17589_v48 = vadd.f32 %v5893_v35, %v5446_v6  ;;  %v21255_v3 = vld [vmem:[#allocation116_spill] sm:$0xff]  ;;  %v5447_v35 = vadd.f32 %v17071_v44, %v17187_v8 }
 0x3e8   : > { %21253 = vst [vmem:[#allocation205_spill] sm:$0xff] %v17578_v12  ;;  %7808 = vmatpush.bf16.msrb.mxu0 %v12169_v15  ;;  %v5448_v12 = vadd.f32 %v17105_v26, %v17216_v53  ;;  %v5449_v53 = vadd.f32 %v17130_v0, %v17235_v60  ;;  %v5450_v0 = vadd.f32 %v17158_v25, %v17261_v54 }
 0x3e9   : > { %v17595_v42 = vpop.f32.mrf.mxu2  ;;  %6824 = vmatmul.bf16.gmra.mxu3 %v21255_v3  ;;  %v5451_v25 = vadd.f32 %v17181_v39, %v17282_v31 }
 0x3ea   : > { %7079 = vmatmul.bf16.gmra.mxu0 %v16941_v14  ;;  %7204 = vmatpush.bf16.msra.mxu1 %v12145_v47  ;;  %v21257_v14 = vld [vmem:[#allocation172_spill] sm:$0xff] }
 0x3ec   : > { %7809 = vmatpush.bf16.msrb.mxu0 %v12168_v5 }
 0x3ee   : > { %v6423_v16 = vpop.f32.mrf.mxu1  ;;  %v5896_v62 = vpop.f32.mrf.mxu3  ;;  %7205 = vmatpush.bf16.msra.mxu1 %v12144_v7  ;;  %v6332_v7 = vunpack.c.l.b16 %v21003_v27 }
 0x3ef   : > { %v17603_v6 = vadd.f32 %v6423_v16, %v6293_v55  ;;  %v17605_v4 = vpop.f32.mrf.mxu0  ;;  %v17616_v15 = vadd.f32 %v5896_v62, %v5447_v35  ;;  %v21258_v55 = vld [vmem:[#allocation192_spill] sm:$0xff] }
 0x3f0   : > { %21256 = vst [vmem:[#allocation7_spill] sm:$0xff] %v17605_v4  ;;  %v6294_v44 = vadd.f32 %v21258_v55, %v17371_v10  ;;  %v21260_v10 = vld [vmem:[#allocation61_spill] sm:$0xff]  ;;  %v21261_v55 = vld [vmem:[#allocation194_spill] sm:$0xff] }
 0x3f1   : > { %6462 = vmatmul.bf16.gmra.mxu1 %v21257_v14  ;;  %v17618_v47 = vpop.f32.mrf.mxu2  ;;  %v6333_v62 = vunpack.c.l.b16 %v21260_v10 }
 0x3f3   : > { %v17641_v26 = vpack.c.b16 %v6333_v62, %v6332_v7 }
 0x3f5   : > { %21263 = vst [vmem:[#allocation58_spill] sm:$0xff] %v17641_v26 }
 0x3f6   : > { %v6425_v8 = vpop.f32.mrf.mxu1  ;;  %7403 = vmatmul.bf16.gmra.mxu2 %v21068_v13  ;;  %v5898_v14 = vpop.f32.mrf.mxu3 }
 0x3f7   : > { %v17622_v16 = vadd.f32 %v6425_v8, %v6294_v44  ;;  %v17624_v4 = vpop.f32.mrf.mxu0  ;;  %v17629_v35 = vadd.f32 %v5898_v14, %v5448_v12  ;;  %v6295_v44 = vadd.f32 %v21261_v55, %v17389_v41  ;;  %v21262_v8 = vld [vmem:[#allocation122_spill] sm:$0xff]  ;;  %v12164_v41 = vld [vmem:[%s19982_s7 + $0x2e0] sm:$0xff] }
 0x3f8   : > { %21259 = vst [vmem:[#allocation69_spill] sm:$0xff] %v17624_v4  ;;  %7607 = vmatpush.bf16.msra.mxu3 %v12164_v41  ;;  %v21267_v41 = vld [vmem:[#allocation204_spill] sm:$0xff] }
 0x3f9   : > { %v17632_v5 = vpop.f32.mrf.mxu2  ;;  %6829 = vmatmul.bf16.gmra.mxu3 %v21262_v8 }
 0x3fa   : > { %7084 = vmatmul.bf16.gmra.mxu0 %v16996_v32 }
 0x3fe   : > { %v6428_v13 = vpop.f32.mrf.mxu1  ;;  %v5901_v12 = vpop.f32.mrf.mxu3 }
 0x3ff   : > { %v17639_v4 = vadd.f32 %v6428_v13, %v6295_v44  ;;  %v17643_v14 = vpop.f32.mrf.mxu0  ;;  %v17648_v27 = vadd.f32 %v5901_v12, %v5449_v53  ;;  %v21265_v13 = vld [vmem:[#allocation200_spill] sm:$0xff] }
 0x400   : > { %21264 = vst [vmem:[#allocation149_spill] sm:$0xff] %v17643_v14  ;;  %v6296_v7 = vadd.f32 %v21265_v13, %v17414_v29  ;;  %v6297_v29 = vadd.f32 %v21267_v41, %v17432_v23  ;;  %v21268_v13 = vld [vmem:[#allocation132_spill] sm:$0xff] }
 0x401   : > { %6467 = vmatmul.bf16.gmra.mxu1 %v17641_v26  ;;  %v17653_v10 = vpop.f32.mrf.mxu2 }
 0x406   : > { %v6430_v62 = vpop.f32.mrf.mxu1  ;;  %7408 = vmatmul.bf16.gmra.mxu2 %v21087_v58  ;;  %v5903_v60 = vpop.f32.mrf.mxu3  ;;  %v21271_v58 = vld [vmem:[#allocation97_spill] sm:$0xff] }
 0x407   : > { %v17657_v55 = vadd.f32 %v6430_v62, %v6296_v7  ;;  %v17659_v44 = vpop.f32.mrf.mxu0  ;;  %v17664_v53 = vadd.f32 %v5903_v60, %v5450_v0  ;;  %v21270_v0 = vld [vmem:[#allocation54_spill] sm:$0xff]  ;;  %v6298_v23 = vadd.f32 %v21271_v58, %v17448_v45  ;;  %v21276_v45 = vld [vmem:[#allocation139_spill] sm:$0xff] }
 0x408   : > { %21266 = vst [vmem:[#allocation6_spill] sm:$0xff] %v17659_v44 }
 0x409   : > { %v17667_v12 = vpop.f32.mrf.mxu2  ;;  %6834 = vmatmul.bf16.gmra.mxu3 %v21268_v13 }
 0x40a   : > { %7810 = vmatmul.bf16.vlgmr.msrb.gmra.mxu0 %v21229_v34 }
 0x40e   : > { %v6433_v7 = vpop.f32.mrf.mxu1  ;;  %v5906_v54 = vpop.f32.mrf.mxu3 }
 0x40f   : > { %v17672_v62 = vadd.f32 %v6433_v7, %v6297_v29  ;;  %v17674_v32 = vpop.f32.mrf.mxu0  ;;  %v17679_v60 = vadd.f32 %v5906_v54, %v5451_v25  ;;  %v21273_v7 = vld [vmem:[#allocation147_spill] sm:$0xff]  ;;  %v21275_v54 = vld [vmem:[#allocation25_spill] sm:$0xff] }
 0x410   : > { %21269 = vst [vmem:[#allocation64_spill] sm:$0xff] %v17674_v32  ;;  %v5452_v39 = vadd.f32 %v21273_v7, %v17300_v19  ;;  %v6299_v58 = vadd.f32 %v21275_v54, %v17472_v33  ;;  %v21281_v54 = vld [vmem:[#allocation178_spill] sm:$0xff] }
 0x411   : > { %7206 = vmatmul.bf16.vlgmr.msra.gmra.mxu1 %v21270_v0  ;;  %v17681_v34 = vpop.f32.mrf.mxu2 }
 0x416   : > { %v6435_v41 = vpop.f32.mrf.mxu1  ;;  %7413 = vmatmul.bf16.gmra.mxu2 %v21107_v37  ;;  %v5908_v31 = vpop.f32.mrf.mxu3  ;;  %v21278_v37 = vld [vmem:[#allocation39_spill] sm:$0xff] }
 0x417   : > { %v17685_v44 = vadd.f32 %v6435_v41, %v6298_v23  ;;  %v17687_v29 = vpop.f32.mrf.mxu0  ;;  %v17692_v32 = vadd.f32 %v5908_v31, %v5452_v39  ;;  %v5453_v19 = vadd.f32 %v21278_v37, %v17317_v57  ;;  %v21279_v39 = vld [vmem:[#allocation110_spill] sm:$0xff]  ;;  %v21283_v37 = vld [vmem:[#allocation15_spill] sm:$0xff] }
 0x418   : > { %21272 = vst [vmem:[#allocation55_spill] sm:$0xff] %v17687_v29  ;;  %v21284_v57 = vld [vmem:[#allocation11_spill] sm:$0xff] }
 0x419   : > { %v17695_v25 = vpop.f32.mrf.mxu2  ;;  %6839 = vmatmul.bf16.gmra.mxu3 %v21276_v45 }
 0x41a   : > { %7815 = vmatmul.bf16.gmra.mxu0 %v21240_v36  ;;  %21274 = vst [vmem:[#allocation117_spill] sm:$0xff] %v17695_v25  ;;  %v12163_v36 = vld [vmem:[%s19982_s7 + $0x2d8] sm:$0xff] }
 0x41b   : > { %7608 = vmatpush.bf16.msra.mxu3 %v12163_v36  ;;  %v21286_v36 = vld [vmem:[#allocation22_spill] sm:$0xff] }
 0x41e   : > { %v6438_v0 = vpop.f32.mrf.mxu1  ;;  %v5911_v7 = vpop.f32.mrf.mxu3 }
 0x41f   : > { %v17700_v23 = vadd.f32 %v6438_v0, %v6299_v58  ;;  %v17702_v41 = vpop.f32.mrf.mxu0  ;;  %v17707_v31 = vadd.f32 %v5911_v7, %v5453_v19  ;;  %v6300_v58 = vadd.f32 %v21281_v54, %v17500_v1  ;;  %v5454_v19 = vadd.f32 %v21284_v57, %v17334_v52  ;;  %v21287_v54 = vld [vmem:[#allocation151_spill] sm:$0xff] }
 0x420   : > { %21277 = vst [vmem:[#allocation108_spill] sm:$0xff] %v17702_v41  ;;  %v6301_v1 = vadd.f32 %v21286_v36, %v17521_v24 }
 0x421   : > { %7211 = vmatmul.bf16.gmra.mxu1 %v21279_v39  ;;  %v17712_v33 = vpop.f32.mrf.mxu2 }
 0x422   : > { %21280 = vst [vmem:[#allocation191_spill] sm:$0xff] %v17712_v33 }
 0x426   : > { %v6440_v0 = vpop.f32.mrf.mxu1  ;;  %7418 = vmatmul.bf16.gmra.mxu2 %v21283_v37  ;;  %v5913_v7 = vpop.f32.mrf.mxu3  ;;  %v21289_v37 = vld [vmem:[#allocation115_spill] sm:$0xff] }
 0x427   : > { %v17716_v41 = vadd.f32 %v6440_v0, %v6300_v58  ;;  %v17718_v29 = vpop.f32.mrf.mxu0  ;;  %v17723_v14 = vadd.f32 %v5913_v7, %v5454_v19  ;;  %v6687_v52 = vadd.f32 %v21289_v37, %v17350_v30  ;;  %v21290_v19 = vld [vmem:[#allocation118_spill] sm:$0xff] }
 0x428   : > { %21282 = vst [vmem:[#allocation8_spill] sm:$0xff] %v17718_v29 }
 0x429   : > { %v17726_v33 = vpop.f32.mrf.mxu2  ;;  %6844 = vmatmul.bf16.gmra.mxu3 %v21287_v54 }
 0x42a   : > { %7820 = vmatmul.bf16.gmra.mxu0 %v21248_v40  ;;  %21285 = vst [vmem:[#allocation91_spill] sm:$0xff] %v17726_v33  ;;  %v21292_v33 = vld [vmem:[#allocation80_spill] sm:$0xff] }
 0x42b   : > { %v6302_v24 = vadd.f32 %v21292_v33, %v17540_v9  ;;  %v21298_v33 = vld [vmem:[#allocation156_spill] sm:$0xff] }
 0x42e   : > { %v6443_v58 = vpop.f32.mrf.mxu1  ;;  %v6805_v57 = vpop.f32.mrf.mxu3 }
 0x42f   : > { %v17731_v0 = vadd.f32 %v6443_v58, %v6301_v1  ;;  %v17733_v29 = vpop.f32.mrf.mxu0  ;;  %v17738_v7 = vadd.f32 %v6805_v57, %v6687_v52  ;;  %v21294_v58 = vld [vmem:[#allocation82_spill] sm:$0xff]  ;;  %v21297_v57 = vld [vmem:[#allocation27_spill] sm:$0xff] }
 0x430   : > { %21288 = vst [vmem:[#allocation79_spill] sm:$0xff] %v17733_v29  ;;  %v21295_v29 = vld [vmem:[#allocation179_spill] sm:$0xff]  ;;  %v6303_v9 = vadd.f32 %v21297_v57, %v17561_v50 }
 0x431   : > { %7216 = vmatmul.bf16.gmra.mxu1 %v21290_v19  ;;  %v17740_v40 = vpop.f32.mrf.mxu2  ;;  %v6688_v30 = vadd.f32 %v21295_v29, %v17365_v18  ;;  %v21304_v57 = vld [vmem:[#allocation119_spill] sm:$0xff] }
 0x432   : > { %21291 = vst [vmem:[#allocation66_spill] sm:$0xff] %v17740_v40  ;;  %v21301_v40 = vld [vmem:[#allocation129_spill] sm:$0xff] }
 0x436   : > { %v6445_v36 = vpop.f32.mrf.mxu1  ;;  %7423 = vmatmul.bf16.gmra.mxu2 %v21294_v58  ;;  %v6807_v37 = vpop.f32.mrf.mxu3  ;;  %v21300_v58 = vld [vmem:[#allocation130_spill] sm:$0xff] }
 0x437   : > { %v17744_v39 = vadd.f32 %v6445_v36, %v6302_v24  ;;  %v17746_v1 = vpop.f32.mrf.mxu0  ;;  %v17751_v25 = vadd.f32 %v6807_v37, %v6688_v30  ;;  %v6689_v18 = vadd.f32 %v21301_v40, %v21300_v58  ;;  %v21302_v30 = vld [vmem:[#allocation127_spill] sm:$0xff]  ;;  %v21307_v40 = vld [vmem:[#allocation98_spill] sm:$0xff] }
 0x438   : > { %21293 = vst [vmem:[#allocation34_spill] sm:$0xff] %v17746_v1  ;;  %v21308_v58 = vld [vmem:[#allocation143_spill] sm:$0xff] }
 0x439   : > { %v17754_v52 = vpop.f32.mrf.mxu2  ;;  %6849 = vmatmul.bf16.gmra.mxu3 %v21298_v33 }
 0x43a   : > { %7825 = vmatmul.bf16.gmra.mxu0 %v21255_v3  ;;  %21296 = vst [vmem:[#allocation89_spill] sm:$0xff] %v17754_v52  ;;  %v12162_v3 = vld [vmem:[%s19982_s7 + $0x2d0] sm:$0xff] }
 0x43b   : > { %7609 = vmatpush.bf16.msra.mxu3 %v12162_v3  ;;  %v21311_v3 = vld [vmem:[#allocation166_spill] sm:$0xff] }
 0x43e   : > { %v6448_v24 = vpop.f32.mrf.mxu1  ;;  %v6810_v29 = vpop.f32.mrf.mxu3 }
 0x43f   : > { %v17759_v36 = vadd.f32 %v6448_v24, %v6303_v9  ;;  %v17761_v1 = vpop.f32.mrf.mxu0  ;;  %v17766_v37 = vadd.f32 %v6810_v29, %v6689_v18  ;;  %v6304_v9 = vadd.f32 %v21304_v57, %v17589_v48  ;;  %v21309_v18 = vld [vmem:[#allocation52_spill] sm:$0xff]  ;;  %v6305_v48 = vadd.f32 %v21311_v3, %v17616_v15  ;;  %v21312_v57 = vld [vmem:[#allocation165_spill] sm:$0xff] }
 0x440   : > { %21299 = vst [vmem:[#allocation135_spill] sm:$0xff] %v17761_v1  ;;  %v6690_v29 = vadd.f32 %v21309_v18, %v21308_v58 }
 0x441   : > { %7221 = vmatmul.bf16.gmra.mxu1 %v21302_v30  ;;  %v17771_v50 = vpop.f32.mrf.mxu2 }
 0x442   : > { %21303 = vst [vmem:[#allocation78_spill] sm:$0xff] %v17771_v50 }
 0x446   : > { %v6450_v24 = vpop.f32.mrf.mxu1  ;;  %7428 = vmatmul.bf16.gmra.mxu2 %v21307_v40  ;;  %v6812_v30 = vpop.f32.mrf.mxu3  ;;  %v21315_v40 = vld [vmem:[#allocation57_spill] sm:$0xff] }
 0x447   : > { %v17775_v1 = vadd.f32 %v6450_v24, %v6304_v9  ;;  %v17777_v52 = vpop.f32.mrf.mxu0  ;;  %v17782_v19 = vadd.f32 %v6812_v30, %v6690_v29  ;;  %v6691_v58 = vadd.f32 %v21315_v40, %v17424_v56  ;;  %v21316_v30 = vld [vmem:[#allocation138_spill] sm:$0xff] }
 0x448   : > { %21306 = vst [vmem:[#allocation46_spill] sm:$0xff] %v17777_v52 }
 0x449   : > { %21305 = vst [vmem:[#allocation182_spill] sm:$0xff] %v17775_v1  ;;  %v17785_v50 = vpop.f32.mrf.mxu2  ;;  %6854 = vmatmul.bf16.gmra.mxu3 %v21312_v57 }
 0x44a   : > { %7830 = vmatmul.bf16.gmra.mxu0 %v21262_v8  ;;  %21310 = vst [vmem:[#allocation72_spill] sm:$0xff] %v17785_v50  ;;  %v21318_v50 = vld [vmem:[#allocation49_spill] sm:$0xff] }
 0x44b   : > { %v6306_v15 = vadd.f32 %v21318_v50, %v17629_v35  ;;  %v21324_v50 = vld [vmem:[#allocation176_spill] sm:$0xff] }
 0x44e   : > { %v6453_v9 = vpop.f32.mrf.mxu1  ;;  %v6815_v18 = vpop.f32.mrf.mxu3 }
 0x44f   : > { %v17790_v24 = vadd.f32 %v6453_v9, %v6305_v48  ;;  %v17792_v52 = vpop.f32.mrf.mxu0  ;;  %v17797_v29 = vadd.f32 %v6815_v18, %v6691_v58  ;;  %v21320_v9 = vld [vmem:[#allocation109_spill] sm:$0xff]  ;;  %v21323_v18 = vld [vmem:[#allocation124_spill] sm:$0xff] }
 0x450   : > { %21314 = vst [vmem:[#allocation142_spill] sm:$0xff] %v17792_v52  ;;  %v21321_v52 = vld [vmem:[#allocation94_spill] sm:$0xff]  ;;  %v6307_v35 = vadd.f32 %v21323_v18, %v17648_v27 }
 0x451   : > { %21313 = vst [vmem:[#allocation9_spill] sm:$0xff] %v17790_v24  ;;  %7226 = vmatmul.bf16.gmra.mxu1 %v21316_v30  ;;  %v17799_v8 = vpop.f32.mrf.mxu2  ;;  %v6692_v56 = vadd.f32 %v21321_v52, %v17439_v21  ;;  %v21329_v18 = vld [vmem:[#allocation38_spill] sm:$0xff] }
 0x452   : > { %21317 = vst [vmem:[#allocation42_spill] sm:$0xff] %v17799_v8 }
 0x456   : > { %v6455_v3 = vpop.f32.mrf.mxu1  ;;  %7433 = vmatmul.bf16.gmra.mxu2 %v21320_v9  ;;  %v6817_v40 = vpop.f32.mrf.mxu3  ;;  %v21326_v9 = vld [vmem:[#allocation133_spill] sm:$0xff] }
 0x457   : > { %v17803_v1 = vadd.f32 %v6455_v3, %v6306_v15  ;;  %v17805_v48 = vpop.f32.mrf.mxu0  ;;  %v17810_v24 = vadd.f32 %v6817_v40, %v6692_v56  ;;  %v6693_v21 = vadd.f32 %v21326_v9, %v17461_v38  ;;  %v21327_v56 = vld [vmem:[#allocation140_spill] sm:$0xff]  ;;  %v21331_v38 = vld [vmem:[#allocation126_spill] sm:$0xff] }
 0x458   : > { %21319 = vst [vmem:[#allocation148_spill] sm:$0xff] %v17805_v48  ;;  %v21332_v9 = vld [vmem:[#allocation70_spill] sm:$0xff] }
 0x459   : > { %v17813_v58 = vpop.f32.mrf.mxu2  ;;  %6859 = vmatmul.bf16.gmra.mxu3 %v21324_v50 }
 0x45a   : > { %7835 = vmatmul.bf16.gmra.mxu0 %v21268_v13  ;;  %21322 = vst [vmem:[#allocation193_spill] sm:$0xff] %v17813_v58  ;;  %v12161_v13 = vld [vmem:[%s19982_s7 + $0x2c8] sm:$0xff] }
 0x45b   : > { %7610 = vmatpush.bf16.msra.mxu3 %v12161_v13  ;;  %v21334_v13 = vld [vmem:[#allocation153_spill] sm:$0xff] }
 0x45e   : > { %v6458_v15 = vpop.f32.mrf.mxu1  ;;  %v6820_v52 = vpop.f32.mrf.mxu3 }
 0x45f   : > { %v17818_v3 = vadd.f32 %v6458_v15, %v6307_v35  ;;  %v17820_v48 = vpop.f32.mrf.mxu0  ;;  %v17825_v40 = vadd.f32 %v6820_v52, %v6693_v21  ;;  %v6308_v35 = vadd.f32 %v21329_v18, %v17664_v53  ;;  %v6694_v21 = vadd.f32 %v21332_v9, %v17485_v2  ;;  %v21335_v18 = vld [vmem:[#allocation44_spill] sm:$0xff] }
 0x460   : > { %21325 = vst [vmem:[#allocation26_spill] sm:$0xff] %v17820_v48  ;;  %v6309_v53 = vadd.f32 %v21334_v13, %v17679_v60 }
 0x461   : > { %7231 = vmatmul.bf16.gmra.mxu1 %v21327_v56  ;;  %v17830_v27 = vpop.f32.mrf.mxu2 }
 0x462   : > { %21328 = vst [vmem:[#allocation59_spill] sm:$0xff] %v17830_v27 }
 0x466   : > { %v6460_v15 = vpop.f32.mrf.mxu1  ;;  %7438 = vmatmul.bf16.gmra.mxu2 %v21331_v38  ;;  %v6822_v52 = vpop.f32.mrf.mxu3  ;;  %v21337_v38 = vld [vmem:[#allocation62_spill] sm:$0xff] }
 0x467   : > { %v17834_v48 = vadd.f32 %v6460_v15, %v6308_v35  ;;  %v17836_v58 = vpop.f32.mrf.mxu0  ;;  %v17841_v56 = vadd.f32 %v6822_v52, %v6694_v21  ;;  %v6695_v2 = vadd.f32 %v21337_v38, %v17511_v46  ;;  %v21338_v21 = vld [vmem:[#allocation152_spill] sm:$0xff]  ;;  %v6696_v46 = vadd.f32 %v17434_v28, %v17527_v51 }
 0x468   : > { %21330 = vst [vmem:[#allocation37_spill] sm:$0xff] %v17836_v58 }
 0x469   : > { %v17844_v27 = vpop.f32.mrf.mxu2  ;;  %6864 = vmatmul.bf16.gmra.mxu3 %v21335_v18 }
 0x46a   : > { %7840 = vmatmul.bf16.gmra.mxu0 %v21276_v45  ;;  %21333 = vst [vmem:[#allocation50_spill] sm:$0xff] %v17844_v27  ;;  %v21339_v27 = vld [vmem:[#allocation95_spill] sm:$0xff] }
 0x46b   : > { %v6310_v60 = vadd.f32 %v21339_v27, %v17692_v32  ;;  %v21342_v27 = vld [vmem:[#allocation77_spill] sm:$0xff] }
 0x46e   : > { %v6463_v35 = vpop.f32.mrf.mxu1  ;;  %v6825_v9 = vpop.f32.mrf.mxu3 }
 0x46f   : > { %v17849_v15 = vadd.f32 %v6463_v35, %v6309_v53  ;;  %v17851_v58 = vpop.f32.mrf.mxu0  ;;  %v17856_v52 = vadd.f32 %v6825_v9, %v6695_v2  ;;  %v21341_v9 = vld [vmem:[#allocation60_spill] sm:$0xff] }
 0x470   : > { %21336 = vst [vmem:[#allocation167_spill] sm:$0xff] %v17851_v58  ;;  %v6311_v32 = vadd.f32 %v21341_v9, %v17707_v31  ;;  %v21347_v9 = vld [vmem:[#allocation160_spill] sm:$0xff] }
 0x471   : > { %7236 = vmatmul.bf16.gmra.mxu1 %v21338_v21  ;;  %v17858_v45 = vpop.f32.mrf.mxu2 }
 0x476   : > { %v6465_v13 = vpop.f32.mrf.mxu1  ;;  %7443 = vmatmul.bf16.gmra.mxu2 %v21220_v17  ;;  %v6827_v38 = vpop.f32.mrf.mxu3  ;;  %v21344_v17 = vld [vmem:[#allocation68_spill] sm:$0xff] }
 0x477   : > { %v17862_v8 = vadd.f32 %v6465_v13, %v6310_v60  ;;  %v17864_v53 = vpop.f32.mrf.mxu0  ;;  %v17869_v35 = vadd.f32 %v6827_v38, %v6696_v46  ;;  %v6697_v28 = vadd.f32 %v21344_v17, %v17548_v22  ;;  %v21345_v46 = vld [vmem:[#allocation158_spill] sm:$0xff]  ;;  %v21349_v22 = vld [vmem:[#allocation107_spill] sm:$0xff] }
 0x478   : > { %21340 = vst [vmem:[#allocation154_spill] sm:$0xff] %v17864_v53  ;;  %v6698_v17 = vadd.f32 %v21349_v22, %v17576_v11  ;;  %v6699_v11 = vadd.f32 %v17506_v63, %v17603_v6  ;;  %v6700_v63 = vadd.f32 %v17523_v43, %v17622_v16  ;;  %v6701_v43 = vadd.f32 %v17543_v20, %v17639_v4 }
 0x479   : > { %v17872_v2 = vpop.f32.mrf.mxu2  ;;  %6869 = vmatmul.bf16.gmra.mxu3 %v21342_v27 }
 0x47a   : > { %7845 = vmatmul.bf16.gmra.mxu0 %v21287_v54  ;;  %v12160_v54 = vld [vmem:[%s19982_s7 + $0x2c0] sm:$0xff] }
 0x47b   : > { %7611 = vmatpush.bf16.msra.mxu3 %v12160_v54  ;;  %v21351_v54 = vld [vmem:[#allocation47_spill] sm:$0xff] }
 0x47e   : > { %v6468_v60 = vpop.f32.mrf.mxu1  ;;  %v6830_v51 = vpop.f32.mrf.mxu3 }
 0x47f   : > { %v17877_v13 = vadd.f32 %v6468_v60, %v6311_v32  ;;  %v17879_v53 = vpop.f32.mrf.mxu0  ;;  %v17884_v38 = vadd.f32 %v6830_v51, %v6697_v28  ;;  %v6312_v32 = vadd.f32 %v21347_v9, %v17723_v14  ;;  %v7090_v14 = vadd.f32 %v21351_v54, %v17738_v7  ;;  %v21352_v9 = vld [vmem:[#allocation67_spill] sm:$0xff] }
 0x480   : > { %21343 = vst [vmem:[#allocation188_spill] sm:$0xff] %v17879_v53 }
 0x481   : > { %7241 = vmatmul.bf16.gmra.mxu1 %v21345_v46  ;;  %v17889_v31 = vpop.f32.mrf.mxu2 }
 0x482   : > { %21346 = vst [vmem:[#allocation163_spill] sm:$0xff] %v17889_v31 }
 0x486   : > { %v6470_v60 = vpop.f32.mrf.mxu1  ;;  %7448 = vmatmul.bf16.gmra.mxu2 %v21233_v59  ;;  %v6832_v28 = vpop.f32.mrf.mxu3  ;;  %v21355_v59 = vld [vmem:[#allocation161_spill] sm:$0xff] }
 0x487   : > { %v17893_v53 = vadd.f32 %v6470_v60, %v6312_v32  ;;  %v17895_v58 = vpop.f32.mrf.mxu0  ;;  %v17900_v51 = vadd.f32 %v6832_v28, %v6698_v17  ;;  %v21354_v17 = vld [vmem:[#allocation168_spill] sm:$0xff]  ;;  %v7091_v7 = vadd.f32 %v21355_v59, %v17751_v25 }
 0x488   : > { %21348 = vst [vmem:[#allocation202_spill] sm:$0xff] %v17895_v58  ;;  %v21358_v25 = vld [vmem:[#allocation12_spill] sm:$0xff] }
 0x489   : > { %v17903_v31 = vpop.f32.mrf.mxu2  ;;  %6874 = vmatmul.bf16.gmra.mxu3 %v21352_v9 }
 0x48a   : > { %7850 = vmatmul.bf16.gmra.mxu0 %v21298_v33  ;;  %21350 = vst [vmem:[#allocation174_spill] sm:$0xff] %v17903_v31 }
 0x48e   : > { %v7207_v32 = vpop.f32.mrf.mxu1  ;;  %v6835_v22 = vpop.f32.mrf.mxu3 }
 0x48f   : > { %v17908_v60 = vadd.f32 %v7207_v32, %v7090_v14  ;;  %v17910_v58 = vpop.f32.mrf.mxu0  ;;  %v17915_v28 = vadd.f32 %v6835_v22, %v6699_v11  ;;  %v21357_v22 = vld [vmem:[#allocation134_spill] sm:$0xff] }
 0x490   : > { %21353 = vst [vmem:[#allocation71_spill] sm:$0xff] %v17910_v58  ;;  %v7092_v59 = vadd.f32 %v21357_v22, %v17766_v37  ;;  %v12199_v37 = vld [vmem:[%s19982_s7 + $0x3f8] sm:$0xff]  ;;  %v21368_v58 = vld [vmem:[#allocation51_spill] sm:$0xff] }
 0x491   : > { %7246 = vmatmul.bf16.gmra.mxu1 %v21354_v17  ;;  %v17917_v33 = vpop.f32.mrf.mxu2  ;;  %8396 = vmatpush.bf16.msrb.mxu3 %v12199_v37 }
 0x496   : > { %v7209_v54 = vpop.f32.mrf.mxu1  ;;  %7453 = vmatmul.bf16.gmra.mxu2 %v21243_v49  ;;  %v6837_v6 = vpop.f32.mrf.mxu3 }
 0x497   : > { %v17921_v31 = vadd.f32 %v7209_v54, %v7091_v7  ;;  %v17923_v14 = vpop.f32.mrf.mxu0  ;;  %v17928_v32 = vadd.f32 %v6837_v6, %v6700_v63  ;;  %v21360_v63 = vld [vmem:[#allocation170_spill] sm:$0xff] }
 0x498   : > { %21356 = vst [vmem:[#allocation84_spill] sm:$0xff] %v17923_v14 }
 0x499   : > { %v17931_v11 = vpop.f32.mrf.mxu2  ;;  %6879 = vmatmul.bf16.gmra.mxu3 %v21358_v25 }
 0x49a   : > { %7855 = vmatmul.bf16.gmra.mxu0 %v21312_v57  ;;  %v12191_v57 = vld [vmem:[%s19982_s7 + $0x3b8] sm:$0xff] }
 0x49b   : > { %8204 = vmatpush.bf16.msrb.mxu2 %v12191_v57  ;;  %v12207_v57 = vld [vmem:[%s19982_s7 + $0x438] sm:$0xff] }
 0x49c   : > { %8610 = vmatpush.bf16.msra.mxu0 %v12207_v57 }
 0x49e   : > { %v7212_v7 = vpop.f32.mrf.mxu1  ;;  %v6840_v16 = vpop.f32.mrf.mxu3 }
 0x49f   : > { %v17936_v54 = vadd.f32 %v7212_v7, %v7092_v59  ;;  %v17938_v14 = vpop.f32.mrf.mxu0  ;;  %v17943_v6 = vadd.f32 %v6840_v16, %v6701_v43  ;;  %v21361_v59 = vld [vmem:[#allocation103_spill] sm:$0xff]  ;;  %v21363_v16 = vld [vmem:[#allocation146_spill] sm:$0xff] }
 0x4a0   : > { %21359 = vst [vmem:[#allocation16_spill] sm:$0xff] %v17938_v14  ;;  %v7093_v20 = vadd.f32 %v21361_v59, %v17782_v19  ;;  %v6702_v49 = vadd.f32 %v21363_v16, %v17657_v55  ;;  %v12183_v14 = vld [vmem:[%s19982_s7 + $0x378] sm:$0xff] }
 0x4a1   : > { %7251 = vmatmul.bf16.gmra.mxu1 %v21360_v63  ;;  %v17951_v22 = vpop.f32.mrf.mxu2 }
 0x4a2   : > { %8007 = vmatpush.bf16.msrb.mxu1 %v12183_v14  ;;  %v21367_v14 = vld [vmem:[#allocation30_spill] sm:$0xff] }
 0x4a6   : > { %v7214_v4 = vpop.f32.mrf.mxu1  ;;  %7458 = vmatmul.bf16.gmra.mxu2 %v21250_v61  ;;  %v6842_v37 = vpop.f32.mrf.mxu3 }
 0x4a7   : > { %v17955_v7 = vadd.f32 %v7214_v4, %v7093_v20  ;;  %v17957_v43 = vpop.f32.mrf.mxu0  ;;  %v17968_v19 = vadd.f32 %v6842_v37, %v6702_v49  ;;  %v21364_v20 = vld [vmem:[#allocation164_spill] sm:$0xff]  ;;  %v6703_v49 = vadd.f32 %v17595_v42, %v17672_v62  ;;  %v6704_v42 = vadd.f32 %v17618_v47, %v17685_v44  ;;  %v12190_v62 = vld [vmem:[%s19982_s7 + $0x3b0] sm:$0xff] }
 0x4a8   : > { %21362 = vst [vmem:[#allocation19_spill] sm:$0xff] %v17957_v43  ;;  %v7094_v55 = vadd.f32 %v21364_v20, %v17797_v29  ;;  %v21365_v4 = vld [vmem:[#allocation112_spill] sm:$0xff]  ;;  %v7095_v29 = vadd.f32 %v21368_v58, %v17810_v24  ;;  %8205 = vmatpush.bf16.msrb.mxu2 %v12190_v62  ;;  %v12189_v24 = vld [vmem:[%s19982_s7 + $0x3a8] sm:$0xff]  ;;  %v21372_v47 = vld [vmem:[#allocation123_spill] sm:$0xff]  ;;  %v6705_v62 = vadd.f32 %v17632_v5, %v17700_v23 }
 0x4a9   : > { %v17971_v59 = vpop.f32.mrf.mxu2  ;;  %7612 = vmatmul.bf16.vlgmr.msra.gmra.mxu3 %v21365_v4  ;;  %v21376_v5 = vld [vmem:[#allocation171_spill] sm:$0xff] }
 0x4aa   : > { %7860 = vmatmul.bf16.gmra.mxu0 %v21324_v50  ;;  %v7097_v23 = vadd.f32 %v21376_v5, %v17841_v56 }
 0x4ac   : > { %8206 = vmatpush.bf16.msrb.mxu2 %v12189_v24  ;;  %v12198_v24 = vld [vmem:[%s19982_s7 + $0x3f0] sm:$0xff] }
 0x4ad   : > { %8397 = vmatpush.bf16.msrb.mxu3 %v12198_v24  ;;  %v12182_v24 = vld [vmem:[%s19982_s7 + $0x370] sm:$0xff] }
 0x4ae   : > { %v7217_v16 = vpop.f32.mrf.mxu1  ;;  %v6845_v37 = vpop.f32.mrf.mxu3  ;;  %8008 = vmatpush.bf16.msrb.mxu1 %v12182_v24  ;;  %v6707_v24 = vadd.f32 %v17667_v12, %v17731_v0  ;;  %v21386_v12 = vld [vmem:[#allocation10_spill] sm:$0xff]  ;;  %v6708_v0 = vadd.f32 %v17681_v34, %v17744_v39  ;;  %v21389_v39 = vld [vmem:[#allocation141_spill] sm:$0xff] }
 0x4af   : > { %v17976_v61 = vadd.f32 %v7217_v16, %v7094_v55  ;;  %v17978_v43 = vpop.f32.mrf.mxu0  ;;  %v17983_v57 = vadd.f32 %v6845_v37, %v6703_v49  ;;  %v21370_v16 = vld [vmem:[#allocation172_spill] sm:$0xff] }
 0x4b0   : > { %21366 = vst [vmem:[#allocation40_spill] sm:$0xff] %v17978_v43 }
 0x4b1   : > { %7256 = vmatmul.bf16.gmra.mxu1 %v21367_v14  ;;  %v17985_v50 = vpop.f32.mrf.mxu2 }
 0x4b6   : > { %v7219_v20 = vpop.f32.mrf.mxu1  ;;  %7463 = vmatmul.bf16.gmra.mxu2 %v21370_v16  ;;  %v6847_v49 = vpop.f32.mrf.mxu3 }
 0x4b7   : > { %v17989_v4 = vadd.f32 %v7219_v20, %v7095_v29  ;;  %v17991_v55 = vpop.f32.mrf.mxu0  ;;  %v17999_v37 = vadd.f32 %v6847_v49, %v6704_v42  ;;  %v21371_v29 = vld [vmem:[#allocation144_spill] sm:$0xff]  ;;  %v12188_v49 = vld [vmem:[%s19982_s7 + $0x3a0] sm:$0xff] }
 0x4b8   : > { %21369 = vst [vmem:[#allocation96_spill] sm:$0xff] %v17991_v55  ;;  %v7096_v20 = vadd.f32 %v21371_v29, %v17825_v40  ;;  %v21374_v55 = vld [vmem:[#allocation100_spill] sm:$0xff]  ;;  %8207 = vmatpush.bf16.msrb.mxu2 %v12188_v49  ;;  %v12186_v49 = vld [vmem:[%s19982_s7 + $0x390] sm:$0xff] }
 0x4b9   : > { %v18005_v58 = vpop.f32.mrf.mxu2  ;;  %7617 = vmatmul.bf16.gmra.mxu3 %v21372_v47  ;;  %v12187_v40 = vld [vmem:[%s19982_s7 + $0x398] sm:$0xff] }
 0x4ba   : > { %7865 = vmatmul.bf16.gmra.mxu0 %v21335_v18 }
 0x4bc   : > { %8208 = vmatpush.bf16.msrb.mxu2 %v12187_v40  ;;  %v12206_v40 = vld [vmem:[%s19982_s7 + $0x430] sm:$0xff] }
 0x4bd   : > { %8611 = vmatpush.bf16.msra.mxu0 %v12206_v40  ;;  %v21382_v40 = vld [vmem:[#allocation187_spill] sm:$0xff] }
 0x4be   : > { %v7222_v44 = vpop.f32.mrf.mxu1  ;;  %v6850_v18 = vpop.f32.mrf.mxu3 }
 0x4bf   : > { %v18010_v16 = vadd.f32 %v7222_v44, %v7096_v20  ;;  %v18012_v42 = vpop.f32.mrf.mxu0  ;;  %v18020_v43 = vadd.f32 %v6850_v18, %v6705_v62  ;;  %v6706_v62 = vadd.f32 %v17653_v10, %v17716_v41  ;;  %v12185_v10 = vld [vmem:[%s19982_s7 + $0x388] sm:$0xff] }
 0x4c0   : > { %21373 = vst [vmem:[#allocation190_spill] sm:$0xff] %v18012_v42  ;;  %8209 = vmatpush.bf16.msrb.mxu2 %v12186_v49 }
 0x4c1   : > { %7261 = vmatmul.bf16.gmra.mxu1 %v21374_v55  ;;  %v18028_v29 = vpop.f32.mrf.mxu2 }
 0x4c2   : > { %21375 = vst [vmem:[#allocation175_spill] sm:$0xff] %v18028_v29 }
 0x4c4   : > { %8210 = vmatpush.bf16.msrb.mxu2 %v12185_v10 }
 0x4c6   : > { %v7224_v20 = vpop.f32.mrf.mxu1  ;;  %7468 = vmatmul.bf16.gmra.mxu2 %v17641_v26  ;;  %v6852_v56 = vpop.f32.mrf.mxu3  ;;  %v21380_v26 = vld [vmem:[#allocation121_spill] sm:$0xff] }
 0x4c7   : > { %v18032_v44 = vadd.f32 %v7224_v20, %v7097_v23  ;;  %v18034_v18 = vpop.f32.mrf.mxu0  ;;  %v18048_v5 = vadd.f32 %v6852_v56, %v6706_v62  ;;  %v21379_v23 = vld [vmem:[#allocation5_spill] sm:$0xff] }
 0x4c8   : > { %21377 = vst [vmem:[#allocation56_spill] sm:$0xff] %v18034_v18  ;;  %v7098_v20 = vadd.f32 %v21379_v23, %v17856_v52  ;;  %v12184_v56 = vld [vmem:[%s19982_s7 + $0x380] sm:$0xff] }
 0x4c9   : > { %v18054_v41 = vpop.f32.mrf.mxu2  ;;  %7622 = vmatmul.bf16.gmra.mxu3 %v21380_v26  ;;  %8211 = vmatpush.bf16.msrb.mxu2 %v12184_v56 }
 0x4ca   : > { %7870 = vmatmul.bf16.gmra.mxu0 %v21342_v27  ;;  %21378 = vst [vmem:[#allocation120_spill] sm:$0xff] %v18054_v41  ;;  %v21410_v41 = vld [vmem:[#allocation118_spill] sm:$0xff] }
 0x4ce   : > { %v7227_v18 = vpop.f32.mrf.mxu1  ;;  %v6855_v27 = vpop.f32.mrf.mxu3 }
 0x4cf   : > { %v18059_v62 = vadd.f32 %v7227_v18, %v7098_v20  ;;  %v18061_v49 = vpop.f32.mrf.mxu0  ;;  %v18069_v42 = vadd.f32 %v6855_v27, %v6707_v24  ;;  %v21384_v18 = vld [vmem:[#allocation114_spill] sm:$0xff] }
 0x4d0   : > { %21381 = vst [vmem:[#allocation92_spill] sm:$0xff] %v18061_v49  ;;  %v7099_v10 = vadd.f32 %v21384_v18, %v17869_v35  ;;  %v12181_v27 = vld [vmem:[%s19982_s7 + $0x368] sm:$0xff] }
 0x4d1   : > { %7266 = vmatmul.bf16.gmra.mxu1 %v21382_v40  ;;  %v18071_v52 = vpop.f32.mrf.mxu2  ;;  %v12205_v24 = vld [vmem:[%s19982_s7 + $0x428] sm:$0xff]  ;;  %v12178_v40 = vld [vmem:[%s19982_s7 + $0x350] sm:$0xff] }
 0x4d2   : > { %21383 = vst [vmem:[#allocation81_spill] sm:$0xff] %v18071_v52  ;;  %8009 = vmatpush.bf16.msrb.mxu1 %v12181_v27  ;;  %8612 = vmatpush.bf16.msra.mxu0 %v12205_v24  ;;  %v21391_v52 = vld [vmem:[#allocation117_spill] sm:$0xff] }
 0x4d3   : > { %v12180_v27 = vld [vmem:[%s19982_s7 + $0x360] sm:$0xff] }
 0x4d4   : > { %v12204_v24 = vld [vmem:[%s19982_s7 + $0x420] sm:$0xff] }
 0x4d6   : > { %v7229_v23 = vpop.f32.mrf.mxu1  ;;  %7473 = vmatmul.bf16.gmra.mxu2 %v21386_v12  ;;  %v6857_v56 = vpop.f32.mrf.mxu3  ;;  %8613 = vmatpush.bf16.msra.mxu0 %v12204_v24 }
 0x4d7   : > { %v18075_v20 = vadd.f32 %v7229_v23, %v7099_v10  ;;  %v18077_v49 = vpop.f32.mrf.mxu0  ;;  %v18088_v35 = vadd.f32 %v6857_v56, %v6708_v0  ;;  %v21388_v10 = vld [vmem:[#allocation29_spill] sm:$0xff]  ;;  %v6709_v0 = vadd.f32 %v21391_v52, %v17759_v36  ;;  %v12197_v36 = vld [vmem:[%s19982_s7 + $0x3e8] sm:$0xff]  ;;  %8010 = vmatpush.bf16.msrb.mxu1 %v12180_v27 }
 0x4d8   : > { %21385 = vst [vmem:[#allocation180_spill] sm:$0xff] %v18077_v49  ;;  %v7100_v34 = vadd.f32 %v21388_v10, %v17884_v38  ;;  %v21392_v38 = vld [vmem:[#allocation65_spill] sm:$0xff]  ;;  %8398 = vmatpush.bf16.msrb.mxu3 %v12197_v36 }
 0x4d9   : > { %v18091_v18 = vpop.f32.mrf.mxu2  ;;  %7627 = vmatmul.bf16.gmra.mxu3 %v21389_v39 }
 0x4da   : > { %7875 = vmatmul.bf16.gmra.mxu0 %v21352_v9  ;;  %21387 = vst [vmem:[#allocation90_spill] sm:$0xff] %v18091_v18  ;;  %v21397_v18 = vld [vmem:[#allocation182_spill] sm:$0xff] }
 0x4de   : > { %v7232_v23 = vpop.f32.mrf.mxu1  ;;  %v6860_v56 = vpop.f32.mrf.mxu3 }
 0x4df   : > { %v18096_v12 = vadd.f32 %v7232_v23, %v7100_v34  ;;  %v18098_v49 = vpop.f32.mrf.mxu0  ;;  %v18109_v10 = vadd.f32 %v6860_v56, %v6709_v0  ;;  %v12203_v34 = vld [vmem:[%s19982_s7 + $0x418] sm:$0xff]  ;;  %v21394_v0 = vld [vmem:[#allocation145_spill] sm:$0xff] }
 0x4e0   : > { %21390 = vst [vmem:[#allocation198_spill] sm:$0xff] %v18098_v49  ;;  %v12179_v23 = vld [vmem:[%s19982_s7 + $0x358] sm:$0xff]  ;;  %v7101_v56 = vadd.f32 %v21394_v0, %v17900_v51  ;;  %8614 = vmatpush.bf16.msra.mxu0 %v12203_v34  ;;  %v12202_v51 = vld [vmem:[%s19982_s7 + $0x410] sm:$0xff] }
 0x4e1   : > { %7271 = vmatmul.bf16.gmra.mxu1 %v21392_v38  ;;  %v18117_v52 = vpop.f32.mrf.mxu2  ;;  %v21396_v38 = vld [vmem:[#allocation110_spill] sm:$0xff] }
 0x4e2   : > { %21393 = vst [vmem:[#allocation33_spill] sm:$0xff] %v18117_v52  ;;  %8011 = vmatpush.bf16.msrb.mxu1 %v12179_v23  ;;  %v21398_v52 = vld [vmem:[#allocation191_spill] sm:$0xff]  ;;  %v12201_v23 = vld [vmem:[%s19982_s7 + $0x408] sm:$0xff] }
 0x4e3   : > { %v6710_v27 = vadd.f32 %v21398_v52, %v21397_v18  ;;  %v12177_v18 = vld [vmem:[%s19982_s7 + $0x348] sm:$0xff]  ;;  %v21400_v52 = vld [vmem:[#allocation205_spill] sm:$0xff] }
 0x4e4   : > { %8615 = vmatpush.bf16.msra.mxu0 %v12202_v51  ;;  %v7102_v0 = vadd.f32 %v21400_v52, %v17915_v28  ;;  %v12200_v28 = vld [vmem:[%s19982_s7 + $0x400] sm:$0xff] }
 0x4e6   : > { %v7234_v24 = vpop.f32.mrf.mxu1  ;;  %8212 = vmatmul.bf16.vlgmr.msrb.gmra.mxu2 %v21396_v38  ;;  %v6862_v34 = vpop.f32.mrf.mxu3  ;;  %8012 = vmatpush.bf16.msrb.mxu1 %v12178_v40  ;;  %v12176_v40 = vld [vmem:[%s19982_s7 + $0x340] sm:$0xff] }
 0x4e7   : > { %v18124_v9 = vadd.f32 %v7234_v24, %v7101_v56  ;;  %v18126_v49 = vpop.f32.mrf.mxu0  ;;  %v18137_v36 = vadd.f32 %v6862_v34, %v6710_v27  ;;  %v21401_v56 = vld [vmem:[#allocation136_spill] sm:$0xff]  ;;  %v21404_v34 = vld [vmem:[#allocation9_spill] sm:$0xff] }
 0x4e8   : > { %21395 = vst [vmem:[#allocation181_spill] sm:$0xff] %v18126_v49  ;;  %8616 = vmatpush.bf16.msra.mxu0 %v12201_v23 }
 0x4e9   : > { %v18143_v38 = vpop.f32.mrf.mxu2  ;;  %7632 = vmatmul.bf16.gmra.mxu3 %v21401_v56 }
 0x4ea   : > { %7880 = vmatmul.bf16.gmra.mxu0 %v21358_v25  ;;  %21399 = vst [vmem:[#allocation21_spill] sm:$0xff] %v18143_v38  ;;  %8013 = vmatpush.bf16.msrb.mxu1 %v12177_v18  ;;  %v21405_v25 = vld [vmem:[#allocation91_spill] sm:$0xff] }
 0x4eb   : > { %v6711_v49 = vadd.f32 %v21405_v25, %v21404_v34  ;;  %v21406_v38 = vld [vmem:[#allocation195_spill] sm:$0xff] }
 0x4ec   : > { %8617 = vmatpush.bf16.msra.mxu0 %v12200_v28  ;;  %v21412_v28 = vld [vmem:[#allocation87_spill] sm:$0xff] }
 0x4ee   : > { %v7237_v24 = vpop.f32.mrf.mxu1  ;;  %v6865_v52 = vpop.f32.mrf.mxu3  ;;  %8014 = vmatpush.bf16.msrb.mxu1 %v12176_v40  ;;  %v21414_v40 = vld [vmem:[#allocation69_spill] sm:$0xff] }
 0x4ef   : > { %v18151_v27 = vadd.f32 %v7237_v24, %v7102_v0  ;;  %v18153_v51 = vpop.f32.mrf.mxu0  ;;  %v18164_v23 = vadd.f32 %v6865_v52, %v6711_v49  ;;  %v21408_v0 = vld [vmem:[#allocation7_spill] sm:$0xff] }
 0x4f0   : > { %21403 = vst [vmem:[#allocation105_spill] sm:$0xff] %v18153_v51  ;;  %v7103_v25 = vadd.f32 %v21408_v0, %v17928_v32  ;;  %v7104_v32 = vadd.f32 %v21414_v40, %v17943_v6  ;;  %v21415_v0 = vld [vmem:[#allocation159_spill] sm:$0xff]  ;;  %v21420_v40 = vld [vmem:[#allocation149_spill] sm:$0xff] }
 0x4f1   : > { %21402 = vst [vmem:[#allocation93_spill] sm:$0xff] %v18151_v27  ;;  %7276 = vmatmul.bf16.gmra.mxu1 %v21406_v38  ;;  %v18166_v18 = vpop.f32.mrf.mxu2  ;;  %v21411_v27 = vld [vmem:[#allocation66_spill] sm:$0xff] }
 0x4f2   : > { %21407 = vst [vmem:[#allocation185_spill] sm:$0xff] %v18166_v18  ;;  %v6712_v29 = vadd.f32 %v21411_v27, %v17803_v1 }
 0x4f6   : > { %v7239_v24 = vpop.f32.mrf.mxu1  ;;  %8217 = vmatmul.bf16.gmra.mxu2 %v21410_v41  ;;  %v6867_v38 = vpop.f32.mrf.mxu3  ;;  %v21417_v41 = vld [vmem:[#allocation89_spill] sm:$0xff] }
 0x4f7   : > { %v18170_v34 = vadd.f32 %v7239_v24, %v7103_v25  ;;  %v18172_v51 = vpop.f32.mrf.mxu0  ;;  %v18177_v49 = vadd.f32 %v6867_v38, %v6712_v29  ;;  %v6713_v1 = vadd.f32 %v21417_v41, %v17818_v3  ;;  %v21418_v29 = vld [vmem:[#allocation177_spill] sm:$0xff]  ;;  %v21422_v3 = vld [vmem:[#allocation127_spill] sm:$0xff]  ;;  %v21423_v41 = vld [vmem:[#allocation78_spill] sm:$0xff] }
 0x4f8   : > { %21409 = vst [vmem:[#allocation83_spill] sm:$0xff] %v18172_v51 }
 0x4f9   : > { %v18180_v52 = vpop.f32.mrf.mxu2  ;;  %7637 = vmatmul.bf16.gmra.mxu3 %v21415_v0 }
 0x4fa   : > { %7885 = vmatmul.bf16.gmra.mxu0 %v21412_v28  ;;  %21413 = vst [vmem:[#allocation186_spill] sm:$0xff] %v18180_v52  ;;  %v12196_v28 = vld [vmem:[%s19982_s7 + $0x3e0] sm:$0xff] }
 0x4fb   : > { %8399 = vmatpush.bf16.msrb.mxu3 %v12196_v28  ;;  %v21425_v28 = vld [vmem:[#allocation6_spill] sm:$0xff] }
 0x4fe   : > { %v7242_v25 = vpop.f32.mrf.mxu1  ;;  %v6870_v27 = vpop.f32.mrf.mxu3 }
 0x4ff   : > { %v18185_v24 = vadd.f32 %v7242_v25, %v7104_v32  ;;  %v18187_v51 = vpop.f32.mrf.mxu0  ;;  %v18192_v38 = vadd.f32 %v6870_v27, %v6713_v1  ;;  %v7105_v32 = vadd.f32 %v21420_v40, %v17968_v19  ;;  %v6714_v1 = vadd.f32 %v21423_v41, %v17834_v48  ;;  %v21426_v40 = vld [vmem:[#allocation155_spill] sm:$0xff] }
 0x500   : > { %21416 = vst [vmem:[#allocation43_spill] sm:$0xff] %v18187_v51  ;;  %v7106_v19 = vadd.f32 %v21425_v28, %v17983_v57 }
 0x501   : > { %7281 = vmatmul.bf16.gmra.mxu1 %v21418_v29  ;;  %v18197_v6 = vpop.f32.mrf.mxu2 }
 0x502   : > { %21419 = vst [vmem:[#allocation53_spill] sm:$0xff] %v18197_v6 }
 0x506   : > { %v7244_v25 = vpop.f32.mrf.mxu1  ;;  %8222 = vmatmul.bf16.gmra.mxu2 %v21422_v3  ;;  %v6872_v27 = vpop.f32.mrf.mxu3  ;;  %v21428_v3 = vld [vmem:[#allocation72_spill] sm:$0xff] }
 0x507   : > { %v18201_v51 = vadd.f32 %v7244_v25, %v7105_v32  ;;  %v18203_v52 = vpop.f32.mrf.mxu0  ;;  %v18208_v29 = vadd.f32 %v6872_v27, %v6714_v1  ;;  %v6715_v48 = vadd.f32 %v21428_v3, %v17849_v15  ;;  %v21429_v1 = vld [vmem:[#allocation183_spill] sm:$0xff] }
 0x508   : > { %21421 = vst [vmem:[#allocation192_spill] sm:$0xff] %v18203_v52 }
 0x509   : > { %v18211_v6 = vpop.f32.mrf.mxu2  ;;  %7642 = vmatmul.bf16.gmra.mxu3 %v21426_v40 }
 0x50a   : > { %8618 = vmatmul.bf16.vlgmr.msra.gmra.mxu0 %v21372_v47  ;;  %21424 = vst [vmem:[#allocation61_spill] sm:$0xff] %v18211_v6  ;;  %v21430_v6 = vld [vmem:[#allocation64_spill] sm:$0xff] }
 0x50b   : > { %v7107_v57 = vadd.f32 %v21430_v6, %v17999_v37  ;;  %v21435_v6 = vld [vmem:[#allocation173_spill] sm:$0xff] }
 0x50e   : > { %v7247_v32 = vpop.f32.mrf.mxu1  ;;  %v6875_v41 = vpop.f32.mrf.mxu3 }
 0x50f   : > { %v18216_v25 = vadd.f32 %v7247_v32, %v7106_v19  ;;  %v18218_v52 = vpop.f32.mrf.mxu0  ;;  %v18223_v27 = vadd.f32 %v6875_v41, %v6715_v48  ;;  %v21432_v32 = vld [vmem:[#allocation42_spill] sm:$0xff]  ;;  %v21434_v41 = vld [vmem:[#allocation55_spill] sm:$0xff] }
 0x510   : > { %21427 = vst [vmem:[#allocation194_spill] sm:$0xff] %v18218_v52  ;;  %v6716_v15 = vadd.f32 %v21432_v32, %v17862_v8  ;;  %v7108_v37 = vadd.f32 %v21434_v41, %v18020_v43  ;;  %v21440_v41 = vld [vmem:[#allocation108_spill] sm:$0xff] }
 0x511   : > { %8015 = vmatmul.bf16.vlgmr.msrb.gmra.mxu1 %v21429_v1  ;;  %v18225_v47 = vpop.f32.mrf.mxu2 }
 0x516   : > { %v7249_v28 = vpop.f32.mrf.mxu1  ;;  %8227 = vmatmul.bf16.gmra.mxu2 %v21316_v30  ;;  %v6877_v3 = vpop.f32.mrf.mxu3  ;;  %v21437_v30 = vld [vmem:[#allocation193_spill] sm:$0xff] }
 0x517   : > { %v18229_v18 = vadd.f32 %v7249_v28, %v7107_v57  ;;  %v18231_v19 = vpop.f32.mrf.mxu0  ;;  %v18236_v52 = vadd.f32 %v6877_v3, %v6716_v15  ;;  %v6717_v8 = vadd.f32 %v21437_v30, %v17877_v13  ;;  %v21438_v15 = vld [vmem:[#allocation28_spill] sm:$0xff]  ;;  %v21443_v13 = vld [vmem:[#allocation59_spill] sm:$0xff] }
 0x518   : > { %21431 = vst [vmem:[#allocation200_spill] sm:$0xff] %v18231_v19  ;;  %v21442_v30 = vld [vmem:[#allocation140_spill] sm:$0xff] }
 0x519   : > { %v18239_v48 = vpop.f32.mrf.mxu2  ;;  %7647 = vmatmul.bf16.gmra.mxu3 %v21435_v6 }
 0x51a   : > { %8623 = vmatmul.bf16.gmra.mxu0 %v21380_v26  ;;  %21433 = vst [vmem:[#allocation204_spill] sm:$0xff] %v18239_v48  ;;  %v12195_v26 = vld [vmem:[%s19982_s7 + $0x3d8] sm:$0xff] }
 0x51b   : > { %8400 = vmatpush.bf16.msrb.mxu3 %v12195_v26  ;;  %v21445_v26 = vld [vmem:[#allocation8_spill] sm:$0xff] }
 0x51e   : > { %v7252_v1 = vpop.f32.mrf.mxu1  ;;  %v6880_v32 = vpop.f32.mrf.mxu3 }
 0x51f   : > { %v18244_v57 = vadd.f32 %v7252_v1, %v7108_v37  ;;  %v18246_v28 = vpop.f32.mrf.mxu0  ;;  %v18251_v3 = vadd.f32 %v6880_v32, %v6717_v8  ;;  %v7109_v37 = vadd.f32 %v21440_v41, %v18048_v5  ;;  %v6718_v8 = vadd.f32 %v21443_v13, %v17893_v53  ;;  %v21446_v41 = vld [vmem:[#allocation169_spill] sm:$0xff] }
 0x520   : > { %21436 = vst [vmem:[#allocation54_spill] sm:$0xff] %v18246_v28  ;;  %v7110_v5 = vadd.f32 %v21445_v26, %v18069_v42 }
 0x521   : > { %8020 = vmatmul.bf16.gmra.mxu1 %v21438_v15  ;;  %v18256_v43 = vpop.f32.mrf.mxu2 }
 0x522   : > { %21439 = vst [vmem:[#allocation97_spill] sm:$0xff] %v18256_v43 }
 0x526   : > { %v7254_v1 = vpop.f32.mrf.mxu1  ;;  %8232 = vmatmul.bf16.gmra.mxu2 %v21442_v30  ;;  %v6882_v32 = vpop.f32.mrf.mxu3  ;;  %v21448_v30 = vld [vmem:[#allocation50_spill] sm:$0xff] }
 0x527   : > { %v18260_v28 = vadd.f32 %v7254_v1, %v7109_v37  ;;  %v18262_v19 = vpop.f32.mrf.mxu0  ;;  %v18267_v15 = vadd.f32 %v6882_v32, %v6718_v8  ;;  %v7479_v53 = vadd.f32 %v21448_v30, %v17908_v60  ;;  %v21449_v8 = vld [vmem:[#allocation24_spill] sm:$0xff]  ;;  %v7480_v60 = vadd.f32 %v17858_v45, %v17921_v31 }
 0x528   : > { %21441 = vst [vmem:[#allocation147_spill] sm:$0xff] %v18262_v19  ;;  %v7481_v45 = vadd.f32 %v17872_v2, %v17936_v54  ;;  %v21459_v2 = vld [vmem:[#allocation163_spill] sm:$0xff] }
 0x529   : > { %v18270_v43 = vpop.f32.mrf.mxu2  ;;  %7652 = vmatmul.bf16.gmra.mxu3 %v21446_v41  ;;  %v7482_v54 = vadd.f32 %v21459_v2, %v17955_v7 }
 0x52a   : > { %8628 = vmatmul.bf16.gmra.mxu0 %v21389_v39  ;;  %21444 = vst [vmem:[#allocation25_spill] sm:$0xff] %v18270_v43  ;;  %v21450_v43 = vld [vmem:[#allocation79_spill] sm:$0xff] }
 0x52b   : > { %v7111_v42 = vadd.f32 %v21450_v43, %v18088_v35  ;;  %v21453_v43 = vld [vmem:[#allocation101_spill] sm:$0xff] }
 0x52e   : > { %v7257_v37 = vpop.f32.mrf.mxu1  ;;  %v7613_v13 = vpop.f32.mrf.mxu3 }
 0x52f   : > { %v18275_v1 = vadd.f32 %v7257_v37, %v7110_v5  ;;  %v18277_v19 = vpop.f32.mrf.mxu0  ;;  %v18282_v32 = vadd.f32 %v7613_v13, %v7479_v53  ;;  %v21452_v13 = vld [vmem:[#allocation34_spill] sm:$0xff] }
 0x530   : > { %21447 = vst [vmem:[#allocation39_spill] sm:$0xff] %v18277_v19  ;;  %v7112_v35 = vadd.f32 %v21452_v13, %v18109_v10  ;;  %v21457_v13 = vld [vmem:[#allocation135_spill] sm:$0xff] }
 0x531   : > { %8025 = vmatmul.bf16.gmra.mxu1 %v21449_v8  ;;  %v18284_v39 = vpop.f32.mrf.mxu2 }
 0x536   : > { %v7259_v26 = vpop.f32.mrf.mxu1  ;;  %8237 = vmatmul.bf16.gmra.mxu2 %v21338_v21  ;;  %v7615_v30 = vpop.f32.mrf.mxu3 }
 0x537   : > { %v18288_v48 = vadd.f32 %v7259_v26, %v7111_v42  ;;  %v18290_v5 = vpop.f32.mrf.mxu0  ;;  %v18295_v37 = vadd.f32 %v7615_v30, %v7480_v60  ;;  %v21455_v60 = vld [vmem:[#allocation41_spill] sm:$0xff] }
 0x538   : > { %21451 = vst [vmem:[#allocation178_spill] sm:$0xff] %v18290_v5 }
 0x539   : > { %v18298_v53 = vpop.f32.mrf.mxu2  ;;  %7657 = vmatmul.bf16.gmra.mxu3 %v21453_v43 }
 0x53a   : > { %8633 = vmatmul.bf16.gmra.mxu0 %v21401_v56  ;;  %v12194_v56 = vld [vmem:[%s19982_s7 + $0x3d0] sm:$0xff] }
 0x53b   : > { %8401 = vmatpush.bf16.msrb.mxu3 %v12194_v56  ;;  %v21461_v56 = vld [vmem:[#allocation46_spill] sm:$0xff] }
 0x53e   : > { %v7262_v42 = vpop.f32.mrf.mxu1  ;;  %v7618_v31 = vpop.f32.mrf.mxu3 }
 0x53f   : > { %v18303_v26 = vadd.f32 %v7262_v42, %v7112_v35  ;;  %v18305_v5 = vpop.f32.mrf.mxu0  ;;  %v18310_v30 = vadd.f32 %v7618_v31, %v7481_v45  ;;  %v7113_v35 = vadd.f32 %v21457_v13, %v18137_v36  ;;  %v7114_v36 = vadd.f32 %v21461_v56, %v18164_v23  ;;  %v21462_v13 = vld [vmem:[#allocation184_spill] sm:$0xff] }
 0x540   : > { %21454 = vst [vmem:[#allocation11_spill] sm:$0xff] %v18305_v5 }
 0x541   : > { %8030 = vmatmul.bf16.gmra.mxu1 %v21455_v60  ;;  %v18315_v10 = vpop.f32.mrf.mxu2 }
 0x542   : > { %21456 = vst [vmem:[#allocation22_spill] sm:$0xff] %v18315_v10 }
 0x546   : > { %v7264_v42 = vpop.f32.mrf.mxu1  ;;  %8242 = vmatmul.bf16.gmra.mxu2 %v21345_v46  ;;  %v7620_v45 = vpop.f32.mrf.mxu3  ;;  %v21464_v46 = vld [vmem:[#allocation174_spill] sm:$0xff] }
 0x547   : > { %v18319_v21 = vadd.f32 %v7264_v42, %v7113_v35  ;;  %v18321_v5 = vpop.f32.mrf.mxu0  ;;  %v18326_v31 = vadd.f32 %v7620_v45, %v7482_v54  ;;  %v7483_v7 = vadd.f32 %v21464_v46, %v17976_v61  ;;  %v21465_v54 = vld [vmem:[#allocation48_spill] sm:$0xff]  ;;  %v7484_v61 = vadd.f32 %v17917_v33, %v17989_v4 }
 0x548   : > { %21458 = vst [vmem:[#allocation115_spill] sm:$0xff] %v18321_v5  ;;  %v7485_v33 = vadd.f32 %v17931_v11, %v18010_v16  ;;  %v7486_v11 = vadd.f32 %v17951_v22, %v18032_v44  ;;  %v7487_v22 = vadd.f32 %v17971_v59, %v18059_v62  ;;  %v7488_v59 = vadd.f32 %v17985_v50, %v18075_v20 }
 0x549   : > { %v18329_v19 = vpop.f32.mrf.mxu2  ;;  %7662 = vmatmul.bf16.gmra.mxu3 %v21462_v13  ;;  %v7489_v50 = vadd.f32 %v18005_v58, %v18096_v12  ;;  %v21488_v58 = vld [vmem:[#allocation175_spill] sm:$0xff] }
 0x54a   : > { %8638 = vmatmul.bf16.gmra.mxu0 %v21415_v0  ;;  %21460 = vst [vmem:[#allocation80_spill] sm:$0xff] %v18329_v19  ;;  %v21466_v19 = vld [vmem:[#allocation142_spill] sm:$0xff]  ;;  %v7490_v12 = vadd.f32 %v21488_v58, %v18124_v9 }
 0x54b   : > { %v7115_v23 = vadd.f32 %v21466_v19, %v18177_v49  ;;  %v21469_v19 = vld [vmem:[#allocation35_spill] sm:$0xff] }
 0x54e   : > { %v7267_v35 = vpop.f32.mrf.mxu1  ;;  %v7623_v2 = vpop.f32.mrf.mxu3 }
 0x54f   : > { %v18334_v42 = vadd.f32 %v7267_v35, %v7114_v36  ;;  %v18336_v5 = vpop.f32.mrf.mxu0  ;;  %v18341_v45 = vadd.f32 %v7623_v2, %v7483_v7  ;;  %v21468_v2 = vld [vmem:[#allocation148_spill] sm:$0xff] }
 0x550   : > { %21463 = vst [vmem:[#allocation179_spill] sm:$0xff] %v18336_v5  ;;  %v7116_v49 = vadd.f32 %v21468_v2, %v18192_v38  ;;  %v21472_v2 = vld [vmem:[#allocation26_spill] sm:$0xff] }
 0x551   : > { %8035 = vmatmul.bf16.gmra.mxu1 %v21465_v54  ;;  %v18343_v0 = vpop.f32.mrf.mxu2 }
 0x556   : > { %v7269_v56 = vpop.f32.mrf.mxu1  ;;  %8247 = vmatmul.bf16.gmra.mxu2 %v21354_v17  ;;  %v7625_v46 = vpop.f32.mrf.mxu3 }
 0x557   : > { %v18347_v10 = vadd.f32 %v7269_v56, %v7115_v23  ;;  %v18349_v36 = vpop.f32.mrf.mxu0  ;;  %v18354_v35 = vadd.f32 %v7625_v46, %v7484_v61  ;;  %v21471_v61 = vld [vmem:[#allocation86_spill] sm:$0xff] }
 0x558   : > { %21467 = vst [vmem:[#allocation27_spill] sm:$0xff] %v18349_v36 }
 0x559   : > { %v18357_v7 = vpop.f32.mrf.mxu2  ;;  %7667 = vmatmul.bf16.gmra.mxu3 %v21469_v19 }
 0x55a   : > { %8643 = vmatmul.bf16.gmra.mxu0 %v21426_v40  ;;  %v12193_v40 = vld [vmem:[%s19982_s7 + $0x3c8] sm:$0xff] }
 0x55b   : > { %8402 = vmatpush.bf16.msrb.mxu3 %v12193_v40  ;;  %v21474_v40 = vld [vmem:[#allocation37_spill] sm:$0xff] }
 0x55e   : > { %v7272_v23 = vpop.f32.mrf.mxu1  ;;  %v7628_v4 = vpop.f32.mrf.mxu3 }
 0x55f   : > { %v18362_v56 = vadd.f32 %v7272_v23, %v7116_v49  ;;  %v18364_v36 = vpop.f32.mrf.mxu0  ;;  %v18369_v46 = vadd.f32 %v7628_v4, %v7485_v33  ;;  %v7117_v49 = vadd.f32 %v21472_v2, %v18208_v29  ;;  %v7118_v29 = vadd.f32 %v21474_v40, %v18223_v27  ;;  %v21475_v2 = vld [vmem:[#allocation189_spill] sm:$0xff] }
 0x560   : > { %21470 = vst [vmem:[#allocation130_spill] sm:$0xff] %v18364_v36 }
 0x561   : > { %8040 = vmatmul.bf16.gmra.mxu1 %v21471_v61  ;;  %v18374_v38 = vpop.f32.mrf.mxu2 }
 0x566   : > { %v7274_v23 = vpop.f32.mrf.mxu1  ;;  %8252 = vmatmul.bf16.gmra.mxu2 %v21360_v63  ;;  %v7630_v16 = vpop.f32.mrf.mxu3  ;;  %v21478_v63 = vld [vmem:[#allocation167_spill] sm:$0xff] }
 0x567   : > { %v18378_v17 = vadd.f32 %v7274_v23, %v7117_v49  ;;  %v18380_v36 = vpop.f32.mrf.mxu0  ;;  %v18385_v33 = vadd.f32 %v7630_v16, %v7486_v11  ;;  %v21477_v11 = vld [vmem:[#allocation113_spill] sm:$0xff]  ;;  %v7119_v27 = vadd.f32 %v21478_v63, %v18236_v52 }
 0x568   : > { %21473 = vst [vmem:[#allocation129_spill] sm:$0xff] %v18380_v36  ;;  %v21482_v52 = vld [vmem:[#allocation197_spill] sm:$0xff] }
 0x569   : > { %v18388_v4 = vpop.f32.mrf.mxu2  ;;  %7672 = vmatmul.bf16.gmra.mxu3 %v21475_v2 }
 0x56a   : > { %8648 = vmatmul.bf16.gmra.mxu0 %v21435_v6 }
 0x56e   : > { %v7277_v49 = vpop.f32.mrf.mxu1  ;;  %v7633_v44 = vpop.f32.mrf.mxu3 }
 0x56f   : > { %v18393_v23 = vadd.f32 %v7277_v49, %v7118_v29  ;;  %v18395_v36 = vpop.f32.mrf.mxu0  ;;  %v18400_v16 = vadd.f32 %v7633_v44, %v7487_v22  ;;  %v21481_v44 = vld [vmem:[#allocation154_spill] sm:$0xff] }
 0x570   : > { %21476 = vst [vmem:[#allocation119_spill] sm:$0xff] %v18395_v36  ;;  %v7120_v63 = vadd.f32 %v21481_v44, %v18251_v3  ;;  %v21486_v44 = vld [vmem:[#allocation188_spill] sm:$0xff] }
 0x571   : > { %8045 = vmatmul.bf16.gmra.mxu1 %v21477_v11  ;;  %v18402_v6 = vpop.f32.mrf.mxu2 }
 0x576   : > { %v7279_v40 = vpop.f32.mrf.mxu1  ;;  %8257 = vmatmul.bf16.gmra.mxu2 %v21367_v14  ;;  %v7635_v62 = vpop.f32.mrf.mxu3 }
 0x577   : > { %v18406_v5 = vadd.f32 %v7279_v40, %v7119_v27  ;;  %v18408_v29 = vpop.f32.mrf.mxu0  ;;  %v18413_v49 = vadd.f32 %v7635_v62, %v7488_v59  ;;  %v21484_v59 = vld [vmem:[#allocation23_spill] sm:$0xff] }
 0x578   : > { %21479 = vst [vmem:[#allocation143_spill] sm:$0xff] %v18408_v29 }
 0x579   : > { %v18416_v22 = vpop.f32.mrf.mxu2  ;;  %7677 = vmatmul.bf16.gmra.mxu3 %v21482_v52 }
 0x57a   : > { %8653 = vmatmul.bf16.gmra.mxu0 %v21446_v41  ;;  %21480 = vst [vmem:[#allocation52_spill] sm:$0xff] %v18416_v22  ;;  %v12192_v41 = vld [vmem:[%s19982_s7 + $0x3c0] sm:$0xff] }
 0x57b   : > { %8403 = vmatpush.bf16.msrb.mxu3 %v12192_v41  ;;  %v21490_v41 = vld [vmem:[#allocation202_spill] sm:$0xff] }
 0x57e   : > { %v7282_v27 = vpop.f32.mrf.mxu1  ;;  %v7638_v20 = vpop.f32.mrf.mxu3 }
 0x57f   : > { %v18421_v40 = vadd.f32 %v7282_v27, %v7120_v63  ;;  %v18423_v29 = vpop.f32.mrf.mxu0  ;;  %v18428_v62 = vadd.f32 %v7638_v20, %v7489_v50  ;;  %v7121_v63 = vadd.f32 %v21486_v44, %v18267_v15  ;;  %v7891_v15 = vadd.f32 %v21490_v41, %v18282_v32  ;;  %v21491_v44 = vld [vmem:[#allocation104_spill] sm:$0xff] }
 0x580   : > { %21483 = vst [vmem:[#allocation166_spill] sm:$0xff] %v18423_v29 }
 0x581   : > { %8050 = vmatmul.bf16.gmra.mxu1 %v21484_v59  ;;  %v18433_v3 = vpop.f32.mrf.mxu2 }
 0x582   : > { %21485 = vst [vmem:[#allocation57_spill] sm:$0xff] %v18433_v3  ;;  %v21494_v3 = vld [vmem:[#allocation120_spill] sm:$0xff] }
 0x586   : > { %v7284_v27 = vpop.f32.mrf.mxu1  ;;  %8262 = vmatmul.bf16.gmra.mxu2 %v21374_v55  ;;  %v7640_v50 = vpop.f32.mrf.mxu3  ;;  %v21493_v55 = vld [vmem:[#allocation93_spill] sm:$0xff] }
 0x587   : > { %v18437_v14 = vadd.f32 %v7284_v27, %v7121_v63  ;;  %v18439_v29 = vpop.f32.mrf.mxu0  ;;  %v18444_v20 = vadd.f32 %v7640_v50, %v7490_v12  ;;  %v7491_v9 = vadd.f32 %v21494_v3, %v21493_v55  ;;  %v21495_v12 = vld [vmem:[#allocation76_spill] sm:$0xff] }
 0x588   : > { %21487 = vst [vmem:[#allocation49_spill] sm:$0xff] %v18439_v29 }
 0x589   : > { %v18447_v36 = vpop.f32.mrf.mxu2  ;;  %7682 = vmatmul.bf16.gmra.mxu3 %v21491_v44 }
 0x58a   : > { %8658 = vmatmul.bf16.gmra.mxu0 %v21453_v43  ;;  %21489 = vst [vmem:[#allocation94_spill] sm:$0xff] %v18447_v36  ;;  %v21496_v36 = vld [vmem:[#allocation71_spill] sm:$0xff] }
 0x58b   : > { %v7892_v32 = vadd.f32 %v21496_v36, %v18295_v37  ;;  %v21502_v36 = vld [vmem:[#allocation199_spill] sm:$0xff] }
 0x58e   : > { %v8016_v63 = vpop.f32.mrf.mxu1  ;;  %v7643_v58 = vpop.f32.mrf.mxu3 }
 0x58f   : > { %v18452_v27 = vadd.f32 %v8016_v63, %v7891_v15  ;;  %v18454_v29 = vpop.f32.mrf.mxu0  ;;  %v18459_v50 = vadd.f32 %v7643_v58, %v7491_v9  ;;  %v21498_v63 = vld [vmem:[#allocation187_spill] sm:$0xff]  ;;  %v21501_v58 = vld [vmem:[#allocation84_spill] sm:$0xff] }
 0x590   : > { %21492 = vst [vmem:[#allocation124_spill] sm:$0xff] %v18454_v29  ;;  %v21499_v29 = vld [vmem:[#allocation81_spill] sm:$0xff]  ;;  %v7893_v37 = vadd.f32 %v21501_v58, %v18310_v30  ;;  %v12231_v30 = vld [vmem:[%s19982_s7 + $0x4f8] sm:$0xff] }
 0x591   : > { %8055 = vmatmul.bf16.gmra.mxu1 %v21495_v12  ;;  %v18461_v43 = vpop.f32.mrf.mxu2  ;;  %v7492_v55 = vadd.f32 %v21499_v29, %v18170_v34  ;;  %9210 = vmatpush.bf16.msra.mxu3 %v12231_v30 }
 0x596   : > { %v8018_v41 = vpop.f32.mrf.mxu1  ;;  %8267 = vmatmul.bf16.gmra.mxu2 %v21498_v63  ;;  %v7645_v3 = vpop.f32.mrf.mxu3  ;;  %v21504_v63 = vld [vmem:[#allocation90_spill] sm:$0xff] }
 0x597   : > { %v18465_v59 = vadd.f32 %v8018_v41, %v7892_v32  ;;  %v18467_v15 = vpop.f32.mrf.mxu0  ;;  %v18472_v22 = vadd.f32 %v7645_v3, %v7492_v55  ;;  %v7493_v34 = vadd.f32 %v21504_v63, %v18185_v24  ;;  %v21505_v55 = vld [vmem:[#allocation125_spill] sm:$0xff] }
 0x598   : > { %21497 = vst [vmem:[#allocation133_spill] sm:$0xff] %v18467_v15 }
 0x599   : > { %v18475_v9 = vpop.f32.mrf.mxu2  ;;  %7687 = vmatmul.bf16.gmra.mxu3 %v21502_v36 }
 0x59a   : > { %8663 = vmatmul.bf16.gmra.mxu0 %v21462_v13  ;;  %21500 = vst [vmem:[#allocation38_spill] sm:$0xff] %v18475_v9  ;;  %v12223_v13 = vld [vmem:[%s19982_s7 + $0x4b8] sm:$0xff] }
 0x59b   : > { %9013 = vmatpush.bf16.msra.mxu2 %v12223_v13  ;;  %v12215_v9 = vld [vmem:[%s19982_s7 + $0x478] sm:$0xff] }
 0x59c   : > { %v12239_v13 = vld [vmem:[%s19982_s7 + $0x538] sm:$0xff]  ;;  %8808 = vmatpush.bf16.msra.mxu1 %v12215_v9  ;;  %v21516_v9 = vld [vmem:[#allocation85_spill] sm:$0xff] }
 0x59d   : > { %9402 = vmatpush.bf16.msrb.mxu0 %v12239_v13 }
 0x59e   : > { %v8021_v32 = vpop.f32.mrf.mxu1  ;;  %v7648_v29 = vpop.f32.mrf.mxu3 }
 0x59f   : > { %v18480_v41 = vadd.f32 %v8021_v32, %v7893_v37  ;;  %v18482_v15 = vpop.f32.mrf.mxu0  ;;  %v18487_v3 = vadd.f32 %v7648_v29, %v7493_v34  ;;  %v21507_v37 = vld [vmem:[#allocation16_spill] sm:$0xff]  ;;  %v21509_v29 = vld [vmem:[#allocation65_spill] sm:$0xff] }
 0x5a0   : > { %21503 = vst [vmem:[#allocation70_spill] sm:$0xff] %v18482_v15  ;;  %v7894_v24 = vadd.f32 %v21507_v37, %v18326_v31  ;;  %v21510_v15 = vld [vmem:[#allocation33_spill] sm:$0xff] }
 0x5a1   : > { %8060 = vmatmul.bf16.gmra.mxu1 %v21505_v55  ;;  %v18495_v58 = vpop.f32.mrf.mxu2  ;;  %v7494_v55 = vadd.f32 %v21510_v15, %v18201_v51  ;;  %v21513_v15 = vld [vmem:[#allocation45_spill] sm:$0xff] }
 0x5a2   : > { %21506 = vst [vmem:[#allocation153_spill] sm:$0xff] %v18495_v58  ;;  %v21515_v58 = vld [vmem:[#allocation21_spill] sm:$0xff] }
 0x5a6   : > { %v8023_v63 = vpop.f32.mrf.mxu1  ;;  %8272 = vmatmul.bf16.gmra.mxu2 %v21509_v29  ;;  %v7650_v30 = vpop.f32.mrf.mxu3 }
 0x5a7   : > { %v18499_v32 = vadd.f32 %v8023_v63, %v7894_v24  ;;  %v18501_v34 = vpop.f32.mrf.mxu0  ;;  %v18512_v31 = vadd.f32 %v7650_v30, %v7494_v55  ;;  %v21512_v24 = vld [vmem:[#allocation19_spill] sm:$0xff]  ;;  %v7495_v55 = vadd.f32 %v21515_v58, %v18216_v25 }
 0x5a8   : > { %21508 = vst [vmem:[#allocation62_spill] sm:$0xff] %v18501_v34  ;;  %v7895_v51 = vadd.f32 %v21512_v24, %v18341_v45  ;;  %v12222_v58 = vld [vmem:[%s19982_s7 + $0x4b0] sm:$0xff] }
 0x5a9   : > { %v18515_v37 = vpop.f32.mrf.mxu2  ;;  %8404 = vmatmul.bf16.vlgmr.msrb.gmra.mxu3 %v21513_v15  ;;  %9014 = vmatpush.bf16.msra.mxu2 %v12222_v58  ;;  %v21526_v58 = vld [vmem:[#allocation186_spill] sm:$0xff] }
 0x5aa   : > { %8668 = vmatmul.bf16.gmra.mxu0 %v21469_v19  ;;  %21511 = vst [vmem:[#allocation95_spill] sm:$0xff] %v18515_v37  ;;  %v21518_v37 = vld [vmem:[#allocation40_spill] sm:$0xff] }
 0x5ab   : > { %v7896_v45 = vadd.f32 %v21518_v37, %v18354_v35  ;;  %v12221_v35 = vld [vmem:[%s19982_s7 + $0x4a8] sm:$0xff] }
 0x5ad   : > { %9015 = vmatpush.bf16.msra.mxu2 %v12221_v35  ;;  %v12230_v35 = vld [vmem:[%s19982_s7 + $0x4f0] sm:$0xff] }
 0x5ae   : > { %v8026_v63 = vpop.f32.mrf.mxu1  ;;  %v7653_v30 = vpop.f32.mrf.mxu3  ;;  %9211 = vmatpush.bf16.msra.mxu3 %v12230_v35  ;;  %v12214_v35 = vld [vmem:[%s19982_s7 + $0x470] sm:$0xff] }
 0x5af   : > { %v18520_v29 = vadd.f32 %v8026_v63, %v7895_v51  ;;  %v18522_v34 = vpop.f32.mrf.mxu0  ;;  %v18527_v13 = vadd.f32 %v7653_v30, %v7495_v55  ;;  %v21520_v63 = vld [vmem:[#allocation195_spill] sm:$0xff]  ;;  %8809 = vmatpush.bf16.msra.mxu1 %v12214_v35  ;;  %v21537_v35 = vld [vmem:[#allocation61_spill] sm:$0xff] }
 0x5b0   : > { %21514 = vst [vmem:[#allocation60_spill] sm:$0xff] %v18522_v34  ;;  %v21521_v34 = vld [vmem:[#allocation185_spill] sm:$0xff] }
 0x5b1   : > { %8065 = vmatmul.bf16.gmra.mxu1 %v21516_v9  ;;  %v18529_v19 = vpop.f32.mrf.mxu2  ;;  %v7496_v25 = vadd.f32 %v21521_v34, %v18229_v18  ;;  %v21524_v18 = vld [vmem:[#allocation63_spill] sm:$0xff] }
 0x5b2   : > { %21517 = vst [vmem:[#allocation68_spill] sm:$0xff] %v18529_v19 }
 0x5b6   : > { %v8028_v24 = vpop.f32.mrf.mxu1  ;;  %8277 = vmatmul.bf16.gmra.mxu2 %v21520_v63  ;;  %v7655_v55 = vpop.f32.mrf.mxu3 }
 0x5b7   : > { %v18533_v15 = vadd.f32 %v8028_v24, %v7896_v45  ;;  %v18535_v51 = vpop.f32.mrf.mxu0  ;;  %v18543_v30 = vadd.f32 %v7655_v55, %v7496_v25  ;;  %v21523_v45 = vld [vmem:[#allocation96_spill] sm:$0xff]  ;;  %v7497_v55 = vadd.f32 %v21526_v58, %v18244_v57  ;;  %v21529_v57 = vld [vmem:[#allocation190_spill] sm:$0xff] }
 0x5b8   : > { %21519 = vst [vmem:[#allocation160_spill] sm:$0xff] %v18535_v51  ;;  %v7897_v24 = vadd.f32 %v21523_v45, %v18369_v46  ;;  %v12219_v46 = vld [vmem:[%s19982_s7 + $0x498] sm:$0xff] }
 0x5b9   : > { %v18549_v37 = vpop.f32.mrf.mxu2  ;;  %8409 = vmatmul.bf16.gmra.mxu3 %v21524_v18 }
 0x5ba   : > { %8673 = vmatmul.bf16.gmra.mxu0 %v21475_v2  ;;  %21522 = vst [vmem:[#allocation107_spill] sm:$0xff] %v18549_v37  ;;  %v12220_v2 = vld [vmem:[%s19982_s7 + $0x4a0] sm:$0xff]  ;;  %v21527_v37 = vld [vmem:[#allocation128_spill] sm:$0xff] }
 0x5bb   : > { %9016 = vmatpush.bf16.msra.mxu2 %v12220_v2  ;;  %v21531_v2 = vld [vmem:[#allocation177_spill] sm:$0xff] }
 0x5be   : > { %v8031_v34 = vpop.f32.mrf.mxu1  ;;  %v7658_v51 = vpop.f32.mrf.mxu3 }
 0x5bf   : > { %v18554_v63 = vadd.f32 %v8031_v34, %v7897_v24  ;;  %v18556_v25 = vpop.f32.mrf.mxu0  ;;  %v18564_v19 = vadd.f32 %v7658_v51, %v7497_v55  ;;  %v7898_v24 = vadd.f32 %v21529_v57, %v18385_v33  ;;  %9017 = vmatpush.bf16.msra.mxu2 %v12219_v46  ;;  %v21532_v55 = vld [vmem:[#allocation53_spill] sm:$0xff]  ;;  %v12238_v46 = vld [vmem:[%s19982_s7 + $0x530] sm:$0xff] }
 0x5c0   : > { %21525 = vst [vmem:[#allocation47_spill] sm:$0xff] %v18556_v25  ;;  %v7498_v25 = vadd.f32 %v21532_v55, %v18260_v28  ;;  %v12217_v28 = vld [vmem:[%s19982_s7 + $0x488] sm:$0xff]  ;;  %9403 = vmatpush.bf16.msrb.mxu0 %v12238_v46  ;;  %v21538_v46 = vld [vmem:[#allocation137_spill] sm:$0xff] }
 0x5c1   : > { %8070 = vmatmul.bf16.gmra.mxu1 %v21527_v37  ;;  %v18572_v45 = vpop.f32.mrf.mxu2  ;;  %v12218_v37 = vld [vmem:[%s19982_s7 + $0x490] sm:$0xff] }
 0x5c2   : > { %21528 = vst [vmem:[#allocation161_spill] sm:$0xff] %v18572_v45 }
 0x5c3   : > { %9018 = vmatpush.bf16.msra.mxu2 %v12218_v37 }
 0x5c6   : > { %v8033_v34 = vpop.f32.mrf.mxu1  ;;  %8282 = vmatmul.bf16.gmra.mxu2 %v21531_v2  ;;  %v7660_v33 = vpop.f32.mrf.mxu3  ;;  %v21535_v2 = vld [vmem:[#allocation73_spill] sm:$0xff] }
 0x5c7   : > { %v18576_v58 = vadd.f32 %v8033_v34, %v7898_v24  ;;  %v18578_v51 = vpop.f32.mrf.mxu0  ;;  %v18592_v57 = vadd.f32 %v7660_v33, %v7498_v25  ;;  %v21534_v34 = vld [vmem:[#allocation56_spill] sm:$0xff]  ;;  %9019 = vmatpush.bf16.msra.mxu2 %v12217_v28  ;;  %v7499_v33 = vadd.f32 %v21537_v35, %v18275_v1  ;;  %v7500_v35 = vadd.f32 %v18225_v47, %v18288_v48  ;;  %v21545_v48 = vld [vmem:[#allocation15_spill] sm:$0xff] }
 0x5c8   : > { %21530 = vst [vmem:[#allocation134_spill] sm:$0xff] %v18578_v51  ;;  %v7899_v55 = vadd.f32 %v21534_v34, %v18400_v16  ;;  %v21542_v1 = vld [vmem:[#allocation196_spill] sm:$0xff] }
 0x5c9   : > { %v18598_v24 = vpop.f32.mrf.mxu2  ;;  %8414 = vmatmul.bf16.gmra.mxu3 %v21535_v2 }
 0x5ca   : > { %8678 = vmatmul.bf16.gmra.mxu0 %v21482_v52  ;;  %21533 = vst [vmem:[#allocation103_spill] sm:$0xff] %v18598_v24  ;;  %v12216_v52 = vld [vmem:[%s19982_s7 + $0x480] sm:$0xff] }
 0x5cb   : > { %9020 = vmatpush.bf16.msra.mxu2 %v12216_v52  ;;  %v12237_v52 = vld [vmem:[%s19982_s7 + $0x528] sm:$0xff] }
 0x5cc   : > { %9404 = vmatpush.bf16.msrb.mxu0 %v12237_v52  ;;  %v12236_v52 = vld [vmem:[%s19982_s7 + $0x520] sm:$0xff] }
 0x5ce   : > { %v8036_v51 = vpop.f32.mrf.mxu1  ;;  %v7663_v24 = vpop.f32.mrf.mxu3 }
 0x5cf   : > { %v18603_v25 = vadd.f32 %v8036_v51, %v7899_v55  ;;  %v18605_v37 = vpop.f32.mrf.mxu0  ;;  %v18613_v45 = vadd.f32 %v7663_v24, %v7499_v33  ;;  %v21540_v51 = vld [vmem:[#allocation92_spill] sm:$0xff]  ;;  %v12213_v24 = vld [vmem:[%s19982_s7 + $0x468] sm:$0xff] }
 0x5d0   : > { %21536 = vst [vmem:[#allocation146_spill] sm:$0xff] %v18605_v37  ;;  %v7900_v28 = vadd.f32 %v21540_v51, %v18413_v49  ;;  %8810 = vmatpush.bf16.msra.mxu1 %v12213_v24  ;;  %v12212_v24 = vld [vmem:[%s19982_s7 + $0x460] sm:$0xff]  ;;  %9405 = vmatpush.bf16.msrb.mxu0 %v12236_v52 }
 0x5d1   : > { %8075 = vmatmul.bf16.gmra.mxu1 %v21538_v46  ;;  %v18615_v16 = vpop.f32.mrf.mxu2 }
 0x5d2   : > { %21539 = vst [vmem:[#allocation164_spill] sm:$0xff] %v18615_v16  ;;  %v21547_v16 = vld [vmem:[#allocation204_spill] sm:$0xff] }
 0x5d4   : > { %8811 = vmatpush.bf16.msra.mxu1 %v12212_v24 }
 0x5d6   : > { %v8038_v34 = vpop.f32.mrf.mxu1  ;;  %8287 = vmatmul.bf16.gmra.mxu2 %v21542_v1  ;;  %v7665_v33 = vpop.f32.mrf.mxu3 }
 0x5d7   : > { %v18619_v55 = vadd.f32 %v8038_v34, %v7900_v28  ;;  %v18621_v37 = vpop.f32.mrf.mxu0  ;;  %v18632_v49 = vadd.f32 %v7665_v33, %v7500_v35  ;;  %v21544_v28 = vld [vmem:[#allocation180_spill] sm:$0xff]  ;;  %v7501_v35 = vadd.f32 %v21547_v16, %v18303_v26  ;;  %v12229_v26 = vld [vmem:[%s19982_s7 + $0x4e8] sm:$0xff] }
 0x5d8   : > { %21541 = vst [vmem:[#allocation112_spill] sm:$0xff] %v18621_v37  ;;  %v7901_v47 = vadd.f32 %v21544_v28, %v18428_v62  ;;  %v21548_v62 = vld [vmem:[#allocation18_spill] sm:$0xff]  ;;  %9212 = vmatpush.bf16.msra.mxu3 %v12229_v26 }
 0x5d9   : > { %v18635_v51 = vpop.f32.mrf.mxu2  ;;  %8419 = vmatmul.bf16.gmra.mxu3 %v21545_v48 }
 0x5da   : > { %8683 = vmatmul.bf16.gmra.mxu0 %v21491_v44  ;;  %21543 = vst [vmem:[#allocation51_spill] sm:$0xff] %v18635_v51  ;;  %v12210_v51 = vld [vmem:[%s19982_s7 + $0x450] sm:$0xff] }
 0x5de   : > { %v8041_v34 = vpop.f32.mrf.mxu1  ;;  %v7668_v33 = vpop.f32.mrf.mxu3 }
 0x5df   : > { %v18640_v1 = vadd.f32 %v8041_v34, %v7901_v47  ;;  %v18642_v37 = vpop.f32.mrf.mxu0  ;;  %v18653_v28 = vadd.f32 %v7668_v33, %v7501_v35  ;;  %v12235_v47 = vld [vmem:[%s19982_s7 + $0x518] sm:$0xff]  ;;  %v21550_v35 = vld [vmem:[#allocation198_spill] sm:$0xff] }
 0x5e0   : > { %21546 = vst [vmem:[#allocation144_spill] sm:$0xff] %v18642_v37  ;;  %v12211_v34 = vld [vmem:[%s19982_s7 + $0x458] sm:$0xff]  ;;  %v7902_v33 = vadd.f32 %v21550_v35, %v18444_v20  ;;  %9406 = vmatpush.bf16.msrb.mxu0 %v12235_v47  ;;  %v12234_v20 = vld [vmem:[%s19982_s7 + $0x510] sm:$0xff] }
 0x5e1   : > { %8080 = vmatmul.bf16.gmra.mxu1 %v21548_v62  ;;  %v18661_v16 = vpop.f32.mrf.mxu2  ;;  %v21552_v62 = vld [vmem:[#allocation28_spill] sm:$0xff] }
 0x5e2   : > { %21549 = vst [vmem:[#allocation123_spill] sm:$0xff] %v18661_v16  ;;  %8812 = vmatpush.bf16.msra.mxu1 %v12211_v34  ;;  %v21553_v16 = vld [vmem:[#allocation97_spill] sm:$0xff]  ;;  %v12233_v34 = vld [vmem:[%s19982_s7 + $0x508] sm:$0xff] }
 0x5e3   : > { %v7502_v24 = vadd.f32 %v21553_v16, %v18319_v21  ;;  %v12209_v21 = vld [vmem:[%s19982_s7 + $0x448] sm:$0xff]  ;;  %v21555_v16 = vld [vmem:[#allocation181_spill] sm:$0xff] }
 0x5e4   : > { %9407 = vmatpush.bf16.msrb.mxu0 %v12234_v20  ;;  %v7903_v35 = vadd.f32 %v21555_v16, %v18459_v50  ;;  %v12232_v50 = vld [vmem:[%s19982_s7 + $0x500] sm:$0xff] }
 0x5e6   : > { %v8043_v52 = vpop.f32.mrf.mxu1  ;;  %9021 = vmatmul.bf16.vlgmr.msra.gmra.mxu2 %v21552_v62  ;;  %v7670_v47 = vpop.f32.mrf.mxu3  ;;  %8813 = vmatpush.bf16.msra.mxu1 %v12210_v51  ;;  %v12208_v51 = vld [vmem:[%s19982_s7 + $0x440] sm:$0xff] }
 0x5e7   : > { %v18668_v44 = vadd.f32 %v8043_v52, %v7902_v33  ;;  %v18670_v37 = vpop.f32.mrf.mxu0  ;;  %v18681_v26 = vadd.f32 %v7670_v47, %v7502_v24  ;;  %v21556_v33 = vld [vmem:[#allocation82_spill] sm:$0xff]  ;;  %v21558_v47 = vld [vmem:[#allocation25_spill] sm:$0xff] }
 0x5e8   : > { %21551 = vst [vmem:[#allocation171_spill] sm:$0xff] %v18670_v37  ;;  %9408 = vmatpush.bf16.msrb.mxu0 %v12233_v34  ;;  %v21559_v37 = vld [vmem:[#allocation31_spill] sm:$0xff] }
 0x5e9   : > { %v18687_v62 = vpop.f32.mrf.mxu2  ;;  %8424 = vmatmul.bf16.gmra.mxu3 %v21556_v33 }
 0x5ea   : > { %8688 = vmatmul.bf16.gmra.mxu0 %v21502_v36  ;;  %21554 = vst [vmem:[#allocation5_spill] sm:$0xff] %v18687_v62  ;;  %8814 = vmatpush.bf16.msra.mxu1 %v12209_v21  ;;  %v7503_v36 = vadd.f32 %v21558_v47, %v18334_v42  ;;  %v7504_v62 = vadd.f32 %v18284_v39, %v18347_v10 }
 0x5eb   : > { %v7505_v39 = vadd.f32 %v18298_v53, %v18362_v56  ;;  %v21570_v53 = vld [vmem:[#allocation22_spill] sm:$0xff] }
 0x5ec   : > { %9409 = vmatpush.bf16.msrb.mxu0 %v12232_v50  ;;  %v21562_v50 = vld [vmem:[#allocation32_spill] sm:$0xff]  ;;  %v7506_v56 = vadd.f32 %v21570_v53, %v18378_v17 }
 0x5ee   : > { %v8046_v52 = vpop.f32.mrf.mxu1  ;;  %v7673_v16 = vpop.f32.mrf.mxu3  ;;  %8815 = vmatpush.bf16.msra.mxu1 %v12208_v51  ;;  %v21563_v51 = vld [vmem:[#allocation83_spill] sm:$0xff] }
 0x5ef   : > { %v18695_v24 = vadd.f32 %v8046_v52, %v7903_v35  ;;  %v18697_v20 = vpop.f32.mrf.mxu0  ;;  %v18708_v34 = vadd.f32 %v7673_v16, %v7503_v36  ;;  %v21560_v35 = vld [vmem:[#allocation105_spill] sm:$0xff] }
 0x5f0   : > { %21557 = vst [vmem:[#allocation114_spill] sm:$0xff] %v18697_v20  ;;  %v7904_v42 = vadd.f32 %v21560_v35, %v18472_v22  ;;  %v7905_v22 = vadd.f32 %v21563_v51, %v18487_v3  ;;  %v21564_v35 = vld [vmem:[#allocation98_spill] sm:$0xff]  ;;  %v21568_v51 = vld [vmem:[#allocation43_spill] sm:$0xff] }
 0x5f1   : > { %8085 = vmatmul.bf16.gmra.mxu1 %v21559_v37  ;;  %v18710_v21 = vpop.f32.mrf.mxu2 }
 0x5f6   : > { %v8048_v52 = vpop.f32.mrf.mxu1  ;;  %9026 = vmatmul.bf16.gmra.mxu2 %v21449_v8  ;;  %v7675_v37 = vpop.f32.mrf.mxu3 }
 0x5f7   : > { %v18714_v47 = vadd.f32 %v8048_v52, %v7904_v42  ;;  %v18716_v20 = vpop.f32.mrf.mxu0  ;;  %v18721_v36 = vadd.f32 %v7675_v37, %v7504_v62  ;;  %v21566_v37 = vld [vmem:[#allocation20_spill] sm:$0xff] }
 0x5f8   : > { %21561 = vst [vmem:[#allocation29_spill] sm:$0xff] %v18716_v20 }
 0x5f9   : > { %v18724_v16 = vpop.f32.mrf.mxu2  ;;  %8429 = vmatmul.bf16.gmra.mxu3 %v21564_v35 }
 0x5fa   : > { %8693 = vmatmul.bf16.gmra.mxu0 %v21562_v50  ;;  %v12228_v50 = vld [vmem:[%s19982_s7 + $0x4e0] sm:$0xff] }
 0x5fb   : > { %9213 = vmatpush.bf16.msra.mxu3 %v12228_v50  ;;  %v21572_v50 = vld [vmem:[#allocation192_spill] sm:$0xff] }
 0x5fe   : > { %v8051_v42 = vpop.f32.mrf.mxu1  ;;  %v7678_v10 = vpop.f32.mrf.mxu3 }
 0x5ff   : > { %v18729_v52 = vadd.f32 %v8051_v42, %v7905_v22  ;;  %v18731_v20 = vpop.f32.mrf.mxu0  ;;  %v18736_v62 = vadd.f32 %v7678_v10, %v7505_v39  ;;  %v7906_v22 = vadd.f32 %v21568_v51, %v18512_v31  ;;  %v7907_v31 = vadd.f32 %v21572_v50, %v18527_v13  ;;  %v21573_v51 = vld [vmem:[#allocation109_spill] sm:$0xff] }
 0x600   : > { %21565 = vst [vmem:[#allocation117_spill] sm:$0xff] %v18731_v20 }
 0x601   : > { %8090 = vmatmul.bf16.gmra.mxu1 %v21566_v37  ;;  %v18741_v3 = vpop.f32.mrf.mxu2 }
 0x602   : > { %21567 = vst [vmem:[#allocation145_spill] sm:$0xff] %v18741_v3 }
 0x606   : > { %v8053_v42 = vpop.f32.mrf.mxu1  ;;  %9031 = vmatmul.bf16.gmra.mxu2 %v21455_v60  ;;  %v7680_v39 = vpop.f32.mrf.mxu3  ;;  %v21575_v60 = vld [vmem:[#allocation80_spill] sm:$0xff] }
 0x607   : > { %v18745_v8 = vadd.f32 %v8053_v42, %v7906_v22  ;;  %v18747_v20 = vpop.f32.mrf.mxu0  ;;  %v18752_v10 = vadd.f32 %v7680_v39, %v7506_v56  ;;  %v7507_v17 = vadd.f32 %v21575_v60, %v18393_v23  ;;  %v21576_v56 = vld [vmem:[#allocation99_spill] sm:$0xff]  ;;  %v7508_v60 = vadd.f32 %v18343_v0, %v18406_v5 }
 0x608   : > { %21569 = vst [vmem:[#allocation110_spill] sm:$0xff] %v18747_v20  ;;  %v7509_v0 = vadd.f32 %v18357_v7, %v18421_v40  ;;  %v7510_v7 = vadd.f32 %v18374_v38, %v18437_v14  ;;  %v8293_v14 = vadd.f32 %v18388_v4, %v18452_v27  ;;  %v8294_v4 = vadd.f32 %v18402_v6, %v18465_v59 }
 0x609   : > { %v18755_v3 = vpop.f32.mrf.mxu2  ;;  %8434 = vmatmul.bf16.gmra.mxu3 %v21573_v51 }
 0x60a   : > { %9410 = vmatmul.bf16.vlgmr.msrb.gmra.mxu0 %v21524_v18  ;;  %21571 = vst [vmem:[#allocation182_spill] sm:$0xff] %v18755_v3  ;;  %v21577_v3 = vld [vmem:[#allocation194_spill] sm:$0xff] }
 0x60b   : > { %v7908_v13 = vadd.f32 %v21577_v3, %v18543_v30  ;;  %v21580_v3 = vld [vmem:[#allocation126_spill] sm:$0xff] }
 0x60e   : > { %v8056_v22 = vpop.f32.mrf.mxu1  ;;  %v7683_v53 = vpop.f32.mrf.mxu3 }
 0x60f   : > { %v18760_v42 = vadd.f32 %v8056_v22, %v7907_v31  ;;  %v18762_v20 = vpop.f32.mrf.mxu0  ;;  %v18767_v39 = vadd.f32 %v7683_v53, %v7507_v17  ;;  %v21579_v53 = vld [vmem:[#allocation200_spill] sm:$0xff] }
 0x610   : > { %21574 = vst [vmem:[#allocation191_spill] sm:$0xff] %v18762_v20  ;;  %v7909_v30 = vadd.f32 %v21579_v53, %v18564_v19  ;;  %v21583_v53 = vld [vmem:[#allocation54_spill] sm:$0xff] }
 0x611   : > { %8816 = vmatmul.bf16.vlgmr.msra.gmra.mxu1 %v21576_v56  ;;  %v18769_v18 = vpop.f32.mrf.mxu2 }
 0x616   : > { %v8058_v50 = vpop.f32.mrf.mxu1  ;;  %9036 = vmatmul.bf16.gmra.mxu2 %v21465_v54  ;;  %v7685_v23 = vpop.f32.mrf.mxu3 }
 0x617   : > { %v18773_v37 = vadd.f32 %v8058_v50, %v7908_v13  ;;  %v18775_v31 = vpop.f32.mrf.mxu0  ;;  %v18780_v22 = vadd.f32 %v7685_v23, %v7508_v60  ;;  %v21582_v60 = vld [vmem:[#allocation106_spill] sm:$0xff] }
 0x618   : > { %21578 = vst [vmem:[#allocation205_spill] sm:$0xff] %v18775_v31 }
 0x619   : > { %v18783_v17 = vpop.f32.mrf.mxu2  ;;  %8439 = vmatmul.bf16.gmra.mxu3 %v21580_v3 }
 0x61a   : > { %9415 = vmatmul.bf16.gmra.mxu0 %v21535_v2  ;;  %v12227_v2 = vld [vmem:[%s19982_s7 + $0x4d8] sm:$0xff] }
 0x61b   : > { %9214 = vmatpush.bf16.msra.mxu3 %v12227_v2  ;;  %v21585_v2 = vld [vmem:[#allocation147_spill] sm:$0xff] }
 0x61e   : > { %v8061_v56 = vpop.f32.mrf.mxu1  ;;  %v7688_v5 = vpop.f32.mrf.mxu3 }
 0x61f   : > { %v18788_v13 = vadd.f32 %v8061_v56, %v7909_v30  ;;  %v18790_v50 = vpop.f32.mrf.mxu0  ;;  %v18795_v23 = vadd.f32 %v7688_v5, %v7509_v0  ;;  %v7910_v30 = vadd.f32 %v21583_v53, %v18592_v57  ;;  %v7911_v57 = vadd.f32 %v21585_v2, %v18613_v45  ;;  %v21586_v53 = vld [vmem:[#allocation131_spill] sm:$0xff] }
 0x620   : > { %21581 = vst [vmem:[#allocation9_spill] sm:$0xff] %v18790_v50 }
 0x621   : > { %8821 = vmatmul.bf16.gmra.mxu1 %v21582_v60  ;;  %v18800_v19 = vpop.f32.mrf.mxu2 }
 0x626   : > { %v8063_v56 = vpop.f32.mrf.mxu1  ;;  %9041 = vmatmul.bf16.gmra.mxu2 %v21471_v61  ;;  %v7690_v40 = vpop.f32.mrf.mxu3  ;;  %v21589_v61 = vld [vmem:[#allocation39_spill] sm:$0xff] }
 0x627   : > { %v18804_v54 = vadd.f32 %v8063_v56, %v7910_v30  ;;  %v18806_v50 = vpop.f32.mrf.mxu0  ;;  %v18811_v0 = vadd.f32 %v7690_v40, %v7510_v7  ;;  %v21588_v7 = vld [vmem:[#allocation116_spill] sm:$0xff]  ;;  %v7912_v45 = vadd.f32 %v21589_v61, %v18632_v49  ;;  %v21592_v49 = vld [vmem:[#allocation13_spill] sm:$0xff] }
 0x628   : > { %21584 = vst [vmem:[#allocation91_spill] sm:$0xff] %v18806_v50 }
 0x629   : > { %v18814_v5 = vpop.f32.mrf.mxu2  ;;  %8444 = vmatmul.bf16.gmra.mxu3 %v21586_v53 }
 0x62a   : > { %9420 = vmatmul.bf16.gmra.mxu0 %v21545_v48 }
 0x62e   : > { %v8066_v30 = vpop.f32.mrf.mxu1  ;;  %v8405_v38 = vpop.f32.mrf.mxu3 }
 0x62f   : > { %v18819_v56 = vadd.f32 %v8066_v30, %v7911_v57  ;;  %v18821_v50 = vpop.f32.mrf.mxu0  ;;  %v18826_v40 = vadd.f32 %v8405_v38, %v8293_v14  ;;  %v21591_v38 = vld [vmem:[#allocation178_spill] sm:$0xff] }
 0x630   : > { %21587 = vst [vmem:[#allocation7_spill] sm:$0xff] %v18821_v50  ;;  %v7913_v61 = vadd.f32 %v21591_v38, %v18653_v28  ;;  %v21597_v38 = vld [vmem:[#allocation11_spill] sm:$0xff] }
 0x631   : > { %8826 = vmatmul.bf16.gmra.mxu1 %v21588_v7  ;;  %v18828_v48 = vpop.f32.mrf.mxu2 }
 0x636   : > { %v8068_v2 = vpop.f32.mrf.mxu1  ;;  %9046 = vmatmul.bf16.gmra.mxu2 %v21477_v11  ;;  %v8407_v27 = vpop.f32.mrf.mxu3  ;;  %v21594_v11 = vld [vmem:[#allocation52_spill] sm:$0xff] }
 0x637   : > { %v18832_v31 = vadd.f32 %v8068_v2, %v7912_v45  ;;  %v18834_v57 = vpop.f32.mrf.mxu0  ;;  %v18839_v30 = vadd.f32 %v8407_v27, %v8294_v4  ;;  %v8295_v6 = vadd.f32 %v21594_v11, %v18480_v41  ;;  %v21595_v4 = vld [vmem:[#allocation122_spill] sm:$0xff]  ;;  %v21599_v11 = vld [vmem:[#allocation23_spill] sm:$0xff]  ;;  %v21600_v41 = vld [vmem:[#allocation57_spill] sm:$0xff] }
 0x638   : > { %21590 = vst [vmem:[#allocation66_spill] sm:$0xff] %v18834_v57 }
 0x639   : > { %v18842_v14 = vpop.f32.mrf.mxu2  ;;  %8449 = vmatmul.bf16.gmra.mxu3 %v21592_v49 }
 0x63a   : > { %9425 = vmatmul.bf16.gmra.mxu0 %v21556_v33  ;;  %v12226_v33 = vld [vmem:[%s19982_s7 + $0x4d0] sm:$0xff] }
 0x63b   : > { %9215 = vmatpush.bf16.msra.mxu3 %v12226_v33  ;;  %v21602_v33 = vld [vmem:[#allocation115_spill] sm:$0xff] }
 0x63e   : > { %v8071_v45 = vpop.f32.mrf.mxu1  ;;  %v8410_v59 = vpop.f32.mrf.mxu3 }
 0x63f   : > { %v18847_v2 = vadd.f32 %v8071_v45, %v7913_v61  ;;  %v18849_v57 = vpop.f32.mrf.mxu0  ;;  %v18854_v27 = vadd.f32 %v8410_v59, %v8295_v6  ;;  %v7914_v61 = vadd.f32 %v21597_v38, %v18681_v26  ;;  %v8296_v6 = vadd.f32 %v21600_v41, %v18499_v32  ;;  %v21603_v38 = vld [vmem:[#allocation157_spill] sm:$0xff] }
 0x640   : > { %21593 = vst [vmem:[#allocation69_spill] sm:$0xff] %v18849_v57  ;;  %v7915_v26 = vadd.f32 %v21602_v33, %v18708_v34 }
 0x641   : > { %8831 = vmatmul.bf16.gmra.mxu1 %v21595_v4  ;;  %v18859_v28 = vpop.f32.mrf.mxu2 }
 0x642   : > { %21596 = vst [vmem:[#allocation89_spill] sm:$0xff] %v18859_v28 }
 0x646   : > { %v8073_v45 = vpop.f32.mrf.mxu1  ;;  %9051 = vmatmul.bf16.gmra.mxu2 %v21599_v11  ;;  %v8412_v59 = vpop.f32.mrf.mxu3  ;;  %v21605_v11 = vld [vmem:[#allocation94_spill] sm:$0xff] }
 0x647   : > { %v18863_v57 = vadd.f32 %v8073_v45, %v7914_v61  ;;  %v18865_v50 = vpop.f32.mrf.mxu0  ;;  %v18870_v20 = vadd.f32 %v8412_v59, %v8296_v6  ;;  %v8297_v32 = vadd.f32 %v21605_v11, %v18520_v29  ;;  %v21606_v6 = vld [vmem:[#allocation132_spill] sm:$0xff]  ;;  %v8298_v29 = vadd.f32 %v18461_v43, %v18533_v15 }
 0x648   : > { %21598 = vst [vmem:[#allocation149_spill] sm:$0xff] %v18865_v50 }
 0x649   : > { %v18873_v28 = vpop.f32.mrf.mxu2  ;;  %8454 = vmatmul.bf16.gmra.mxu3 %v21603_v38 }
 0x64a   : > { %9430 = vmatmul.bf16.gmra.mxu0 %v21564_v35  ;;  %21601 = vst [vmem:[#allocation78_spill] sm:$0xff] %v18873_v28  ;;  %v21607_v28 = vld [vmem:[#allocation179_spill] sm:$0xff] }
 0x64b   : > { %v7916_v34 = vadd.f32 %v21607_v28, %v18721_v36  ;;  %v21611_v28 = vld [vmem:[#allocation162_spill] sm:$0xff] }
 0x64e   : > { %v8076_v61 = vpop.f32.mrf.mxu1  ;;  %v8415_v41 = vpop.f32.mrf.mxu3 }
 0x64f   : > { %v18878_v45 = vadd.f32 %v8076_v61, %v7915_v26  ;;  %v18880_v50 = vpop.f32.mrf.mxu0  ;;  %v18885_v59 = vadd.f32 %v8415_v41, %v8297_v32  ;;  %v21610_v41 = vld [vmem:[#allocation27_spill] sm:$0xff] }
 0x650   : > { %21604 = vst [vmem:[#allocation6_spill] sm:$0xff] %v18880_v50  ;;  %v7917_v36 = vadd.f32 %v21610_v41, %v18736_v62  ;;  %v21616_v41 = vld [vmem:[#allocation130_spill] sm:$0xff] }
 0x651   : > { %8836 = vmatmul.bf16.gmra.mxu1 %v21606_v6  ;;  %v18887_v35 = vpop.f32.mrf.mxu2 }
 0x656   : > { %v8078_v33 = vpop.f32.mrf.mxu1  ;;  %9056 = vmatmul.bf16.gmra.mxu2 %v21495_v12  ;;  %v8417_v11 = vpop.f32.mrf.mxu3  ;;  %v21613_v12 = vld [vmem:[#allocation38_spill] sm:$0xff] }
 0x657   : > { %v18891_v4 = vadd.f32 %v8078_v33, %v7916_v34  ;;  %v18893_v26 = vpop.f32.mrf.mxu0  ;;  %v18898_v61 = vadd.f32 %v8417_v11, %v8298_v29  ;;  %v8299_v43 = vadd.f32 %v21613_v12, %v18554_v63  ;;  %v21614_v29 = vld [vmem:[#allocation139_spill] sm:$0xff]  ;;  %v21618_v12 = vld [vmem:[#allocation125_spill] sm:$0xff] }
 0x658   : > { %21608 = vst [vmem:[#allocation72_spill] sm:$0xff] %v18893_v26  ;;  %v21619_v63 = vld [vmem:[#allocation153_spill] sm:$0xff] }
 0x659   : > { %v18901_v32 = vpop.f32.mrf.mxu2  ;;  %8459 = vmatmul.bf16.gmra.mxu3 %v21611_v28 }
 0x65a   : > { %9435 = vmatmul.bf16.gmra.mxu0 %v21573_v51  ;;  %21609 = vst [vmem:[#allocation183_spill] sm:$0xff] %v18901_v32  ;;  %v12225_v51 = vld [vmem:[%s19982_s7 + $0x4c8] sm:$0xff] }
 0x65b   : > { %9216 = vmatpush.bf16.msra.mxu3 %v12225_v51  ;;  %v21621_v51 = vld [vmem:[#allocation129_spill] sm:$0xff] }
 0x65e   : > { %v8081_v34 = vpop.f32.mrf.mxu1  ;;  %v8420_v15 = vpop.f32.mrf.mxu3 }
 0x65f   : > { %v18906_v33 = vadd.f32 %v8081_v34, %v7917_v36  ;;  %v18908_v26 = vpop.f32.mrf.mxu0  ;;  %v18913_v11 = vadd.f32 %v8420_v15, %v8299_v43  ;;  %v7918_v36 = vadd.f32 %v21616_v41, %v18752_v10  ;;  %v8300_v43 = vadd.f32 %v21619_v63, %v18576_v58  ;;  %v21622_v41 = vld [vmem:[#allocation172_spill] sm:$0xff] }
 0x660   : > { %21612 = vst [vmem:[#allocation64_spill] sm:$0xff] %v18908_v26  ;;  %v7919_v10 = vadd.f32 %v21621_v51, %v18767_v39 }
 0x661   : > { %8841 = vmatmul.bf16.gmra.mxu1 %v21614_v29  ;;  %v18918_v62 = vpop.f32.mrf.mxu2 }
 0x662   : > { %21615 = vst [vmem:[#allocation42_spill] sm:$0xff] %v18918_v62 }
 0x666   : > { %v8083_v34 = vpop.f32.mrf.mxu1  ;;  %9061 = vmatmul.bf16.gmra.mxu2 %v21618_v12  ;;  %v8422_v15 = vpop.f32.mrf.mxu3  ;;  %v21624_v12 = vld [vmem:[#allocation95_spill] sm:$0xff] }
 0x667   : > { %v18922_v26 = vadd.f32 %v8083_v34, %v7918_v36  ;;  %v18924_v50 = vpop.f32.mrf.mxu0  ;;  %v18929_v29 = vadd.f32 %v8422_v15, %v8300_v43  ;;  %v8301_v58 = vadd.f32 %v21624_v12, %v18603_v25  ;;  %v21625_v43 = vld [vmem:[#allocation151_spill] sm:$0xff] }
 0x668   : > { %21617 = vst [vmem:[#allocation55_spill] sm:$0xff] %v18924_v50 }
 0x669   : > { %v18932_v62 = vpop.f32.mrf.mxu2  ;;  %8464 = vmatmul.bf16.gmra.mxu3 %v21622_v41 }
 0x66a   : > { %9440 = vmatmul.bf16.gmra.mxu0 %v21580_v3  ;;  %21620 = vst [vmem:[#allocation193_spill] sm:$0xff] %v18932_v62  ;;  %v21627_v62 = vld [vmem:[#allocation119_spill] sm:$0xff] }
 0x66b   : > { %v7920_v39 = vadd.f32 %v21627_v62, %v18780_v22  ;;  %v21632_v62 = vld [vmem:[#allocation58_spill] sm:$0xff] }
 0x66e   : > { %v8086_v36 = vpop.f32.mrf.mxu1  ;;  %v8425_v63 = vpop.f32.mrf.mxu3 }
 0x66f   : > { %v18937_v34 = vadd.f32 %v8086_v36, %v7919_v10  ;;  %v18939_v50 = vpop.f32.mrf.mxu0  ;;  %v18944_v15 = vadd.f32 %v8425_v63, %v8301_v58  ;;  %v21629_v36 = vld [vmem:[#allocation68_spill] sm:$0xff]  ;;  %v21631_v63 = vld [vmem:[#allocation143_spill] sm:$0xff] }
 0x670   : > { %21623 = vst [vmem:[#allocation108_spill] sm:$0xff] %v18939_v50  ;;  %v8302_v25 = vadd.f32 %v21629_v36, %v18619_v55  ;;  %v7921_v22 = vadd.f32 %v21631_v63, %v18795_v23  ;;  %v21637_v63 = vld [vmem:[#allocation166_spill] sm:$0xff] }
 0x671   : > { %8846 = vmatmul.bf16.gmra.mxu1 %v21625_v43  ;;  %v18946_v3 = vpop.f32.mrf.mxu2 }
 0x672   : > { %21626 = vst [vmem:[#allocation59_spill] sm:$0xff] %v18946_v3 }
 0x676   : > { %v8088_v51 = vpop.f32.mrf.mxu1  ;;  %9066 = vmatmul.bf16.gmra.mxu2 %v21516_v9  ;;  %v8427_v12 = vpop.f32.mrf.mxu3  ;;  %v21634_v9 = vld [vmem:[#allocation107_spill] sm:$0xff] }
 0x677   : > { %v18950_v32 = vadd.f32 %v8088_v51, %v7920_v39  ;;  %v18952_v10 = vpop.f32.mrf.mxu0  ;;  %v18957_v50 = vadd.f32 %v8427_v12, %v8302_v25  ;;  %v8303_v55 = vadd.f32 %v21634_v9, %v18640_v1  ;;  %v21635_v25 = vld [vmem:[#allocation156_spill] sm:$0xff]  ;;  %v21640_v1 = vld [vmem:[#allocation161_spill] sm:$0xff] }
 0x678   : > { %21628 = vst [vmem:[#allocation8_spill] sm:$0xff] %v18952_v10  ;;  %v21639_v9 = vld [vmem:[#allocation128_spill] sm:$0xff] }
 0x679   : > { %v18960_v58 = vpop.f32.mrf.mxu2  ;;  %8469 = vmatmul.bf16.gmra.mxu3 %v21632_v62 }
 0x67a   : > { %9445 = vmatmul.bf16.gmra.mxu0 %v21586_v53  ;;  %21630 = vst [vmem:[#allocation50_spill] sm:$0xff] %v18960_v58  ;;  %v12224_v53 = vld [vmem:[%s19982_s7 + $0x4c0] sm:$0xff] }
 0x67b   : > { %9217 = vmatpush.bf16.msra.mxu3 %v12224_v53  ;;  %v21642_v53 = vld [vmem:[#allocation49_spill] sm:$0xff] }
 0x67e   : > { %v8091_v39 = vpop.f32.mrf.mxu1  ;;  %v8430_v36 = vpop.f32.mrf.mxu3 }
 0x67f   : > { %v18965_v51 = vadd.f32 %v8091_v39, %v7921_v22  ;;  %v18967_v10 = vpop.f32.mrf.mxu0  ;;  %v18972_v12 = vadd.f32 %v8430_v36, %v8303_v55  ;;  %v7922_v22 = vadd.f32 %v21637_v63, %v18811_v0  ;;  %v8304_v55 = vadd.f32 %v21640_v1, %v18668_v44  ;;  %v21643_v63 = vld [vmem:[#allocation10_spill] sm:$0xff] }
 0x680   : > { %21633 = vst [vmem:[#allocation79_spill] sm:$0xff] %v18967_v10  ;;  %v8699_v0 = vadd.f32 %v21642_v53, %v18826_v40 }
 0x681   : > { %8851 = vmatmul.bf16.gmra.mxu1 %v21635_v25  ;;  %v18977_v23 = vpop.f32.mrf.mxu2 }
 0x682   : > { %21636 = vst [vmem:[#allocation34_spill] sm:$0xff] %v18977_v23 }
 0x686   : > { %v8093_v39 = vpop.f32.mrf.mxu1  ;;  %9071 = vmatmul.bf16.gmra.mxu2 %v21639_v9  ;;  %v8432_v36 = vpop.f32.mrf.mxu3  ;;  %v21645_v9 = vld [vmem:[#allocation103_spill] sm:$0xff] }
 0x687   : > { %v18981_v10 = vadd.f32 %v8093_v39, %v7922_v22  ;;  %v18983_v58 = vpop.f32.mrf.mxu0  ;;  %v18988_v25 = vadd.f32 %v8432_v36, %v8304_v55  ;;  %v8305_v44 = vadd.f32 %v21645_v9, %v18695_v24  ;;  %v21646_v55 = vld [vmem:[#allocation165_spill] sm:$0xff] }
 0x688   : > { %21638 = vst [vmem:[#allocation135_spill] sm:$0xff] %v18983_v58 }
 0x689   : > { %v18991_v23 = vpop.f32.mrf.mxu2  ;;  %8474 = vmatmul.bf16.gmra.mxu3 %v21643_v63 }
 0x68a   : > { %9450 = vmatmul.bf16.gmra.mxu0 %v21592_v49  ;;  %21641 = vst [vmem:[#allocation163_spill] sm:$0xff] %v18991_v23  ;;  %v21647_v23 = vld [vmem:[#allocation124_spill] sm:$0xff] }
 0x68b   : > { %v8700_v40 = vadd.f32 %v21647_v23, %v18839_v30  ;;  %v21652_v23 = vld [vmem:[#allocation203_spill] sm:$0xff] }
 0x68e   : > { %v8817_v22 = vpop.f32.mrf.mxu1  ;;  %v8435_v1 = vpop.f32.mrf.mxu3 }
 0x68f   : > { %v18996_v39 = vadd.f32 %v8817_v22, %v8699_v0  ;;  %v18998_v58 = vpop.f32.mrf.mxu0  ;;  %v19003_v36 = vadd.f32 %v8435_v1, %v8305_v44  ;;  %v21649_v22 = vld [vmem:[#allocation164_spill] sm:$0xff]  ;;  %v21651_v1 = vld [vmem:[#allocation133_spill] sm:$0xff] }
 0x690   : > { %21644 = vst [vmem:[#allocation46_spill] sm:$0xff] %v18998_v58  ;;  %v8306_v24 = vadd.f32 %v21649_v22, %v18714_v47  ;;  %v8701_v30 = vadd.f32 %v21651_v1, %v18854_v27  ;;  %v12263_v27 = vld [vmem:[%s19982_s7 + $0x5f8] sm:$0xff] }
 0x691   : > { %8856 = vmatmul.bf16.gmra.mxu1 %v21646_v55  ;;  %v19005_v49 = vpop.f32.mrf.mxu2  ;;  %10019 = vmatpush.bf16.msrb.mxu3 %v12263_v27 }
 0x696   : > { %v8819_v53 = vpop.f32.mrf.mxu1  ;;  %9076 = vmatmul.bf16.gmra.mxu2 %v21538_v46  ;;  %v8437_v9 = vpop.f32.mrf.mxu3  ;;  %v21654_v46 = vld [vmem:[#allocation51_spill] sm:$0xff] }
 0x697   : > { %v19009_v3 = vadd.f32 %v8819_v53, %v8700_v40  ;;  %v19011_v0 = vpop.f32.mrf.mxu0  ;;  %v19016_v58 = vadd.f32 %v8437_v9, %v8306_v24  ;;  %v8307_v47 = vadd.f32 %v21654_v46, %v18729_v52  ;;  %v21655_v24 = vld [vmem:[#allocation176_spill] sm:$0xff] }
 0x698   : > { %21648 = vst [vmem:[#allocation174_spill] sm:$0xff] %v19011_v0 }
 0x699   : > { %v19019_v44 = vpop.f32.mrf.mxu2  ;;  %8479 = vmatmul.bf16.gmra.mxu3 %v21652_v23 }
 0x69a   : > { %9455 = vmatmul.bf16.gmra.mxu0 %v21603_v38  ;;  %21650 = vst [vmem:[#allocation142_spill] sm:$0xff] %v19019_v44  ;;  %v12255_v38 = vld [vmem:[%s19982_s7 + $0x5b8] sm:$0xff] }
 0x69b   : > { %9814 = vmatpush.bf16.msrb.mxu2 %v12255_v38  ;;  %v12247_v44 = vld [vmem:[%s19982_s7 + $0x578] sm:$0xff] }
 0x69c   : > { %v12271_v38 = vld [vmem:[%s19982_s7 + $0x638] sm:$0xff]  ;;  %9616 = vmatpush.bf16.msrb.mxu1 %v12247_v44 }
 0x69d   : > { %10216 = vmatpush.bf16.msra.mxu0 %v12271_v38  ;;  %v21666_v44 = vld [vmem:[#allocation44_spill] sm:$0xff] }
 0x69e   : > { %v8822_v40 = vpop.f32.mrf.mxu1  ;;  %v8440_v22 = vpop.f32.mrf.mxu3 }
 0x69f   : > { %v19024_v53 = vadd.f32 %v8822_v40, %v8701_v30  ;;  %v19026_v0 = vpop.f32.mrf.mxu0  ;;  %v19031_v9 = vadd.f32 %v8440_v22, %v8307_v47  ;;  %v21657_v30 = vld [vmem:[#allocation70_spill] sm:$0xff] }
 0x6a0   : > { %21653 = vst [vmem:[#allocation148_spill] sm:$0xff] %v19026_v0  ;;  %v8702_v46 = vadd.f32 %v21657_v30, %v18870_v20  ;;  %v21659_v22 = vld [vmem:[#allocation18_spill] sm:$0xff]  ;;  %v21660_v0 = vld [vmem:[#allocation123_spill] sm:$0xff] }
 0x6a1   : > { %8861 = vmatmul.bf16.gmra.mxu1 %v21655_v24  ;;  %v19039_v1 = vpop.f32.mrf.mxu2  ;;  %v8308_v24 = vadd.f32 %v21660_v0, %v18745_v8  ;;  %v21663_v0 = vld [vmem:[#allocation118_spill] sm:$0xff] }
 0x6a2   : > { %21656 = vst [vmem:[#allocation26_spill] sm:$0xff] %v19039_v1  ;;  %v21665_v1 = vld [vmem:[#allocation5_spill] sm:$0xff] }
 0x6a6   : > { %v8824_v52 = vpop.f32.mrf.mxu1  ;;  %9081 = vmatmul.bf16.gmra.mxu2 %v21659_v22  ;;  %v8442_v27 = vpop.f32.mrf.mxu3 }
 0x6a7   : > { %v19043_v40 = vadd.f32 %v8824_v52, %v8702_v46  ;;  %v19045_v47 = vpop.f32.mrf.mxu0  ;;  %v19056_v20 = vadd.f32 %v8442_v27, %v8308_v24  ;;  %v21662_v46 = vld [vmem:[#allocation62_spill] sm:$0xff]  ;;  %v8309_v24 = vadd.f32 %v21665_v1, %v18760_v42  ;;  %v8310_v42 = vadd.f32 %v18710_v21, %v18773_v37  ;;  %v12254_v1 = vld [vmem:[%s19982_s7 + $0x5b0] sm:$0xff] }
 0x6a8   : > { %21658 = vst [vmem:[#allocation37_spill] sm:$0xff] %v19045_v47  ;;  %v8703_v8 = vadd.f32 %v21662_v46, %v18885_v59  ;;  %9815 = vmatpush.bf16.msrb.mxu2 %v12254_v1  ;;  %v21671_v21 = vld [vmem:[#allocation127_spill] sm:$0xff]  ;;  %v8311_v1 = vadd.f32 %v18724_v16, %v18788_v13 }
 0x6a9   : > { %v19059_v30 = vpop.f32.mrf.mxu2  ;;  %9218 = vmatmul.bf16.vlgmr.msra.gmra.mxu3 %v21663_v0  ;;  %v21675_v16 = vld [vmem:[#allocation47_spill] sm:$0xff] }
 0x6aa   : > { %9460 = vmatmul.bf16.gmra.mxu0 %v21611_v28  ;;  %21661 = vst [vmem:[#allocation167_spill] sm:$0xff] %v19059_v30  ;;  %v21667_v30 = vld [vmem:[#allocation60_spill] sm:$0xff]  ;;  %v8706_v13 = vadd.f32 %v21675_v16, %v18929_v29 }
 0x6ab   : > { %v8704_v59 = vadd.f32 %v21667_v30, %v18898_v61  ;;  %v12253_v61 = vld [vmem:[%s19982_s7 + $0x5a8] sm:$0xff] }
 0x6ac   : > { %9816 = vmatpush.bf16.msrb.mxu2 %v12253_v61  ;;  %v12262_v61 = vld [vmem:[%s19982_s7 + $0x5f0] sm:$0xff] }
 0x6ad   : > { %10020 = vmatpush.bf16.msrb.mxu3 %v12262_v61  ;;  %v12246_v61 = vld [vmem:[%s19982_s7 + $0x570] sm:$0xff] }
 0x6ae   : > { %v8827_v52 = vpop.f32.mrf.mxu1  ;;  %v8445_v27 = vpop.f32.mrf.mxu3  ;;  %9617 = vmatpush.bf16.msrb.mxu1 %v12246_v61  ;;  %v21683_v61 = vld [vmem:[#allocation182_spill] sm:$0xff] }
 0x6af   : > { %v19064_v22 = vadd.f32 %v8827_v52, %v8703_v8  ;;  %v19066_v47 = vpop.f32.mrf.mxu0  ;;  %v19071_v38 = vadd.f32 %v8445_v27, %v8309_v24  ;;  %v21669_v52 = vld [vmem:[#allocation31_spill] sm:$0xff] }
 0x6b0   : > { %21664 = vst [vmem:[#allocation154_spill] sm:$0xff] %v19066_v47 }
 0x6b1   : > { %8866 = vmatmul.bf16.gmra.mxu1 %v21666_v44  ;;  %v19073_v28 = vpop.f32.mrf.mxu2 }
 0x6b6   : > { %v8829_v46 = vpop.f32.mrf.mxu1  ;;  %9086 = vmatmul.bf16.gmra.mxu2 %v21669_v52  ;;  %v8447_v24 = vpop.f32.mrf.mxu3 }
 0x6b7   : > { %v19077_v0 = vadd.f32 %v8829_v46, %v8704_v59  ;;  %v19079_v8 = vpop.f32.mrf.mxu0  ;;  %v19087_v27 = vadd.f32 %v8447_v24, %v8310_v42  ;;  %v21670_v59 = vld [vmem:[#allocation160_spill] sm:$0xff] }
 0x6b8   : > { %21668 = vst [vmem:[#allocation188_spill] sm:$0xff] %v19079_v8  ;;  %v8705_v46 = vadd.f32 %v21670_v59, %v18913_v11  ;;  %v21673_v8 = vld [vmem:[#allocation77_spill] sm:$0xff]  ;;  %v12251_v11 = vld [vmem:[%s19982_s7 + $0x598] sm:$0xff] }
 0x6b9   : > { %v19093_v30 = vpop.f32.mrf.mxu2  ;;  %9223 = vmatmul.bf16.gmra.mxu3 %v21671_v21 }
 0x6ba   : > { %9465 = vmatmul.bf16.gmra.mxu0 %v21622_v41  ;;  %v12252_v41 = vld [vmem:[%s19982_s7 + $0x5a0] sm:$0xff] }
 0x6bb   : > { %9817 = vmatpush.bf16.msrb.mxu2 %v12252_v41  ;;  %v21677_v41 = vld [vmem:[#allocation20_spill] sm:$0xff] }
 0x6be   : > { %v8832_v37 = vpop.f32.mrf.mxu1  ;;  %v8450_v24 = vpop.f32.mrf.mxu3 }
 0x6bf   : > { %v19098_v52 = vadd.f32 %v8832_v37, %v8705_v46  ;;  %v19100_v42 = vpop.f32.mrf.mxu0  ;;  %v19108_v47 = vadd.f32 %v8450_v24, %v8311_v1  ;;  %9818 = vmatpush.bf16.msrb.mxu2 %v12251_v11  ;;  %v21678_v24 = vld [vmem:[#allocation145_spill] sm:$0xff]  ;;  %v12270_v11 = vld [vmem:[%s19982_s7 + $0x630] sm:$0xff] }
 0x6c0   : > { %21672 = vst [vmem:[#allocation175_spill] sm:$0xff] %v19100_v42  ;;  %v8312_v42 = vadd.f32 %v21678_v24, %v18804_v54  ;;  %v12249_v54 = vld [vmem:[%s19982_s7 + $0x588] sm:$0xff]  ;;  %10217 = vmatpush.bf16.msra.mxu0 %v12270_v11  ;;  %v21684_v11 = vld [vmem:[#allocation67_spill] sm:$0xff] }
 0x6c1   : > { %8871 = vmatmul.bf16.gmra.mxu1 %v21673_v8  ;;  %v19116_v59 = vpop.f32.mrf.mxu2  ;;  %v12250_v8 = vld [vmem:[%s19982_s7 + $0x590] sm:$0xff] }
 0x6c2   : > { %21674 = vst [vmem:[#allocation202_spill] sm:$0xff] %v19116_v59 }
 0x6c3   : > { %9819 = vmatpush.bf16.msrb.mxu2 %v12250_v8 }
 0x6c6   : > { %v8834_v46 = vpop.f32.mrf.mxu1  ;;  %9091 = vmatmul.bf16.gmra.mxu2 %v21677_v41  ;;  %v8452_v29 = vpop.f32.mrf.mxu3  ;;  %v21681_v41 = vld [vmem:[#allocation138_spill] sm:$0xff] }
 0x6c7   : > { %v19120_v37 = vadd.f32 %v8834_v46, %v8706_v13  ;;  %v19122_v1 = vpop.f32.mrf.mxu0  ;;  %v19136_v16 = vadd.f32 %v8452_v29, %v8312_v42  ;;  %v21680_v46 = vld [vmem:[#allocation134_spill] sm:$0xff]  ;;  %9820 = vmatpush.bf16.msrb.mxu2 %v12249_v54  ;;  %v8313_v29 = vadd.f32 %v21683_v61, %v18819_v56  ;;  %v8314_v56 = vadd.f32 %v18769_v18, %v18832_v31 }
 0x6c8   : > { %21676 = vst [vmem:[#allocation93_spill] sm:$0xff] %v19122_v1  ;;  %v8707_v24 = vadd.f32 %v21680_v46, %v18944_v15  ;;  %v12245_v61 = vld [vmem:[%s19982_s7 + $0x568] sm:$0xff] }
 0x6c9   : > { %v19142_v13 = vpop.f32.mrf.mxu2  ;;  %9228 = vmatmul.bf16.gmra.mxu3 %v21681_v41  ;;  %9618 = vmatpush.bf16.msrb.mxu1 %v12245_v61 }
 0x6ca   : > { %9470 = vmatmul.bf16.gmra.mxu0 %v21632_v62  ;;  %21679 = vst [vmem:[#allocation120_spill] sm:$0xff] %v19142_v13  ;;  %v12248_v62 = vld [vmem:[%s19982_s7 + $0x580] sm:$0xff] }
 0x6cb   : > { %9821 = vmatpush.bf16.msrb.mxu2 %v12248_v62 }
 0x6ce   : > { %v8837_v1 = vpop.f32.mrf.mxu1  ;;  %v8455_v13 = vpop.f32.mrf.mxu3 }
 0x6cf   : > { %v19147_v42 = vadd.f32 %v8837_v1, %v8707_v24  ;;  %v19149_v8 = vpop.f32.mrf.mxu0  ;;  %v19157_v59 = vadd.f32 %v8455_v13, %v8313_v29  ;;  %v21685_v1 = vld [vmem:[#allocation146_spill] sm:$0xff] }
 0x6d0   : > { %21682 = vst [vmem:[#allocation71_spill] sm:$0xff] %v19149_v8  ;;  %v8708_v54 = vadd.f32 %v21685_v1, %v18957_v50  ;;  %v21686_v8 = vld [vmem:[#allocation150_spill] sm:$0xff]  ;;  %v21688_v1 = vld [vmem:[#allocation112_spill] sm:$0xff] }
 0x6d1   : > { %8876 = vmatmul.bf16.gmra.mxu1 %v21684_v11  ;;  %v19159_v15 = vpop.f32.mrf.mxu2  ;;  %v12269_v13 = vld [vmem:[%s19982_s7 + $0x628] sm:$0xff]  ;;  %v8709_v18 = vadd.f32 %v21688_v1, %v18972_v12  ;;  %v21691_v12 = vld [vmem:[#allocation12_spill] sm:$0xff] }
 0x6d2   : > { %10218 = vmatpush.bf16.msra.mxu0 %v12269_v13  ;;  %v12243_v1 = vld [vmem:[%s19982_s7 + $0x558] sm:$0xff] }
 0x6d6   : > { %v8839_v46 = vpop.f32.mrf.mxu1  ;;  %9096 = vmatmul.bf16.gmra.mxu2 %v21686_v8  ;;  %v8457_v62 = vpop.f32.mrf.mxu3 }
 0x6d7   : > { %v19163_v24 = vadd.f32 %v8839_v46, %v8708_v54  ;;  %v19174_v29 = vpop.f32.mrf.mxu0  ;;  %v19176_v50 = vadd.f32 %v8457_v62, %v8314_v56  ;;  %v21690_v54 = vld [vmem:[#allocation140_spill] sm:$0xff]  ;;  %v12244_v56 = vld [vmem:[%s19982_s7 + $0x560] sm:$0xff] }
 0x6d8   : > { %21687 = vst [vmem:[#allocation81_spill] sm:$0xff] %v19174_v29  ;;  %v8315_v29 = vadd.f32 %v18783_v17, %v18847_v2  ;;  %v12267_v62 = vld [vmem:[%s19982_s7 + $0x618] sm:$0xff]  ;;  %v12261_v17 = vld [vmem:[%s19982_s7 + $0x5e8] sm:$0xff]  ;;  %9619 = vmatpush.bf16.msrb.mxu1 %v12244_v56  ;;  %v8316_v56 = vadd.f32 %v18800_v19, %v18863_v57  ;;  %v21696_v57 = vld [vmem:[#allocation171_spill] sm:$0xff] }
 0x6d9   : > { %v19181_v31 = vpop.f32.mrf.mxu2  ;;  %9233 = vmatmul.bf16.gmra.mxu3 %v21690_v54 }
 0x6da   : > { %9475 = vmatmul.bf16.gmra.mxu0 %v21643_v63  ;;  %21689 = vst [vmem:[#allocation84_spill] sm:$0xff] %v19181_v31  ;;  %v12268_v63 = vld [vmem:[%s19982_s7 + $0x620] sm:$0xff]  ;;  %10021 = vmatpush.bf16.msrb.mxu3 %v12261_v17 }
 0x6db   : > { %10219 = vmatpush.bf16.msra.mxu0 %v12268_v63 }
 0x6dc   : > { %9620 = vmatpush.bf16.msrb.mxu1 %v12243_v1  ;;  %v12265_v1 = vld [vmem:[%s19982_s7 + $0x608] sm:$0xff] }
 0x6de   : > { %v8842_v46 = vpop.f32.mrf.mxu1  ;;  %v8460_v61 = vpop.f32.mrf.mxu3 }
 0x6df   : > { %v19184_v8 = vadd.f32 %v8842_v46, %v8709_v18  ;;  %v19195_v13 = vadd.f32 %v8460_v61, %v8315_v29  ;;  %v19203_v2 = vpop.f32.mrf.mxu0  ;;  %v21693_v29 = vld [vmem:[#allocation144_spill] sm:$0xff]  ;;  %10220 = vmatpush.bf16.msra.mxu0 %v12267_v62 }
 0x6e0   : > { %21692 = vst [vmem:[#allocation90_spill] sm:$0xff] %v19203_v2  ;;  %v8710_v18 = vadd.f32 %v21693_v29, %v18988_v25  ;;  %v12242_v2 = vld [vmem:[%s19982_s7 + $0x550] sm:$0xff]  ;;  %v8711_v29 = vadd.f32 %v21696_v57, %v19003_v36 }
 0x6e1   : > { %8881 = vmatmul.bf16.gmra.mxu1 %v21691_v12  ;;  %v19212_v61 = vpop.f32.mrf.mxu2  ;;  %v12266_v25 = vld [vmem:[%s19982_s7 + $0x610] sm:$0xff] }
 0x6e2   : > { %21694 = vst [vmem:[#allocation16_spill] sm:$0xff] %v19212_v61  ;;  %9621 = vmatpush.bf16.msrb.mxu1 %v12242_v2  ;;  %v12240_v2 = vld [vmem:[%s19982_s7 + $0x540] sm:$0xff]  ;;  %v21698_v36 = vld [vmem:[#allocation87_spill] sm:$0xff] }
 0x6e3   : > { %10221 = vmatpush.bf16.msra.mxu0 %v12266_v25  ;;  %v12264_v25 = vld [vmem:[%s19982_s7 + $0x600] sm:$0xff] }
 0x6e6   : > { %v8844_v46 = vpop.f32.mrf.mxu1  ;;  %9822 = vmatmul.bf16.vlgmr.msrb.gmra.mxu2 %v21582_v60  ;;  %v8462_v62 = vpop.f32.mrf.mxu3  ;;  %v12241_v60 = vld [vmem:[%s19982_s7 + $0x548] sm:$0xff] }
 0x6e7   : > { %v19210_v63 = vadd.f32 %v8844_v46, %v8710_v18  ;;  %v19223_v17 = vadd.f32 %v8462_v62, %v8316_v56  ;;  %v19232_v19 = vpop.f32.mrf.mxu0  ;;  %v21697_v18 = vld [vmem:[#allocation152_spill] sm:$0xff]  ;;  %10222 = vmatpush.bf16.msra.mxu0 %v12265_v1  ;;  %9622 = vmatpush.bf16.msrb.mxu1 %v12241_v60  ;;  %v21699_v60 = vld [vmem:[#allocation74_spill] sm:$0xff] }
 0x6e8   : > { %21695 = vst [vmem:[#allocation33_spill] sm:$0xff] %v19232_v19 }
 0x6e9   : > { %9238 = vmatmul.bf16.gmra.mxu3 %v21697_v18  ;;  %v19248_v57 = vpop.f32.mrf.mxu2 }
 0x6ea   : > { %9480 = vmatmul.bf16.gmra.mxu0 %v21652_v23  ;;  %v8317_v23 = vadd.f32 %v18814_v5, %v18878_v45  ;;  %v21700_v5 = vld [vmem:[#allocation201_spill] sm:$0xff] }
 0x6eb   : > { %10223 = vmatpush.bf16.msra.mxu0 %v12264_v25  ;;  %9623 = vmatpush.bf16.msrb.mxu1 %v12240_v2  ;;  %v9351_v45 = vunpack.c.l.b16 %v21700_v5  ;;  %v21703_v5 = vld [vmem:[#allocation29_spill] sm:$0xff] }
 0x6ee   : > { %v8847_v46 = vpop.f32.mrf.mxu1  ;;  %v8465_v62 = vpop.f32.mrf.mxu3 }
 0x6ef   : > { %v19237_v56 = vadd.f32 %v8847_v46, %v8711_v29  ;;  %v19250_v1 = vadd.f32 %v8465_v62, %v8317_v23  ;;  %v9350_v29 = vunpack.c.l.b16 %v21699_v60  ;;  %v21701_v46 = vld [vmem:[#allocation114_spill] sm:$0xff]  ;;  %v19256_v12 = vpop.f32.mrf.mxu0  ;;  %v8318_v23 = vadd.f32 %v18828_v48, %v18891_v4  ;;  %v21706_v4 = vld [vmem:[#allocation36_spill] sm:$0xff] }
 0x6f0   : > { %v8712_v19 = vadd.f32 %v21701_v46, %v19016_v58  ;;  %21702 = vst [vmem:[#allocation19_spill] sm:$0xff] %v19256_v12  ;;  %v8713_v58 = vadd.f32 %v21703_v5, %v19031_v9  ;;  %v21704_v46 = vld [vmem:[#allocation158_spill] sm:$0xff] }
 0x6f1   : > { %8886 = vmatmul.bf16.gmra.mxu1 %v21698_v36  ;;  %v9352_v62 = vpack.c.b16 %v9351_v45, %v9350_v29  ;;  %v19265_v60 = vpop.f32.mrf.mxu2  ;;  %v12260_v45 = vld [vmem:[%s19982_s7 + $0x5e0] sm:$0xff] }
 0x6f2   : > { %10022 = vmatpush.bf16.msrb.mxu3 %v12260_v45  ;;  %v21711_v45 = vld [vmem:[#allocation110_spill] sm:$0xff] }
 0x6f6   : > { %v8849_v61 = vpop.f32.mrf.mxu1  ;;  %9827 = vmatmul.bf16.gmra.mxu2 %v21588_v7  ;;  %v8467_v25 = vpop.f32.mrf.mxu3  ;;  %v8319_v7 = vadd.f32 %v18842_v14, %v18906_v33  ;;  %v21708_v14 = vld [vmem:[#allocation122_spill] sm:$0xff]  ;;  %v21709_v33 = vld [vmem:[#allocation89_spill] sm:$0xff] }
 0x6f7   : > { %v19258_v31 = vadd.f32 %v8849_v61, %v8712_v19  ;;  %v19263_v2 = vadd.f32 %v8467_v25, %v8318_v23  ;;  %v19274_v19 = vpop.f32.mrf.mxu0  ;;  %v8320_v5 = vadd.f32 %v21709_v33, %v18922_v26  ;;  %v21714_v33 = vld [vmem:[#allocation121_spill] sm:$0xff] }
 0x6f8   : > { %21705 = vst [vmem:[#allocation45_spill] sm:$0xff] %v19274_v19  ;;  %v8715_v19 = vadd.f32 %v21711_v45, %v19071_v38 }
 0x6f9   : > { %9243 = vmatmul.bf16.gmra.mxu3 %v21704_v46  ;;  %v19282_v9 = vpop.f32.mrf.mxu2 }
 0x6fa   : > { %9485 = vmatmul.bf16.gmra.mxu0 %v9352_v62 }
 0x6fe   : > { %v8852_v12 = vpop.f32.mrf.mxu1  ;;  %v8470_v48 = vpop.f32.mrf.mxu3 }
 0x6ff   : > { %v19270_v61 = vadd.f32 %v8852_v12, %v8713_v58  ;;  %v19277_v29 = vadd.f32 %v8470_v48, %v8319_v7  ;;  %v21707_v12 = vld [vmem:[#allocation117_spill] sm:$0xff]  ;;  %v19293_v48 = vpop.f32.mrf.mxu0 }
 0x700   : > { %v8714_v23 = vadd.f32 %v21707_v12, %v19056_v20  ;;  %21710 = vst [vmem:[#allocation21_spill] sm:$0xff] %v19293_v48 }
 0x701   : > { %8891 = vmatmul.bf16.gmra.mxu1 %v21706_v4  ;;  %v21712_v4 = vld [vmem:[#allocation168_spill] sm:$0xff]  ;;  %v19299_v12 = vpop.f32.mrf.mxu2 }
 0x706   : > { %v8854_v62 = vpop.f32.mrf.mxu1  ;;  %9832 = vmatmul.bf16.gmra.mxu2 %v21708_v14  ;;  %v8472_v58 = vpop.f32.mrf.mxu3 }
 0x707   : > { %v19286_v25 = vadd.f32 %v8854_v62, %v8714_v23  ;;  %v19291_v7 = vadd.f32 %v8472_v58, %v8320_v5  ;;  %v21713_v62 = vld [vmem:[#allocation78_spill] sm:$0xff]  ;;  %v19308_v58 = vpop.f32.mrf.mxu0 }
 0x708   : > { %v8321_v26 = vadd.f32 %v21713_v62, %v18937_v34  ;;  %21715 = vst [vmem:[#allocation40_spill] sm:$0xff] %v19308_v58 }
 0x709   : > { %9248 = vmatmul.bf16.gmra.mxu3 %v21712_v4  ;;  %v19317_v34 = vpop.f32.mrf.mxu2 }
 0x70a   : > { %10224 = vmatmul.bf16.vlgmr.msra.gmra.mxu0 %v21671_v21  ;;  %v21716_v21 = vld [vmem:[#allocation191_spill] sm:$0xff] }
 0x70b   : > { %v8716_v38 = vadd.f32 %v21716_v21, %v19087_v27 }
 0x70e   : > { %v8857_v20 = vpop.f32.mrf.mxu1  ;;  %v8475_v14 = vpop.f32.mrf.mxu3 }
 0x70f   : > { %v19301_v23 = vadd.f32 %v8857_v20, %v8715_v19  ;;  %v19306_v5 = vadd.f32 %v8475_v14, %v8321_v26  ;;  %v8322_v19 = vadd.f32 %v18887_v35, %v18950_v32  ;;  %v21717_v26 = vld [vmem:[#allocation205_spill] sm:$0xff]  ;;  %v19325_v27 = vpop.f32.mrf.mxu0 }
 0x710   : > { %v8717_v14 = vadd.f32 %v21717_v26, %v19108_v47  ;;  %21719 = vst [vmem:[#allocation185_spill] sm:$0xff] %v19325_v27  ;;  %v21724_v27 = vld [vmem:[#allocation139_spill] sm:$0xff] }
 0x711   : > { %9624 = vmatmul.bf16.vlgmr.msrb.gmra.mxu1 %v21714_v33  ;;  %v21718_v33 = vld [vmem:[#allocation170_spill] sm:$0xff]  ;;  %v19337_v47 = vpop.f32.mrf.mxu2 }
 0x712   : > { %21722 = vst [vmem:[#allocation96_spill] sm:$0xff] %v19337_v47 }
 0x716   : > { %v8859_v45 = vpop.f32.mrf.mxu1  ;;  %9837 = vmatmul.bf16.gmra.mxu2 %v21606_v6  ;;  %v8477_v20 = vpop.f32.mrf.mxu3  ;;  %v21720_v6 = vld [vmem:[#allocation183_spill] sm:$0xff] }
 0x717   : > { %v19312_v48 = vadd.f32 %v8859_v45, %v8716_v38  ;;  %v19319_v62 = vadd.f32 %v8477_v20, %v8322_v19  ;;  %v8323_v35 = vadd.f32 %v21720_v6, %v18965_v51  ;;  %v21721_v45 = vld [vmem:[#allocation141_spill] sm:$0xff]  ;;  %v21725_v51 = vld [vmem:[#allocation42_spill] sm:$0xff] }
 0x718   : > { %v21723_v20 = vld [vmem:[#allocation9_spill] sm:$0xff]  ;;  %v8324_v6 = vadd.f32 %v21725_v51, %v18981_v10 }
 0x719   : > { %9253 = vmatmul.bf16.gmra.mxu3 %v21718_v33  ;;  %v8718_v26 = vadd.f32 %v21723_v20, %v19136_v16  ;;  %v19351_v58 = vpop.f32.mrf.mxu2  ;;  %v21729_v20 = vld [vmem:[#allocation30_spill] sm:$0xff] }
 0x71a   : > { %10229 = vmatmul.bf16.gmra.mxu0 %v21681_v41  ;;  %v12259_v41 = vld [vmem:[%s19982_s7 + $0x5d8] sm:$0xff]  ;;  %21727 = vst [vmem:[#allocation186_spill] sm:$0xff] %v19351_v58 }
 0x71b   : > { %10023 = vmatpush.bf16.msrb.mxu3 %v12259_v41  ;;  %v21728_v41 = vld [vmem:[#allocation91_spill] sm:$0xff] }
 0x71c   : > { %v8719_v16 = vadd.f32 %v21728_v41, %v19157_v59 }
 0x71e   : > { %v8862_v21 = vpop.f32.mrf.mxu1  ;;  %v8480_v32 = vpop.f32.mrf.mxu3 }
 0x71f   : > { %v19327_v38 = vadd.f32 %v8862_v21, %v8717_v14  ;;  %v19332_v19 = vadd.f32 %v8480_v32, %v8323_v35  ;;  %v19346_v35 = vpop.f32.mrf.mxu0 }
 0x720   : > { %21726 = vst [vmem:[#allocation63_spill] sm:$0xff] %v19346_v35  ;;  %v21731_v35 = vld [vmem:[#allocation136_spill] sm:$0xff] }
 0x721   : > { %9629 = vmatmul.bf16.gmra.mxu1 %v21721_v45  ;;  %v19367_v59 = vpop.f32.mrf.mxu2 }
 0x726   : > { %v8864_v14 = vpop.f32.mrf.mxu1  ;;  %9842 = vmatmul.bf16.gmra.mxu2 %v21724_v27  ;;  %v8482_v32 = vpop.f32.mrf.mxu3  ;;  %v21730_v27 = vld [vmem:[#allocation193_spill] sm:$0xff] }
 0x727   : > { %v19341_v21 = vadd.f32 %v8864_v14, %v8718_v26  ;;  %v19348_v45 = vadd.f32 %v8482_v32, %v8324_v6  ;;  %v9102_v10 = vadd.f32 %v21730_v27, %v18996_v39  ;;  %v19363_v32 = vpop.f32.mrf.mxu0 }
 0x728   : > { %21732 = vst [vmem:[#allocation190_spill] sm:$0xff] %v19363_v32 }
 0x729   : > { %9258 = vmatmul.bf16.gmra.mxu3 %v21729_v20 }
 0x72a   : > { %10234 = vmatmul.bf16.gmra.mxu0 %v21690_v54  ;;  %v21733_v54 = vld [vmem:[#allocation7_spill] sm:$0xff] }
 0x72b   : > { %v8720_v58 = vadd.f32 %v21733_v54, %v19176_v50 }
 0x72e   : > { %v8867_v26 = vpop.f32.mrf.mxu1  ;;  %v9219_v51 = vpop.f32.mrf.mxu3 }
 0x72f   : > { %v19356_v14 = vadd.f32 %v8867_v26, %v8719_v16  ;;  %v19361_v6 = vadd.f32 %v9219_v51, %v9102_v10  ;;  %v21734_v16 = vld [vmem:[#allocation59_spill] sm:$0xff]  ;;  %v21736_v10 = vld [vmem:[#allocation66_spill] sm:$0xff]  ;;  %v21737_v51 = vld [vmem:[#allocation100_spill] sm:$0xff] }
 0x730   : > { %v9103_v39 = vadd.f32 %v21734_v16, %v19009_v3  ;;  %v8721_v50 = vadd.f32 %v21736_v10, %v19195_v13  ;;  %v19386_v3 = vpop.f32.mrf.mxu2  ;;  %v21740_v16 = vld [vmem:[#allocation159_spill] sm:$0xff]  ;;  %v21741_v13 = vld [vmem:[#allocation69_spill] sm:$0xff] }
 0x731   : > { %9634 = vmatmul.bf16.gmra.mxu1 %v21731_v35  ;;  %v19377_v35 = vpop.f32.mrf.mxu0  ;;  %21739 = vst [vmem:[#allocation56_spill] sm:$0xff] %v19386_v3 }
 0x732   : > { %21735 = vst [vmem:[#allocation53_spill] sm:$0xff] %v19377_v35 }
 0x736   : > { %v8869_v47 = vpop.f32.mrf.mxu1  ;;  %9847 = vmatmul.bf16.gmra.mxu2 %v21625_v43  ;;  %v9221_v26 = vpop.f32.mrf.mxu3  ;;  %v21738_v43 = vld [vmem:[#allocation50_spill] sm:$0xff] }
 0x737   : > { %v19369_v41 = vadd.f32 %v8869_v47, %v8720_v58  ;;  %v19374_v27 = vadd.f32 %v9221_v26, %v9103_v39  ;;  %v9104_v47 = vadd.f32 %v21738_v43, %v19024_v53  ;;  %v8722_v26 = vadd.f32 %v21741_v13, %v19223_v17  ;;  %v21743_v53 = vld [vmem:[#allocation156_spill] sm:$0xff]  ;;  %v21744_v43 = vld [vmem:[#allocation34_spill] sm:$0xff]  ;;  %v21747_v13 = vld [vmem:[#allocation187_spill] sm:$0xff] }
 0x738   : > { %v19406_v35 = vpop.f32.mrf.mxu2 }
 0x739   : > { %9263 = vmatmul.bf16.gmra.mxu3 %v21737_v51  ;;  %v19396_v10 = vpop.f32.mrf.mxu0  ;;  %21745 = vst [vmem:[#allocation61_spill] sm:$0xff] %v19406_v35 }
 0x73a   : > { %10239 = vmatmul.bf16.gmra.mxu0 %v21697_v18  ;;  %v12258_v18 = vld [vmem:[%s19982_s7 + $0x5d0] sm:$0xff]  ;;  %21742 = vst [vmem:[#allocation73_spill] sm:$0xff] %v19396_v10 }
 0x73b   : > { %10024 = vmatpush.bf16.msrb.mxu3 %v12258_v18  ;;  %v21746_v18 = vld [vmem:[#allocation149_spill] sm:$0xff] }
 0x73c   : > { %v8723_v17 = vadd.f32 %v21746_v18, %v19250_v1 }
 0x73e   : > { %v8872_v54 = vpop.f32.mrf.mxu1  ;;  %v9224_v32 = vpop.f32.mrf.mxu3 }
 0x73f   : > { %v19382_v58 = vadd.f32 %v8872_v54, %v8721_v50  ;;  %v19389_v39 = vadd.f32 %v9224_v32, %v9104_v47 }
 0x741   : > { %9639 = vmatmul.bf16.gmra.mxu1 %v21740_v16  ;;  %v9105_v16 = vadd.f32 %v21744_v43, %v19043_v40  ;;  %v19415_v3 = vpop.f32.mrf.mxu0  ;;  %v21750_v43 = vld [vmem:[#allocation155_spill] sm:$0xff] }
 0x742   : > { %21749 = vst [vmem:[#allocation92_spill] sm:$0xff] %v19415_v3  ;;  %v21763_v3 = vld [vmem:[#allocation195_spill] sm:$0xff] }
 0x746   : > { %v8874_v50 = vpop.f32.mrf.mxu1  ;;  %9852 = vmatmul.bf16.gmra.mxu2 %v21743_v53  ;;  %v9226_v32 = vpop.f32.mrf.mxu3 }
 0x747   : > { %v19398_v54 = vadd.f32 %v8874_v50, %v8722_v26  ;;  %v19403_v47 = vadd.f32 %v9226_v32, %v9105_v16  ;;  %v21748_v50 = vld [vmem:[#allocation163_spill] sm:$0xff]  ;;  %v21751_v32 = vld [vmem:[#allocation6_spill] sm:$0xff] }
 0x748   : > { %v9106_v53 = vadd.f32 %v21748_v50, %v19064_v22  ;;  %v8724_v1 = vadd.f32 %v21751_v32, %v19263_v2  ;;  %v9107_v22 = vadd.f32 %v19005_v49, %v19077_v0 }
 0x749   : > { %9268 = vmatmul.bf16.gmra.mxu3 %v21747_v13  ;;  %v19431_v50 = vpop.f32.mrf.mxu0 }
 0x74a   : > { %10244 = vmatmul.bf16.gmra.mxu0 %v21704_v46  ;;  %v19420_v46 = vpop.f32.mrf.mxu2  ;;  %21752 = vst [vmem:[#allocation180_spill] sm:$0xff] %v19431_v50  ;;  %v21759_v50 = vld [vmem:[#allocation176_spill] sm:$0xff] }
 0x74e   : > { %v8877_v10 = vpop.f32.mrf.mxu1  ;;  %v9229_v40 = vpop.f32.mrf.mxu3 }
 0x74f   : > { %v19411_v26 = vadd.f32 %v8877_v10, %v8723_v17  ;;  %v19418_v16 = vadd.f32 %v9229_v40, %v9106_v53  ;;  %v21753_v53 = vld [vmem:[#allocation72_spill] sm:$0xff] }
 0x750   : > { %v8725_v40 = vadd.f32 %v21753_v53, %v19277_v29 }
 0x751   : > { %9644 = vmatmul.bf16.gmra.mxu1 %v21750_v43  ;;  %v21754_v43 = vld [vmem:[#allocation65_spill] sm:$0xff]  ;;  %v19449_v29 = vpop.f32.mrf.mxu0 }
 0x752   : > { %v19437_v32 = vpop.f32.mrf.mxu2  ;;  %21757 = vst [vmem:[#allocation15_spill] sm:$0xff] %v19449_v29 }
 0x756   : > { %v8879_v18 = vpop.f32.mrf.mxu1  ;;  %9857 = vmatmul.bf16.gmra.mxu2 %v21646_v55  ;;  %v9231_v10 = vpop.f32.mrf.mxu3  ;;  %v21755_v55 = vld [vmem:[#allocation142_spill] sm:$0xff] }
 0x757   : > { %v19424_v35 = vadd.f32 %v8879_v18, %v8724_v1  ;;  %v19429_v17 = vadd.f32 %v9231_v10, %v9107_v22  ;;  %v9108_v49 = vadd.f32 %v21755_v55, %v19098_v52  ;;  %v21756_v18 = vld [vmem:[#allocation173_spill] sm:$0xff]  ;;  %v21758_v10 = vld [vmem:[#allocation64_spill] sm:$0xff]  ;;  %v21760_v52 = vld [vmem:[#allocation26_spill] sm:$0xff] }
 0x758   : > { %v8726_v53 = vadd.f32 %v21758_v10, %v19291_v7  ;;  %v9109_v55 = vadd.f32 %v21760_v52, %v19120_v37  ;;  %v21766_v52 = vld [vmem:[#allocation169_spill] sm:$0xff] }
 0x759   : > { %9273 = vmatmul.bf16.gmra.mxu3 %v21754_v43  ;;  %v19466_v7 = vpop.f32.mrf.mxu0 }
 0x75a   : > { %10249 = vmatmul.bf16.gmra.mxu0 %v21712_v4  ;;  %v12257_v4 = vld [vmem:[%s19982_s7 + $0x5c8] sm:$0xff]  ;;  %21764 = vst [vmem:[#allocation198_spill] sm:$0xff] %v19466_v7 }
 0x75b   : > { %10025 = vmatpush.bf16.msrb.mxu3 %v12257_v4  ;;  %v21762_v4 = vld [vmem:[#allocation55_spill] sm:$0xff] }
 0x75c   : > { %v8727_v29 = vadd.f32 %v21762_v4, %v19306_v5 }
 0x75e   : > { %v8882_v2 = vpop.f32.mrf.mxu1  ;;  %v9234_v0 = vpop.f32.mrf.mxu3 }
 0x75f   : > { %v19439_v1 = vadd.f32 %v8882_v2, %v8725_v40  ;;  %v19444_v22 = vadd.f32 %v9234_v0, %v9108_v49  ;;  %v19458_v0 = vpop.f32.mrf.mxu2 }
 0x760   : > { %21761 = vst [vmem:[#allocation204_spill] sm:$0xff] %v19458_v0 }
 0x761   : > { %9649 = vmatmul.bf16.gmra.mxu1 %v21756_v18 }
 0x766   : > { %v8884_v40 = vpop.f32.mrf.mxu1  ;;  %9862 = vmatmul.bf16.gmra.mxu2 %v21759_v50  ;;  %v9236_v49 = vpop.f32.mrf.mxu3  ;;  %v21765_v50 = vld [vmem:[#allocation167_spill] sm:$0xff] }
 0x767   : > { %v19453_v2 = vadd.f32 %v8884_v40, %v8726_v53  ;;  %v19460_v18 = vadd.f32 %v9236_v49, %v9109_v55  ;;  %v9110_v37 = vadd.f32 %v21765_v50, %v19147_v42  ;;  %v19475_v49 = vpop.f32.mrf.mxu2 }
 0x769   : > { %9278 = vmatmul.bf16.gmra.mxu3 %v21763_v3 }
 0x76a   : > { %10254 = vmatmul.bf16.gmra.mxu0 %v21718_v33  ;;  %v21767_v33 = vld [vmem:[#allocation108_spill] sm:$0xff] }
 0x76b   : > { %v8728_v5 = vadd.f32 %v21767_v33, %v19319_v62 }
 0x76e   : > { %v8887_v10 = vpop.f32.mrf.mxu1  ;;  %v9239_v40 = vpop.f32.mrf.mxu3 }
 0x76f   : > { %v19468_v53 = vadd.f32 %v8887_v10, %v8727_v29  ;;  %v19473_v55 = vadd.f32 %v9239_v40, %v9110_v37  ;;  %v9111_v29 = vadd.f32 %v19073_v28, %v19163_v24  ;;  %v19484_v10 = vpop.f32.mrf.mxu0  ;;  %v19489_v37 = vpop.f32.mrf.mxu2  ;;  %v21769_v40 = vld [vmem:[#allocation8_spill] sm:$0xff]  ;;  %v21771_v24 = vld [vmem:[#allocation101_spill] sm:$0xff] }
 0x770   : > { %21768 = vst [vmem:[#allocation28_spill] sm:$0xff] %v19484_v10  ;;  %v8729_v62 = vadd.f32 %v21769_v40, %v19332_v19  ;;  %v21773_v19 = vld [vmem:[#allocation79_spill] sm:$0xff] }
 0x771   : > { %9654 = vmatmul.bf16.gmra.mxu1 %v21766_v52  ;;  %v21770_v52 = vld [vmem:[#allocation177_spill] sm:$0xff] }
 0x776   : > { %v8889_v4 = vpop.f32.mrf.mxu1  ;;  %9867 = vmatmul.bf16.gmra.mxu2 %v21666_v44  ;;  %v9241_v42 = vpop.f32.mrf.mxu3  ;;  %v9112_v44 = vadd.f32 %v19093_v30, %v19184_v8  ;;  %v21774_v30 = vld [vmem:[#allocation77_spill] sm:$0xff]  ;;  %v21775_v8 = vld [vmem:[#allocation202_spill] sm:$0xff] }
 0x777   : > { %v19479_v0 = vadd.f32 %v8889_v4, %v8728_v5  ;;  %v19486_v50 = vadd.f32 %v9241_v42, %v9111_v29  ;;  %v19504_v29 = vpop.f32.mrf.mxu0  ;;  %v8730_v42 = vadd.f32 %v21773_v19, %v19348_v45  ;;  %v21778_v19 = vld [vmem:[#allocation196_spill] sm:$0xff] }
 0x778   : > { %21772 = vst [vmem:[#allocation97_spill] sm:$0xff] %v19504_v29 }
 0x779   : > { %9283 = vmatmul.bf16.gmra.mxu3 %v21770_v52 }
 0x77a   : > { %10259 = vmatmul.bf16.gmra.mxu0 %v21729_v20  ;;  %v12256_v20 = vld [vmem:[%s19982_s7 + $0x5c0] sm:$0xff] }
 0x77b   : > { %10026 = vmatpush.bf16.msrb.mxu3 %v12256_v20  ;;  %v21777_v20 = vld [vmem:[#allocation135_spill] sm:$0xff] }
 0x77c   : > { %v9491_v45 = vadd.f32 %v21777_v20, %v19361_v6 }
 0x77e   : > { %v8892_v33 = vpop.f32.mrf.mxu1  ;;  %v9244_v28 = vpop.f32.mrf.mxu3 }
 0x77f   : > { %v19494_v5 = vadd.f32 %v8892_v33, %v8729_v62  ;;  %v19499_v4 = vadd.f32 %v9244_v28, %v9112_v44  ;;  %v19508_v62 = vpop.f32.mrf.mxu2  ;;  %v9113_v44 = vadd.f32 %v21775_v8, %v19210_v63  ;;  %v19518_v29 = vpop.f32.mrf.mxu0  ;;  %v21780_v8 = vld [vmem:[#allocation184_spill] sm:$0xff] }
 0x780   : > { %21776 = vst [vmem:[#allocation181_spill] sm:$0xff] %v19518_v29 }
 0x781   : > { %9659 = vmatmul.bf16.gmra.mxu1 %v21771_v24 }
 0x786   : > { %v8894_v40 = vpop.f32.mrf.mxu1  ;;  %9872 = vmatmul.bf16.gmra.mxu2 %v21774_v30  ;;  %v9246_v28 = vpop.f32.mrf.mxu3 }
 0x787   : > { %v19510_v33 = vadd.f32 %v8894_v40, %v8730_v42  ;;  %v19515_v24 = vadd.f32 %v9246_v28, %v9113_v44  ;;  %v21779_v40 = vld [vmem:[#allocation120_spill] sm:$0xff]  ;;  %v19527_v63 = vpop.f32.mrf.mxu2  ;;  %v19534_v29 = vpop.f32.mrf.mxu0 }
 0x788   : > { %v9114_v30 = vadd.f32 %v21779_v40, %v19237_v56  ;;  %21782 = vst [vmem:[#allocation82_spill] sm:$0xff] %v19534_v29  ;;  %v9115_v56 = vadd.f32 %v19159_v15, %v19258_v31  ;;  %v21784_v40 = vld [vmem:[#allocation174_spill] sm:$0xff]  ;;  %v21788_v31 = vld [vmem:[#allocation35_spill] sm:$0xff] }
 0x789   : > { %9288 = vmatmul.bf16.gmra.mxu3 %v21778_v19 }
 0x78a   : > { %10264 = vmatmul.bf16.gmra.mxu0 %v21737_v51  ;;  %v21781_v51 = vld [vmem:[#allocation46_spill] sm:$0xff] }
 0x78b   : > { %v9492_v28 = vadd.f32 %v21781_v51, %v19374_v27  ;;  %v9493_v27 = vadd.f32 %v21784_v40, %v19389_v39 }
 0x78e   : > { %v9625_v10 = vpop.f32.mrf.mxu1  ;;  %v9249_v7 = vpop.f32.mrf.mxu3 }
 0x78f   : > { %v19523_v42 = vadd.f32 %v9625_v10, %v9491_v45  ;;  %v19530_v44 = vadd.f32 %v9249_v7, %v9114_v30  ;;  %v19544_v7 = vpop.f32.mrf.mxu2  ;;  %v21785_v30 = vld [vmem:[#allocation111_spill] sm:$0xff] }
 0x791   : > { %9664 = vmatmul.bf16.gmra.mxu1 %v21780_v8 }
 0x796   : > { %v9627_v6 = vpop.f32.mrf.mxu1  ;;  %9877 = vmatmul.bf16.gmra.mxu2 %v21684_v11  ;;  %v9251_v10 = vpop.f32.mrf.mxu3  ;;  %v21786_v11 = vld [vmem:[#allocation84_spill] sm:$0xff] }
 0x797   : > { %v19536_v20 = vadd.f32 %v9627_v6, %v9492_v28  ;;  %v19541_v45 = vadd.f32 %v9251_v10, %v9115_v56  ;;  %v9116_v28 = vadd.f32 %v21786_v11, %v19270_v61  ;;  %v19553_v6 = vpop.f32.mrf.mxu0  ;;  %v21789_v10 = vld [vmem:[#allocation148_spill] sm:$0xff] }
 0x798   : > { %21787 = vst [vmem:[#allocation105_spill] sm:$0xff] %v19553_v6  ;;  %v9494_v39 = vadd.f32 %v21789_v10, %v19403_v47 }
 0x799   : > { %21783 = vst [vmem:[#allocation25_spill] sm:$0xff] %v19541_v45  ;;  %9293 = vmatmul.bf16.gmra.mxu3 %v21785_v30 }
 0x79a   : > { %10269 = vmatmul.bf16.gmra.mxu0 %v21747_v13  ;;  %v19558_v13 = vpop.f32.mrf.mxu2 }
 0x79e   : > { %v9630_v8 = vpop.f32.mrf.mxu1  ;;  %v9254_v15 = vpop.f32.mrf.mxu3 }
 0x79f   : > { %v19549_v51 = vadd.f32 %v9630_v8, %v9493_v27  ;;  %v19556_v56 = vadd.f32 %v9254_v15, %v9116_v28  ;;  %v21790_v27 = vld [vmem:[#allocation12_spill] sm:$0xff]  ;;  %v19569_v45 = vpop.f32.mrf.mxu0  ;;  %v21793_v28 = vld [vmem:[#allocation37_spill] sm:$0xff] }
 0x7a0   : > { %v21791_v8 = vld [vmem:[#allocation16_spill] sm:$0xff]  ;;  %21792 = vst [vmem:[#allocation83_spill] sm:$0xff] %v19569_v45  ;;  %v9495_v15 = vadd.f32 %v21793_v28, %v19418_v16  ;;  %v21816_v45 = vld [vmem:[#allocation102_spill] sm:$0xff] }
 0x7a1   : > { %9669 = vmatmul.bf16.gmra.mxu1 %v21788_v31  ;;  %v9117_v61 = vadd.f32 %v21791_v8, %v19286_v25  ;;  %v21794_v31 = vld [vmem:[#allocation24_spill] sm:$0xff]  ;;  %v9118_v25 = vadd.f32 %v19248_v57, %v19301_v23 }
 0x7a2   : > { %v19575_v10 = vpop.f32.mrf.mxu2 }
 0x7a6   : > { %v9632_v40 = vpop.f32.mrf.mxu1  ;;  %9882 = vmatmul.bf16.gmra.mxu2 %v21790_v27  ;;  %v9256_v11 = vpop.f32.mrf.mxu3  ;;  %v21795_v27 = vld [vmem:[#allocation189_spill] sm:$0xff] }
 0x7a7   : > { %v19562_v29 = vadd.f32 %v9632_v40, %v9494_v39  ;;  %v19567_v6 = vadd.f32 %v9256_v11, %v9117_v61  ;;  %v19584_v61 = vpop.f32.mrf.mxu0 }
 0x7a9   : > { %10027 = vmatmul.bf16.vlgmr.msrb.gmra.mxu3 %v21794_v31 }
 0x7aa   : > { %10274 = vmatmul.bf16.gmra.mxu0 %v21754_v43  ;;  %v21796_v43 = vld [vmem:[#allocation154_spill] sm:$0xff]  ;;  %v19593_v57 = vpop.f32.mrf.mxu2 }
 0x7ab   : > { %v9496_v16 = vadd.f32 %v21796_v43, %v19429_v17 }
 0x7ae   : > { %v9635_v47 = vpop.f32.mrf.mxu1  ;;  %v9259_v40 = vpop.f32.mrf.mxu3 }
 0x7af   : > { %v19577_v39 = vadd.f32 %v9635_v47, %v9495_v15  ;;  %v19582_v8 = vadd.f32 %v9259_v40, %v9118_v25  ;;  %v9119_v15 = vadd.f32 %v19265_v60, %v19312_v48  ;;  %v21797_v47 = vld [vmem:[#allocation188_spill] sm:$0xff]  ;;  %v21798_v40 = vld [vmem:[#allocation41_spill] sm:$0xff]  ;;  %v19601_v17 = vpop.f32.mrf.mxu0 }
 0x7b0   : > { %v9497_v25 = vadd.f32 %v21797_v47, %v19444_v22  ;;  %v21799_v48 = vld [vmem:[#allocation197_spill] sm:$0xff]  ;;  %v21801_v47 = vld [vmem:[#allocation36_spill] sm:$0xff] }
 0x7b1   : > { %9674 = vmatmul.bf16.gmra.mxu1 %v21795_v27 }
 0x7b6   : > { %v9637_v11 = vpop.f32.mrf.mxu1  ;;  %9887 = vmatmul.bf16.gmra.mxu2 %v21698_v36  ;;  %v9261_v31 = vpop.f32.mrf.mxu3  ;;  %v9120_v36 = vadd.f32 %v19282_v9, %v19327_v38 }
 0x7b7   : > { %v19588_v28 = vadd.f32 %v9637_v11, %v9496_v16  ;;  %v19595_v23 = vadd.f32 %v9261_v31, %v9119_v15  ;;  %v19610_v11 = vpop.f32.mrf.mxu2 }
 0x7b9   : > { %10032 = vmatmul.bf16.gmra.mxu3 %v21798_v40  ;;  %v19619_v40 = vpop.f32.mrf.mxu0 }
 0x7ba   : > { %10279 = vmatmul.bf16.gmra.mxu0 %v21763_v3  ;;  %v21800_v3 = vld [vmem:[#allocation175_spill] sm:$0xff] }
 0x7bb   : > { %v9498_v22 = vadd.f32 %v21800_v3, %v19460_v18  ;;  %v9122_v18 = vadd.f32 %v19317_v34, %v19356_v14  ;;  %v21806_v14 = vld [vmem:[#allocation86_spill] sm:$0xff] }
 0x7be   : > { %v9640_v27 = vpop.f32.mrf.mxu1  ;;  %v9264_v60 = vpop.f32.mrf.mxu3 }
 0x7bf   : > { %v19603_v43 = vadd.f32 %v9640_v27, %v9497_v25  ;;  %v19608_v16 = vadd.f32 %v9264_v60, %v9120_v36  ;;  %v9121_v25 = vadd.f32 %v19299_v12, %v19341_v21  ;;  %v19624_v27 = vpop.f32.mrf.mxu2  ;;  %v21802_v36 = vld [vmem:[#allocation48_spill] sm:$0xff] }
 0x7c1   : > { %9679 = vmatmul.bf16.gmra.mxu1 %v21799_v48  ;;  %v21803_v48 = vld [vmem:[#allocation104_spill] sm:$0xff]  ;;  %v19632_v12 = vpop.f32.mrf.mxu0 }
 0x7c6   : > { %v9642_v15 = vpop.f32.mrf.mxu1  ;;  %9892 = vmatmul.bf16.gmra.mxu2 %v21801_v47  ;;  %v9266_v9 = vpop.f32.mrf.mxu3 }
 0x7c7   : > { %v19614_v31 = vadd.f32 %v9642_v15, %v9498_v22  ;;  %v19621_v38 = vadd.f32 %v9266_v9, %v9121_v25  ;;  %v19634_v21 = vpop.f32.mrf.mxu2  ;;  %v21804_v22 = vld [vmem:[#allocation75_spill] sm:$0xff]  ;;  %v21807_v9 = vld [vmem:[#allocation186_spill] sm:$0xff] }
 0x7c9   : > { %10037 = vmatmul.bf16.gmra.mxu3 %v21802_v36  ;;  %v19642_v34 = vpop.f32.mrf.mxu0  ;;  %v9124_v36 = vadd.f32 %v21807_v9, %v19382_v58 }
 0x7ca   : > { %10284 = vmatmul.bf16.gmra.mxu0 %v21770_v52  ;;  %v21805_v52 = vld [vmem:[#allocation96_spill] sm:$0xff] }
 0x7cb   : > { %v9123_v15 = vadd.f32 %v21805_v52, %v19369_v41  ;;  %v9125_v41 = vadd.f32 %v19367_v59, %v19398_v54 }
 0x7ce   : > { %v9269_v60 = vpop.f32.mrf.mxu3 }
 0x7cf   : > { %v19630_v3 = vadd.f32 %v9269_v60, %v9122_v18  ;;  %v21808_v60 = vld [vmem:[#allocation199_spill] sm:$0xff] }
 0x7d1   : > { %9684 = vmatmul.bf16.gmra.mxu1 %v21803_v48 }
 0x7d6   : > { %9897 = vmatmul.bf16.gmra.mxu2 %v21804_v22  ;;  %v9271_v47 = vpop.f32.mrf.mxu3  ;;  %v19650_v22 = vpop.f32.mrf.mxu0 }
 0x7d7   : > { %v19639_v25 = vadd.f32 %v9271_v47, %v9123_v15  ;;  %v21810_v47 = vld [vmem:[#allocation56_spill] sm:$0xff] }
 0x7d8   : > { %v9126_v58 = vadd.f32 %v21810_v47, %v19411_v26  ;;  %v9128_v26 = vadd.f32 %v19420_v46, %v19439_v1  ;;  %v9131_v1 = vadd.f32 %v19475_v49, %v19479_v0  ;;  %v9903_v0 = vadd.f32 %v19527_v63, %v19523_v42 }
 0x7d9   : > { %10042 = vmatmul.bf16.gmra.mxu3 %v21806_v14  ;;  %v9904_v63 = vadd.f32 %v19544_v7, %v19536_v20  ;;  %v9905_v20 = vadd.f32 %v19558_v13, %v19549_v51  ;;  %v19734_v7 = vpop.f32.mrf.mxu2  ;;  %v9906_v51 = vadd.f32 %v19575_v10, %v19562_v29  ;;  %v9907_v29 = vadd.f32 %v19593_v57, %v19577_v39 }
 0x7da   : > { %10289 = vmatmul.bf16.gmra.mxu0 %v21778_v19  ;;  %v21809_v19 = vld [vmem:[#allocation113_spill] sm:$0xff] }
 0x7de   : > { %v9274_v18 = vpop.f32.mrf.mxu3  ;;  %v19660_v14 = vpop.f32.mrf.mxu0 }
 0x7df   : > { %v19648_v48 = vadd.f32 %v9274_v18, %v9124_v36  ;;  %v21811_v36 = vld [vmem:[#allocation32_spill] sm:$0xff] }
 0x7e1   : > { %9689 = vmatmul.bf16.gmra.mxu1 %v21808_v60  ;;  %v21812_v60 = vld [vmem:[#allocation61_spill] sm:$0xff] }
 0x7e2   : > { %v9127_v59 = vadd.f32 %v21812_v60, %v19424_v35  ;;  %v9129_v35 = vadd.f32 %v19437_v32, %v19453_v2  ;;  %v9132_v32 = vadd.f32 %v19489_v37, %v19494_v5  ;;  %v19708_v37 = vld [vmem:[%s19983_s8] ss:$0 sm:$0xff] }
 0x7e6   : > { %v9276_v52 = vpop.f32.mrf.mxu3 }
 0x7e7   : > { %v19654_v15 = vadd.f32 %v9276_v52, %v9125_v41  ;;  %v19669_v52 = vpop.f32.mrf.mxu0 }
 0x7e9   : > { %10047 = vmatmul.bf16.gmra.mxu3 %v21809_v19  ;;  %v21815_v19 = vld [vmem:[#allocation23_spill] sm:$0xff] }
 0x7ea   : > { %10294 = vmatmul.bf16.gmra.mxu0 %v21785_v30  ;;  %v21814_v30 = vld [vmem:[#allocation88_spill] sm:$0xff] }
 0x7ee   : > { %v9279_v9 = vpop.f32.mrf.mxu3 }
 0x7ef   : > { %v19663_v18 = vadd.f32 %v9279_v9, %v9126_v58 }
 0x7f1   : > { %9694 = vmatmul.bf16.gmra.mxu1 %v21811_v36  ;;  %v21817_v36 = vld [vmem:[#allocation14_spill] sm:$0xff] }
 0x7f2   : > { %v21818_v58 = vpack.c.b16 %v21816_v45, %v21817_v36 }
 0x7f6   : > { %v9281_v54 = vpop.f32.mrf.mxu3 }
 0x7f7   : > { %v19667_v41 = vadd.f32 %v9281_v54, %v9127_v59  ;;  %v21819_v54 = vld [vmem:[#allocation76_spill] sm:$0xff] }
 0x7f9   : > { %21813 = vst [vmem:[#allocation98_spill] sm:$0xff] %v19667_v41  ;;  %10052 = vmatmul.bf16.gmra.mxu3 %v21815_v19 }
 0x7fa   : > { %10299 = vmatmul.bf16.gmra.mxu0 %v21814_v30  ;;  %v21820_v30 = vld [vmem:[#allocation204_spill] sm:$0xff] }
 0x7fb   : > { %v9130_v19 = vadd.f32 %v21820_v30, %v19468_v53  ;;  %v9133_v53 = vadd.f32 %v19508_v62, %v19510_v33  ;;  %v19715_v62 = vld [vmem:[%s19984_s9] ss:$0 sm:$0xff] }
 0x7fe   : > { %v9284_v47 = vpop.f32.mrf.mxu3 }
 0x7ff   : > { %v19678_v9 = vadd.f32 %v9284_v47, %v9128_v26  ;;  %v21821_v47 = vld [vmem:[#allocation125_spill] sm:$0xff] }
 0x801   : > { %9699 = vmatmul.bf16.gmra.mxu1 %v21818_v58 }
 0x806   : > { %v9286_v60 = vpop.f32.mrf.mxu3 }
 0x807   : > { %v19682_v59 = vadd.f32 %v9286_v60, %v9129_v35  ;;  %v21822_v35 = vld [vmem:[#allocation85_spill] sm:$0xff] }
 0x809   : > { %10057 = vmatmul.bf16.gmra.mxu3 %v21819_v54 }
 0x80e   : > { %v9289_v41 = vpop.f32.mrf.mxu3 }
 0x80f   : > { %v19687_v46 = vadd.f32 %v9289_v41, %v9130_v19 }
 0x816   : > { %v9291_v45 = vpop.f32.mrf.mxu3 }
 0x817   : > { %v19691_v26 = vadd.f32 %v9291_v45, %v9131_v1  ;;  %v19723_v1 = vpop.f32.mrf.mxu1 }
 0x819   : > { %10062 = vmatmul.bf16.gmra.mxu3 %v21821_v47  ;;  %v21823_v47 = vld [vmem:[#allocation128_spill] sm:$0xff] }
 0x81e   : > { %v9294_v2 = vpop.f32.mrf.mxu3 }
 0x81f   : > { %v19696_v36 = vadd.f32 %v9294_v2, %v9132_v32 }
 0x826   : > { %v9296_v41 = vpop.f32.mrf.mxu3 }
 0x827   : > { %v19700_v58 = vadd.f32 %v9296_v41, %v9133_v53 }
 0x829   : > { %10067 = vmatmul.bf16.gmra.mxu3 %v21822_v35  ;;  %v19736_v35 = vpop.f32.mrf.mxu0 }
 0x82e   : > { %v10028_v49 = vpop.f32.mrf.mxu3 }
 0x82f   : > { %v10108_v60 = vadd.f32 %v10028_v49, %v9903_v0  ;;  %v19740_v0 = vpop.f32.mrf.mxu1 }
 0x831   : > { %v10305_v5 = vadd.f32 %v19584_v61, %v10108_v60 }
 0x833   : > { %v10341_v33 = vmul.f32 %v19708_v37, %v10305_v5 }
 0x835   : > { %v10377_v42 = vadd.f32 %v19715_v62, %v10341_v33 }
 0x836   : > { %v10030_v54 = vpop.f32.mrf.mxu3 }
 0x837   : > { %v10409_v30 = vmax.f32 %v10377_v42, 0.0  ;;  %v10109_v19 = vadd.f32 %v10030_v54, %v9904_v63  ;;  %v19746_v42 = vpop.f32.mrf.mxu2  ;;  %v19750_v54 = vpop.f32.mrf.mxu0 }
 0x839   : > { %10441 = vst [vmem:[%s19725_s25] sm:$0xff] %v10409_v30  ;;  %v10306_v61 = vadd.f32 %v19601_v17, %v10109_v19  ;;  %10072 = vmatmul.bf16.gmra.mxu3 %v21823_v47  ;;  %v21824_v30 = vld [vmem:[#allocation137_spill] sm:$0xff]  ;;  %v19754_v19 = vpop.f32.mrf.mxu1 }
 0x83b   : > { %v10342_v45 = vmul.f32 %v19708_v37, %v10306_v61 }
 0x83d   : > { %v10378_v32 = vadd.f32 %v19715_v62, %v10342_v45 }
 0x83e   : > { %v10033_v2 = vpop.f32.mrf.mxu3 }
 0x83f   : > { %v10410_v53 = vmax.f32 %v10378_v32, 0.0  ;;  %v10110_v41 = vadd.f32 %v10033_v2, %v9905_v20  ;;  %v19761_v32 = vpop.f32.mrf.mxu2  ;;  %v19764_v2 = vpop.f32.mrf.mxu0 }
 0x841   : > { %10442 = vst [vmem:[%s19725_s25 + $0x8] sm:$0xff] %v10410_v53  ;;  %v10307_v17 = vadd.f32 %v19619_v40, %v10110_v41  ;;  %v9908_v41 = vadd.f32 %v19610_v11, %v19588_v28  ;;  %v9909_v28 = vadd.f32 %v19624_v27, %v19603_v43  ;;  %v21826_v27 = vld [vmem:[#allocation93_spill] sm:$0xff] }
 0x843   : > { %v10343_v49 = vmul.f32 %v19708_v37, %v10307_v17  ;;  %v19769_v17 = vpop.f32.mrf.mxu1 }
 0x845   : > { %v10379_v60 = vadd.f32 %v19715_v62, %v10343_v49 }
 0x846   : > { %v10035_v13 = vpop.f32.mrf.mxu3 }
 0x847   : > { %v10411_v5 = vmax.f32 %v10379_v60, 0.0  ;;  %v10111_v33 = vadd.f32 %v10035_v13, %v9906_v51  ;;  %v21825_v51 = vld [vmem:[#allocation18_spill] sm:$0xff]  ;;  %v19775_v13 = vpop.f32.mrf.mxu2 }
 0x849   : > { %10443 = vst [vmem:[%s19725_s25 + $0x10] sm:$0xff] %v10411_v5  ;;  %v10308_v63 = vadd.f32 %v19632_v12, %v10111_v33  ;;  %10077 = vmatmul.bf16.gmra.mxu3 %v21824_v30  ;;  %v19780_v33 = vpop.f32.mrf.mxu0 }
 0x84b   : > { %v10344_v40 = vmul.f32 %v19708_v37, %v10308_v63  ;;  %v19782_v30 = vpop.f32.mrf.mxu1 }
 0x84d   : > { %v10380_v61 = vadd.f32 %v19715_v62, %v10344_v40 }
 0x84e   : > { %v10038_v10 = vpop.f32.mrf.mxu3 }
 0x84f   : > { %v10412_v45 = vmax.f32 %v10380_v61, 0.0  ;;  %v10112_v47 = vadd.f32 %v10038_v10, %v9907_v29  ;;  %v9910_v10 = vadd.f32 %v19634_v21, %v19614_v31  ;;  %v21827_v31 = vld [vmem:[#allocation31_spill] sm:$0xff] }
 0x851   : > { %10444 = vst [vmem:[%s19725_s25 + $0x18] sm:$0xff] %v10412_v45  ;;  %v10309_v12 = vadd.f32 %v19642_v34, %v10112_v47  ;;  %v19790_v45 = vpop.f32.mrf.mxu2  ;;  %v9499_v47 = vadd.f32 %v21826_v27, %v19473_v55 }
 0x853   : > { %v10345_v20 = vmul.f32 %v19708_v37, %v10309_v12 }
 0x855   : > { %v10381_v53 = vadd.f32 %v19715_v62, %v10345_v20 }
 0x856   : > { %v10040_v39 = vpop.f32.mrf.mxu3 }
 0x857   : > { %v10413_v57 = vmax.f32 %v10381_v53, 0.0  ;;  %v10113_v49 = vadd.f32 %v10040_v39, %v9908_v41  ;;  %v9713_v53 = vadd.f32 %v19723_v1, %v9499_v47  ;;  %v19795_v41 = vpop.f32.mrf.mxu0  ;;  %v9657_v39 = vpop.f32.mrf.mxu1 }
 0x859   : > { %10445 = vst [vmem:[%s19725_s25 + $0x20] sm:$0xff] %v10413_v57  ;;  %v10310_v34 = vadd.f32 %v19650_v22, %v10113_v49  ;;  %10082 = vmatmul.bf16.gmra.mxu3 %v21825_v51  ;;  %v9911_v49 = vadd.f32 %v19734_v7, %v9713_v53 }
 0x85b   : > { %v10346_v60 = vmul.f32 %v19708_v37, %v10310_v34  ;;  %v21828_v34 = vld [vmem:[#allocation71_spill] sm:$0xff] }
 0x85d   : > { %v10382_v5 = vadd.f32 %v19715_v62, %v10346_v60  ;;  %v9500_v60 = vadd.f32 %v21828_v34, %v19486_v50  ;;  %v21829_v50 = vld [vmem:[#allocation81_spill] sm:$0xff] }
 0x85e   : > { %v10043_v11 = vpop.f32.mrf.mxu3 }
 0x85f   : > { %v10414_v63 = vmax.f32 %v10382_v5, 0.0  ;;  %v10114_v40 = vadd.f32 %v10043_v11, %v9909_v28  ;;  %v9855_v5 = vpop.f32.mrf.mxu2  ;;  %v9714_v28 = vadd.f32 %v19740_v0, %v9500_v60  ;;  %v19808_v11 = vpop.f32.mrf.mxu0 }
 0x861   : > { %10446 = vst [vmem:[%s19725_s25 + $0x28] sm:$0xff] %v10414_v63  ;;  %v10311_v22 = vadd.f32 %v19660_v14, %v10114_v40  ;;  %v9660_v40 = vpop.f32.mrf.mxu1 }
 0x863   : > { %v10347_v61 = vmul.f32 %v19708_v37, %v10311_v22  ;;  %v9912_v22 = vadd.f32 %v19746_v42, %v9714_v28 }
 0x865   : > { %v10383_v29 = vadd.f32 %v19715_v62, %v10347_v61 }
 0x866   : > { %v10045_v43 = vpop.f32.mrf.mxu3 }
 0x867   : > { %v10415_v12 = vmax.f32 %v10383_v29, 0.0  ;;  %v10115_v20 = vadd.f32 %v10045_v43, %v9910_v10  ;;  %v9501_v29 = vadd.f32 %v21829_v50, %v19499_v4  ;;  %v9858_v27 = vpop.f32.mrf.mxu2 }
 0x869   : > { %10447 = vst [vmem:[%s19725_s25 + $0x30] sm:$0xff] %v10415_v12  ;;  %v10312_v14 = vadd.f32 %v19669_v52, %v10115_v20  ;;  %10087 = vmatmul.bf16.gmra.mxu3 %v21827_v31  ;;  %v9715_v0 = vadd.f32 %v19754_v19, %v9501_v29  ;;  %v21830_v12 = vld [vmem:[#allocation20_spill] sm:$0xff]  ;;  %v10260_v20 = vpop.f32.mrf.mxu0 }
 0x86b   : > { %v10348_v57 = vmul.f32 %v19708_v37, %v10312_v14  ;;  %v9913_v53 = vadd.f32 %v19761_v32, %v9715_v0  ;;  %v9662_v14 = vpop.f32.mrf.mxu1 }
 0x86d   : > { %v10384_v21 = vadd.f32 %v19715_v62, %v10348_v57  ;;  %v21831_v57 = vld [vmem:[#allocation90_spill] sm:$0xff] }
 0x86e   : > { %v10048_v55 = vpop.f32.mrf.mxu3  ;;  %v9502_v31 = vadd.f32 %v21831_v57, %v19515_v24 }
 0x86f   : > { %v10416_v51 = vmax.f32 %v10384_v21, 0.0  ;;  %v10116_v1 = vadd.f32 %v10048_v55, %v9911_v49  ;;  %v9860_v34 = vpop.f32.mrf.mxu2 }
 0x871   : > { %10448 = vst [vmem:[%s19725_s25 + $0x38] sm:$0xff] %v10416_v51  ;;  %v10313_v52 = vadd.f32 %v19736_v35, %v10116_v1  ;;  %v21832_v1 = vld [vmem:[#allocation33_spill] sm:$0xff]  ;;  %v10262_v24 = vpop.f32.mrf.mxu0 }
 0x872   : > { %v9503_v28 = vadd.f32 %v21832_v1, %v19530_v44 }
 0x873   : > { %v10349_v63 = vmul.f32 %v19708_v37, %v10313_v52 }
 0x875   : > { %v10385_v7 = vadd.f32 %v19715_v62, %v10349_v63 }
 0x876   : > { %v10050_v61 = vpop.f32.mrf.mxu3 }
 0x877   : > { %v10417_v10 = vmax.f32 %v10385_v7, 0.0  ;;  %v10117_v43 = vadd.f32 %v10050_v61, %v9912_v22  ;;  %v9665_v7 = vpop.f32.mrf.mxu1  ;;  %v21833_v61 = vld [vmem:[#allocation150_spill] sm:$0xff]  ;;  %v9863_v29 = vpop.f32.mrf.mxu2 }
 0x879   : > { %10449 = vst [vmem:[%s19725_s25 + $0x40] sm:$0xff] %v10417_v10  ;;  %v10314_v35 = vadd.f32 %v19750_v54, %v10117_v43  ;;  %10092 = vmatmul.bf16.gmra.mxu3 %v21830_v12  ;;  %v9716_v54 = vadd.f32 %v19769_v17, %v9502_v31  ;;  %v9717_v17 = vadd.f32 %v19782_v30, %v9503_v28  ;;  %v21834_v10 = vld [vmem:[#allocation25_spill] sm:$0xff]  ;;  %v21835_v43 = vld [vmem:[#allocation19_spill] sm:$0xff]  ;;  %v10265_v12 = vpop.f32.mrf.mxu0 }
 0x87a   : > { %v9504_v0 = vadd.f32 %v21835_v43, %v21834_v10  ;;  %v21836_v31 = vld [vmem:[#allocation45_spill] sm:$0xff] }
 0x87b   : > { %v10350_v47 = vmul.f32 %v19708_v37, %v10314_v35  ;;  %v9914_v32 = vadd.f32 %v19775_v13, %v9716_v54  ;;  %v9915_v50 = vadd.f32 %v19790_v45, %v9717_v17 }
 0x87c   : > { %v9718_v30 = vadd.f32 %v9657_v39, %v9504_v0 }
 0x87d   : > { %v10386_v42 = vadd.f32 %v19715_v62, %v10350_v47 }
 0x87e   : > { %v10053_v4 = vpop.f32.mrf.mxu3  ;;  %v9916_v57 = vadd.f32 %v9855_v5, %v9718_v30 }
 0x87f   : > { %v10418_v21 = vmax.f32 %v10386_v42, 0.0  ;;  %v10118_v19 = vadd.f32 %v10053_v4, %v9913_v53  ;;  %v9667_v42 = vpop.f32.mrf.mxu1 }
 0x881   : > { %10450 = vst [vmem:[%s19725_s25 + $0x48] sm:$0xff] %v10418_v21  ;;  %v10315_v49 = vadd.f32 %v19764_v2, %v10118_v19  ;;  %v9505_v21 = vadd.f32 %v21836_v31, %v19556_v56  ;;  %v21838_v56 = vld [vmem:[#allocation21_spill] sm:$0xff] }
 0x883   : > { %v10351_v55 = vmul.f32 %v19708_v37, %v10315_v49  ;;  %v9865_v49 = vpop.f32.mrf.mxu2 }
 0x885   : > { %v10387_v60 = vadd.f32 %v19715_v62, %v10351_v55  ;;  %v9719_v55 = vadd.f32 %v9660_v40, %v9505_v21 }
 0x886   : > { %v10055_v51 = vpop.f32.mrf.mxu3 }
 0x887   : > { %v10419_v52 = vmax.f32 %v10387_v60, 0.0  ;;  %v10119_v63 = vadd.f32 %v10055_v51, %v9914_v32  ;;  %v10267_v60 = vpop.f32.mrf.mxu0  ;;  %v21837_v32 = vld [vmem:[#allocation17_spill] sm:$0xff]  ;;  %v9670_v51 = vpop.f32.mrf.mxu1  ;;  %v9917_v1 = vadd.f32 %v9858_v27, %v9719_v55  ;;  %v21839_v27 = vld [vmem:[#allocation40_spill] sm:$0xff] }
 0x888   : > { %v9507_v43 = vadd.f32 %v21839_v27, %v19582_v8 }
 0x889   : > { %10451 = vst [vmem:[%s19725_s25 + $0x50] sm:$0xff] %v10419_v52  ;;  %v10316_v2 = vadd.f32 %v19780_v33, %v10119_v63  ;;  %10097 = vmatmul.bf16.gmra.mxu3 %v21833_v61  ;;  %v9506_v52 = vadd.f32 %v21838_v56, %v19567_v6 }
 0x88b   : > { %v10352_v22 = vmul.f32 %v19708_v37, %v10316_v2  ;;  %v9720_v40 = vadd.f32 %v9662_v14, %v9506_v52 }
 0x88d   : > { %v10388_v13 = vadd.f32 %v19715_v62, %v10352_v22 }
 0x88e   : > { %v10058_v44 = vpop.f32.mrf.mxu3 }
 0x88f   : > { %v10420_v35 = vmax.f32 %v10388_v13, 0.0  ;;  %v10120_v47 = vadd.f32 %v10058_v44, %v9915_v50  ;;  %v10270_v61 = vpop.f32.mrf.mxu0  ;;  %v9918_v50 = vadd.f32 %v9860_v34, %v9720_v40  ;;  %v9672_v44 = vpop.f32.mrf.mxu1  ;;  %v21840_v34 = vld [vmem:[#allocation185_spill] sm:$0xff] }
 0x891   : > { %10452 = vst [vmem:[%s19725_s25 + $0x58] sm:$0xff] %v10420_v35  ;;  %v10317_v33 = vadd.f32 %v19795_v41, %v10120_v47  ;;  %v9721_v35 = vadd.f32 %v9665_v7, %v9507_v43 }
 0x893   : > { %v10353_v53 = vmul.f32 %v19708_v37, %v10317_v33  ;;  %v9919_v33 = vadd.f32 %v9863_v29, %v9721_v35  ;;  %v21841_v29 = vld [vmem:[#allocation63_spill] sm:$0xff] }
 0x895   : > { %v10389_v4 = vadd.f32 %v19715_v62, %v10353_v53 }
 0x896   : > { %v10060_v45 = vpop.f32.mrf.mxu3 }
 0x897   : > { %v10421_v19 = vmax.f32 %v10389_v4, 0.0  ;;  %v10121_v54 = vadd.f32 %v10060_v45, %v9916_v57  ;;  %v9508_v4 = vadd.f32 %v21840_v34, %v19595_v23  ;;  %v10272_v57 = vpop.f32.mrf.mxu0  ;;  %v9675_v31 = vpop.f32.mrf.mxu1 }
 0x899   : > { %10453 = vst [vmem:[%s19725_s25 + $0x60] sm:$0xff] %v10421_v19  ;;  %v10318_v39 = vadd.f32 %v19808_v11, %v10121_v54  ;;  %10102 = vmatmul.bf16.gmra.mxu3 %v21837_v32  ;;  %v9868_v11 = vpop.f32.mrf.mxu2  ;;  %v9722_v21 = vadd.f32 %v9667_v42, %v9508_v4 }
 0x89b   : > { %v10354_v41 = vmul.f32 %v19708_v37, %v10318_v39  ;;  %v9920_v54 = vadd.f32 %v9865_v49, %v9722_v21  ;;  %v21842_v49 = vld [vmem:[#allocation190_spill] sm:$0xff] }
 0x89d   : > { %v10390_v5 = vadd.f32 %v19715_v62, %v10354_v41  ;;  %v9509_v41 = vadd.f32 %v21841_v29, %v19608_v16 }
 0x89e   : > { %v10063_v28 = vpop.f32.mrf.mxu3 }
 0x89f   : > { %v10422_v63 = vmax.f32 %v10390_v5, 0.0  ;;  %v10122_v17 = vadd.f32 %v10063_v28, %v9917_v1  ;;  %v9723_v5 = vadd.f32 %v9670_v51, %v9509_v41  ;;  %v10275_v1 = vpop.f32.mrf.mxu0  ;;  %v9677_v42 = vpop.f32.mrf.mxu1 }
 0x8a1   : > { %10454 = vst [vmem:[%s19725_s25 + $0x68] sm:$0xff] %v10422_v63  ;;  %v10319_v2 = vadd.f32 %v10260_v20, %v10122_v17  ;;  %v9870_v47 = vpop.f32.mrf.mxu2  ;;  %v9921_v52 = vadd.f32 %v9868_v11, %v9723_v5  ;;  %v9510_v17 = vadd.f32 %v21842_v49, %v19621_v38  ;;  %v21843_v11 = vld [vmem:[#allocation53_spill] sm:$0xff] }
 0x8a3   : > { %v10355_v22 = vmul.f32 %v19708_v37, %v10319_v2 }
 0x8a5   : > { %v10391_v13 = vadd.f32 %v19715_v62, %v10355_v22  ;;  %v9724_v22 = vadd.f32 %v9672_v44, %v9510_v17 }
 0x8a6   : > { %v10065_v10 = vpop.f32.mrf.mxu3 }
 0x8a7   : > { %v10423_v0 = vmax.f32 %v10391_v13, 0.0  ;;  %v10123_v6 = vadd.f32 %v10065_v10, %v9918_v50  ;;  %v10277_v13 = vpop.f32.mrf.mxu0  ;;  %v9680_v50 = vpop.f32.mrf.mxu1  ;;  %v9922_v27 = vadd.f32 %v9870_v47, %v9724_v22  ;;  %v21844_v47 = vld [vmem:[#allocation73_spill] sm:$0xff] }
 0x8a8   : > { %v9512_v4 = vadd.f32 %v21844_v47, %v19639_v25 }
 0x8a9   : > { %10455 = vst [vmem:[%s19725_s25 + $0x70] sm:$0xff] %v10423_v0  ;;  %v10320_v14 = vadd.f32 %v10262_v24, %v10123_v6  ;;  %v9873_v55 = vpop.f32.mrf.mxu2  ;;  %v9511_v0 = vadd.f32 %v21843_v11, %v19630_v3 }
 0x8ab   : > { %v10356_v20 = vmul.f32 %v19708_v37, %v10320_v14  ;;  %v9725_v35 = vadd.f32 %v9675_v31, %v9511_v0 }
 0x8ad   : > { %v10392_v30 = vadd.f32 %v19715_v62, %v10356_v20 }
 0x8ae   : > { %v10068_v53 = vpop.f32.mrf.mxu3 }
 0x8af   : > { %v10424_v45 = vmax.f32 %v10392_v30, 0.0  ;;  %v10124_v8 = vadd.f32 %v10068_v53, %v9919_v33  ;;  %v10280_v20 = vpop.f32.mrf.mxu0  ;;  %v9923_v33 = vadd.f32 %v9873_v55, %v9725_v35  ;;  %v9682_v53 = vpop.f32.mrf.mxu1 }
 0x8b1   : > { %10456 = vst [vmem:[%s19725_s25 + $0x78] sm:$0xff] %v10424_v45  ;;  %v10321_v7 = vadd.f32 %v10265_v12, %v10124_v8  ;;  %v9875_v2 = vpop.f32.mrf.mxu2  ;;  %v9726_v8 = vadd.f32 %v9677_v42, %v9512_v4 }
 0x8b3   : > { %v10357_v24 = vmul.f32 %v19708_v37, %v10321_v7 }
 0x8b5   : > { %v10393_v19 = vadd.f32 %v19715_v62, %v10357_v24  ;;  %v9924_v24 = vadd.f32 %v9875_v2, %v9726_v8 }
 0x8b6   : > { %v10070_v39 = vpop.f32.mrf.mxu3 }
 0x8b7   : > { %v10425_v32 = vmax.f32 %v10393_v19, 0.0  ;;  %v10125_v23 = vadd.f32 %v10070_v39, %v9920_v54  ;;  %v21845_v54 = vld [vmem:[#allocation92_spill] sm:$0xff]  ;;  %v10282_v39 = vpop.f32.mrf.mxu0  ;;  %v9685_v41 = vpop.f32.mrf.mxu1 }
 0x8b8   : > { %v9513_v55 = vadd.f32 %v21845_v54, %v19648_v48 }
 0x8b9   : > { %10457 = vst [vmem:[%s19725_s25 + $0x80] sm:$0xff] %v10425_v32  ;;  %v10322_v28 = vadd.f32 %v10267_v60, %v10125_v23  ;;  %v9878_v44 = vpop.f32.mrf.mxu2 }
 0x8ba   : > { %v9727_v32 = vadd.f32 %v9680_v50, %v9513_v55 }
 0x8bb   : > { %v10358_v12 = vmul.f32 %v19708_v37, %v10322_v28 }
 0x8bc   : > { %v9925_v28 = vadd.f32 %v9878_v44, %v9727_v32 }
 0x8bd   : > { %v10394_v56 = vadd.f32 %v19715_v62, %v10358_v12 }
 0x8be   : > { %v10073_v63 = vpop.f32.mrf.mxu3 }
 0x8bf   : > { %v10426_v40 = vmax.f32 %v10394_v56, 0.0  ;;  %v10126_v16 = vadd.f32 %v10073_v63, %v9921_v52  ;;  %v21846_v56 = vld [vmem:[#allocation180_spill] sm:$0xff]  ;;  %v10285_v17 = vpop.f32.mrf.mxu0 }
 0x8c0   : > { %v9514_v52 = vadd.f32 %v21846_v56, %v19654_v15 }
 0x8c1   : > { %10458 = vst [vmem:[%s19725_s25 + $0x88] sm:$0xff] %v10426_v40  ;;  %v10323_v51 = vadd.f32 %v10270_v61, %v10126_v16  ;;  %v9880_v21 = vpop.f32.mrf.mxu2  ;;  %v9687_v16 = vpop.f32.mrf.mxu1 }
 0x8c2   : > { %v9728_v49 = vadd.f32 %v9682_v53, %v9514_v52 }
 0x8c3   : > { %v10359_v60 = vmul.f32 %v19708_v37, %v10323_v51 }
 0x8c4   : > { %v9926_v51 = vadd.f32 %v9880_v21, %v9728_v49  ;;  %v21850_v21 = vld [vmem:[#allocation28_spill] sm:$0xff] }
 0x8c5   : > { %v10395_v10 = vadd.f32 %v19715_v62, %v10359_v60  ;;  %v21847_v60 = vld [vmem:[#allocation15_spill] sm:$0xff] }
 0x8c6   : > { %v10075_v43 = vpop.f32.mrf.mxu3  ;;  %v9515_v50 = vadd.f32 %v21847_v60, %v19663_v18 }
 0x8c7   : > { %v10427_v6 = vmax.f32 %v10395_v10, 0.0  ;;  %v10127_v38 = vadd.f32 %v10075_v43, %v9922_v27  ;;  %v10287_v0 = vpop.f32.mrf.mxu0 }
 0x8c8   : > { %v9729_v43 = vadd.f32 %v9685_v41, %v9515_v50 }
 0x8c9   : > { %10459 = vst [vmem:[%s19725_s25 + $0x90] sm:$0xff] %v10427_v6  ;;  %v10324_v14 = vadd.f32 %v10272_v57, %v10127_v38  ;;  %v9883_v42 = vpop.f32.mrf.mxu2  ;;  %v9690_v38 = vpop.f32.mrf.mxu1 }
 0x8cb   : > { %v10360_v61 = vmul.f32 %v19708_v37, %v10324_v14  ;;  %v9927_v14 = vadd.f32 %v9883_v42, %v9729_v43  ;;  %v21853_v43 = vld [vmem:[#allocation82_spill] sm:$0xff] }
 0x8cd   : > { %v10396_v30 = vadd.f32 %v19715_v62, %v10360_v61  ;;  %v21848_v61 = vld [vmem:[#allocation98_spill] sm:$0xff] }
 0x8ce   : > { %v10078_v34 = vpop.f32.mrf.mxu3 }
 0x8cf   : > { %v10428_v45 = vmax.f32 %v10396_v30, 0.0  ;;  %v10128_v3 = vadd.f32 %v10078_v34, %v9923_v33 }
 0x8d1   : > { %10460 = vst [vmem:[%s19725_s25 + $0x98] sm:$0xff] %v10428_v45  ;;  %v10325_v31 = vadd.f32 %v10275_v1, %v10128_v3  ;;  %v9885_v27 = vpop.f32.mrf.mxu2  ;;  %v10290_v45 = vpop.f32.mrf.mxu0 }
 0x8d3   : > { %v10361_v57 = vmul.f32 %v19708_v37, %v10325_v31  ;;  %v9692_v31 = vpop.f32.mrf.mxu1 }
 0x8d5   : > { %v10397_v7 = vadd.f32 %v19715_v62, %v10361_v57 }
 0x8d6   : > { %v10080_v19 = vpop.f32.mrf.mxu3 }
 0x8d7   : > { %v10429_v29 = vmax.f32 %v10397_v7, 0.0  ;;  %v10129_v25 = vadd.f32 %v10080_v19, %v9924_v24  ;;  %v9517_v7 = vadd.f32 %v21850_v21, %v19678_v9 }
 0x8d9   : > { %10461 = vst [vmem:[%s19725_s25 + $0xa0] sm:$0xff] %v10429_v29  ;;  %v10326_v23 = vadd.f32 %v10277_v13, %v10129_v25  ;;  %v9888_v47 = vpop.f32.mrf.mxu2  ;;  %v9731_v54 = vadd.f32 %v9690_v38, %v9517_v7 }
 0x8db   : > { %v10362_v5 = vmul.f32 %v19708_v37, %v10326_v23  ;;  %v9929_v41 = vadd.f32 %v9888_v47, %v9731_v54  ;;  %v21851_v23 = vld [vmem:[#allocation97_spill] sm:$0xff]  ;;  %v9695_v42 = vpop.f32.mrf.mxu1 }
 0x8dd   : > { %v10398_v1 = vadd.f32 %v19715_v62, %v10362_v5  ;;  %v9518_v5 = vadd.f32 %v21851_v23, %v19682_v59 }
 0x8de   : > { %v10083_v12 = vpop.f32.mrf.mxu3 }
 0x8df   : > { %v10430_v63 = vmax.f32 %v10398_v1, 0.0  ;;  %v10130_v48 = vadd.f32 %v10083_v12, %v9925_v28  ;;  %v10292_v1 = vpop.f32.mrf.mxu0  ;;  %v9732_v12 = vadd.f32 %v9692_v31, %v9518_v5 }
 0x8e1   : > { %10462 = vst [vmem:[%s19725_s25 + $0xa8] sm:$0xff] %v10430_v63  ;;  %v10327_v40 = vadd.f32 %v10280_v20, %v10130_v48  ;;  %v21849_v20 = vld [vmem:[#allocation198_spill] sm:$0xff]  ;;  %v9890_v29 = vpop.f32.mrf.mxu2 }
 0x8e2   : > { %v9516_v30 = vadd.f32 %v21849_v20, %v21848_v61  ;;  %v9930_v48 = vadd.f32 %v9890_v29, %v9732_v12 }
 0x8e3   : > { %v10363_v2 = vmul.f32 %v19708_v37, %v10327_v40  ;;  %v21852_v40 = vld [vmem:[#allocation181_spill] sm:$0xff]  ;;  %v9697_v60 = vpop.f32.mrf.mxu1 }
 0x8e4   : > { %v9730_v53 = vadd.f32 %v9687_v16, %v9516_v30  ;;  %v9519_v16 = vadd.f32 %v21852_v40, %v19687_v46 }
 0x8e5   : > { %v10399_v22 = vadd.f32 %v19715_v62, %v10363_v2 }
 0x8e6   : > { %v10085_v13 = vpop.f32.mrf.mxu3  ;;  %v9928_v8 = vadd.f32 %v9885_v27, %v9730_v53 }
 0x8e7   : > { %v10431_v10 = vmax.f32 %v10399_v22, 0.0  ;;  %v10131_v15 = vadd.f32 %v10085_v13, %v9926_v51  ;;  %v9733_v22 = vadd.f32 %v9695_v42, %v9519_v16  ;;  %v10295_v51 = vpop.f32.mrf.mxu0 }
 0x8e9   : > { %10463 = vst [vmem:[%s19725_s25 + $0xb0] sm:$0xff] %v10431_v10  ;;  %v10328_v11 = vadd.f32 %v10282_v39, %v10131_v15  ;;  %v9893_v49 = vpop.f32.mrf.mxu2 }
 0x8ea   : > { %v9931_v15 = vadd.f32 %v9893_v49, %v9733_v22 }
 0x8eb   : > { %v10364_v6 = vmul.f32 %v19708_v37, %v10328_v11  ;;  %v9520_v11 = vadd.f32 %v21853_v43, %v19691_v26  ;;  %v9700_v61 = vpop.f32.mrf.mxu1 }
 0x8ed   : > { %v10400_v35 = vadd.f32 %v19715_v62, %v10364_v6  ;;  %v9734_v38 = vadd.f32 %v9697_v60, %v9520_v11 }
 0x8ee   : > { %v10088_v44 = vpop.f32.mrf.mxu3 }
 0x8ef   : > { %v10432_v33 = vmax.f32 %v10400_v35, 0.0  ;;  %v10132_v18 = vadd.f32 %v10088_v44, %v9927_v14  ;;  %v10297_v14 = vpop.f32.mrf.mxu0 }
 0x8f1   : > { %10464 = vst [vmem:[%s19725_s25 + $0xb8] sm:$0xff] %v10432_v33  ;;  %v10329_v34 = vadd.f32 %v10285_v17, %v10132_v18  ;;  %v9895_v6 = vpop.f32.mrf.mxu2  ;;  %v21854_v18 = vld [vmem:[#allocation105_spill] sm:$0xff] }
 0x8f2   : > { %v9932_v30 = vadd.f32 %v9895_v6, %v9734_v38  ;;  %v9521_v53 = vadd.f32 %v21854_v18, %v19696_v36 }
 0x8f3   : > { %v10365_v4 = vmul.f32 %v19708_v37, %v10329_v34  ;;  %v9702_v21 = vpop.f32.mrf.mxu1 }
 0x8f4   : > { %v9735_v47 = vadd.f32 %v9700_v61, %v9521_v53 }
 0x8f5   : > { %v10401_v3 = vadd.f32 %v19715_v62, %v10365_v4 }
 0x8f6   : > { %v10090_v57 = vpop.f32.mrf.mxu3 }
 0x8f7   : > { %v10433_v24 = vmax.f32 %v10401_v3, 0.0  ;;  %v10133_v19 = vadd.f32 %v10090_v57, %v9928_v8  ;;  %v10300_v8 = vpop.f32.mrf.mxu0 }
 0x8f9   : > { %10465 = vst [vmem:[%s19725_s25 + $0xc0] sm:$0xff] %v10433_v24  ;;  %v10330_v55 = vadd.f32 %v10287_v0, %v10133_v19  ;;  %v21855_v24 = vld [vmem:[#allocation83_spill] sm:$0xff] }
 0x8fa   : > { %v9522_v19 = vadd.f32 %v21855_v24, %v19700_v58 }
 0x8fb   : > { %v10366_v39 = vmul.f32 %v19708_v37, %v10330_v55 }
 0x8fc   : > { %v9736_v55 = vadd.f32 %v9702_v21, %v9522_v19 }
 0x8fd   : > { %v10402_v25 = vadd.f32 %v19715_v62, %v10366_v39 }
 0x8fe   : > { %v10093_v32 = vpop.f32.mrf.mxu3 }
 0x8ff   : > { %v10434_v28 = vmax.f32 %v10402_v25, 0.0  ;;  %v10134_v9 = vadd.f32 %v10093_v32, %v9929_v41  ;;  %v10302_v58 = vpop.f32.mrf.mxu0 }
 0x901   : > { %10466 = vst [vmem:[%s19725_s25 + $0xc8] sm:$0xff] %v10434_v28  ;;  %v10331_v56 = vadd.f32 %v10290_v45, %v10134_v9  ;;  %v9898_v45 = vpop.f32.mrf.mxu2 }
 0x902   : > { %v9933_v57 = vadd.f32 %v9898_v45, %v9735_v47 }
 0x903   : > { %v10367_v52 = vmul.f32 %v19708_v37, %v10331_v56 }
 0x905   : > { %v10403_v63 = vadd.f32 %v19715_v62, %v10367_v52 }
 0x906   : > { %v10095_v17 = vpop.f32.mrf.mxu3 }
 0x907   : > { %v10435_v2 = vmax.f32 %v10403_v63, 0.0  ;;  %v10135_v59 = vadd.f32 %v10095_v17, %v9930_v48 }
 0x909   : > { %10467 = vst [vmem:[%s19725_s25 + $0xd0] sm:$0xff] %v10435_v2  ;;  %v10332_v13 = vadd.f32 %v10292_v1, %v10135_v59  ;;  %v9900_v25 = vpop.f32.mrf.mxu2 }
 0x90a   : > { %v9934_v32 = vadd.f32 %v9900_v25, %v9736_v55 }
 0x90b   : > { %v10368_v50 = vmul.f32 %v19708_v37, %v10332_v13 }
 0x90d   : > { %v10404_v10 = vadd.f32 %v19715_v62, %v10368_v50 }
 0x90e   : > { %v10098_v27 = vpop.f32.mrf.mxu3 }
 0x90f   : > { %v10436_v0 = vmax.f32 %v10404_v10, 0.0  ;;  %v10136_v46 = vadd.f32 %v10098_v27, %v9931_v15 }
 0x911   : > { %10468 = vst [vmem:[%s19725_s25 + $0xd8] sm:$0xff] %v10436_v0  ;;  %v10333_v35 = vadd.f32 %v10295_v51, %v10136_v46 }
 0x913   : > { %v10369_v44 = vmul.f32 %v19708_v37, %v10333_v35 }
 0x915   : > { %v10405_v20 = vadd.f32 %v19715_v62, %v10369_v44 }
 0x916   : > { %v10100_v33 = vpop.f32.mrf.mxu3 }
 0x917   : > { %v10437_v34 = vmax.f32 %v10405_v20, 0.0  ;;  %v10137_v26 = vadd.f32 %v10100_v33, %v9932_v30 }
 0x919   : > { %10469 = vst [vmem:[%s19725_s25 + $0xe0] sm:$0xff] %v10437_v34  ;;  %v10334_v4 = vadd.f32 %v10297_v14, %v10137_v26 }
 0x91b   : > { %v10370_v3 = vmul.f32 %v19708_v37, %v10334_v4 }
 0x91d   : > { %v10406_v31 = vadd.f32 %v19715_v62, %v10370_v3 }
 0x91e   : > { %v10103_v7 = vpop.f32.mrf.mxu3 }
 0x91f   : > { %v10438_v36 = vmax.f32 %v10406_v31, 0.0  ;;  %v10138_v54 = vadd.f32 %v10103_v7, %v9933_v57 }
 0x921   : > { %10470 = vst [vmem:[%s19725_s25 + $0xe8] sm:$0xff] %v10438_v36  ;;  %v10335_v39 = vadd.f32 %v10300_v8, %v10138_v54 }
 0x923   : > { %v10371_v29 = vmul.f32 %v19708_v37, %v10335_v39 }
 0x925   : > { %v10407_v41 = vadd.f32 %v19715_v62, %v10371_v29 }
 0x926   : > { %v10105_v23 = vpop.f32.mrf.mxu3 }
 0x927   : > { %v10439_v5 = vmax.f32 %v10407_v41, 0.0  ;;  %v10139_v1 = vadd.f32 %v10105_v23, %v9934_v32 }
 0x929   : > { %10471 = vst [vmem:[%s19725_s25 + $0xf0] sm:$0xff] %v10439_v5  ;;  %v10336_v28 = vadd.f32 %v10302_v58, %v10139_v1 }
 0x92b   : > { %v10372_v9 = vmul.f32 %v19708_v37, %v10336_v28 }
 0x92d   : > { %v10408_v42 = vadd.f32 %v19715_v62, %v10372_v9 }
 0x92f   : > { %v10440_v12 = vmax.f32 %v10408_v42, 0.0 }
 0x931   : > { %10472 = vst [vmem:[%s19725_s25 + $0xf8] sm:$0xff] %v10440_v12 }
 0x932   : > { %12424 = shalt.err (!%p12421_p3)
}
 0x933   : > { %s12461_s12 = smov 128   ;;  %s12462_s25 = smov 8  }
 0x934   : > { %12298 = dma.vmem_to_hbm [thread:$0]  (%p12556_p5), %s10487_s30, 4096, %s10489_s11, %s10474_s17, %s12461_s12, %s12461_s12, %s12462_s25  }
 0x935 PF: > { %p12304_p4 = scmp.ge.s32.totalorder %s12459_s16, 2  ;;  %s10503_s21 = sand.u32 1, %s12447_s13  }
 0x936   : > { %s10504_s26 = scalar_lea.sflag [#allocation3], %s10503_s21 }
 0x937   : > { %p12301_p7 = pnand %p12304_p4, %p12560_p6 }
 0x939   : > { %p12302_p8 = pneg %p12301_p7 }
 0x93b   : > { %12442 = dma.done.wait (%p12302_p8), %s10504_s26, 4096  }
 0x93c   : > { %12444 = vsyncadd (%p12302_p8), %s10504_s26, 4294963200  ;;  %p20_p9 = scmp.ge.s32.totalorder %s12543_s19, 4   ;;  %s21856_s13 = smov %s12451_s14 }
 0x93d   : > { %s21857_s14 = smov %s12455_s15  ;;  %s21858_s15 = smov %s12554_s22 }
 0x93e   : > { %s21859_s16 = smov %s12543_s19  ;;  %22 = sbr.rel (!%p20_p9) target bundleno = 3 (0x3), region = 119 }
 0x943   :  { %10510 = vsyncpa [#allocation3], 1 }
 0x944   :  { %10512 = vsyncpa [#allocation3 + $0x1], 1 }

</bundles_post_ra>
